<compile_context>
chip_gen: v5e
topology: v5e:2x2
jax: 0.10.0
libtpu: 0.0.40
codegen_flags: <defaults>
</compile_context>

<pallas_src>
import functools
import math

import jax
import jax.numpy as jnp
from jax import lax
from jax.experimental import pallas as pl
from jax.experimental.pallas import tpu as pltpu

LN_EPS = 1e-5


# ----------------------------------------------------------------------------
# In-kernel helpers (pure 2-D math, f32)
# ----------------------------------------------------------------------------
def _layer_norm(x, w, b):
    mu = jnp.mean(x, axis=-1, keepdims=True)
    var = jnp.mean(jnp.square(x - mu), axis=-1, keepdims=True)
    return (x - mu) * lax.rsqrt(var + LN_EPS) * w + b


# ----------------------------------------------------------------------------
# Fused whole-model kernel: single program, batch folded into rows (BS, D)
# ----------------------------------------------------------------------------
def _fused_kernel(x_ref, in_w_ref, in_b_ref, pos_ref,
                  wqkv_ref, bqkv_ref, wo_ref, bo_ref,
                  ln1w_ref, ln1b_ref,
                  w1_ref, b1_ref, w2_ref, b2_ref,
                  ln2w_ref, ln2b_ref,
                  cls_w_ref, cls_b_ref,
                  o_ref, *, batch, seq_len, nhead, num_layers):
    B, S = batch, seq_len
    BS = B * S
    D = in_w_ref.shape[1]
    hd = D // nhead
    scale = 1.0 / math.sqrt(hd)

    x = x_ref[...].astype(jnp.float32)                        # (BS, IN)

    # ---- input projection + positional embedding (tiled over batch rows) ----
    pos = pos_ref[...]                                        # (S, D)
    pos_full = jnp.concatenate([pos] * B, axis=0)             # (BS, D)
    h = (jnp.dot(x, in_w_ref[...], preferred_element_type=jnp.float32)
         + in_b_ref[...] + pos_full)                          # (BS, D)

    for l in range(num_layers):                               # static unroll
        # ---- fused QKV projection (weights pre-transposed: (D, 3D)) ----
        qkv = (jnp.dot(h, wqkv_ref[l], preferred_element_type=jnp.float32)
               + bqkv_ref[l])                                 # (BS, 3D)

        # ---- attention; out-projection folded into per-head accumulation ----
        attn = jnp.zeros((BS, D), jnp.float32)
        for hh in range(nhead):                               # static unroll
            oq = hh * hd
            ok = D + hh * hd
            ov = 2 * D + hh * hd
            q_h = qkv[:, oq:oq + hd]                          # (BS, hd)
            k_h = qkv[:, ok:ok + hd]
            v_h = qkv[:, ov:ov + hd]
            ctx_rows = []
            for b in range(B):                                # static unroll
                r0 = b * S                                    # row slices only
                qb = q_h[r0:r0 + S]
                kb = k_h[r0:r0 + S]
                vb = v_h[r0:r0 + S]
                s = lax.dot_general(
                    qb, kb, (((1,), (1,)), ((), ())),
                    preferred_element_type=jnp.float32) * scale   # (S, S)
                s = s - jnp.max(s, axis=-1, keepdims=True)
                p = jnp.exp(s)
                p = p * pl.reciprocal(jnp.sum(p, axis=-1, keepdims=True),
                                      approx=True)
                ctx_rows.append(jnp.dot(p, vb,
                                        preferred_element_type=jnp.float32))
            ctx_h = jnp.concatenate(ctx_rows, axis=0)         # (BS, hd) rows
            attn = attn + jnp.dot(ctx_h, wo_ref[l, hh],
                                  preferred_element_type=jnp.float32)
        attn = attn + bo_ref[l]

        # ---- residual + LayerNorm1 (post-norm) ----
        x1 = _layer_norm(h + attn, ln1w_ref[l], ln1b_ref[l])

        # ---- FFN, un-chunked ----
        hmid = jnp.maximum(
            jnp.dot(x1, w1_ref[l], preferred_element_type=jnp.float32)
            + b1_ref[l], 0.0)                                 # (BS, FF)
        ff = (jnp.dot(hmid, w2_ref[l], preferred_element_type=jnp.float32)
              + b2_ref[l])                                    # (BS, D)

        # ---- residual + LayerNorm2 ----
        h = _layer_norm(x1 + ff, ln2w_ref[l], ln2b_ref[l])

    # ---- classifier on the last time step of each sequence ----
    last = jnp.concatenate([h[(b + 1) * S - 1:(b + 1) * S, :]
                            for b in range(B)], axis=0)       # (B, D)
    out = (jnp.dot(last, cls_w_ref[...], preferred_element_type=jnp.float32)
           + cls_b_ref[...])                                  # (B, C)
    o_ref[...] = out


# ----------------------------------------------------------------------------
# Wrapper: one pallas_call for the whole forward pass
# ----------------------------------------------------------------------------
def forward(params, x, *, nhead, num_layers):
    B, S, IN = x.shape
    D = params['in_w'].shape[1]
    C = params['cls_w'].shape[1]
    dim_ff = params['w1'].shape[2]
    assert D % nhead == 0

    kern = functools.partial(_fused_kernel, batch=B, seq_len=S,
                             nhead=nhead, num_layers=num_layers)

    args = (x.reshape(B * S, IN),
            params['in_w'], params['in_b'], params['pos'],
            params['wqkv'], params['bqkv'], params['wo'], params['bo'],
            params['ln1w'], params['ln1b'],
            params['w1'], params['b1'], params['w2'], params['b2'],
            params['ln2w'], params['ln2b'],
            params['cls_w'], params['cls_b'])

    def full_spec(a):
        nd = a.ndim
        return pl.BlockSpec(a.shape, lambda i, _nd=nd: (0,) * _nd)

    in_specs = [full_spec(a) for a in args]

    # advisory cost estimate (attention = scores + context = 4*S*S*D flops)
    macs = B * (S * IN * D
                + num_layers * (S * D * 3 * D          # fused QKV
                                + 2 * S * S * D        # scores + context
                                + S * D * D            # out-proj
                                + 2 * S * D * dim_ff)  # FFN
                + D * C)
    flops = 2 * macs
    transc = B * num_layers * (nhead * S * S + nhead * S + 2 * S)
    bytes_acc = 4 * (sum(int(a.size) for a in args) + B * C)

    out = pl.pallas_call(
        kern,
        out_shape=jax.ShapeDtypeStruct((B, C), jnp.float32),
        grid=(1,),
        in_specs=in_specs,
        out_specs=pl.BlockSpec((B, C), lambda i: (0, 0)),
        compiler_params=pltpu.CompilerParams(
            dimension_semantics=("arbitrary",)),
        cost_estimate=pl.CostEstimate(flops=int(flops),
                                      transcendentals=int(transc),
                                      bytes_accessed=int(bytes_acc)),
    )(*args)
    return out


# ----------------------------------------------------------------------------
# Parameter construction (deterministic synthetic init; PyTorch semantics,
# stored pre-transposed to (in_features, out_features) for the kernel)
# ----------------------------------------------------------------------------
def init_params(key, input_dim, seq_len, d_model, num_classes,
                nhead, num_layers, dim_ff):
    hd = d_model // nhead

    def lin_t(k, in_f, out_f):
        # PyTorch nn.Linear init: weight (out,in), bias (out,); return W.T
        k1, k2 = jax.random.split(k)
        bound = 1.0 / math.sqrt(in_f)
        w = jax.random.uniform(k1, (out_f, in_f), jnp.float32, -bound, bound)
        b = jax.random.uniform(k2, (out_f,), jnp.float32, -bound, bound)
        return w.T, b.reshape(1, out_f)

    keys = jax.random.split(key, 3 + num_layers)
    params = {}
    params['in_w'], params['in_b'] = lin_t(keys[0], input_dim, d_model)
    params['pos'] = jax.random.normal(keys[1], (seq_len, d_model), jnp.float32)
    params['cls_w'], params['cls_b'] = lin_t(keys[2], d_model, num_classes)

    wqkv, bqkv, wo, bo, w1, b1, w2, b2 = ([] for _ in range(8))
    bound = 1.0 / math.sqrt(d_model)
    for l in range(num_layers):
        lk = jax.random.split(keys[3 + l], 5)
        # PyTorch MHA in_proj layout: rows [Wq; Wk; Wv] of shape (3D, D);
        # pre-transpose -> (D, 3D) so qkv = h @ wqkv gives [q | k | v] lanes.
        w_in_proj = jax.random.uniform(lk[0], (3 * d_model, d_model),
                                       jnp.float32, -bound, bound)
        b_in_proj = jax.random.uniform(lk[1], (3 * d_model,),
                                       jnp.float32, -bound, bound)
        wqkv.append(w_in_proj.T)
        bqkv.append(b_in_proj.reshape(1, 3 * d_model))
        _wo, _bo = lin_t(lk[2], d_model, d_model)   # (D, D) pre-transposed
        wo.append(_wo.reshape(nhead, hd, d_model))  # per-head row blocks
        bo.append(_bo)
        _w1, _b1 = lin_t(lk[3], d_model, dim_ff)
        _w2, _b2 = lin_t(lk[4], dim_ff, d_model)
        w1.append(_w1); b1.append(_b1)
        w2.append(_w2); b2.append(_b2)

    params.update(
        wqkv=jnp.stack(wqkv), bqkv=jnp.stack(bqkv),
        wo=jnp.stack(wo), bo=jnp.stack(bo),
        w1=jnp.stack(w1), b1=jnp.stack(b1),
        w2=jnp.stack(w2), b2=jnp.stack(b2),
        ln1w=jnp.ones((num_layers, 1, d_model), jnp.float32),
        ln1b=jnp.zeros((num_layers, 1, d_model), jnp.float32),
        ln2w=jnp.ones((num_layers, 1, d_model), jnp.float32),
        ln2b=jnp.zeros((num_layers, 1, d_model), jnp.float32),
    )
    return params


# ----------------------------------------------------------------------------
if __name__ == "__main__":
    INPUT_DIM, SEQ_LEN, D_MODEL, NUM_CLASSES = 8, 16, 32, 3
    NHEAD, NUM_LAYERS = 4, 2
    DIM_FF = 2048  # nn.TransformerEncoderLayer default dim_feedforward

    key = jax.random.PRNGKey(0)
    pkey, xkey = jax.random.split(key)
    params = init_params(pkey, INPUT_DIM, SEQ_LEN, D_MODEL, NUM_CLASSES,
                         NHEAD, NUM_LAYERS, DIM_FF)
    x = jax.random.normal(xkey, (2, SEQ_LEN, INPUT_DIM), jnp.float32)

    fwd = jax.jit(functools.partial(forward, nhead=NHEAD,
                                    num_layers=NUM_LAYERS))
    out = fwd(params, x)
    jax.block_until_ready(out)
    assert out.shape == (2, NUM_CLASSES), out.shape
    assert bool(jnp.all(jnp.isfinite(out)))
    print("KERNEL_OK")
</pallas_src>

<mosaic_0001>
module attributes {stable_mosaic.version = 11 : i64} {
  func.func @_fused_kernel(%arg0: i32, %arg1: memref<32x8xf32, #tpu.memory_space<vmem>>, %arg2: memref<8x32xf32, #tpu.memory_space<vmem>>, %arg3: memref<1x32xf32, #tpu.memory_space<vmem>>, %arg4: memref<16x32xf32, #tpu.memory_space<vmem>>, %arg5: memref<2x32x96xf32, #tpu.memory_space<vmem>>, %arg6: memref<2x1x96xf32, #tpu.memory_space<vmem>>, %arg7: memref<2x4x8x32xf32, #tpu.memory_space<vmem>>, %arg8: memref<2x1x32xf32, #tpu.memory_space<vmem>>, %arg9: memref<2x1x32xf32, #tpu.memory_space<vmem>>, %arg10: memref<2x1x32xf32, #tpu.memory_space<vmem>>, %arg11: memref<2x32x2048xf32, #tpu.memory_space<vmem>>, %arg12: memref<2x1x2048xf32, #tpu.memory_space<vmem>>, %arg13: memref<2x2048x32xf32, #tpu.memory_space<vmem>>, %arg14: memref<2x1x32xf32, #tpu.memory_space<vmem>>, %arg15: memref<2x1x32xf32, #tpu.memory_space<vmem>>, %arg16: memref<2x1x32xf32, #tpu.memory_space<vmem>>, %arg17: memref<32x3xf32, #tpu.memory_space<vmem>>, %arg18: memref<1x3xf32, #tpu.memory_space<vmem>>, %arg19: memref<2x3xf32, #tpu.memory_space<vmem>>) attributes {dimension_semantics = [#tpu.dimension_semantics<arbitrary>], iteration_bounds = array<i64: 1>, scalar_prefetch = 0 : i64, scratch_operands = 0 : i64, tpu.core_type = #tpu.core_type<tc>, window_params = [{pipeline_mode = #tpu.pipeline_mode<synchronous>, transform_indices = @transform_0, window_bounds = array<i64: 32, 8>}, {pipeline_mode = #tpu.pipeline_mode<synchronous>, transform_indices = @transform_1, window_bounds = array<i64: 8, 32>}, {pipeline_mode = #tpu.pipeline_mode<synchronous>, transform_indices = @transform_2, window_bounds = array<i64: 1, 32>}, {pipeline_mode = #tpu.pipeline_mode<synchronous>, transform_indices = @transform_3, window_bounds = array<i64: 16, 32>}, {pipeline_mode = #tpu.pipeline_mode<synchronous>, transform_indices = @transform_4, window_bounds = array<i64: 2, 32, 96>}, {pipeline_mode = #tpu.pipeline_mode<synchronous>, transform_indices = @transform_5, window_bounds = array<i64: 2, 1, 96>}, {pipeline_mode = #tpu.pipeline_mode<synchronous>, transform_indices = @transform_6, window_bounds = array<i64: 2, 4, 8, 32>}, {pipeline_mode = #tpu.pipeline_mode<synchronous>, transform_indices = @transform_7, window_bounds = array<i64: 2, 1, 32>}, {pipeline_mode = #tpu.pipeline_mode<synchronous>, transform_indices = @transform_8, window_bounds = array<i64: 2, 1, 32>}, {pipeline_mode = #tpu.pipeline_mode<synchronous>, transform_indices = @transform_9, window_bounds = array<i64: 2, 1, 32>}, {pipeline_mode = #tpu.pipeline_mode<synchronous>, transform_indices = @transform_10, window_bounds = array<i64: 2, 32, 2048>}, {pipeline_mode = #tpu.pipeline_mode<synchronous>, transform_indices = @transform_11, window_bounds = array<i64: 2, 1, 2048>}, {pipeline_mode = #tpu.pipeline_mode<synchronous>, transform_indices = @transform_12, window_bounds = array<i64: 2, 2048, 32>}, {pipeline_mode = #tpu.pipeline_mode<synchronous>, transform_indices = @transform_13, window_bounds = array<i64: 2, 1, 32>}, {pipeline_mode = #tpu.pipeline_mode<synchronous>, transform_indices = @transform_14, window_bounds = array<i64: 2, 1, 32>}, {pipeline_mode = #tpu.pipeline_mode<synchronous>, transform_indices = @transform_15, window_bounds = array<i64: 2, 1, 32>}, {pipeline_mode = #tpu.pipeline_mode<synchronous>, transform_indices = @transform_16, window_bounds = array<i64: 32, 3>}, {pipeline_mode = #tpu.pipeline_mode<synchronous>, transform_indices = @transform_17, window_bounds = array<i64: 1, 3>}, {pipeline_mode = #tpu.pipeline_mode<synchronous>, transform_indices = @transform_18, window_bounds = array<i64: 2, 3>}]} {
    %c0 = arith.constant 0 : index
    %c0_0 = arith.constant 0 : index
    %0 = vector.load %arg1[%c0, %c0_0] : memref<32x8xf32, #tpu.memory_space<vmem>>, vector<32x8xf32>
    %c0_1 = arith.constant 0 : index
    %c0_2 = arith.constant 0 : index
    %1 = vector.load %arg4[%c0_1, %c0_2] : memref<16x32xf32, #tpu.memory_space<vmem>>, vector<16x32xf32>
    %2 = tpu.concatenate %1, %1 in 0 : vector<16x32xf32>, vector<16x32xf32> -> vector<32x32xf32>
    %c0_3 = arith.constant 0 : index
    %c0_4 = arith.constant 0 : index
    %3 = vector.load %arg2[%c0_3, %c0_4] : memref<8x32xf32, #tpu.memory_space<vmem>>, vector<8x32xf32>
    %cst = arith.constant dense<0.000000e+00> : vector<32x32xf32>
    %4 = tpu.matmul %0, %3, %cst {dimension_numbers = #tpu.dot_dimension_numbers<[1], [0], [0], [1], [0, 0, 1, 1], [], []>} : vector<32x8xf32>, vector<8x32xf32>, vector<32x32xf32> -> vector<32x32xf32>
    %c0_5 = arith.constant 0 : index
    %c0_6 = arith.constant 0 : index
    %5 = vector.load %arg3[%c0_5, %c0_6] : memref<1x32xf32, #tpu.memory_space<vmem>>, vector<1x32xf32>
    %6 = vector.broadcast %5 : vector<1x32xf32> to vector<32x32xf32>
    %7 = arith.addf %4, %6 : vector<32x32xf32>
    %8 = arith.addf %7, %2 : vector<32x32xf32>
    %c0_7 = arith.constant 0 : index
    %c0_8 = arith.constant 0 : index
    %c0_9 = arith.constant 0 : index
    %9 = vector.load %arg5[%c0_7, %c0_8, %c0_9] : memref<2x32x96xf32, #tpu.memory_space<vmem>>, vector<1x32x96xf32>
    %10 = vector.shape_cast %9 : vector<1x32x96xf32> to vector<32x96xf32>
    %cst_10 = arith.constant dense<0.000000e+00> : vector<32x96xf32>
    %11 = tpu.matmul %8, %10, %cst_10 {dimension_numbers = #tpu.dot_dimension_numbers<[1], [0], [0], [1], [0, 0, 1, 1], [], []>} : vector<32x32xf32>, vector<32x96xf32>, vector<32x96xf32> -> vector<32x96xf32>
    %c0_11 = arith.constant 0 : index
    %c0_12 = arith.constant 0 : index
    %c0_13 = arith.constant 0 : index
    %12 = vector.load %arg6[%c0_11, %c0_12, %c0_13] : memref<2x1x96xf32, #tpu.memory_space<vmem>>, vector<1x1x96xf32>
    %13 = vector.shape_cast %12 : vector<1x1x96xf32> to vector<1x96xf32>
    %14 = vector.broadcast %13 : vector<1x96xf32> to vector<32x96xf32>
    %15 = arith.addf %11, %14 : vector<32x96xf32>
    %cst_14 = arith.constant 0.000000e+00 : f32
    %16 = vector.broadcast %cst_14 : f32 to vector<32x32xf32>
    %17 = vector.extract_strided_slice %15 {offsets = [0, 0], sizes = [32, 8], strides = [1, 1]} : vector<32x96xf32> to vector<32x8xf32>
    %18 = vector.extract_strided_slice %15 {offsets = [0, 32], sizes = [32, 8], strides = [1, 1]} : vector<32x96xf32> to vector<32x8xf32>
    %19 = vector.extract_strided_slice %15 {offsets = [0, 64], sizes = [32, 8], strides = [1, 1]} : vector<32x96xf32> to vector<32x8xf32>
    %20 = vector.extract_strided_slice %17 {offsets = [0, 0], sizes = [16, 8], strides = [1, 1]} : vector<32x8xf32> to vector<16x8xf32>
    %21 = vector.extract_strided_slice %18 {offsets = [0, 0], sizes = [16, 8], strides = [1, 1]} : vector<32x8xf32> to vector<16x8xf32>
    %22 = vector.extract_strided_slice %19 {offsets = [0, 0], sizes = [16, 8], strides = [1, 1]} : vector<32x8xf32> to vector<16x8xf32>
    %cst_15 = arith.constant dense<0.000000e+00> : vector<16x16xf32>
    %23 = tpu.matmul %20, %21, %cst_15 {dimension_numbers = #tpu.dot_dimension_numbers<[1], [1], [0], [0], [0, 0, 1, 0], [], []>} : vector<16x8xf32>, vector<16x8xf32>, vector<16x16xf32> -> vector<16x16xf32>
    %cst_16 = arith.constant 0.353553385 : f32
    %24 = vector.broadcast %cst_16 : f32 to vector<16x16xf32>
    %25 = arith.mulf %23, %24 : vector<16x16xf32>
    %cst_17 = arith.constant dense<0xFF800000> : vector<16xf32>
    %26 = vector.multi_reduction <maximumf>, %25, %cst_17 [1] : vector<16x16xf32> to vector<16xf32>
    %27 = vector.shape_cast %26 : vector<16xf32> to vector<16x1xf32>
    %28 = vector.broadcast %27 : vector<16x1xf32> to vector<16x16xf32>
    %29 = arith.subf %25, %28 : vector<16x16xf32>
    %30 = math.exp %29 : vector<16x16xf32>
    %cst_18 = arith.constant dense<0.000000e+00> : vector<16xf32>
    %31 = vector.multi_reduction <add>, %30, %cst_18 [1] : vector<16x16xf32> to vector<16xf32>
    %32 = vector.shape_cast %31 : vector<16xf32> to vector<16x1xf32>
    %33 = tpu.reciprocal %32 {approx = true} : vector<16x1xf32> -> vector<16x1xf32>
    %34 = vector.broadcast %33 : vector<16x1xf32> to vector<16x16xf32>
    %35 = arith.mulf %30, %34 : vector<16x16xf32>
    %cst_19 = arith.constant dense<0.000000e+00> : vector<16x8xf32>
    %36 = tpu.matmul %35, %22, %cst_19 {dimension_numbers = #tpu.dot_dimension_numbers<[1], [0], [0], [1], [0, 0, 1, 1], [], []>} : vector<16x16xf32>, vector<16x8xf32>, vector<16x8xf32> -> vector<16x8xf32>
    %37 = vector.extract_strided_slice %17 {offsets = [16, 0], sizes = [16, 8], strides = [1, 1]} : vector<32x8xf32> to vector<16x8xf32>
    %38 = vector.extract_strided_slice %18 {offsets = [16, 0], sizes = [16, 8], strides = [1, 1]} : vector<32x8xf32> to vector<16x8xf32>
    %39 = vector.extract_strided_slice %19 {offsets = [16, 0], sizes = [16, 8], strides = [1, 1]} : vector<32x8xf32> to vector<16x8xf32>
    %cst_20 = arith.constant dense<0.000000e+00> : vector<16x16xf32>
    %40 = tpu.matmul %37, %38, %cst_20 {dimension_numbers = #tpu.dot_dimension_numbers<[1], [1], [0], [0], [0, 0, 1, 0], [], []>} : vector<16x8xf32>, vector<16x8xf32>, vector<16x16xf32> -> vector<16x16xf32>
    %cst_21 = arith.constant 0.353553385 : f32
    %41 = vector.broadcast %cst_21 : f32 to vector<16x16xf32>
    %42 = arith.mulf %40, %41 : vector<16x16xf32>
    %cst_22 = arith.constant dense<0xFF800000> : vector<16xf32>
    %43 = vector.multi_reduction <maximumf>, %42, %cst_22 [1] : vector<16x16xf32> to vector<16xf32>
    %44 = vector.shape_cast %43 : vector<16xf32> to vector<16x1xf32>
    %45 = vector.broadcast %44 : vector<16x1xf32> to vector<16x16xf32>
    %46 = arith.subf %42, %45 : vector<16x16xf32>
    %47 = math.exp %46 : vector<16x16xf32>
    %cst_23 = arith.constant dense<0.000000e+00> : vector<16xf32>
    %48 = vector.multi_reduction <add>, %47, %cst_23 [1] : vector<16x16xf32> to vector<16xf32>
    %49 = vector.shape_cast %48 : vector<16xf32> to vector<16x1xf32>
    %50 = tpu.reciprocal %49 {approx = true} : vector<16x1xf32> -> vector<16x1xf32>
    %51 = vector.broadcast %50 : vector<16x1xf32> to vector<16x16xf32>
    %52 = arith.mulf %47, %51 : vector<16x16xf32>
    %cst_24 = arith.constant dense<0.000000e+00> : vector<16x8xf32>
    %53 = tpu.matmul %52, %39, %cst_24 {dimension_numbers = #tpu.dot_dimension_numbers<[1], [0], [0], [1], [0, 0, 1, 1], [], []>} : vector<16x16xf32>, vector<16x8xf32>, vector<16x8xf32> -> vector<16x8xf32>
    %54 = tpu.concatenate %36, %53 in 0 : vector<16x8xf32>, vector<16x8xf32> -> vector<32x8xf32>
    %c0_25 = arith.constant 0 : index
    %c0_26 = arith.constant 0 : index
    %c0_27 = arith.constant 0 : index
    %c0_28 = arith.constant 0 : index
    %55 = vector.load %arg7[%c0_25, %c0_26, %c0_27, %c0_28] : memref<2x4x8x32xf32, #tpu.memory_space<vmem>>, vector<1x1x8x32xf32>
    %56 = vector.shape_cast %55 : vector<1x1x8x32xf32> to vector<8x32xf32>
    %cst_29 = arith.constant dense<0.000000e+00> : vector<32x32xf32>
    %57 = tpu.matmul %54, %56, %cst_29 {dimension_numbers = #tpu.dot_dimension_numbers<[1], [0], [0], [1], [0, 0, 1, 1], [], []>} : vector<32x8xf32>, vector<8x32xf32>, vector<32x32xf32> -> vector<32x32xf32>
    %58 = arith.addf %16, %57 : vector<32x32xf32>
    %59 = vector.extract_strided_slice %15 {offsets = [0, 8], sizes = [32, 8], strides = [1, 1]} : vector<32x96xf32> to vector<32x8xf32>
    %60 = vector.extract_strided_slice %15 {offsets = [0, 40], sizes = [32, 8], strides = [1, 1]} : vector<32x96xf32> to vector<32x8xf32>
    %61 = vector.extract_strided_slice %15 {offsets = [0, 72], sizes = [32, 8], strides = [1, 1]} : vector<32x96xf32> to vector<32x8xf32>
    %62 = vector.extract_strided_slice %59 {offsets = [0, 0], sizes = [16, 8], strides = [1, 1]} : vector<32x8xf32> to vector<16x8xf32>
    %63 = vector.extract_strided_slice %60 {offsets = [0, 0], sizes = [16, 8], strides = [1, 1]} : vector<32x8xf32> to vector<16x8xf32>
    %64 = vector.extract_strided_slice %61 {offsets = [0, 0], sizes = [16, 8], strides = [1, 1]} : vector<32x8xf32> to vector<16x8xf32>
    %cst_30 = arith.constant dense<0.000000e+00> : vector<16x16xf32>
    %65 = tpu.matmul %62, %63, %cst_30 {dimension_numbers = #tpu.dot_dimension_numbers<[1], [1], [0], [0], [0, 0, 1, 0], [], []>} : vector<16x8xf32>, vector<16x8xf32>, vector<16x16xf32> -> vector<16x16xf32>
    %cst_31 = arith.constant 0.353553385 : f32
    %66 = vector.broadcast %cst_31 : f32 to vector<16x16xf32>
    %67 = arith.mulf %65, %66 : vector<16x16xf32>
    %cst_32 = arith.constant dense<0xFF800000> : vector<16xf32>
    %68 = vector.multi_reduction <maximumf>, %67, %cst_32 [1] : vector<16x16xf32> to vector<16xf32>
    %69 = vector.shape_cast %68 : vector<16xf32> to vector<16x1xf32>
    %70 = vector.broadcast %69 : vector<16x1xf32> to vector<16x16xf32>
    %71 = arith.subf %67, %70 : vector<16x16xf32>
    %72 = math.exp %71 : vector<16x16xf32>
    %cst_33 = arith.constant dense<0.000000e+00> : vector<16xf32>
    %73 = vector.multi_reduction <add>, %72, %cst_33 [1] : vector<16x16xf32> to vector<16xf32>
    %74 = vector.shape_cast %73 : vector<16xf32> to vector<16x1xf32>
    %75 = tpu.reciprocal %74 {approx = true} : vector<16x1xf32> -> vector<16x1xf32>
    %76 = vector.broadcast %75 : vector<16x1xf32> to vector<16x16xf32>
    %77 = arith.mulf %72, %76 : vector<16x16xf32>
    %cst_34 = arith.constant dense<0.000000e+00> : vector<16x8xf32>
    %78 = tpu.matmul %77, %64, %cst_34 {dimension_numbers = #tpu.dot_dimension_numbers<[1], [0], [0], [1], [0, 0, 1, 1], [], []>} : vector<16x16xf32>, vector<16x8xf32>, vector<16x8xf32> -> vector<16x8xf32>
    %79 = vector.extract_strided_slice %59 {offsets = [16, 0], sizes = [16, 8], strides = [1, 1]} : vector<32x8xf32> to vector<16x8xf32>
    %80 = vector.extract_strided_slice %60 {offsets = [16, 0], sizes = [16, 8], strides = [1, 1]} : vector<32x8xf32> to vector<16x8xf32>
    %81 = vector.extract_strided_slice %61 {offsets = [16, 0], sizes = [16, 8], strides = [1, 1]} : vector<32x8xf32> to vector<16x8xf32>
    %cst_35 = arith.constant dense<0.000000e+00> : vector<16x16xf32>
    %82 = tpu.matmul %79, %80, %cst_35 {dimension_numbers = #tpu.dot_dimension_numbers<[1], [1], [0], [0], [0, 0, 1, 0], [], []>} : vector<16x8xf32>, vector<16x8xf32>, vector<16x16xf32> -> vector<16x16xf32>
    %cst_36 = arith.constant 0.353553385 : f32
    %83 = vector.broadcast %cst_36 : f32 to vector<16x16xf32>
    %84 = arith.mulf %82, %83 : vector<16x16xf32>
    %cst_37 = arith.constant dense<0xFF800000> : vector<16xf32>
    %85 = vector.multi_reduction <maximumf>, %84, %cst_37 [1] : vector<16x16xf32> to vector<16xf32>
    %86 = vector.shape_cast %85 : vector<16xf32> to vector<16x1xf32>
    %87 = vector.broadcast %86 : vector<16x1xf32> to vector<16x16xf32>
    %88 = arith.subf %84, %87 : vector<16x16xf32>
    %89 = math.exp %88 : vector<16x16xf32>
    %cst_38 = arith.constant dense<0.000000e+00> : vector<16xf32>
    %90 = vector.multi_reduction <add>, %89, %cst_38 [1] : vector<16x16xf32> to vector<16xf32>
    %91 = vector.shape_cast %90 : vector<16xf32> to vector<16x1xf32>
    %92 = tpu.reciprocal %91 {approx = true} : vector<16x1xf32> -> vector<16x1xf32>
    %93 = vector.broadcast %92 : vector<16x1xf32> to vector<16x16xf32>
    %94 = arith.mulf %89, %93 : vector<16x16xf32>
    %cst_39 = arith.constant dense<0.000000e+00> : vector<16x8xf32>
    %95 = tpu.matmul %94, %81, %cst_39 {dimension_numbers = #tpu.dot_dimension_numbers<[1], [0], [0], [1], [0, 0, 1, 1], [], []>} : vector<16x16xf32>, vector<16x8xf32>, vector<16x8xf32> -> vector<16x8xf32>
    %96 = tpu.concatenate %78, %95 in 0 : vector<16x8xf32>, vector<16x8xf32> -> vector<32x8xf32>
    %c0_40 = arith.constant 0 : index
    %c1 = arith.constant 1 : index
    %c0_41 = arith.constant 0 : index
    %c0_42 = arith.constant 0 : index
    %97 = vector.load %arg7[%c0_40, %c1, %c0_41, %c0_42] : memref<2x4x8x32xf32, #tpu.memory_space<vmem>>, vector<1x1x8x32xf32>
    %98 = vector.shape_cast %97 : vector<1x1x8x32xf32> to vector<8x32xf32>
    %cst_43 = arith.constant dense<0.000000e+00> : vector<32x32xf32>
    %99 = tpu.matmul %96, %98, %cst_43 {dimension_numbers = #tpu.dot_dimension_numbers<[1], [0], [0], [1], [0, 0, 1, 1], [], []>} : vector<32x8xf32>, vector<8x32xf32>, vector<32x32xf32> -> vector<32x32xf32>
    %100 = arith.addf %58, %99 : vector<32x32xf32>
    %101 = vector.extract_strided_slice %15 {offsets = [0, 16], sizes = [32, 8], strides = [1, 1]} : vector<32x96xf32> to vector<32x8xf32>
    %102 = vector.extract_strided_slice %15 {offsets = [0, 48], sizes = [32, 8], strides = [1, 1]} : vector<32x96xf32> to vector<32x8xf32>
    %103 = vector.extract_strided_slice %15 {offsets = [0, 80], sizes = [32, 8], strides = [1, 1]} : vector<32x96xf32> to vector<32x8xf32>
    %104 = vector.extract_strided_slice %101 {offsets = [0, 0], sizes = [16, 8], strides = [1, 1]} : vector<32x8xf32> to vector<16x8xf32>
    %105 = vector.extract_strided_slice %102 {offsets = [0, 0], sizes = [16, 8], strides = [1, 1]} : vector<32x8xf32> to vector<16x8xf32>
    %106 = vector.extract_strided_slice %103 {offsets = [0, 0], sizes = [16, 8], strides = [1, 1]} : vector<32x8xf32> to vector<16x8xf32>
    %cst_44 = arith.constant dense<0.000000e+00> : vector<16x16xf32>
    %107 = tpu.matmul %104, %105, %cst_44 {dimension_numbers = #tpu.dot_dimension_numbers<[1], [1], [0], [0], [0, 0, 1, 0], [], []>} : vector<16x8xf32>, vector<16x8xf32>, vector<16x16xf32> -> vector<16x16xf32>
    %cst_45 = arith.constant 0.353553385 : f32
    %108 = vector.broadcast %cst_45 : f32 to vector<16x16xf32>
    %109 = arith.mulf %107, %108 : vector<16x16xf32>
    %cst_46 = arith.constant dense<0xFF800000> : vector<16xf32>
    %110 = vector.multi_reduction <maximumf>, %109, %cst_46 [1] : vector<16x16xf32> to vector<16xf32>
    %111 = vector.shape_cast %110 : vector<16xf32> to vector<16x1xf32>
    %112 = vector.broadcast %111 : vector<16x1xf32> to vector<16x16xf32>
    %113 = arith.subf %109, %112 : vector<16x16xf32>
    %114 = math.exp %113 : vector<16x16xf32>
    %cst_47 = arith.constant dense<0.000000e+00> : vector<16xf32>
    %115 = vector.multi_reduction <add>, %114, %cst_47 [1] : vector<16x16xf32> to vector<16xf32>
    %116 = vector.shape_cast %115 : vector<16xf32> to vector<16x1xf32>
    %117 = tpu.reciprocal %116 {approx = true} : vector<16x1xf32> -> vector<16x1xf32>
    %118 = vector.broadcast %117 : vector<16x1xf32> to vector<16x16xf32>
    %119 = arith.mulf %114, %118 : vector<16x16xf32>
    %cst_48 = arith.constant dense<0.000000e+00> : vector<16x8xf32>
    %120 = tpu.matmul %119, %106, %cst_48 {dimension_numbers = #tpu.dot_dimension_numbers<[1], [0], [0], [1], [0, 0, 1, 1], [], []>} : vector<16x16xf32>, vector<16x8xf32>, vector<16x8xf32> -> vector<16x8xf32>
    %121 = vector.extract_strided_slice %101 {offsets = [16, 0], sizes = [16, 8], strides = [1, 1]} : vector<32x8xf32> to vector<16x8xf32>
    %122 = vector.extract_strided_slice %102 {offsets = [16, 0], sizes = [16, 8], strides = [1, 1]} : vector<32x8xf32> to vector<16x8xf32>
    %123 = vector.extract_strided_slice %103 {offsets = [16, 0], sizes = [16, 8], strides = [1, 1]} : vector<32x8xf32> to vector<16x8xf32>
    %cst_49 = arith.constant dense<0.000000e+00> : vector<16x16xf32>
    %124 = tpu.matmul %121, %122, %cst_49 {dimension_numbers = #tpu.dot_dimension_numbers<[1], [1], [0], [0], [0, 0, 1, 0], [], []>} : vector<16x8xf32>, vector<16x8xf32>, vector<16x16xf32> -> vector<16x16xf32>
    %cst_50 = arith.constant 0.353553385 : f32
    %125 = vector.broadcast %cst_50 : f32 to vector<16x16xf32>
    %126 = arith.mulf %124, %125 : vector<16x16xf32>
    %cst_51 = arith.constant dense<0xFF800000> : vector<16xf32>
    %127 = vector.multi_reduction <maximumf>, %126, %cst_51 [1] : vector<16x16xf32> to vector<16xf32>
    %128 = vector.shape_cast %127 : vector<16xf32> to vector<16x1xf32>
    %129 = vector.broadcast %128 : vector<16x1xf32> to vector<16x16xf32>
    %130 = arith.subf %126, %129 : vector<16x16xf32>
    %131 = math.exp %130 : vector<16x16xf32>
    %cst_52 = arith.constant dense<0.000000e+00> : vector<16xf32>
    %132 = vector.multi_reduction <add>, %131, %cst_52 [1] : vector<16x16xf32> to vector<16xf32>
    %133 = vector.shape_cast %132 : vector<16xf32> to vector<16x1xf32>
    %134 = tpu.reciprocal %133 {approx = true} : vector<16x1xf32> -> vector<16x1xf32>
    %135 = vector.broadcast %134 : vector<16x1xf32> to vector<16x16xf32>
    %136 = arith.mulf %131, %135 : vector<16x16xf32>
    %cst_53 = arith.constant dense<0.000000e+00> : vector<16x8xf32>
    %137 = tpu.matmul %136, %123, %cst_53 {dimension_numbers = #tpu.dot_dimension_numbers<[1], [0], [0], [1], [0, 0, 1, 1], [], []>} : vector<16x16xf32>, vector<16x8xf32>, vector<16x8xf32> -> vector<16x8xf32>
    %138 = tpu.concatenate %120, %137 in 0 : vector<16x8xf32>, vector<16x8xf32> -> vector<32x8xf32>
    %c0_54 = arith.constant 0 : index
    %c2 = arith.constant 2 : index
    %c0_55 = arith.constant 0 : index
    %c0_56 = arith.constant 0 : index
    %139 = vector.load %arg7[%c0_54, %c2, %c0_55, %c0_56] : memref<2x4x8x32xf32, #tpu.memory_space<vmem>>, vector<1x1x8x32xf32>
    %140 = vector.shape_cast %139 : vector<1x1x8x32xf32> to vector<8x32xf32>
    %cst_57 = arith.constant dense<0.000000e+00> : vector<32x32xf32>
    %141 = tpu.matmul %138, %140, %cst_57 {dimension_numbers = #tpu.dot_dimension_numbers<[1], [0], [0], [1], [0, 0, 1, 1], [], []>} : vector<32x8xf32>, vector<8x32xf32>, vector<32x32xf32> -> vector<32x32xf32>
    %142 = arith.addf %100, %141 : vector<32x32xf32>
    %143 = vector.extract_strided_slice %15 {offsets = [0, 24], sizes = [32, 8], strides = [1, 1]} : vector<32x96xf32> to vector<32x8xf32>
    %144 = vector.extract_strided_slice %15 {offsets = [0, 56], sizes = [32, 8], strides = [1, 1]} : vector<32x96xf32> to vector<32x8xf32>
    %145 = vector.extract_strided_slice %15 {offsets = [0, 88], sizes = [32, 8], strides = [1, 1]} : vector<32x96xf32> to vector<32x8xf32>
    %146 = vector.extract_strided_slice %143 {offsets = [0, 0], sizes = [16, 8], strides = [1, 1]} : vector<32x8xf32> to vector<16x8xf32>
    %147 = vector.extract_strided_slice %144 {offsets = [0, 0], sizes = [16, 8], strides = [1, 1]} : vector<32x8xf32> to vector<16x8xf32>
    %148 = vector.extract_strided_slice %145 {offsets = [0, 0], sizes = [16, 8], strides = [1, 1]} : vector<32x8xf32> to vector<16x8xf32>
    %cst_58 = arith.constant dense<0.000000e+00> : vector<16x16xf32>
    %149 = tpu.matmul %146, %147, %cst_58 {dimension_numbers = #tpu.dot_dimension_numbers<[1], [1], [0], [0], [0, 0, 1, 0], [], []>} : vector<16x8xf32>, vector<16x8xf32>, vector<16x16xf32> -> vector<16x16xf32>
    %cst_59 = arith.constant 0.353553385 : f32
    %150 = vector.broadcast %cst_59 : f32 to vector<16x16xf32>
    %151 = arith.mulf %149, %150 : vector<16x16xf32>
    %cst_60 = arith.constant dense<0xFF800000> : vector<16xf32>
    %152 = vector.multi_reduction <maximumf>, %151, %cst_60 [1] : vector<16x16xf32> to vector<16xf32>
    %153 = vector.shape_cast %152 : vector<16xf32> to vector<16x1xf32>
    %154 = vector.broadcast %153 : vector<16x1xf32> to vector<16x16xf32>
    %155 = arith.subf %151, %154 : vector<16x16xf32>
    %156 = math.exp %155 : vector<16x16xf32>
    %cst_61 = arith.constant dense<0.000000e+00> : vector<16xf32>
    %157 = vector.multi_reduction <add>, %156, %cst_61 [1] : vector<16x16xf32> to vector<16xf32>
    %158 = vector.shape_cast %157 : vector<16xf32> to vector<16x1xf32>
    %159 = tpu.reciprocal %158 {approx = true} : vector<16x1xf32> -> vector<16x1xf32>
    %160 = vector.broadcast %159 : vector<16x1xf32> to vector<16x16xf32>
    %161 = arith.mulf %156, %160 : vector<16x16xf32>
    %cst_62 = arith.constant dense<0.000000e+00> : vector<16x8xf32>
    %162 = tpu.matmul %161, %148, %cst_62 {dimension_numbers = #tpu.dot_dimension_numbers<[1], [0], [0], [1], [0, 0, 1, 1], [], []>} : vector<16x16xf32>, vector<16x8xf32>, vector<16x8xf32> -> vector<16x8xf32>
    %163 = vector.extract_strided_slice %143 {offsets = [16, 0], sizes = [16, 8], strides = [1, 1]} : vector<32x8xf32> to vector<16x8xf32>
    %164 = vector.extract_strided_slice %144 {offsets = [16, 0], sizes = [16, 8], strides = [1, 1]} : vector<32x8xf32> to vector<16x8xf32>
    %165 = vector.extract_strided_slice %145 {offsets = [16, 0], sizes = [16, 8], strides = [1, 1]} : vector<32x8xf32> to vector<16x8xf32>
    %cst_63 = arith.constant dense<0.000000e+00> : vector<16x16xf32>
    %166 = tpu.matmul %163, %164, %cst_63 {dimension_numbers = #tpu.dot_dimension_numbers<[1], [1], [0], [0], [0, 0, 1, 0], [], []>} : vector<16x8xf32>, vector<16x8xf32>, vector<16x16xf32> -> vector<16x16xf32>
    %cst_64 = arith.constant 0.353553385 : f32
    %167 = vector.broadcast %cst_64 : f32 to vector<16x16xf32>
    %168 = arith.mulf %166, %167 : vector<16x16xf32>
    %cst_65 = arith.constant dense<0xFF800000> : vector<16xf32>
    %169 = vector.multi_reduction <maximumf>, %168, %cst_65 [1] : vector<16x16xf32> to vector<16xf32>
    %170 = vector.shape_cast %169 : vector<16xf32> to vector<16x1xf32>
    %171 = vector.broadcast %170 : vector<16x1xf32> to vector<16x16xf32>
    %172 = arith.subf %168, %171 : vector<16x16xf32>
    %173 = math.exp %172 : vector<16x16xf32>
    %cst_66 = arith.constant dense<0.000000e+00> : vector<16xf32>
    %174 = vector.multi_reduction <add>, %173, %cst_66 [1] : vector<16x16xf32> to vector<16xf32>
    %175 = vector.shape_cast %174 : vector<16xf32> to vector<16x1xf32>
    %176 = tpu.reciprocal %175 {approx = true} : vector<16x1xf32> -> vector<16x1xf32>
    %177 = vector.broadcast %176 : vector<16x1xf32> to vector<16x16xf32>
    %178 = arith.mulf %173, %177 : vector<16x16xf32>
    %cst_67 = arith.constant dense<0.000000e+00> : vector<16x8xf32>
    %179 = tpu.matmul %178, %165, %cst_67 {dimension_numbers = #tpu.dot_dimension_numbers<[1], [0], [0], [1], [0, 0, 1, 1], [], []>} : vector<16x16xf32>, vector<16x8xf32>, vector<16x8xf32> -> vector<16x8xf32>
    %180 = tpu.concatenate %162, %179 in 0 : vector<16x8xf32>, vector<16x8xf32> -> vector<32x8xf32>
    %c0_68 = arith.constant 0 : index
    %c3 = arith.constant 3 : index
    %c0_69 = arith.constant 0 : index
    %c0_70 = arith.constant 0 : index
    %181 = vector.load %arg7[%c0_68, %c3, %c0_69, %c0_70] : memref<2x4x8x32xf32, #tpu.memory_space<vmem>>, vector<1x1x8x32xf32>
    %182 = vector.shape_cast %181 : vector<1x1x8x32xf32> to vector<8x32xf32>
    %cst_71 = arith.constant dense<0.000000e+00> : vector<32x32xf32>
    %183 = tpu.matmul %180, %182, %cst_71 {dimension_numbers = #tpu.dot_dimension_numbers<[1], [0], [0], [1], [0, 0, 1, 1], [], []>} : vector<32x8xf32>, vector<8x32xf32>, vector<32x32xf32> -> vector<32x32xf32>
    %184 = arith.addf %142, %183 : vector<32x32xf32>
    %c0_72 = arith.constant 0 : index
    %c0_73 = arith.constant 0 : index
    %c0_74 = arith.constant 0 : index
    %185 = vector.load %arg8[%c0_72, %c0_73, %c0_74] : memref<2x1x32xf32, #tpu.memory_space<vmem>>, vector<1x1x32xf32>
    %186 = vector.shape_cast %185 : vector<1x1x32xf32> to vector<1x32xf32>
    %187 = vector.broadcast %186 : vector<1x32xf32> to vector<32x32xf32>
    %188 = arith.addf %184, %187 : vector<32x32xf32>
    %189 = arith.addf %8, %188 : vector<32x32xf32>
    %c0_75 = arith.constant 0 : index
    %c0_76 = arith.constant 0 : index
    %c0_77 = arith.constant 0 : index
    %190 = vector.load %arg9[%c0_75, %c0_76, %c0_77] : memref<2x1x32xf32, #tpu.memory_space<vmem>>, vector<1x1x32xf32>
    %191 = vector.shape_cast %190 : vector<1x1x32xf32> to vector<1x32xf32>
    %c0_78 = arith.constant 0 : index
    %c0_79 = arith.constant 0 : index
    %c0_80 = arith.constant 0 : index
    %192 = vector.load %arg10[%c0_78, %c0_79, %c0_80] : memref<2x1x32xf32, #tpu.memory_space<vmem>>, vector<1x1x32xf32>
    %193 = vector.shape_cast %192 : vector<1x1x32xf32> to vector<1x32xf32>
    %cst_81 = arith.constant dense<0.000000e+00> : vector<32xf32>
    %194 = vector.multi_reduction <add>, %189, %cst_81 [1] : vector<32x32xf32> to vector<32xf32>
    %195 = vector.shape_cast %194 : vector<32xf32> to vector<32x1xf32>
    %cst_82 = arith.constant 3.200000e+01 : f32
    %196 = vector.broadcast %cst_82 : f32 to vector<32x1xf32>
    %197 = arith.divf %195, %196 : vector<32x1xf32>
    %198 = vector.broadcast %197 : vector<32x1xf32> to vector<32x32xf32>
    %199 = arith.subf %189, %198 : vector<32x32xf32>
    %200 = arith.mulf %199, %199 : vector<32x32xf32>
    %cst_83 = arith.constant dense<0.000000e+00> : vector<32xf32>
    %201 = vector.multi_reduction <add>, %200, %cst_83 [1] : vector<32x32xf32> to vector<32xf32>
    %202 = vector.shape_cast %201 : vector<32xf32> to vector<32x1xf32>
    %cst_84 = arith.constant 3.200000e+01 : f32
    %203 = vector.broadcast %cst_84 : f32 to vector<32x1xf32>
    %204 = arith.divf %202, %203 : vector<32x1xf32>
    %205 = vector.broadcast %197 : vector<32x1xf32> to vector<32x32xf32>
    %206 = arith.subf %189, %205 : vector<32x32xf32>
    %cst_85 = arith.constant 9.99999974E-6 : f32
    %207 = vector.broadcast %cst_85 : f32 to vector<32x1xf32>
    %208 = arith.addf %204, %207 : vector<32x1xf32>
    %209 = math.rsqrt %208 : vector<32x1xf32>
    %210 = vector.broadcast %209 : vector<32x1xf32> to vector<32x32xf32>
    %211 = arith.mulf %206, %210 : vector<32x32xf32>
    %212 = vector.broadcast %191 : vector<1x32xf32> to vector<32x32xf32>
    %213 = arith.mulf %211, %212 : vector<32x32xf32>
    %214 = vector.broadcast %193 : vector<1x32xf32> to vector<32x32xf32>
    %215 = arith.addf %213, %214 : vector<32x32xf32>
    %c0_86 = arith.constant 0 : index
    %c0_87 = arith.constant 0 : index
    %c0_88 = arith.constant 0 : index
    %216 = vector.load %arg11[%c0_86, %c0_87, %c0_88] : memref<2x32x2048xf32, #tpu.memory_space<vmem>>, vector<1x32x2048xf32>
    %217 = vector.shape_cast %216 : vector<1x32x2048xf32> to vector<32x2048xf32>
    %cst_89 = arith.constant dense<0.000000e+00> : vector<32x2048xf32>
    %218 = tpu.matmul %215, %217, %cst_89 {dimension_numbers = #tpu.dot_dimension_numbers<[1], [0], [0], [1], [0, 0, 1, 1], [], []>} : vector<32x32xf32>, vector<32x2048xf32>, vector<32x2048xf32> -> vector<32x2048xf32>
    %c0_90 = arith.constant 0 : index
    %c0_91 = arith.constant 0 : index
    %c0_92 = arith.constant 0 : index
    %219 = vector.load %arg12[%c0_90, %c0_91, %c0_92] : memref<2x1x2048xf32, #tpu.memory_space<vmem>>, vector<1x1x2048xf32>
    %220 = vector.shape_cast %219 : vector<1x1x2048xf32> to vector<1x2048xf32>
    %221 = vector.broadcast %220 : vector<1x2048xf32> to vector<32x2048xf32>
    %222 = arith.addf %218, %221 : vector<32x2048xf32>
    %cst_93 = arith.constant 0.000000e+00 : f32
    %223 = vector.broadcast %cst_93 : f32 to vector<32x2048xf32>
    %224 = arith.maximumf %222, %223 : vector<32x2048xf32>
    %c0_94 = arith.constant 0 : index
    %c0_95 = arith.constant 0 : index
    %c0_96 = arith.constant 0 : index
    %225 = vector.load %arg13[%c0_94, %c0_95, %c0_96] : memref<2x2048x32xf32, #tpu.memory_space<vmem>>, vector<1x2048x32xf32>
    %226 = vector.shape_cast %225 : vector<1x2048x32xf32> to vector<2048x32xf32>
    %cst_97 = arith.constant dense<0.000000e+00> : vector<32x32xf32>
    %227 = tpu.matmul %224, %226, %cst_97 {dimension_numbers = #tpu.dot_dimension_numbers<[1], [0], [0], [1], [0, 0, 1, 1], [], []>} : vector<32x2048xf32>, vector<2048x32xf32>, vector<32x32xf32> -> vector<32x32xf32>
    %c0_98 = arith.constant 0 : index
    %c0_99 = arith.constant 0 : index
    %c0_100 = arith.constant 0 : index
    %228 = vector.load %arg14[%c0_98, %c0_99, %c0_100] : memref<2x1x32xf32, #tpu.memory_space<vmem>>, vector<1x1x32xf32>
    %229 = vector.shape_cast %228 : vector<1x1x32xf32> to vector<1x32xf32>
    %230 = vector.broadcast %229 : vector<1x32xf32> to vector<32x32xf32>
    %231 = arith.addf %227, %230 : vector<32x32xf32>
    %232 = arith.addf %215, %231 : vector<32x32xf32>
    %c0_101 = arith.constant 0 : index
    %c0_102 = arith.constant 0 : index
    %c0_103 = arith.constant 0 : index
    %233 = vector.load %arg15[%c0_101, %c0_102, %c0_103] : memref<2x1x32xf32, #tpu.memory_space<vmem>>, vector<1x1x32xf32>
    %234 = vector.shape_cast %233 : vector<1x1x32xf32> to vector<1x32xf32>
    %c0_104 = arith.constant 0 : index
    %c0_105 = arith.constant 0 : index
    %c0_106 = arith.constant 0 : index
    %235 = vector.load %arg16[%c0_104, %c0_105, %c0_106] : memref<2x1x32xf32, #tpu.memory_space<vmem>>, vector<1x1x32xf32>
    %236 = vector.shape_cast %235 : vector<1x1x32xf32> to vector<1x32xf32>
    %cst_107 = arith.constant dense<0.000000e+00> : vector<32xf32>
    %237 = vector.multi_reduction <add>, %232, %cst_107 [1] : vector<32x32xf32> to vector<32xf32>
    %238 = vector.shape_cast %237 : vector<32xf32> to vector<32x1xf32>
    %cst_108 = arith.constant 3.200000e+01 : f32
    %239 = vector.broadcast %cst_108 : f32 to vector<32x1xf32>
    %240 = arith.divf %238, %239 : vector<32x1xf32>
    %241 = vector.broadcast %240 : vector<32x1xf32> to vector<32x32xf32>
    %242 = arith.subf %232, %241 : vector<32x32xf32>
    %243 = arith.mulf %242, %242 : vector<32x32xf32>
    %cst_109 = arith.constant dense<0.000000e+00> : vector<32xf32>
    %244 = vector.multi_reduction <add>, %243, %cst_109 [1] : vector<32x32xf32> to vector<32xf32>
    %245 = vector.shape_cast %244 : vector<32xf32> to vector<32x1xf32>
    %cst_110 = arith.constant 3.200000e+01 : f32
    %246 = vector.broadcast %cst_110 : f32 to vector<32x1xf32>
    %247 = arith.divf %245, %246 : vector<32x1xf32>
    %248 = vector.broadcast %240 : vector<32x1xf32> to vector<32x32xf32>
    %249 = arith.subf %232, %248 : vector<32x32xf32>
    %cst_111 = arith.constant 9.99999974E-6 : f32
    %250 = vector.broadcast %cst_111 : f32 to vector<32x1xf32>
    %251 = arith.addf %247, %250 : vector<32x1xf32>
    %252 = math.rsqrt %251 : vector<32x1xf32>
    %253 = vector.broadcast %252 : vector<32x1xf32> to vector<32x32xf32>
    %254 = arith.mulf %249, %253 : vector<32x32xf32>
    %255 = vector.broadcast %234 : vector<1x32xf32> to vector<32x32xf32>
    %256 = arith.mulf %254, %255 : vector<32x32xf32>
    %257 = vector.broadcast %236 : vector<1x32xf32> to vector<32x32xf32>
    %258 = arith.addf %256, %257 : vector<32x32xf32>
    %c1_112 = arith.constant 1 : index
    %c0_113 = arith.constant 0 : index
    %c0_114 = arith.constant 0 : index
    %259 = vector.load %arg5[%c1_112, %c0_113, %c0_114] : memref<2x32x96xf32, #tpu.memory_space<vmem>>, vector<1x32x96xf32>
    %260 = vector.shape_cast %259 : vector<1x32x96xf32> to vector<32x96xf32>
    %cst_115 = arith.constant dense<0.000000e+00> : vector<32x96xf32>
    %261 = tpu.matmul %258, %260, %cst_115 {dimension_numbers = #tpu.dot_dimension_numbers<[1], [0], [0], [1], [0, 0, 1, 1], [], []>} : vector<32x32xf32>, vector<32x96xf32>, vector<32x96xf32> -> vector<32x96xf32>
    %c1_116 = arith.constant 1 : index
    %c0_117 = arith.constant 0 : index
    %c0_118 = arith.constant 0 : index
    %262 = vector.load %arg6[%c1_116, %c0_117, %c0_118] : memref<2x1x96xf32, #tpu.memory_space<vmem>>, vector<1x1x96xf32>
    %263 = vector.shape_cast %262 : vector<1x1x96xf32> to vector<1x96xf32>
    %264 = vector.broadcast %263 : vector<1x96xf32> to vector<32x96xf32>
    %265 = arith.addf %261, %264 : vector<32x96xf32>
    %cst_119 = arith.constant 0.000000e+00 : f32
    %266 = vector.broadcast %cst_119 : f32 to vector<32x32xf32>
    %267 = vector.extract_strided_slice %265 {offsets = [0, 0], sizes = [32, 8], strides = [1, 1]} : vector<32x96xf32> to vector<32x8xf32>
    %268 = vector.extract_strided_slice %265 {offsets = [0, 32], sizes = [32, 8], strides = [1, 1]} : vector<32x96xf32> to vector<32x8xf32>
    %269 = vector.extract_strided_slice %265 {offsets = [0, 64], sizes = [32, 8], strides = [1, 1]} : vector<32x96xf32> to vector<32x8xf32>
    %270 = vector.extract_strided_slice %267 {offsets = [0, 0], sizes = [16, 8], strides = [1, 1]} : vector<32x8xf32> to vector<16x8xf32>
    %271 = vector.extract_strided_slice %268 {offsets = [0, 0], sizes = [16, 8], strides = [1, 1]} : vector<32x8xf32> to vector<16x8xf32>
    %272 = vector.extract_strided_slice %269 {offsets = [0, 0], sizes = [16, 8], strides = [1, 1]} : vector<32x8xf32> to vector<16x8xf32>
    %cst_120 = arith.constant dense<0.000000e+00> : vector<16x16xf32>
    %273 = tpu.matmul %270, %271, %cst_120 {dimension_numbers = #tpu.dot_dimension_numbers<[1], [1], [0], [0], [0, 0, 1, 0], [], []>} : vector<16x8xf32>, vector<16x8xf32>, vector<16x16xf32> -> vector<16x16xf32>
    %cst_121 = arith.constant 0.353553385 : f32
    %274 = vector.broadcast %cst_121 : f32 to vector<16x16xf32>
    %275 = arith.mulf %273, %274 : vector<16x16xf32>
    %cst_122 = arith.constant dense<0xFF800000> : vector<16xf32>
    %276 = vector.multi_reduction <maximumf>, %275, %cst_122 [1] : vector<16x16xf32> to vector<16xf32>
    %277 = vector.shape_cast %276 : vector<16xf32> to vector<16x1xf32>
    %278 = vector.broadcast %277 : vector<16x1xf32> to vector<16x16xf32>
    %279 = arith.subf %275, %278 : vector<16x16xf32>
    %280 = math.exp %279 : vector<16x16xf32>
    %cst_123 = arith.constant dense<0.000000e+00> : vector<16xf32>
    %281 = vector.multi_reduction <add>, %280, %cst_123 [1] : vector<16x16xf32> to vector<16xf32>
    %282 = vector.shape_cast %281 : vector<16xf32> to vector<16x1xf32>
    %283 = tpu.reciprocal %282 {approx = true} : vector<16x1xf32> -> vector<16x1xf32>
    %284 = vector.broadcast %283 : vector<16x1xf32> to vector<16x16xf32>
    %285 = arith.mulf %280, %284 : vector<16x16xf32>
    %cst_124 = arith.constant dense<0.000000e+00> : vector<16x8xf32>
    %286 = tpu.matmul %285, %272, %cst_124 {dimension_numbers = #tpu.dot_dimension_numbers<[1], [0], [0], [1], [0, 0, 1, 1], [], []>} : vector<16x16xf32>, vector<16x8xf32>, vector<16x8xf32> -> vector<16x8xf32>
    %287 = vector.extract_strided_slice %267 {offsets = [16, 0], sizes = [16, 8], strides = [1, 1]} : vector<32x8xf32> to vector<16x8xf32>
    %288 = vector.extract_strided_slice %268 {offsets = [16, 0], sizes = [16, 8], strides = [1, 1]} : vector<32x8xf32> to vector<16x8xf32>
    %289 = vector.extract_strided_slice %269 {offsets = [16, 0], sizes = [16, 8], strides = [1, 1]} : vector<32x8xf32> to vector<16x8xf32>
    %cst_125 = arith.constant dense<0.000000e+00> : vector<16x16xf32>
    %290 = tpu.matmul %287, %288, %cst_125 {dimension_numbers = #tpu.dot_dimension_numbers<[1], [1], [0], [0], [0, 0, 1, 0], [], []>} : vector<16x8xf32>, vector<16x8xf32>, vector<16x16xf32> -> vector<16x16xf32>
    %cst_126 = arith.constant 0.353553385 : f32
    %291 = vector.broadcast %cst_126 : f32 to vector<16x16xf32>
    %292 = arith.mulf %290, %291 : vector<16x16xf32>
    %cst_127 = arith.constant dense<0xFF800000> : vector<16xf32>
    %293 = vector.multi_reduction <maximumf>, %292, %cst_127 [1] : vector<16x16xf32> to vector<16xf32>
    %294 = vector.shape_cast %293 : vector<16xf32> to vector<16x1xf32>
    %295 = vector.broadcast %294 : vector<16x1xf32> to vector<16x16xf32>
    %296 = arith.subf %292, %295 : vector<16x16xf32>
    %297 = math.exp %296 : vector<16x16xf32>
    %cst_128 = arith.constant dense<0.000000e+00> : vector<16xf32>
    %298 = vector.multi_reduction <add>, %297, %cst_128 [1] : vector<16x16xf32> to vector<16xf32>
    %299 = vector.shape_cast %298 : vector<16xf32> to vector<16x1xf32>
    %300 = tpu.reciprocal %299 {approx = true} : vector<16x1xf32> -> vector<16x1xf32>
    %301 = vector.broadcast %300 : vector<16x1xf32> to vector<16x16xf32>
    %302 = arith.mulf %297, %301 : vector<16x16xf32>
    %cst_129 = arith.constant dense<0.000000e+00> : vector<16x8xf32>
    %303 = tpu.matmul %302, %289, %cst_129 {dimension_numbers = #tpu.dot_dimension_numbers<[1], [0], [0], [1], [0, 0, 1, 1], [], []>} : vector<16x16xf32>, vector<16x8xf32>, vector<16x8xf32> -> vector<16x8xf32>
    %304 = tpu.concatenate %286, %303 in 0 : vector<16x8xf32>, vector<16x8xf32> -> vector<32x8xf32>
    %c1_130 = arith.constant 1 : index
    %c0_131 = arith.constant 0 : index
    %c0_132 = arith.constant 0 : index
    %c0_133 = arith.constant 0 : index
    %305 = vector.load %arg7[%c1_130, %c0_131, %c0_132, %c0_133] : memref<2x4x8x32xf32, #tpu.memory_space<vmem>>, vector<1x1x8x32xf32>
    %306 = vector.shape_cast %305 : vector<1x1x8x32xf32> to vector<8x32xf32>
    %cst_134 = arith.constant dense<0.000000e+00> : vector<32x32xf32>
    %307 = tpu.matmul %304, %306, %cst_134 {dimension_numbers = #tpu.dot_dimension_numbers<[1], [0], [0], [1], [0, 0, 1, 1], [], []>} : vector<32x8xf32>, vector<8x32xf32>, vector<32x32xf32> -> vector<32x32xf32>
    %308 = arith.addf %266, %307 : vector<32x32xf32>
    %309 = vector.extract_strided_slice %265 {offsets = [0, 8], sizes = [32, 8], strides = [1, 1]} : vector<32x96xf32> to vector<32x8xf32>
    %310 = vector.extract_strided_slice %265 {offsets = [0, 40], sizes = [32, 8], strides = [1, 1]} : vector<32x96xf32> to vector<32x8xf32>
    %311 = vector.extract_strided_slice %265 {offsets = [0, 72], sizes = [32, 8], strides = [1, 1]} : vector<32x96xf32> to vector<32x8xf32>
    %312 = vector.extract_strided_slice %309 {offsets = [0, 0], sizes = [16, 8], strides = [1, 1]} : vector<32x8xf32> to vector<16x8xf32>
    %313 = vector.extract_strided_slice %310 {offsets = [0, 0], sizes = [16, 8], strides = [1, 1]} : vector<32x8xf32> to vector<16x8xf32>
    %314 = vector.extract_strided_slice %311 {offsets = [0, 0], sizes = [16, 8], strides = [1, 1]} : vector<32x8xf32> to vector<16x8xf32>
    %cst_135 = arith.constant dense<0.000000e+00> : vector<16x16xf32>
    %315 = tpu.matmul %312, %313, %cst_135 {dimension_numbers = #tpu.dot_dimension_numbers<[1], [1], [0], [0], [0, 0, 1, 0], [], []>} : vector<16x8xf32>, vector<16x8xf32>, vector<16x16xf32> -> vector<16x16xf32>
    %cst_136 = arith.constant 0.353553385 : f32
    %316 = vector.broadcast %cst_136 : f32 to vector<16x16xf32>
    %317 = arith.mulf %315, %316 : vector<16x16xf32>
    %cst_137 = arith.constant dense<0xFF800000> : vector<16xf32>
    %318 = vector.multi_reduction <maximumf>, %317, %cst_137 [1] : vector<16x16xf32> to vector<16xf32>
    %319 = vector.shape_cast %318 : vector<16xf32> to vector<16x1xf32>
    %320 = vector.broadcast %319 : vector<16x1xf32> to vector<16x16xf32>
    %321 = arith.subf %317, %320 : vector<16x16xf32>
    %322 = math.exp %321 : vector<16x16xf32>
    %cst_138 = arith.constant dense<0.000000e+00> : vector<16xf32>
    %323 = vector.multi_reduction <add>, %322, %cst_138 [1] : vector<16x16xf32> to vector<16xf32>
    %324 = vector.shape_cast %323 : vector<16xf32> to vector<16x1xf32>
    %325 = tpu.reciprocal %324 {approx = true} : vector<16x1xf32> -> vector<16x1xf32>
    %326 = vector.broadcast %325 : vector<16x1xf32> to vector<16x16xf32>
    %327 = arith.mulf %322, %326 : vector<16x16xf32>
    %cst_139 = arith.constant dense<0.000000e+00> : vector<16x8xf32>
    %328 = tpu.matmul %327, %314, %cst_139 {dimension_numbers = #tpu.dot_dimension_numbers<[1], [0], [0], [1], [0, 0, 1, 1], [], []>} : vector<16x16xf32>, vector<16x8xf32>, vector<16x8xf32> -> vector<16x8xf32>
    %329 = vector.extract_strided_slice %309 {offsets = [16, 0], sizes = [16, 8], strides = [1, 1]} : vector<32x8xf32> to vector<16x8xf32>
    %330 = vector.extract_strided_slice %310 {offsets = [16, 0], sizes = [16, 8], strides = [1, 1]} : vector<32x8xf32> to vector<16x8xf32>
    %331 = vector.extract_strided_slice %311 {offsets = [16, 0], sizes = [16, 8], strides = [1, 1]} : vector<32x8xf32> to vector<16x8xf32>
    %cst_140 = arith.constant dense<0.000000e+00> : vector<16x16xf32>
    %332 = tpu.matmul %329, %330, %cst_140 {dimension_numbers = #tpu.dot_dimension_numbers<[1], [1], [0], [0], [0, 0, 1, 0], [], []>} : vector<16x8xf32>, vector<16x8xf32>, vector<16x16xf32> -> vector<16x16xf32>
    %cst_141 = arith.constant 0.353553385 : f32
    %333 = vector.broadcast %cst_141 : f32 to vector<16x16xf32>
    %334 = arith.mulf %332, %333 : vector<16x16xf32>
    %cst_142 = arith.constant dense<0xFF800000> : vector<16xf32>
    %335 = vector.multi_reduction <maximumf>, %334, %cst_142 [1] : vector<16x16xf32> to vector<16xf32>
    %336 = vector.shape_cast %335 : vector<16xf32> to vector<16x1xf32>
    %337 = vector.broadcast %336 : vector<16x1xf32> to vector<16x16xf32>
    %338 = arith.subf %334, %337 : vector<16x16xf32>
    %339 = math.exp %338 : vector<16x16xf32>
    %cst_143 = arith.constant dense<0.000000e+00> : vector<16xf32>
    %340 = vector.multi_reduction <add>, %339, %cst_143 [1] : vector<16x16xf32> to vector<16xf32>
    %341 = vector.shape_cast %340 : vector<16xf32> to vector<16x1xf32>
    %342 = tpu.reciprocal %341 {approx = true} : vector<16x1xf32> -> vector<16x1xf32>
    %343 = vector.broadcast %342 : vector<16x1xf32> to vector<16x16xf32>
    %344 = arith.mulf %339, %343 : vector<16x16xf32>
    %cst_144 = arith.constant dense<0.000000e+00> : vector<16x8xf32>
    %345 = tpu.matmul %344, %331, %cst_144 {dimension_numbers = #tpu.dot_dimension_numbers<[1], [0], [0], [1], [0, 0, 1, 1], [], []>} : vector<16x16xf32>, vector<16x8xf32>, vector<16x8xf32> -> vector<16x8xf32>
    %346 = tpu.concatenate %328, %345 in 0 : vector<16x8xf32>, vector<16x8xf32> -> vector<32x8xf32>
    %c1_145 = arith.constant 1 : index
    %c1_146 = arith.constant 1 : index
    %c0_147 = arith.constant 0 : index
    %c0_148 = arith.constant 0 : index
    %347 = vector.load %arg7[%c1_145, %c1_146, %c0_147, %c0_148] : memref<2x4x8x32xf32, #tpu.memory_space<vmem>>, vector<1x1x8x32xf32>
    %348 = vector.shape_cast %347 : vector<1x1x8x32xf32> to vector<8x32xf32>
    %cst_149 = arith.constant dense<0.000000e+00> : vector<32x32xf32>
    %349 = tpu.matmul %346, %348, %cst_149 {dimension_numbers = #tpu.dot_dimension_numbers<[1], [0], [0], [1], [0, 0, 1, 1], [], []>} : vector<32x8xf32>, vector<8x32xf32>, vector<32x32xf32> -> vector<32x32xf32>
    %350 = arith.addf %308, %349 : vector<32x32xf32>
    %351 = vector.extract_strided_slice %265 {offsets = [0, 16], sizes = [32, 8], strides = [1, 1]} : vector<32x96xf32> to vector<32x8xf32>
    %352 = vector.extract_strided_slice %265 {offsets = [0, 48], sizes = [32, 8], strides = [1, 1]} : vector<32x96xf32> to vector<32x8xf32>
    %353 = vector.extract_strided_slice %265 {offsets = [0, 80], sizes = [32, 8], strides = [1, 1]} : vector<32x96xf32> to vector<32x8xf32>
    %354 = vector.extract_strided_slice %351 {offsets = [0, 0], sizes = [16, 8], strides = [1, 1]} : vector<32x8xf32> to vector<16x8xf32>
    %355 = vector.extract_strided_slice %352 {offsets = [0, 0], sizes = [16, 8], strides = [1, 1]} : vector<32x8xf32> to vector<16x8xf32>
    %356 = vector.extract_strided_slice %353 {offsets = [0, 0], sizes = [16, 8], strides = [1, 1]} : vector<32x8xf32> to vector<16x8xf32>
    %cst_150 = arith.constant dense<0.000000e+00> : vector<16x16xf32>
    %357 = tpu.matmul %354, %355, %cst_150 {dimension_numbers = #tpu.dot_dimension_numbers<[1], [1], [0], [0], [0, 0, 1, 0], [], []>} : vector<16x8xf32>, vector<16x8xf32>, vector<16x16xf32> -> vector<16x16xf32>
    %cst_151 = arith.constant 0.353553385 : f32
    %358 = vector.broadcast %cst_151 : f32 to vector<16x16xf32>
    %359 = arith.mulf %357, %358 : vector<16x16xf32>
    %cst_152 = arith.constant dense<0xFF800000> : vector<16xf32>
    %360 = vector.multi_reduction <maximumf>, %359, %cst_152 [1] : vector<16x16xf32> to vector<16xf32>
    %361 = vector.shape_cast %360 : vector<16xf32> to vector<16x1xf32>
    %362 = vector.broadcast %361 : vector<16x1xf32> to vector<16x16xf32>
    %363 = arith.subf %359, %362 : vector<16x16xf32>
    %364 = math.exp %363 : vector<16x16xf32>
    %cst_153 = arith.constant dense<0.000000e+00> : vector<16xf32>
    %365 = vector.multi_reduction <add>, %364, %cst_153 [1] : vector<16x16xf32> to vector<16xf32>
    %366 = vector.shape_cast %365 : vector<16xf32> to vector<16x1xf32>
    %367 = tpu.reciprocal %366 {approx = true} : vector<16x1xf32> -> vector<16x1xf32>
    %368 = vector.broadcast %367 : vector<16x1xf32> to vector<16x16xf32>
    %369 = arith.mulf %364, %368 : vector<16x16xf32>
    %cst_154 = arith.constant dense<0.000000e+00> : vector<16x8xf32>
    %370 = tpu.matmul %369, %356, %cst_154 {dimension_numbers = #tpu.dot_dimension_numbers<[1], [0], [0], [1], [0, 0, 1, 1], [], []>} : vector<16x16xf32>, vector<16x8xf32>, vector<16x8xf32> -> vector<16x8xf32>
    %371 = vector.extract_strided_slice %351 {offsets = [16, 0], sizes = [16, 8], strides = [1, 1]} : vector<32x8xf32> to vector<16x8xf32>
    %372 = vector.extract_strided_slice %352 {offsets = [16, 0], sizes = [16, 8], strides = [1, 1]} : vector<32x8xf32> to vector<16x8xf32>
    %373 = vector.extract_strided_slice %353 {offsets = [16, 0], sizes = [16, 8], strides = [1, 1]} : vector<32x8xf32> to vector<16x8xf32>
    %cst_155 = arith.constant dense<0.000000e+00> : vector<16x16xf32>
    %374 = tpu.matmul %371, %372, %cst_155 {dimension_numbers = #tpu.dot_dimension_numbers<[1], [1], [0], [0], [0, 0, 1, 0], [], []>} : vector<16x8xf32>, vector<16x8xf32>, vector<16x16xf32> -> vector<16x16xf32>
    %cst_156 = arith.constant 0.353553385 : f32
    %375 = vector.broadcast %cst_156 : f32 to vector<16x16xf32>
    %376 = arith.mulf %374, %375 : vector<16x16xf32>
    %cst_157 = arith.constant dense<0xFF800000> : vector<16xf32>
    %377 = vector.multi_reduction <maximumf>, %376, %cst_157 [1] : vector<16x16xf32> to vector<16xf32>
    %378 = vector.shape_cast %377 : vector<16xf32> to vector<16x1xf32>
    %379 = vector.broadcast %378 : vector<16x1xf32> to vector<16x16xf32>
    %380 = arith.subf %376, %379 : vector<16x16xf32>
    %381 = math.exp %380 : vector<16x16xf32>
    %cst_158 = arith.constant dense<0.000000e+00> : vector<16xf32>
    %382 = vector.multi_reduction <add>, %381, %cst_158 [1] : vector<16x16xf32> to vector<16xf32>
    %383 = vector.shape_cast %382 : vector<16xf32> to vector<16x1xf32>
    %384 = tpu.reciprocal %383 {approx = true} : vector<16x1xf32> -> vector<16x1xf32>
    %385 = vector.broadcast %384 : vector<16x1xf32> to vector<16x16xf32>
    %386 = arith.mulf %381, %385 : vector<16x16xf32>
    %cst_159 = arith.constant dense<0.000000e+00> : vector<16x8xf32>
    %387 = tpu.matmul %386, %373, %cst_159 {dimension_numbers = #tpu.dot_dimension_numbers<[1], [0], [0], [1], [0, 0, 1, 1], [], []>} : vector<16x16xf32>, vector<16x8xf32>, vector<16x8xf32> -> vector<16x8xf32>
    %388 = tpu.concatenate %370, %387 in 0 : vector<16x8xf32>, vector<16x8xf32> -> vector<32x8xf32>
    %c1_160 = arith.constant 1 : index
    %c2_161 = arith.constant 2 : index
    %c0_162 = arith.constant 0 : index
    %c0_163 = arith.constant 0 : index
    %389 = vector.load %arg7[%c1_160, %c2_161, %c0_162, %c0_163] : memref<2x4x8x32xf32, #tpu.memory_space<vmem>>, vector<1x1x8x32xf32>
    %390 = vector.shape_cast %389 : vector<1x1x8x32xf32> to vector<8x32xf32>
    %cst_164 = arith.constant dense<0.000000e+00> : vector<32x32xf32>
    %391 = tpu.matmul %388, %390, %cst_164 {dimension_numbers = #tpu.dot_dimension_numbers<[1], [0], [0], [1], [0, 0, 1, 1], [], []>} : vector<32x8xf32>, vector<8x32xf32>, vector<32x32xf32> -> vector<32x32xf32>
    %392 = arith.addf %350, %391 : vector<32x32xf32>
    %393 = vector.extract_strided_slice %265 {offsets = [0, 24], sizes = [32, 8], strides = [1, 1]} : vector<32x96xf32> to vector<32x8xf32>
    %394 = vector.extract_strided_slice %265 {offsets = [0, 56], sizes = [32, 8], strides = [1, 1]} : vector<32x96xf32> to vector<32x8xf32>
    %395 = vector.extract_strided_slice %265 {offsets = [0, 88], sizes = [32, 8], strides = [1, 1]} : vector<32x96xf32> to vector<32x8xf32>
    %396 = vector.extract_strided_slice %393 {offsets = [0, 0], sizes = [16, 8], strides = [1, 1]} : vector<32x8xf32> to vector<16x8xf32>
    %397 = vector.extract_strided_slice %394 {offsets = [0, 0], sizes = [16, 8], strides = [1, 1]} : vector<32x8xf32> to vector<16x8xf32>
    %398 = vector.extract_strided_slice %395 {offsets = [0, 0], sizes = [16, 8], strides = [1, 1]} : vector<32x8xf32> to vector<16x8xf32>
    %cst_165 = arith.constant dense<0.000000e+00> : vector<16x16xf32>
    %399 = tpu.matmul %396, %397, %cst_165 {dimension_numbers = #tpu.dot_dimension_numbers<[1], [1], [0], [0], [0, 0, 1, 0], [], []>} : vector<16x8xf32>, vector<16x8xf32>, vector<16x16xf32> -> vector<16x16xf32>
    %cst_166 = arith.constant 0.353553385 : f32
    %400 = vector.broadcast %cst_166 : f32 to vector<16x16xf32>
    %401 = arith.mulf %399, %400 : vector<16x16xf32>
    %cst_167 = arith.constant dense<0xFF800000> : vector<16xf32>
    %402 = vector.multi_reduction <maximumf>, %401, %cst_167 [1] : vector<16x16xf32> to vector<16xf32>
    %403 = vector.shape_cast %402 : vector<16xf32> to vector<16x1xf32>
    %404 = vector.broadcast %403 : vector<16x1xf32> to vector<16x16xf32>
    %405 = arith.subf %401, %404 : vector<16x16xf32>
    %406 = math.exp %405 : vector<16x16xf32>
    %cst_168 = arith.constant dense<0.000000e+00> : vector<16xf32>
    %407 = vector.multi_reduction <add>, %406, %cst_168 [1] : vector<16x16xf32> to vector<16xf32>
    %408 = vector.shape_cast %407 : vector<16xf32> to vector<16x1xf32>
    %409 = tpu.reciprocal %408 {approx = true} : vector<16x1xf32> -> vector<16x1xf32>
    %410 = vector.broadcast %409 : vector<16x1xf32> to vector<16x16xf32>
    %411 = arith.mulf %406, %410 : vector<16x16xf32>
    %cst_169 = arith.constant dense<0.000000e+00> : vector<16x8xf32>
    %412 = tpu.matmul %411, %398, %cst_169 {dimension_numbers = #tpu.dot_dimension_numbers<[1], [0], [0], [1], [0, 0, 1, 1], [], []>} : vector<16x16xf32>, vector<16x8xf32>, vector<16x8xf32> -> vector<16x8xf32>
    %413 = vector.extract_strided_slice %393 {offsets = [16, 0], sizes = [16, 8], strides = [1, 1]} : vector<32x8xf32> to vector<16x8xf32>
    %414 = vector.extract_strided_slice %394 {offsets = [16, 0], sizes = [16, 8], strides = [1, 1]} : vector<32x8xf32> to vector<16x8xf32>
    %415 = vector.extract_strided_slice %395 {offsets = [16, 0], sizes = [16, 8], strides = [1, 1]} : vector<32x8xf32> to vector<16x8xf32>
    %cst_170 = arith.constant dense<0.000000e+00> : vector<16x16xf32>
    %416 = tpu.matmul %413, %414, %cst_170 {dimension_numbers = #tpu.dot_dimension_numbers<[1], [1], [0], [0], [0, 0, 1, 0], [], []>} : vector<16x8xf32>, vector<16x8xf32>, vector<16x16xf32> -> vector<16x16xf32>
    %cst_171 = arith.constant 0.353553385 : f32
    %417 = vector.broadcast %cst_171 : f32 to vector<16x16xf32>
    %418 = arith.mulf %416, %417 : vector<16x16xf32>
    %cst_172 = arith.constant dense<0xFF800000> : vector<16xf32>
    %419 = vector.multi_reduction <maximumf>, %418, %cst_172 [1] : vector<16x16xf32> to vector<16xf32>
    %420 = vector.shape_cast %419 : vector<16xf32> to vector<16x1xf32>
    %421 = vector.broadcast %420 : vector<16x1xf32> to vector<16x16xf32>
    %422 = arith.subf %418, %421 : vector<16x16xf32>
    %423 = math.exp %422 : vector<16x16xf32>
    %cst_173 = arith.constant dense<0.000000e+00> : vector<16xf32>
    %424 = vector.multi_reduction <add>, %423, %cst_173 [1] : vector<16x16xf32> to vector<16xf32>
    %425 = vector.shape_cast %424 : vector<16xf32> to vector<16x1xf32>
    %426 = tpu.reciprocal %425 {approx = true} : vector<16x1xf32> -> vector<16x1xf32>
    %427 = vector.broadcast %426 : vector<16x1xf32> to vector<16x16xf32>
    %428 = arith.mulf %423, %427 : vector<16x16xf32>
    %cst_174 = arith.constant dense<0.000000e+00> : vector<16x8xf32>
    %429 = tpu.matmul %428, %415, %cst_174 {dimension_numbers = #tpu.dot_dimension_numbers<[1], [0], [0], [1], [0, 0, 1, 1], [], []>} : vector<16x16xf32>, vector<16x8xf32>, vector<16x8xf32> -> vector<16x8xf32>
    %430 = tpu.concatenate %412, %429 in 0 : vector<16x8xf32>, vector<16x8xf32> -> vector<32x8xf32>
    %c1_175 = arith.constant 1 : index
    %c3_176 = arith.constant 3 : index
    %c0_177 = arith.constant 0 : index
    %c0_178 = arith.constant 0 : index
    %431 = vector.load %arg7[%c1_175, %c3_176, %c0_177, %c0_178] : memref<2x4x8x32xf32, #tpu.memory_space<vmem>>, vector<1x1x8x32xf32>
    %432 = vector.shape_cast %431 : vector<1x1x8x32xf32> to vector<8x32xf32>
    %cst_179 = arith.constant dense<0.000000e+00> : vector<32x32xf32>
    %433 = tpu.matmul %430, %432, %cst_179 {dimension_numbers = #tpu.dot_dimension_numbers<[1], [0], [0], [1], [0, 0, 1, 1], [], []>} : vector<32x8xf32>, vector<8x32xf32>, vector<32x32xf32> -> vector<32x32xf32>
    %434 = arith.addf %392, %433 : vector<32x32xf32>
    %c1_180 = arith.constant 1 : index
    %c0_181 = arith.constant 0 : index
    %c0_182 = arith.constant 0 : index
    %435 = vector.load %arg8[%c1_180, %c0_181, %c0_182] : memref<2x1x32xf32, #tpu.memory_space<vmem>>, vector<1x1x32xf32>
    %436 = vector.shape_cast %435 : vector<1x1x32xf32> to vector<1x32xf32>
    %437 = vector.broadcast %436 : vector<1x32xf32> to vector<32x32xf32>
    %438 = arith.addf %434, %437 : vector<32x32xf32>
    %439 = arith.addf %258, %438 : vector<32x32xf32>
    %c1_183 = arith.constant 1 : index
    %c0_184 = arith.constant 0 : index
    %c0_185 = arith.constant 0 : index
    %440 = vector.load %arg9[%c1_183, %c0_184, %c0_185] : memref<2x1x32xf32, #tpu.memory_space<vmem>>, vector<1x1x32xf32>
    %441 = vector.shape_cast %440 : vector<1x1x32xf32> to vector<1x32xf32>
    %c1_186 = arith.constant 1 : index
    %c0_187 = arith.constant 0 : index
    %c0_188 = arith.constant 0 : index
    %442 = vector.load %arg10[%c1_186, %c0_187, %c0_188] : memref<2x1x32xf32, #tpu.memory_space<vmem>>, vector<1x1x32xf32>
    %443 = vector.shape_cast %442 : vector<1x1x32xf32> to vector<1x32xf32>
    %cst_189 = arith.constant dense<0.000000e+00> : vector<32xf32>
    %444 = vector.multi_reduction <add>, %439, %cst_189 [1] : vector<32x32xf32> to vector<32xf32>
    %445 = vector.shape_cast %444 : vector<32xf32> to vector<32x1xf32>
    %cst_190 = arith.constant 3.200000e+01 : f32
    %446 = vector.broadcast %cst_190 : f32 to vector<32x1xf32>
    %447 = arith.divf %445, %446 : vector<32x1xf32>
    %448 = vector.broadcast %447 : vector<32x1xf32> to vector<32x32xf32>
    %449 = arith.subf %439, %448 : vector<32x32xf32>
    %450 = arith.mulf %449, %449 : vector<32x32xf32>
    %cst_191 = arith.constant dense<0.000000e+00> : vector<32xf32>
    %451 = vector.multi_reduction <add>, %450, %cst_191 [1] : vector<32x32xf32> to vector<32xf32>
    %452 = vector.shape_cast %451 : vector<32xf32> to vector<32x1xf32>
    %cst_192 = arith.constant 3.200000e+01 : f32
    %453 = vector.broadcast %cst_192 : f32 to vector<32x1xf32>
    %454 = arith.divf %452, %453 : vector<32x1xf32>
    %455 = vector.broadcast %447 : vector<32x1xf32> to vector<32x32xf32>
    %456 = arith.subf %439, %455 : vector<32x32xf32>
    %cst_193 = arith.constant 9.99999974E-6 : f32
    %457 = vector.broadcast %cst_193 : f32 to vector<32x1xf32>
    %458 = arith.addf %454, %457 : vector<32x1xf32>
    %459 = math.rsqrt %458 : vector<32x1xf32>
    %460 = vector.broadcast %459 : vector<32x1xf32> to vector<32x32xf32>
    %461 = arith.mulf %456, %460 : vector<32x32xf32>
    %462 = vector.broadcast %441 : vector<1x32xf32> to vector<32x32xf32>
    %463 = arith.mulf %461, %462 : vector<32x32xf32>
    %464 = vector.broadcast %443 : vector<1x32xf32> to vector<32x32xf32>
    %465 = arith.addf %463, %464 : vector<32x32xf32>
    %c1_194 = arith.constant 1 : index
    %c0_195 = arith.constant 0 : index
    %c0_196 = arith.constant 0 : index
    %466 = vector.load %arg11[%c1_194, %c0_195, %c0_196] : memref<2x32x2048xf32, #tpu.memory_space<vmem>>, vector<1x32x2048xf32>
    %467 = vector.shape_cast %466 : vector<1x32x2048xf32> to vector<32x2048xf32>
    %cst_197 = arith.constant dense<0.000000e+00> : vector<32x2048xf32>
    %468 = tpu.matmul %465, %467, %cst_197 {dimension_numbers = #tpu.dot_dimension_numbers<[1], [0], [0], [1], [0, 0, 1, 1], [], []>} : vector<32x32xf32>, vector<32x2048xf32>, vector<32x2048xf32> -> vector<32x2048xf32>
    %c1_198 = arith.constant 1 : index
    %c0_199 = arith.constant 0 : index
    %c0_200 = arith.constant 0 : index
    %469 = vector.load %arg12[%c1_198, %c0_199, %c0_200] : memref<2x1x2048xf32, #tpu.memory_space<vmem>>, vector<1x1x2048xf32>
    %470 = vector.shape_cast %469 : vector<1x1x2048xf32> to vector<1x2048xf32>
    %471 = vector.broadcast %470 : vector<1x2048xf32> to vector<32x2048xf32>
    %472 = arith.addf %468, %471 : vector<32x2048xf32>
    %cst_201 = arith.constant 0.000000e+00 : f32
    %473 = vector.broadcast %cst_201 : f32 to vector<32x2048xf32>
    %474 = arith.maximumf %472, %473 : vector<32x2048xf32>
    %c1_202 = arith.constant 1 : index
    %c0_203 = arith.constant 0 : index
    %c0_204 = arith.constant 0 : index
    %475 = vector.load %arg13[%c1_202, %c0_203, %c0_204] : memref<2x2048x32xf32, #tpu.memory_space<vmem>>, vector<1x2048x32xf32>
    %476 = vector.shape_cast %475 : vector<1x2048x32xf32> to vector<2048x32xf32>
    %cst_205 = arith.constant dense<0.000000e+00> : vector<32x32xf32>
    %477 = tpu.matmul %474, %476, %cst_205 {dimension_numbers = #tpu.dot_dimension_numbers<[1], [0], [0], [1], [0, 0, 1, 1], [], []>} : vector<32x2048xf32>, vector<2048x32xf32>, vector<32x32xf32> -> vector<32x32xf32>
    %c1_206 = arith.constant 1 : index
    %c0_207 = arith.constant 0 : index
    %c0_208 = arith.constant 0 : index
    %478 = vector.load %arg14[%c1_206, %c0_207, %c0_208] : memref<2x1x32xf32, #tpu.memory_space<vmem>>, vector<1x1x32xf32>
    %479 = vector.shape_cast %478 : vector<1x1x32xf32> to vector<1x32xf32>
    %480 = vector.broadcast %479 : vector<1x32xf32> to vector<32x32xf32>
    %481 = arith.addf %477, %480 : vector<32x32xf32>
    %482 = arith.addf %465, %481 : vector<32x32xf32>
    %c1_209 = arith.constant 1 : index
    %c0_210 = arith.constant 0 : index
    %c0_211 = arith.constant 0 : index
    %483 = vector.load %arg15[%c1_209, %c0_210, %c0_211] : memref<2x1x32xf32, #tpu.memory_space<vmem>>, vector<1x1x32xf32>
    %484 = vector.shape_cast %483 : vector<1x1x32xf32> to vector<1x32xf32>
    %c1_212 = arith.constant 1 : index
    %c0_213 = arith.constant 0 : index
    %c0_214 = arith.constant 0 : index
    %485 = vector.load %arg16[%c1_212, %c0_213, %c0_214] : memref<2x1x32xf32, #tpu.memory_space<vmem>>, vector<1x1x32xf32>
    %486 = vector.shape_cast %485 : vector<1x1x32xf32> to vector<1x32xf32>
    %cst_215 = arith.constant dense<0.000000e+00> : vector<32xf32>
    %487 = vector.multi_reduction <add>, %482, %cst_215 [1] : vector<32x32xf32> to vector<32xf32>
    %488 = vector.shape_cast %487 : vector<32xf32> to vector<32x1xf32>
    %cst_216 = arith.constant 3.200000e+01 : f32
    %489 = vector.broadcast %cst_216 : f32 to vector<32x1xf32>
    %490 = arith.divf %488, %489 : vector<32x1xf32>
    %491 = vector.broadcast %490 : vector<32x1xf32> to vector<32x32xf32>
    %492 = arith.subf %482, %491 : vector<32x32xf32>
    %493 = arith.mulf %492, %492 : vector<32x32xf32>
    %cst_217 = arith.constant dense<0.000000e+00> : vector<32xf32>
    %494 = vector.multi_reduction <add>, %493, %cst_217 [1] : vector<32x32xf32> to vector<32xf32>
    %495 = vector.shape_cast %494 : vector<32xf32> to vector<32x1xf32>
    %cst_218 = arith.constant 3.200000e+01 : f32
    %496 = vector.broadcast %cst_218 : f32 to vector<32x1xf32>
    %497 = arith.divf %495, %496 : vector<32x1xf32>
    %498 = vector.broadcast %490 : vector<32x1xf32> to vector<32x32xf32>
    %499 = arith.subf %482, %498 : vector<32x32xf32>
    %cst_219 = arith.constant 9.99999974E-6 : f32
    %500 = vector.broadcast %cst_219 : f32 to vector<32x1xf32>
    %501 = arith.addf %497, %500 : vector<32x1xf32>
    %502 = math.rsqrt %501 : vector<32x1xf32>
    %503 = vector.broadcast %502 : vector<32x1xf32> to vector<32x32xf32>
    %504 = arith.mulf %499, %503 : vector<32x32xf32>
    %505 = vector.broadcast %484 : vector<1x32xf32> to vector<32x32xf32>
    %506 = arith.mulf %504, %505 : vector<32x32xf32>
    %507 = vector.broadcast %486 : vector<1x32xf32> to vector<32x32xf32>
    %508 = arith.addf %506, %507 : vector<32x32xf32>
    %509 = vector.extract_strided_slice %508 {offsets = [15, 0], sizes = [1, 32], strides = [1, 1]} : vector<32x32xf32> to vector<1x32xf32>
    %510 = vector.extract_strided_slice %508 {offsets = [31, 0], sizes = [1, 32], strides = [1, 1]} : vector<32x32xf32> to vector<1x32xf32>
    %511 = tpu.concatenate %509, %510 in 0 : vector<1x32xf32>, vector<1x32xf32> -> vector<2x32xf32>
    %c0_220 = arith.constant 0 : index
    %c0_221 = arith.constant 0 : index
    %512 = vector.load %arg17[%c0_220, %c0_221] : memref<32x3xf32, #tpu.memory_space<vmem>>, vector<32x3xf32>
    %cst_222 = arith.constant dense<0.000000e+00> : vector<2x3xf32>
    %513 = tpu.matmul %511, %512, %cst_222 {dimension_numbers = #tpu.dot_dimension_numbers<[1], [0], [0], [1], [0, 0, 1, 1], [], []>} : vector<2x32xf32>, vector<32x3xf32>, vector<2x3xf32> -> vector<2x3xf32>
    %c0_223 = arith.constant 0 : index
    %c0_224 = arith.constant 0 : index
    %514 = vector.load %arg18[%c0_223, %c0_224] : memref<1x3xf32, #tpu.memory_space<vmem>>, vector<1x3xf32>
    %515 = vector.broadcast %514 : vector<1x3xf32> to vector<2x3xf32>
    %516 = arith.addf %513, %515 : vector<2x3xf32>
    %c0_225 = arith.constant 0 : index
    %c0_226 = arith.constant 0 : index
    %517 = vector.load %arg19[%c0_225, %c0_226] : memref<2x3xf32, #tpu.memory_space<vmem>>, vector<2x3xf32>
    tpu.vector_store %arg19[%c0_225, %c0_226], %516 {strides = array<i32>} : memref<2x3xf32, #tpu.memory_space<vmem>>, vector<2x3xf32>,
    return
  }
  func.func @transform_0(%arg0: i32) -> (i32, i32) {
    %c0_i32 = arith.constant 0 : i32
    %c0_i32_0 = arith.constant 0 : i32
    %c0_i32_1 = arith.constant 0 : i32
    return %c0_i32, %c0_i32_0 : i32, i32
  }
  func.func @transform_1(%arg0: i32) -> (i32, i32) {
    %c0_i32 = arith.constant 0 : i32
    %c0_i32_0 = arith.constant 0 : i32
    %c0_i32_1 = arith.constant 0 : i32
    return %c0_i32, %c0_i32_0 : i32, i32
  }
  func.func @transform_2(%arg0: i32) -> (i32, i32) {
    %c0_i32 = arith.constant 0 : i32
    %c0_i32_0 = arith.constant 0 : i32
    %c0_i32_1 = arith.constant 0 : i32
    return %c0_i32, %c0_i32_0 : i32, i32
  }
  func.func @transform_3(%arg0: i32) -> (i32, i32) {
    %c0_i32 = arith.constant 0 : i32
    %c0_i32_0 = arith.constant 0 : i32
    %c0_i32_1 = arith.constant 0 : i32
    return %c0_i32, %c0_i32_0 : i32, i32
  }
  func.func @transform_4(%arg0: i32) -> (i32, i32, i32) {
    %c0_i32 = arith.constant 0 : i32
    %c0_i32_0 = arith.constant 0 : i32
    %c0_i32_1 = arith.constant 0 : i32
    %c0_i32_2 = arith.constant 0 : i32
    return %c0_i32, %c0_i32_0, %c0_i32_1 : i32, i32, i32
  }
  func.func @transform_5(%arg0: i32) -> (i32, i32, i32) {
    %c0_i32 = arith.constant 0 : i32
    %c0_i32_0 = arith.constant 0 : i32
    %c0_i32_1 = arith.constant 0 : i32
    %c0_i32_2 = arith.constant 0 : i32
    return %c0_i32, %c0_i32_0, %c0_i32_1 : i32, i32, i32
  }
  func.func @transform_6(%arg0: i32) -> (i32, i32, i32, i32) {
    %c0_i32 = arith.constant 0 : i32
    %c0_i32_0 = arith.constant 0 : i32
    %c0_i32_1 = arith.constant 0 : i32
    %c0_i32_2 = arith.constant 0 : i32
    %c0_i32_3 = arith.constant 0 : i32
    return %c0_i32, %c0_i32_0, %c0_i32_1, %c0_i32_2 : i32, i32, i32, i32
  }
  func.func @transform_7(%arg0: i32) -> (i32, i32, i32) {
    %c0_i32 = arith.constant 0 : i32
    %c0_i32_0 = arith.constant 0 : i32
    %c0_i32_1 = arith.constant 0 : i32
    %c0_i32_2 = arith.constant 0 : i32
    return %c0_i32, %c0_i32_0, %c0_i32_1 : i32, i32, i32
  }
  func.func @transform_8(%arg0: i32) -> (i32, i32, i32) {
    %c0_i32 = arith.constant 0 : i32
    %c0_i32_0 = arith.constant 0 : i32
    %c0_i32_1 = arith.constant 0 : i32
    %c0_i32_2 = arith.constant 0 : i32
    return %c0_i32, %c0_i32_0, %c0_i32_1 : i32, i32, i32
  }
  func.func @transform_9(%arg0: i32) -> (i32, i32, i32) {
    %c0_i32 = arith.constant 0 : i32
    %c0_i32_0 = arith.constant 0 : i32
    %c0_i32_1 = arith.constant 0 : i32
    %c0_i32_2 = arith.constant 0 : i32
    return %c0_i32, %c0_i32_0, %c0_i32_1 : i32, i32, i32
  }
  func.func @transform_10(%arg0: i32) -> (i32, i32, i32) {
    %c0_i32 = arith.constant 0 : i32
    %c0_i32_0 = arith.constant 0 : i32
    %c0_i32_1 = arith.constant 0 : i32
    %c0_i32_2 = arith.constant 0 : i32
    return %c0_i32, %c0_i32_0, %c0_i32_1 : i32, i32, i32
  }
  func.func @transform_11(%arg0: i32) -> (i32, i32, i32) {
    %c0_i32 = arith.constant 0 : i32
    %c0_i32_0 = arith.constant 0 : i32
    %c0_i32_1 = arith.constant 0 : i32
    %c0_i32_2 = arith.constant 0 : i32
    return %c0_i32, %c0_i32_0, %c0_i32_1 : i32, i32, i32
  }
  func.func @transform_12(%arg0: i32) -> (i32, i32, i32) {
    %c0_i32 = arith.constant 0 : i32
    %c0_i32_0 = arith.constant 0 : i32
    %c0_i32_1 = arith.constant 0 : i32
    %c0_i32_2 = arith.constant 0 : i32
    return %c0_i32, %c0_i32_0, %c0_i32_1 : i32, i32, i32
  }
  func.func @transform_13(%arg0: i32) -> (i32, i32, i32) {
    %c0_i32 = arith.constant 0 : i32
    %c0_i32_0 = arith.constant 0 : i32
    %c0_i32_1 = arith.constant 0 : i32
    %c0_i32_2 = arith.constant 0 : i32
    return %c0_i32, %c0_i32_0, %c0_i32_1 : i32, i32, i32
  }
  func.func @transform_14(%arg0: i32) -> (i32, i32, i32) {
    %c0_i32 = arith.constant 0 : i32
    %c0_i32_0 = arith.constant 0 : i32
    %c0_i32_1 = arith.constant 0 : i32
    %c0_i32_2 = arith.constant 0 : i32
    return %c0_i32, %c0_i32_0, %c0_i32_1 : i32, i32, i32
  }
  func.func @transform_15(%arg0: i32) -> (i32, i32, i32) {
    %c0_i32 = arith.constant 0 : i32
    %c0_i32_0 = arith.constant 0 : i32
    %c0_i32_1 = arith.constant 0 : i32
    %c0_i32_2 = arith.constant 0 : i32
    return %c0_i32, %c0_i32_0, %c0_i32_1 : i32, i32, i32
  }
  func.func @transform_16(%arg0: i32) -> (i32, i32) {
    %c0_i32 = arith.constant 0 : i32
    %c0_i32_0 = arith.constant 0 : i32
    %c0_i32_1 = arith.constant 0 : i32
    return %c0_i32, %c0_i32_0 : i32, i32
  }
  func.func @transform_17(%arg0: i32) -> (i32, i32) {
    %c0_i32 = arith.constant 0 : i32
    %c0_i32_0 = arith.constant 0 : i32
    %c0_i32_1 = arith.constant 0 : i32
    return %c0_i32, %c0_i32_0 : i32, i32
  }
  func.func @transform_18(%arg0: i32) -> (i32, i32) {
    %c0_i32 = arith.constant 0 : i32
    %c0_i32_0 = arith.constant 0 : i32
    %c0_i32_1 = arith.constant 0 : i32
    return %c0_i32, %c0_i32_0 : i32, i32
  }
}

</mosaic_0001>

<bundles_post_ra>
// kernel: forward.1
= control target key start
LH: loop header
LB: loop body
LE: loop exit
PB: predicated region body
PF: predicated region fallthrough
CT: control target
= control target key end

     0   :  { %s9616_s0 = inlined_call_operand.vmem [shape: f32[32,8], index: 0, kind: input, shape index: {}]   ;;  %s9617_s1 = inlined_call_operand.vmem [shape: f32[8,32], index: 1, kind: input, shape index: {}]   ;;  %s9618_s2 = inlined_call_operand.vmem [shape: f32[1,32], index: 2, kind: input, shape index: {}]   ;;  %s9619_s3 = inlined_call_operand.vmem [shape: f32[16,32], index: 3, kind: input, shape index: {}]   ;;  %s9620_s4 = inlined_call_operand.vmem [shape: f32[2,32,96], index: 4, kind: input, shape index: {}]   ;;  %s9621_s5 = inlined_call_operand.vmem [shape: f32[2,1,96], index: 5, kind: input, shape index: {}]   ;;  %s9622_s6 = inlined_call_operand.vmem [shape: f32[2,4,8,32], index: 6, kind: input, shape index: {}]   ;;  %s9623_s7 = inlined_call_operand.vmem [shape: f32[2,1,32], index: 7, kind: input, shape index: {}]   ;;  %s9624_s8 = inlined_call_operand.vmem [shape: f32[2,1,32], index: 8, kind: input, shape index: {}]   ;;  %s9625_s9 = inlined_call_operand.vmem [shape: f32[2,1,32], index: 9, kind: input, shape index: {}]   ;;  %s9626_s10 = inlined_call_operand.vmem [shape: f32[2,32,2048], index: 10, kind: input, shape index: {}]   ;;  %s9627_s11 = inlined_call_operand.vmem [shape: f32[2,1,2048], index: 11, kind: input, shape index: {}]   ;;  %s9628_s12 = inlined_call_operand.vmem [shape: f32[2,2048,32], index: 12, kind: input, shape index: {}]   ;;  %s9629_s13 = inlined_call_operand.vmem [shape: f32[2,1,32], index: 13, kind: input, shape index: {}]   ;;  %s9630_s14 = inlined_call_operand.vmem [shape: f32[2,1,32], index: 14, kind: input, shape index: {}]   ;;  %s9631_s15 = inlined_call_operand.vmem [shape: f32[2,1,32], index: 15, kind: input, shape index: {}]   ;;  %s9632_s16 = inlined_call_operand.vmem [shape: f32[32,3], index: 16, kind: input, shape index: {}]   ;;  %s9633_s17 = inlined_call_operand.vmem [shape: f32[1,3], index: 17, kind: input, shape index: {}]   ;;  %s9634_s18 = inlined_call_operand.hbm [shape: f32[2,3], index: 18, kind: output, shape index: {}]  }
   0x1   :  { %9645 = sst [smem:[#allocation5_spill]] %s9616_s0 }
   0x2   :  { %9646 = sst [smem:[#allocation6_spill]] %s9617_s1 }
   0x3   :  { %9647 = sst [smem:[#allocation7_spill]] %s9618_s2 }
   0x4   :  { %9648 = sst [smem:[#allocation8_spill]] %s9629_s13 }
   0x5   :  { %s9649_s29 = sld [smem:[#allocation6_spill]]  ;;  %vm71_vm0 = vcmask 64512   ;;  %v120_v4 = vld [vmem:[%s9620_s4 + $0x18] sm:$0xff] }
   0x6   :  { %s9650_s13 = sld [smem:[#allocation5_spill]] }
   0xb   :  { %v66_v0 = vld [vmem:[%s9649_s29] sm:$0xff] }
   0xc   :  { %v60_v1 = vld [vmem:[%s9650_s13] sm:$0xff]  ;;  %v61_v2 = vld [vmem:[%s9650_s13 + $0x8] sm:$0xff]  ;;  %99 = vmatpush.msra.mxu0 %v66_v0  ;;  %5914 = vmatpush.msra.mxu1 %v66_v0  ;;  %v63_v3 = vld [vmem:[%s9650_s13 + $0x18] sm:$0xff] }
   0xd   :  { %5305 = vmatmul.msk.f32.vlgmr.msra.gmra.mxu0 %vm71_vm0, %v60_v1  ;;  %5306 = vmatmul.msk.f32.vlgmr.msra.gmra.mxu1 %vm71_vm0, %v61_v2  ;;  %v62_v5 = vld [vmem:[%s9650_s13 + $0x10] sm:$0xff] }
   0xe   :  { %5915 = vmatpush.msra.mxu2 %v66_v0  ;;  %150 = vmatpush.msrb.mxu1 %v120_v4 }
   0xf   :  { %5308 = vmatmul.msk.f32.vlgmr.msra.gmra.mxu2 %vm71_vm0, %v63_v3 }
  0x10   :  { %23 = vsyncpa [#allocation3], 0  ;;  %v119_v6 = vld [vmem:[%s9620_s4 + $0x10] sm:$0xff]  ;;  %v118_v7 = vld [vmem:[%s9620_s4 + $0x8] sm:$0xff]  ;;  %s9651_s19 = sld [smem:[#allocation7_spill]]  ;;  %vm125_vm1 = vcmask 261120  }
  0x11   :  { %151 = vmatpush.msrb.mxu1 %v119_v6  ;;  %v117_v8 = vld [vmem:[%s9620_s4] sm:$0xff]  ;;  %v65_v16 = vld [vmem:[%s9619_s3 + $0x8] sm:$0xff]  ;;  %s6209_s23 = smov 96   ;;  %s6210_s24 = smov 64   ;;  %vm206_vm2 = vcmask 130048  }
  0x12   :  { %v64_v10 = vld [vmem:[%s9619_s3] sm:$0xff]  ;;  %s6211_s25 = smov 88   ;;  %s6212_s26 = smov 120  }
  0x13   :  { %152 = vmatpush.msrb.mxu1 %v118_v7  ;;  %v6010_v25 = vld [vmem:[%s9621_s5] ss:$0 sm:$0xff]  ;;  %s6213_s27 = smov 80   ;;  %s6214_s28 = smov 112  }
  0x14   :  { %s6215_s29 = smov 56   ;;  %s9643_s30 = smov 48  }
  0x15   :  { %5307 = vmatmul.msk.f32.gmra.mxu1 %vm71_vm0, %v62_v5  ;;  %s9641_s0 = smov 72   ;;  %s9639_s13 = smov 104  }
  0x16   :  { %153 = vmatpush.msrb.mxu1 %v117_v8  ;;  %v6009_v9 = vld [vmem:[%s9651_s19] ss:$0 sm:$0xff]  ;;  %s9637_s2 = smov 40   ;;  %s9652_s22 = sld [smem:[#allocation8_spill]] }
  0x8a   :  { %v101_v11 = vpop.f32.mrf.mxu0  ;;  %v104_v13 = vpop.f32.mrf.mxu1 }
  0x8b   :  { %v102_v12 = vadd.f32 %v6009_v9, %v101_v11  ;;  %v105_v15 = vadd.f32 %v6009_v9, %v104_v13 }
  0x8d   :  { %v6354_v14 = vadd.f32 %v102_v12, %v64_v10  ;;  %v6361_v17 = vadd.f32 %v105_v15, %v65_v16 }
  0x8f   :  { %5309 = vmatmul.msk.f32.vlgmr.msrb.gmra.mxu1 %vm125_vm1, %v6354_v14 }
  0x92   :  { %v107_v18 = vpop.f32.mrf.mxu1  ;;  %v110_v21 = vpop.f32.mrf.mxu2 }
  0x93   :  { %v108_v19 = vadd.f32 %v6009_v9, %v107_v18  ;;  %v111_v22 = vadd.f32 %v6009_v9, %v110_v21 }
  0x95   :  { %v6365_v20 = vadd.f32 %v108_v19, %v64_v10  ;;  %v6369_v23 = vadd.f32 %v111_v22, %v65_v16 }
  0x97   :  { %5310 = vmatmul.msk.f32.gmra.mxu1 %vm125_vm1, %v6361_v17 }
  0x9f   :  { %5311 = vmatmul.msk.f32.gmra.mxu1 %vm125_vm1, %v6365_v20 }
  0xa7   :  { %5312 = vmatmul.msk.f32.gmra.mxu1 %vm125_vm1, %v6369_v23 }
 0x10c   :  { %v155_v24 = vpop.f32.mrf.mxu1 }
 0x10d   :  { %v6376_v27 = vadd.f32 %v6010_v25, %v155_v24 }
 0x114   :  { %v158_v26 = vpop.f32.mrf.mxu1 }
 0x115   :  { %v6378_v28 = vadd.f32 %v6010_v25, %v158_v26 }
 0x117   :  { %171 = vrot.lane.b32.xlu0 %v6378_v28, %s6209_s23  ;;  %v6384_v29 = vpack.i.bf16 %v6376_v27, %v6378_v28 }
 0x119   :  { %5930 = vrot.lane.b32.xlu2 %v6384_v29, %s6210_s24 }
 0x11c   :  { %v161_v41 = vpop.f32.mrf.mxu1 }
 0x11d   :  { %v6412_v44 = vadd.f32 %v6010_v25, %v161_v41 }
 0x11f   :  { %169 = vrot.lane.b32.xlu0 %v6376_v27, %s6209_s23 }
 0x124   :  { %v164_v42 = vpop.f32.mrf.mxu1 }
 0x125   :  { %v6398_v43 = vadd.f32 %v6010_v25, %v164_v42 }
 0x173   :  { %v5931_v30 = vpop.permute.xlu2 %5930 }
 0x174   :  { %v5932_v31 = vunpack.i.l.bf16 %v5931_v30  ;;  %v5933_v32 = vunpack.i.h.bf16 %v5931_v30 }
 0x176   :  { %255 = vmatpush.msra.mxu3 %v5932_v31 }
 0x178   :  { %256 = vmatpush.msra.mxu3 %v5933_v32 }
 0x189   :  { %v172_v33 = vpop.permute.xlu0 %171 }
 0x18a   :  { %5313 = vmatpush.xpose.msk.msrb.mxu2 %vm71_vm0, %v172_v33 }
 0x191   :  { %v170_v34 = vpop.permute.xlu0 %169 }
 0x192   :  { %5314 = vmatpush.xpose.msk.msrb.mxu2 %vm71_vm0, %v170_v34  ;;  %v6476_v34 = vpack.i.bf16 %v6412_v44, %v6398_v43 }
 0x195   :  { %5315 = vmatmul.msk.f32.vlgmr.msrb.gmra.mxu2 %vm71_vm0, %v6376_v27 }
 0x19d   :  { %5316 = vmatmul.msk.f32.gmra.mxu2 %vm71_vm0, %v6378_v28 }
 0x218   :  { %v198_v35 = vpop.f32.mrf.mxu2 }
 0x219   :  { %v204_v36 = vmul.f32 0.35355338, %v198_v35 }
 0x21b   :  { %v207_v37 = vsel %vm206_vm2, %v204_v36, -inf }
 0x21c   :  { %208 = vmax.xlane.f32.xlu1 %v207_v37 }
 0x220   :  { %v201_v38 = vpop.f32.mrf.mxu2 }
 0x221   :  { %v205_v39 = vmul.f32 0.35355338, %v201_v38 }
 0x223   :  { %v210_v40 = vsel %vm206_vm2, %v205_v39, -inf }
 0x224   :  { %211 = vmax.xlane.f32.xlu1 %v210_v40 }
 0x23d   :  { %268 = vrot.lane.b32.xlu1 %v6398_v43, %s6209_s23 }
 0x245   :  { %365 = vrot.lane.b32.xlu1 %v6376_v27, %s6211_s25 }
 0x24d   :  { %465 = vrot.lane.b32.xlu1 %v6398_v43, %s6211_s25 }
 0x255   :  { %363 = vrot.lane.b32.xlu1 %v6378_v28, %s6212_s26 }
 0x25d   :  { %647 = vrot.lane.b32.xlu1 %v6378_v28, %s6213_s27 }
 0x265   :  { %641 = vrot.lane.b32.xlu1 %v6376_v27, %s6214_s28 }
 0x26d   :  { %743 = vrot.lane.b32.xlu1 %v6412_v44, %s6213_s27 }
 0x28f   :  { %v209_v45 = vpop.xlane.xlu1 %208 }
 0x290   :  { %v213_v46 = vsub.f32 %v204_v36, %v209_v45 }
 0x292   :  { %v215_v47 = vmul.f32 1.442695, %v213_v46 }
 0x294   :  { %6025 = vpow2.f32 %v215_v47 }
 0x297   :  { %v212_v48 = vpop.xlane.xlu1 %211 }
 0x298   :  { %v214_v49 = vsub.f32 %v205_v39, %v212_v48 }
 0x29a   :  { %v6026_v50 = vpop.eup %6025  ;;  %v217_v51 = vmul.f32 1.442695, %v214_v49 }
 0x29b   :  { %v219_v52 = vsel %vm206_vm2, %v6026_v50, 0.0 }
 0x29c   :  { %6027 = vpow2.f32 %v217_v51  ;;  %220 = vadd.xlane.f32.xlu2 %v219_v52 }
 0x2a2   :  { %v6028_v53 = vpop.eup %6027 }
 0x2a3   :  { %v222_v54 = vsel %vm206_vm2, %v6028_v53, 0.0 }
 0x2a4   :  { %223 = vadd.xlane.f32.xlu0 %v222_v54 }
 0x2af   :  { %v269_v55 = vpop.permute.xlu1 %268 }
 0x2b0   :  { %5319 = vmatpush.xpose.msk.msrb.mxu3 %vm71_vm0, %v269_v55 }
 0x2b4   :  { %266 = vrot.lane.b32.xlu2 %v6412_v44, %s6209_s23 }
 0x2b7   :  { %v366_v56 = vpop.permute.xlu1 %365 }
 0x2b8   :  { %459 = vrot.lane.b32.xlu0 %v6412_v44, %s6212_s26 }
 0x2bc   :  { %367 = vrot.lane.b32.xlu2 %v6378_v28, %s6211_s25 }
 0x2bf   :  { %v466_v57 = vpop.permute.xlu1 %465 }
 0x2c0   :  { %643 = vrot.lane.b32.xlu0 %v6378_v28, %s6214_s28  ;;  %5331 = vmatpush.xpose.msk.msra.mxu1 %vm71_vm0, %v466_v57 }
 0x2c4   :  { %361 = vrot.lane.b32.xlu2 %v6376_v27, %s6212_s26 }
 0x2c7   :  { %v364_v2 = vpop.permute.xlu1 %363 }
 0x2c8   :  { %739 = vrot.lane.b32.xlu0 %v6412_v44, %s6214_s28 }
 0x2cc   :  { %463 = vrot.lane.b32.xlu2 %v6412_v44, %s6211_s25 }
 0x2cf   :  { %v648_v5 = vpop.permute.xlu1 %647 }
 0x2d4   :  { %461 = vrot.lane.b32.xlu2 %v6398_v43, %s6212_s26 }
 0x2d7   :  { %v642_v9 = vpop.permute.xlu1 %641 }
 0x2dc   :  { %645 = vrot.lane.b32.xlu2 %v6376_v27, %s6213_s27 }
 0x2df   :  { %v744_v12 = vpop.permute.xlu1 %743 }
 0x2e4   :  { %745 = vrot.lane.b32.xlu2 %v6398_v43, %s6213_s27 }
 0x2ec   :  { %741 = vrot.lane.b32.xlu2 %v6398_v43, %s6214_s28 }
 0x30f   :  { %v221_v58 = vpop.xlane.xlu2 %220 }
 0x310   :  { %6029 = vrcp.f32 %v221_v58 }
 0x316   :  { %v6030_v59 = vpop.eup %6029 }
 0x317   :  { %v267_v60 = vpop.permute.xlu2 %266  ;;  %v224_v61 = vpop.xlane.xlu0 %223  ;;  %v227_v62 = vmul.f32 %v6030_v59, %v6026_v50 }
 0x318   :  { %6031 = vrcp.f32 %v224_v61  ;;  %5320 = vmatpush.xpose.msk.msrb.mxu3 %vm71_vm0, %v267_v60 }
 0x319   :  { %5317 = vmatmul.msk.f32.vlgmr.msra.gmra.mxu3 %vm206_vm2, %v227_v62 }
 0x31e   :  { %v6032_v63 = vpop.eup %6031 }
 0x31f   :  { %v368_v0 = vpop.permute.xlu2 %367  ;;  %v228_v1 = vmul.f32 %v6032_v63, %v6028_v53 }
 0x320   :  { %5325 = vmatpush.xpose.msk.msrb.mxu0 %vm71_vm0, %v368_v0 }
 0x321   :  { %5318 = vmatmul.msk.f32.gmra.mxu3 %vm206_vm2, %v228_v1 }
 0x324   :  { %5326 = vmatpush.xpose.msk.msrb.mxu0 %vm71_vm0, %v366_v56 }
 0x327   :  { %v362_v3 = vpop.permute.xlu2 %361 }
 0x328   :  { %5327 = vmatmul.msk.f32.vlgmr.msrb.gmra.mxu0 %vm71_vm0, %v362_v3 }
 0x329   :  { %5321 = vmatmul.msk.f32.vlgmr.msrb.gmra.mxu3 %vm71_vm0, %v6412_v44 }
 0x32a   :  { %v460_v6 = vpop.permute.xlu0 %459 }
 0x32f   :  { %v464_v4 = vpop.permute.xlu2 %463 }
 0x330   :  { %5328 = vmatmul.msk.f32.gmra.mxu0 %vm71_vm0, %v364_v2  ;;  %5332 = vmatpush.xpose.msk.msra.mxu1 %vm71_vm0, %v464_v4 }
 0x331   :  { %5322 = vmatmul.msk.f32.gmra.mxu3 %vm71_vm0, %v6398_v43 }
 0x332   :  { %v644_v11 = vpop.permute.xlu0 %643 }
 0x333   :  { %5333 = vmatmul.msk.f32.vlgmr.msra.gmra.mxu1 %vm71_vm0, %v460_v6 }
 0x334   :  { %5346 = vmatpush.xpose.msk.msrb.mxu1 %vm71_vm0, %v648_v5 }
 0x337   :  { %v462_v7 = vpop.permute.xlu2 %461 }
 0x33a   :  { %v740_v13 = vpop.permute.xlu0 %739 }
 0x33b   :  { %5334 = vmatmul.msk.f32.gmra.mxu1 %vm71_vm0, %v462_v7 }
 0x33f   :  { %v646_v8 = vpop.permute.xlu2 %645 }
 0x340   :  { %5347 = vmatpush.xpose.msk.msrb.mxu1 %vm71_vm0, %v646_v8 }
 0x343   :  { %5348 = vmatmul.msk.f32.vlgmr.msrb.gmra.mxu1 %vm71_vm0, %v642_v9 }
 0x347   :  { %v746_v10 = vpop.permute.xlu2 %745 }
 0x348   :  { %5352 = vmatpush.xpose.msk.msra.mxu1 %vm71_vm0, %v746_v10 }
 0x34b   :  { %5349 = vmatmul.msk.f32.gmra.mxu1 %vm71_vm0, %v644_v11 }
 0x34c   :  { %5353 = vmatpush.xpose.msk.msra.mxu1 %vm71_vm0, %v744_v12 }
 0x34f   :  { %v742_v15 = vpop.permute.xlu2 %741 }
 0x353   :  { %5354 = vmatmul.msk.f32.vlgmr.msra.gmra.mxu1 %vm71_vm0, %v740_v13 }
 0x35b   :  { %5355 = vmatmul.msk.f32.gmra.mxu1 %vm71_vm0, %v742_v15 }
 0x39c   :  { %v6464_v16 = vpop.f32.mrf.mxu3 }
 0x3a4   :  { %v6466_v18 = vpop.f32.mrf.mxu3 }
 0x3a5   :  { %v394_v22 = vpop.f32.mrf.mxu0 }
 0x3a6   :  { %v400_v51 = vmul.f32 0.35355338, %v394_v22 }
 0x3a8   :  { %v402_v54 = vsel %vm206_vm2, %v400_v51, -inf }
 0x3ac   :  { %v295_v19 = vpop.f32.mrf.mxu3 }
 0x3ad   :  { %v301_v21 = vmul.f32 0.35355338, %v295_v19  ;;  %v397_v31 = vpop.f32.mrf.mxu0 }
 0x3ae   :  { %v6470_v32 = vmul.f32 0.35355338, %v397_v31 }
 0x3af   :  { %v303_v24 = vsel %vm206_vm2, %v301_v21, -inf }
 0x3b0   :  { %304 = vmax.xlane.f32.xlu1 %v303_v24  ;;  %v405_v33 = vsel %vm206_vm2, %v6470_v32, -inf  ;;  %v492_v35 = vpop.f32.mrf.mxu1 }
 0x3b1   :  { %v498_v55 = vmul.f32 0.35355338, %v492_v35 }
 0x3b3   :  { %v500_v62 = vsel %vm206_vm2, %v498_v55, -inf }
 0x3b4   :  { %v298_v25 = vpop.f32.mrf.mxu3 }
 0x3b5   :  { %v302_v26 = vmul.f32 0.35355338, %v298_v25 }
 0x3b7   :  { %v306_v30 = vsel %vm206_vm2, %v302_v26, -inf }
 0x3b8   :  { %307 = vmax.xlane.f32.xlu0 %v306_v30  ;;  %v495_v36 = vpop.f32.mrf.mxu1 }
 0x3b9   :  { %v499_v56 = vmul.f32 0.35355338, %v495_v36 }
 0x3bb   :  { %v503_v61 = vsel %vm206_vm2, %v499_v56, -inf }
 0x3c0   :  { %406 = vmax.xlane.f32.xlu0 %v405_v33  ;;  %v674_v37 = vpop.f32.mrf.mxu1 }
 0x3c1   :  { %v680_v63 = vmul.f32 0.35355338, %v674_v37 }
 0x3c3   :  { %v682_v2 = vsel %vm206_vm2, %v680_v63, -inf }
 0x3c8   :  { %v677_v38 = vpop.f32.mrf.mxu1 }
 0x3c9   :  { %5935 = vrot.lane.b32.xlu1 %v6476_v34, %s6210_s24  ;;  %v6480_v39 = vmul.f32 0.35355338, %v677_v38 }
 0x3cb   :  { %v685_v40 = vsel %vm206_vm2, %v6480_v39, -inf }
 0x3d0   :  { %v772_v59 = vpop.f32.mrf.mxu1 }
 0x3d1   :  { %v6489_v0 = vmul.f32 0.35355338, %v772_v59 }
 0x3d3   :  { %v780_v1 = vsel %vm206_vm2, %v6489_v0, -inf }
 0x3d8   :  { %v775_v3 = vpop.f32.mrf.mxu1 }
 0x3d9   :  { %v6494_v4 = vmul.f32 0.35355338, %v775_v3 }
 0x3db   :  { %v783_v5 = vsel %vm206_vm2, %v6494_v4, -inf }
 0x3f3   :  { %686 = vmax.xlane.f32.xlu1 %v685_v40 }
 0x423   :  { %v305_v41 = vpop.xlane.xlu1 %304 }
 0x424   :  { %v309_v42 = vsub.f32 %v301_v21, %v305_v41 }
 0x426   :  { %v311_v45 = vmul.f32 1.442695, %v309_v42 }
 0x428   :  { %6033 = vpow2.f32 %v311_v45 }
 0x42b   :  { %v308_v46 = vpop.xlane.xlu0 %307 }
 0x42c   :  { %v310_v47 = vsub.f32 %v302_v26, %v308_v46 }
 0x42e   :  { %v6034_v48 = vpop.eup %6033  ;;  %v313_v49 = vmul.f32 1.442695, %v310_v47 }
 0x42f   :  { %v315_v50 = vsel %vm206_vm2, %v6034_v48, 0.0 }
 0x430   :  { %6035 = vpow2.f32 %v313_v49  ;;  %316 = vadd.xlane.f32.xlu2 %v315_v50 }
 0x433   :  { %v407_v6 = vpop.xlane.xlu0 %406 }
 0x434   :  { %v409_v13 = vsub.f32 %v6470_v32, %v407_v6 }
 0x436   :  { %v6036_v52 = vpop.eup %6035  ;;  %v412_v21 = vmul.f32 1.442695, %v409_v13 }
 0x437   :  { %v318_v53 = vsel %vm206_vm2, %v6036_v52, 0.0 }
 0x438   :  { %319 = vadd.xlane.f32.xlu0 %v318_v53  ;;  %403 = vmax.xlane.f32.xlu2 %v402_v54 }
 0x43b   :  { %v5936_v57 = vpop.permute.xlu1 %5935 }
 0x43c   :  { %v5937_v58 = vunpack.i.l.bf16 %v5936_v57  ;;  %v5938_v60 = vunpack.i.h.bf16 %v5936_v57 }
 0x43e   :  { %351 = vmatpush.msra.mxu2 %v5937_v58 }
 0x440   :  { %504 = vmax.xlane.f32.xlu0 %v503_v61  ;;  %501 = vmax.xlane.f32.xlu2 %v500_v62 }
 0x441   :  { %352 = vmatpush.msra.mxu2 %v5938_v60 }
 0x448   :  { %781 = vmax.xlane.f32.xlu0 %v780_v1  ;;  %683 = vmax.xlane.f32.xlu2 %v682_v2  ;;  %v360_v2 = vld [vmem:[%s9622_s6] sm:$0xff] }
 0x450   :  { %784 = vmax.xlane.f32.xlu2 %v783_v5 }
 0x466   :  { %v687_v54 = vpop.xlane.xlu1 %686 }
 0x468   :  { %5940 = vrot.lane.b32.xlu2 %v6384_v29, %s6215_s29 }
 0x4a3   :  { %v317_v7 = vpop.xlane.xlu2 %316 }
 0x4a4   :  { %6037 = vrcp.f32 %v317_v7 }
 0x4aa   :  { %v6038_v8 = vpop.eup %6037 }
 0x4ab   :  { %v323_v9 = vmul.f32 %v6038_v8, %v6034_v48  ;;  %v320_v10 = vpop.xlane.xlu0 %319  ;;  %v404_v11 = vpop.xlane.xlu2 %403 }
 0x4ac   :  { %6039 = vrcp.f32 %v320_v10  ;;  %v408_v12 = vsub.f32 %v400_v51, %v404_v11 }
 0x4ad   :  { %5323 = vmatmul.msk.f32.vlgmr.msra.gmra.mxu2 %vm206_vm2, %v323_v9 }
 0x4ae   :  { %v410_v15 = vmul.f32 1.442695, %v408_v12 }
 0x4b0   :  { %6041 = vpow2.f32 %v410_v15 }
 0x4b1   :  { %6043 = vpow2.f32 %v412_v21 }
 0x4b2   :  { %v6040_v19 = vpop.eup %6039 }
 0x4b3   :  { %v505_v22 = vpop.xlane.xlu0 %504  ;;  %v502_v24 = vpop.xlane.xlu2 %501  ;;  %v324_v25 = vmul.f32 %v6040_v19, %v6036_v52 }
 0x4b4   :  { %v507_v26 = vsub.f32 %v499_v56, %v505_v22  ;;  %v506_v33 = vsub.f32 %v498_v55, %v502_v24  ;;  %v689_v55 = vsub.f32 %v6480_v39, %v687_v54 }
 0x4b5   :  { %5324 = vmatmul.msk.f32.gmra.mxu2 %vm206_vm2, %v324_v25 }
 0x4b6   :  { %v6503_v30 = vpop.eup %6041  ;;  %v510_v31 = vmul.f32 1.442695, %v507_v26  ;;  %v508_v32 = vmul.f32 1.442695, %v506_v33  ;;  %v692_v57 = vmul.f32 1.442695, %v689_v55 }
 0x4b7   :  { %v414_v35 = vsel %vm206_vm2, %v6503_v30, 0.0  ;;  %v6507_v37 = vpop.eup %6043 }
 0x4b8   :  { %6045 = vpow2.f32 %v510_v31  ;;  %415 = vadd.xlane.f32.xlu0 %v414_v35  ;;  %v417_v45 = vsel %vm206_vm2, %v6507_v37, 0.0 }
 0x4b9   :  { %6047 = vpow2.f32 %v508_v32 }
 0x4bb   :  { %v684_v36 = vpop.xlane.xlu2 %683  ;;  %v782_v56 = vpop.xlane.xlu0 %781 }
 0x4bc   :  { %v688_v38 = vsub.f32 %v680_v63, %v684_v36  ;;  %v786_v58 = vsub.f32 %v6489_v0, %v782_v56 }
 0x4be   :  { %v6509_v40 = vpop.eup %6045  ;;  %v690_v41 = vmul.f32 1.442695, %v688_v38  ;;  %v788_v60 = vmul.f32 1.442695, %v786_v58 }
 0x4bf   :  { %v515_v42 = vsel %vm206_vm2, %v6509_v40, 0.0  ;;  %v6515_v47 = vpop.eup %6047 }
 0x4c0   :  { %516 = vadd.xlane.f32.xlu2 %v515_v42  ;;  %418 = vadd.xlane.f32.xlu0 %v417_v45  ;;  %6049 = vpow2.f32 %v690_v41  ;;  %v512_v49 = vsel %vm206_vm2, %v6515_v47, 0.0 }
 0x4c1   :  { %6051 = vpow2.f32 %v692_v57  ;;  %v5358_v57 = vld [vmem:[%s9622_s6 + $0x10] sm:$0xff] }
 0x4c2   :  { %6053 = vpow2.f32 %v788_v60 }
 0x4c3   :  { %v785_v46 = vpop.xlane.xlu2 %784 }
 0x4c4   :  { %v787_v59 = vsub.f32 %v6494_v4, %v785_v46 }
 0x4c6   :  { %v6517_v48 = vpop.eup %6049  ;;  %v790_v61 = vmul.f32 1.442695, %v787_v59 }
 0x4c7   :  { %v694_v50 = vsel %vm206_vm2, %v6517_v48, 0.0  ;;  %v6540_v62 = vpop.eup %6051 }
 0x4c8   :  { %513 = vadd.xlane.f32.xlu0 %v512_v49  ;;  %695 = vadd.xlane.f32.xlu1 %v694_v50  ;;  %6055 = vpow2.f32 %v790_v61  ;;  %v697_v63 = vsel %vm206_vm2, %v6540_v62, 0.0  ;;  %v6544_v39 = vpop.eup %6053 }
 0x4cb   :  { %v5941_v51 = vpop.permute.xlu2 %5940 }
 0x4cc   :  { %v5942_v52 = vunpack.i.l.bf16 %v5941_v51  ;;  %v5943_v53 = vunpack.i.h.bf16 %v5941_v51  ;;  %v5337_v51 = vld [vmem:[%s9622_s6 + $0x8] sm:$0xff] }
 0x4cd   :  { %586 = vmatpush.msra.mxu0 %v5337_v51 }
 0x4ce   :  { %450 = vmatpush.msra.mxu3 %v5942_v52  ;;  %v6546_v1 = vpop.eup %6055 }
 0x4cf   :  { %v795_v0 = vsel %vm206_vm2, %v6546_v1, 0.0  ;;  %866 = vmatpush.msrb.mxu0 %v5358_v57 }
 0x4d0   :  { %451 = vmatpush.msra.mxu3 %v5943_v53 }
 0x4d2   :  { %627 = vmatpush.msrb.mxu3 %v360_v2 }
 0x4d8   :  { %5955 = vrot.lane.b32.xlu2 %v6476_v34, %s9643_s30 }
 0x4dc   :  { %5945 = vrot.lane.b32.xlu0 %v6476_v34, %s6215_s29 }
 0x4e0   :  { %890 = vrot.lane.b32.xlu2 %v6378_v28, %s9641_s0 }
 0x4e1   :  { %5950 = vrot.lane.b32.xlu1 %v6384_v29, %s9643_s30 }
 0x4e8   :  { %884 = vrot.lane.b32.xlu2 %v6376_v27, %s9639_s13 }
 0x4f0   :  { %986 = vrot.lane.b32.xlu2 %v6412_v44, %s9641_s0 }
 0x4f8   :  { %982 = vrot.lane.b32.xlu2 %v6412_v44, %s9639_s13  ;;  %v792_v44 = vsel %vm206_vm2, %v6544_v39, 0.0 }
 0x506   :  { %698 = vadd.xlane.f32.xlu0 %v697_v63 }
 0x50b   :  { %793 = vadd.xlane.f32.xlu1 %v792_v44 }
 0x50e   :  { %796 = vadd.xlane.f32.xlu0 %v795_v0 }
 0x522   :  { %888 = vrot.lane.b32.xlu0 %v6376_v27, %s9641_s0 }
 0x524   :  { %988 = vrot.lane.b32.xlu1 %v6398_v43, %s9641_s0 }
 0x52a   :  { %886 = vrot.lane.b32.xlu0 %v6378_v28, %s9639_s13 }
 0x52b   :  { %v416_v3 = vpop.xlane.xlu0 %415 }
 0x52c   :  { %6057 = vrcp.f32 %v416_v3 }
 0x530   :  { %v354_v19 = vpop.f32.mrf.mxu2 }
 0x532   :  { %v6058_v4 = vpop.eup %6057  ;;  %984 = vrot.lane.b32.xlu0 %v6398_v43, %s9639_s13  ;;  %s9656_s13 = smov 40  }
 0x533   :  { %v422_v5 = vmul.f32 %v6058_v4, %v6503_v30  ;;  %v419_v27 = vpop.xlane.xlu0 %418  ;;  %v517_v6 = vpop.xlane.xlu2 %516 }
 0x534   :  { %6059 = vrcp.f32 %v419_v27 }
 0x535   :  { %5329 = vmatmul.msk.f32.vlgmr.msra.gmra.mxu3 %vm206_vm2, %v422_v5 }
 0x538   :  { %v357_v31 = vpop.f32.mrf.mxu2 }
 0x53a   :  { %v6060_v7 = vpop.eup %6059 }
 0x53b   :  { %v5956_v8 = vpop.permute.xlu2 %5955  ;;  %v423_v9 = vmul.f32 %v6060_v7, %v6507_v37  ;;  %v514_v43 = vpop.xlane.xlu0 %513 }
 0x53c   :  { %6061 = vrcp.f32 %v514_v43  ;;  %v696_v10 = vpop.xlane.xlu1 %695  ;;  %v5958_v26 = vunpack.i.h.bf16 %v5956_v8 }
 0x53d   :  { %5330 = vmatmul.msk.f32.gmra.mxu3 %vm206_vm2, %v423_v9  ;;  %6063 = vrcp.f32 %v517_v6 }
 0x53e   :  { %6065 = vrcp.f32 %v696_v10 }
 0x542   :  { %v6062_v12 = vpop.eup %6061 }
 0x543   :  { %v891_v28 = vpop.permute.xlu2 %890  ;;  %v520_v21 = vmul.f32 %v6062_v12, %v6515_v47  ;;  %v6064_v25 = vpop.eup %6063 }
 0x544   :  { %5363 = vmatpush.xpose.msk.msra.mxu3 %vm71_vm0, %v891_v28  ;;  %v521_v30 = vmul.f32 %v6064_v25, %v6509_v40  ;;  %v6066_v33 = vpop.eup %6065 }
 0x545   :  { %5342 = vmatmul.msk.f32.vlgmr.msrb.gmra.mxu3 %vm71_vm0, %v6464_v16  ;;  %v702_v35 = vmul.f32 %v6066_v33, %v6517_v48 }
 0x54b   :  { %v885_v45 = vpop.permute.xlu2 %884 }
 0x54d   :  { %5343 = vmatmul.msk.f32.gmra.mxu3 %vm71_vm0, %v6466_v18  ;;  %v5957_v18 = vunpack.i.l.bf16 %v5956_v8 }
 0x54e   :  { %v5946_v11 = vpop.permute.xlu0 %5945 }
 0x54f   :  { %v5947_v13 = vunpack.i.l.bf16 %v5946_v11  ;;  %v5948_v15 = vunpack.i.h.bf16 %v5946_v11 }
 0x551   :  { %548 = vmatpush.msrb.mxu2 %v5947_v13 }
 0x553   :  { %549 = vmatpush.msrb.mxu2 %v5948_v15  ;;  %v5951_v22 = vpop.permute.xlu1 %5950  ;;  %v987_v48 = vpop.permute.xlu2 %986 }
 0x554   :  { %5335 = vmatmul.msk.f32.vlgmr.msrb.gmra.mxu2 %vm206_vm2, %v520_v21  ;;  %v5952_v16 = vunpack.i.l.bf16 %v5951_v22  ;;  %v5953_v24 = vunpack.i.h.bf16 %v5951_v22 }
 0x555   :  { %5344 = vmatmul.msk.f32.gmra.mxu3 %vm71_vm0, %v354_v19 }
 0x556   :  { %730 = vmatpush.msra.mxu2 %v5952_v16 }
 0x558   :  { %731 = vmatpush.msra.mxu2 %v5953_v24 }
 0x55a   :  { %828 = vmatpush.msrb.mxu2 %v5957_v18 }
 0x55b   :  { %v983_v53 = vpop.permute.xlu2 %982 }
 0x55c   :  { %829 = vmatpush.msrb.mxu2 %v5958_v26 }
 0x55d   :  { %5336 = vmatmul.msk.f32.gmra.mxu2 %vm206_vm2, %v521_v30  ;;  %5345 = vmatmul.msk.f32.gmra.mxu3 %vm71_vm0, %v357_v31 }
 0x565   :  { %5350 = vmatmul.msk.f32.vlgmr.msra.gmra.mxu2 %vm206_vm2, %v702_v35 }
 0x579   :  { %v699_v32 = vpop.xlane.xlu0 %698 }
 0x57a   :  { %6067 = vrcp.f32 %v699_v32 }
 0x57e   :  { %v794_v36 = vpop.xlane.xlu1 %793 }
 0x57f   :  { %6069 = vrcp.f32 %v794_v36 }
 0x580   :  { %v6068_v37 = vpop.eup %6067 }
 0x581   :  { %v703_v38 = vmul.f32 %v6068_v37, %v6540_v62  ;;  %v797_v40 = vpop.xlane.xlu0 %796 }
 0x582   :  { %6071 = vrcp.f32 %v797_v40 }
 0x583   :  { %5351 = vmatmul.msk.f32.gmra.mxu2 %vm206_vm2, %v703_v38 }
 0x585   :  { %v6070_v41 = vpop.eup %6069 }
 0x586   :  { %v800_v42 = vmul.f32 %v6070_v41, %v6544_v39 }
 0x588   :  { %v6072_v46 = vpop.eup %6071 }
 0x589   :  { %v801_v47 = vmul.f32 %v6072_v46, %v6546_v1 }
 0x58b   :  { %5356 = vmatmul.msk.f32.vlgmr.msrb.gmra.mxu2 %vm206_vm2, %v800_v42 }
 0x593   :  { %5357 = vmatmul.msk.f32.gmra.mxu2 %vm206_vm2, %v801_v47 }
 0x594   :  { %v889_v49 = vpop.permute.xlu0 %888 }
 0x595   :  { %5364 = vmatpush.xpose.msk.msra.mxu3 %vm71_vm0, %v889_v49 }
 0x596   :  { %v989_v50 = vpop.permute.xlu1 %988 }
 0x597   :  { %5369 = vmatpush.xpose.msk.msra.mxu2 %vm71_vm0, %v989_v50 }
 0x598   :  { %5365 = vmatmul.msk.f32.vlgmr.msra.gmra.mxu3 %vm71_vm0, %v885_v45 }
 0x59b   :  { %5370 = vmatpush.xpose.msk.msra.mxu2 %vm71_vm0, %v987_v48 }
 0x59c   :  { %v887_v52 = vpop.permute.xlu0 %886 }
 0x59e   :  { %5371 = vmatmul.msk.f32.vlgmr.msra.gmra.mxu2 %vm71_vm0, %v983_v53 }
 0x5a0   :  { %5366 = vmatmul.msk.f32.gmra.mxu3 %vm71_vm0, %v887_v52 }
 0x5a4   :  { %v985_v54 = vpop.permute.xlu0 %984 }
 0x5a6   :  { %5372 = vmatmul.msk.f32.gmra.mxu2 %vm71_vm0, %v985_v54 }
 0x5b8   :  { %v453_v55 = vpop.f32.mrf.mxu3 }
 0x5b9   :  { %5338 = vmatmul.msk.f32.vlgmr.msra.gmra.mxu0 %vm71_vm0, %v453_v55 }
 0x5c0   :  { %v456_v56 = vpop.f32.mrf.mxu3 }
 0x5c1   :  { %5339 = vmatmul.msk.f32.gmra.mxu0 %vm71_vm0, %v456_v56 }
 0x5c8   :  { %v6604_v61 = vpop.f32.mrf.mxu3 }
 0x5d0   :  { %v6606_v62 = vpop.f32.mrf.mxu3 }
 0x5d7   :  { %v551_v58 = vpop.f32.mrf.mxu2 }
 0x5d8   :  { %5340 = vmatmul.msk.f32.gmra.mxu0 %vm71_vm0, %v551_v58  ;;  %v6609_v39 = vpop.f32.mrf.mxu3  ;;  %v5375_v58 = vld [vmem:[%s9622_s6 + $0x18] sm:$0xff] }
 0x5e0   :  { %v554_v59 = vpop.f32.mrf.mxu2  ;;  %v6612_v44 = vpop.f32.mrf.mxu3 }
 0x5e1   :  { %5341 = vmatmul.msk.f32.gmra.mxu0 %vm71_vm0, %v554_v59 }
 0x5e8   :  { %v733_v60 = vpop.f32.mrf.mxu2 }
 0x5e9   :  { %5359 = vmatmul.msk.f32.vlgmr.msrb.gmra.mxu0 %vm71_vm0, %v733_v60 }
 0x606   :  { %v736_v63 = vpop.f32.mrf.mxu2 }
 0x607   :  { %5360 = vmatmul.msk.f32.gmra.mxu0 %vm71_vm0, %v736_v63 }
 0x60e   :  { %v831_v1 = vpop.f32.mrf.mxu2 }
 0x60f   :  { %5361 = vmatmul.msk.f32.gmra.mxu0 %vm71_vm0, %v831_v1 }
 0x616   :  { %v834_v0 = vpop.f32.mrf.mxu2 }
 0x617   :  { %5362 = vmatmul.msk.f32.gmra.mxu0 %vm71_vm0, %v834_v0 }
 0x61b   :  { %v917_v2 = vpop.f32.mrf.mxu3 }
 0x61c   :  { %v923_v3 = vmul.f32 0.35355338, %v917_v2 }
 0x61e   :  { %v925_v4 = vsel %vm206_vm2, %v923_v3, -inf }
 0x61f   :  { %926 = vmax.xlane.f32.xlu2 %v925_v4 }
 0x621   :  { %v1015_v5 = vpop.f32.mrf.mxu2 }
 0x622   :  { %v1021_v27 = vmul.f32 0.35355338, %v1015_v5 }
 0x623   :  { %v920_v6 = vpop.f32.mrf.mxu3 }
 0x624   :  { %v924_v7 = vmul.f32 0.35355338, %v920_v6  ;;  %v1023_v8 = vsel %vm206_vm2, %v1021_v27, -inf }
 0x625   :  { %1024 = vmax.xlane.f32.xlu1 %v1023_v8 }
 0x626   :  { %v928_v9 = vsel %vm206_vm2, %v924_v7, -inf }
 0x627   :  { %929 = vmax.xlane.f32.xlu0 %v928_v9 }
 0x629   :  { %v1018_v28 = vpop.f32.mrf.mxu2 }
 0x62a   :  { %v1022_v43 = vmul.f32 0.35355338, %v1018_v28 }
 0x62c   :  { %v1026_v10 = vsel %vm206_vm2, %v1022_v43, -inf }
 0x62d   :  { %1027 = vmax.xlane.f32.xlu2 %v1026_v10 }
 0x636   :  { %v588_v0 = vpop.f32.mrf.mxu0 }
 0x63b   :  { %5960 = vrot.lane.b32.xlu0 %v6384_v29, %s9637_s2 }
 0x63e   :  { %v591_v2 = vpop.f32.mrf.mxu0 }
 0x63f   :  { %v633_v10 = vadd.f32 %v6606_v62, %v591_v2  ;;  %v1299_v2 = vld [vmem:[%s9626_s10 + $0x188] sm:$0xff] }
 0x640   :  { %1403 = vmatpush.msra.mxu0 %v1299_v2  ;;  %v1256_v2 = vld [vmem:[%s9626_s10 + $0x30] sm:$0xff] }
 0x692   :  { %v927_v11 = vpop.xlane.xlu2 %926 }
 0x693   :  { %v931_v12 = vsub.f32 %v923_v3, %v927_v11  ;;  %v594_v3 = vpop.f32.mrf.mxu0 }
 0x695   :  { %v933_v13 = vmul.f32 1.442695, %v931_v12 }
 0x697   :  { %6073 = vpow2.f32 %v933_v13 }
 0x698   :  { %v1025_v15 = vpop.xlane.xlu1 %1024 }
 0x699   :  { %v1029_v19 = vsub.f32 %v1021_v27, %v1025_v15  ;;  %v630_v27 = vadd.f32 %v6604_v61, %v588_v0  ;;  %v1298_v0 = vld [vmem:[%s9626_s10 + $0x180] sm:$0xff] }
 0x69a   :  { %v930_v21 = vpop.xlane.xlu0 %929  ;;  %1374 = vmatpush.msrb.mxu2 %v1298_v0  ;;  %v1254_v0 = vld [vmem:[%s9626_s10 + $0x20] sm:$0xff] }
 0x69b   :  { %v932_v22 = vsub.f32 %v924_v7, %v930_v21  ;;  %v1031_v16 = vmul.f32 1.442695, %v1029_v19  ;;  %v597_v4 = vpop.f32.mrf.mxu0  ;;  %v6011_v7 = vld [vmem:[%s9623_s7] ss:$0 sm:$0xff] }
 0x69d   :  { %v6074_v24 = vpop.eup %6073  ;;  %v935_v25 = vmul.f32 1.442695, %v932_v22  ;;  %6075 = vpow2.f32 %v1031_v16 }
 0x69e   :  { %v937_v18 = vsel %vm206_vm2, %v6074_v24, 0.0 }
 0x69f   :  { %6077 = vpow2.f32 %v935_v25  ;;  %938 = vadd.xlane.f32.xlu2 %v937_v18 }
 0x6a0   :  { %v1028_v26 = vpop.xlane.xlu2 %1027 }
 0x6a1   :  { %v1030_v30 = vsub.f32 %v1022_v43, %v1028_v26 }
 0x6a3   :  { %v6076_v31 = vpop.eup %6075  ;;  %v1033_v29 = vmul.f32 1.442695, %v1030_v30  ;;  %v868_v5 = vpop.f32.mrf.mxu0  ;;  %v639_v30 = vadd.f32 %v6612_v44, %v597_v4  ;;  %v1301_v4 = vld [vmem:[%s9626_s10 + $0x198] sm:$0xff] }
 0x6a4   :  { %v1035_v32 = vsel %vm206_vm2, %v6076_v31, 0.0  ;;  %v880_v6 = vadd.f32 %v868_v5, %v630_v27  ;;  %v1282_v5 = vld [vmem:[%s9626_s10 + $0x100] sm:$0xff]  ;;  %v1283_v27 = vld [vmem:[%s9626_s10 + $0x108] sm:$0xff] }
 0x6a5   :  { %v6078_v33 = vpop.eup %6077  ;;  %6079 = vpow2.f32 %v1033_v29  ;;  %1375 = vmatpush.msrb.mxu2 %v1282_v5  ;;  %1404 = vmatpush.msra.mxu0 %v1283_v27  ;;  %v1257_v27 = vld [vmem:[%s9626_s10 + $0x38] sm:$0xff] }
 0x6a6   :  { %v940_v35 = vsel %vm206_vm2, %v6078_v33, 0.0 }
 0x6a7   :  { %941 = vadd.xlane.f32.xlu1 %v940_v35  ;;  %1036 = vadd.xlane.f32.xlu2 %v1035_v32 }
 0x6ab   :  { %v6080_v36 = vpop.eup %6079  ;;  %v871_v43 = vpop.f32.mrf.mxu0 }
 0x6ac   :  { %v1038_v40 = vsel %vm206_vm2, %v6080_v36, 0.0  ;;  %v881_v12 = vadd.f32 %v871_v43, %v633_v10  ;;  %v1269_v43 = vld [vmem:[%s9626_s10 + $0x98] sm:$0xff]  ;;  %v1250_v10 = vld [vmem:[%s9626_s10] sm:$0xff] }
 0x6ad   :  { %v5961_v37 = vpop.permute.xlu0 %5960 }
 0x6ae   :  { %v5962_v38 = vunpack.i.l.bf16 %v5961_v37  ;;  %v5963_v41 = vunpack.i.h.bf16 %v5961_v37  ;;  %v6220_v37 = vmov 32.0  }
 0x6af   :  { %1039 = vadd.xlane.f32.xlu2 %v1038_v40 }
 0x6b0   :  { %973 = vmatpush.msrb.mxu1 %v5962_v38 }
 0x6b2   :  { %974 = vmatpush.msrb.mxu1 %v5963_v41 }
 0x6b3   :  { %v874_v16 = vpop.f32.mrf.mxu0 }
 0x6b4   :  { %1109 = vmatpush.msra.mxu1 %v5375_v58 }
 0x6c0   :  { %5965 = vrot.lane.b32.xlu1 %v6476_v34, %s9637_s2 }
 0x712   :  { %v939_v42 = vpop.xlane.xlu2 %938 }
 0x713   :  { %6081 = vrcp.f32 %v939_v42 }
 0x719   :  { %v6082_v45 = vpop.eup %6081 }
 0x71a   :  { %v945_v46 = vmul.f32 %v6082_v45, %v6074_v24  ;;  %v942_v47 = vpop.xlane.xlu1 %941  ;;  %v1037_v50 = vpop.xlane.xlu2 %1036  ;;  %v636_v24 = vadd.f32 %v6609_v39, %v594_v3  ;;  %v1300_v3 = vld [vmem:[%s9626_s10 + $0x190] sm:$0xff] }
 0x71b   :  { %6083 = vrcp.f32 %v942_v47 }
 0x71c   :  { %5367 = vmatmul.msk.f32.vlgmr.msrb.gmra.mxu1 %vm206_vm2, %v945_v46  ;;  %6085 = vrcp.f32 %v1037_v50  ;;  %v882_v25 = vadd.f32 %v874_v16, %v636_v24 }
 0x71d   :  { %1461 = vmatpush.msrb.mxu1 %v1301_v4 }
 0x721   :  { %v6084_v48 = vpop.eup %6083 }
 0x722   :  { %v946_v49 = vmul.f32 %v6084_v48, %v6078_v33  ;;  %v1040_v51 = vpop.xlane.xlu2 %1039  ;;  %v6086_v53 = vpop.eup %6085 }
 0x723   :  { %6087 = vrcp.f32 %v1040_v51  ;;  %v1043_v55 = vmul.f32 %v6086_v53, %v6076_v31 }
 0x724   :  { %5368 = vmatmul.msk.f32.gmra.mxu1 %vm206_vm2, %v946_v49  ;;  %6089 = vrcp.f32 %v6220_v37 }
 0x729   :  { %v6088_v56 = vpop.eup %6087 }
 0x72a   :  { %v1044_v57 = vmul.f32 %v6088_v56, %v6080_v36  ;;  %v6090_v38 = vpop.eup %6089 }
 0x72b   :  { %v1154_v40 = vmul.f32 32.0, %v6090_v38  ;;  %vm1158_vm3 = vweird.f32 %v6090_v38 }
 0x72d   :  { %v1155_v41 = vsub.f32 1.0, %v1154_v40 }
 0x72f   :  { %v1156_v44 = vmul.f32 %v6090_v38, %v1155_v41 }
 0x731   :  { %v1157_v42 = vadd.f32 %v6090_v38, %v1156_v44 }
 0x732   :  { %v5966_v52 = vpop.permute.xlu1 %5965 }
 0x733   :  { %v5967_v54 = vunpack.i.l.bf16 %v5966_v52  ;;  %v5968_v34 = vunpack.i.h.bf16 %v5966_v52 }
 0x735   :  { %1071 = vmatpush.msrb.mxu3 %v5967_v54 }
 0x737   :  { %1072 = vmatpush.msrb.mxu3 %v5968_v34 }
 0x738   :  { %5373 = vmatmul.msk.f32.vlgmr.msrb.gmra.mxu3 %vm206_vm2, %v1043_v55 }
 0x739   :  { %1432 = vmatpush.msra.mxu3 %v1300_v3  ;;  %v1255_v3 = vld [vmem:[%s9626_s10 + $0x28] sm:$0xff] }
 0x740   :  { %5374 = vmatmul.msk.f32.gmra.mxu3 %vm206_vm2, %v1044_v57 }
 0x799   :  { %v976_v59 = vpop.f32.mrf.mxu1 }
 0x79a   :  { %5376 = vmatmul.msk.f32.vlgmr.msra.gmra.mxu1 %vm71_vm0, %v976_v59 }
 0x7a1   :  { %v979_v60 = vpop.f32.mrf.mxu1 }
 0x7a2   :  { %5377 = vmatmul.msk.f32.gmra.mxu1 %vm71_vm0, %v979_v60 }
 0x7bb   :  { %v1074_v63 = vpop.f32.mrf.mxu3 }
 0x7bc   :  { %5378 = vmatmul.msk.f32.gmra.mxu1 %vm71_vm0, %v1074_v63 }
 0x7c3   :  { %v1077_v1 = vpop.f32.mrf.mxu3 }
 0x7c4   :  { %5379 = vmatmul.msk.f32.gmra.mxu1 %vm71_vm0, %v1077_v1 }
 0x817   :  { %v1111_v8 = vpop.f32.mrf.mxu1 }
 0x818   :  { %v1123_v9 = vadd.f32 %v1111_v8, %v880_v6  ;;  %v1284_v6 = vld [vmem:[%s9626_s10 + $0x110] sm:$0xff]  ;;  %v1266_v8 = vld [vmem:[%s9626_s10 + $0x80] sm:$0xff] }
 0x819   :  { %1433 = vmatpush.msra.mxu3 %v1284_v6  ;;  %1376 = vmatpush.msrb.mxu2 %v1266_v8 }
 0x81a   :  { %v1131_v28 = vadd.f32 %v6011_v7, %v1123_v9  ;;  %v1267_v9 = vld [vmem:[%s9626_s10 + $0x88] sm:$0xff] }
 0x81b   :  { %1405 = vmatpush.msra.mxu0 %v1267_v9  ;;  %1377 = vmatpush.msrb.mxu2 %v1250_v10 }
 0x81c   :  { %v1135_v11 = vadd.f32 %v1131_v28, %v6354_v14  ;;  %v877_v14 = vpop.f32.mrf.mxu0  ;;  %v1268_v28 = vld [vmem:[%s9626_s10 + $0x90] sm:$0xff] }
 0x81d   :  { %v883_v29 = vadd.f32 %v877_v14, %v639_v30  ;;  %1434 = vmatpush.msra.mxu3 %v1268_v28 }
 0x81e   :  { %v1141_v13 = vsel %vm125_vm1, %v1135_v11, 0.0 }
 0x81f   :  { %v1114_v15 = vpop.f32.mrf.mxu1  ;;  %1142 = vadd.xlane.f32.xlu0 %v1141_v13  ;;  %v1253_v13 = vld [vmem:[%s9626_s10 + $0x18] sm:$0xff] }
 0x820   :  { %v1124_v19 = vadd.f32 %v1114_v15, %v881_v12  ;;  %v1252_v12 = vld [vmem:[%s9626_s10 + $0x10] sm:$0xff] }
 0x821   :  { %1435 = vmatpush.msra.mxu3 %v1252_v12 }
 0x822   :  { %v1132_v61 = vadd.f32 %v6011_v7, %v1124_v19 }
 0x824   :  { %v1136_v21 = vadd.f32 %v1132_v61, %v6361_v17 }
 0x826   :  { %v1144_v22 = vsel %vm125_vm1, %v1136_v21, 0.0 }
 0x827   :  { %1145 = vadd.xlane.f32.xlu2 %v1144_v22 }
 0x839   :  { %v1117_v18 = vpop.f32.mrf.mxu1 }
 0x83a   :  { %v1125_v62 = vadd.f32 %v1117_v18, %v882_v25 }
 0x83c   :  { %v1133_v26 = vadd.f32 %v6011_v7, %v1125_v62 }
 0x83e   :  { %v1137_v31 = vadd.f32 %v1133_v26, %v6365_v20  ;;  %v6653_v20 = vsel %vm1158_vm3, %v6090_v38, %v1157_v42 }
 0x840   :  { %v1147_v33 = vsel %vm125_vm1, %v1137_v31, 0.0 }
 0x841   :  { %v1120_v35 = vpop.f32.mrf.mxu1  ;;  %1148 = vadd.xlane.f32.xlu2 %v1147_v33 }
 0x842   :  { %v1126_v17 = vadd.f32 %v1120_v35, %v883_v29  ;;  %v6732_v29 = vld [vmem:[%s9624_s8] ss:$0 sm:$0xff] }
 0x844   :  { %v1134_v32 = vadd.f32 %v6011_v7, %v1126_v17  ;;  %v1285_v7 = vld [vmem:[%s9626_s10 + $0x118] sm:$0xff]  ;;  %v6737_v17 = vld [vmem:[%s9625_s9] ss:$0 sm:$0xff] }
 0x845   :  { %1462 = vmatpush.msrb.mxu1 %v1285_v7 }
 0x846   :  { %v1138_v36 = vadd.f32 %v1134_v32, %v6369_v23 }
 0x847   :  { %1463 = vmatpush.msrb.mxu1 %v1269_v43 }
 0x848   :  { %v1150_v39 = vsel %vm125_vm1, %v1138_v36, 0.0 }
 0x849   :  { %1151 = vadd.xlane.f32.xlu1 %v1150_v39  ;;  %1464 = vmatpush.msrb.mxu1 %v1253_v13  ;;  %v1306_v13 = vld [vmem:[%s9626_s10 + $0x1c0] sm:$0xff] }
 0x892   :  { %v1143_v45 = vpop.xlane.xlu0 %1142 }
 0x893   :  { %v1160_v46 = vmul.f32 %v6653_v20, %v1143_v45 }
 0x895   :  { %v6656_v47 = vsub.f32 %v1135_v11, %v1160_v46  ;;  %v1251_v11 = vld [vmem:[%s9626_s10 + $0x8] sm:$0xff] }
 0x896   :  { %1406 = vmatpush.msra.mxu0 %v1251_v11 }
 0x897   :  { %v1168_v23 = vmul.f32 %v6656_v47, %v6656_v47 }
 0x899   :  { %v1172_v48 = vsel %vm125_vm1, %v1168_v23, 0.0 }
 0x89a   :  { %v1146_v49 = vpop.xlane.xlu2 %1145  ;;  %1173 = vadd.xlane.f32.xlu2 %v1172_v48  ;;  %v1302_v48 = vld [vmem:[%s9626_s10 + $0x1a0] sm:$0xff] }
 0x89b   :  { %v1161_v50 = vmul.f32 %v6653_v20, %v1146_v49  ;;  %v1304_v49 = vld [vmem:[%s9626_s10 + $0x1b0] sm:$0xff]  ;;  %1490 = vmatpush.msra.mxu2 %v1302_v48  ;;  %v1295_v48 = vld [vmem:[%s9626_s10 + $0x168] sm:$0xff] }
 0x89c   :  { %1548 = vmatpush.msrb.mxu3 %v1304_v49  ;;  %v1297_v49 = vld [vmem:[%s9626_s10 + $0x178] sm:$0xff] }
 0x89d   :  { %v6662_v51 = vsub.f32 %v1136_v21, %v1161_v50  ;;  %v1286_v50 = vld [vmem:[%s9626_s10 + $0x120] sm:$0xff] }
 0x89e   :  { %1491 = vmatpush.msra.mxu2 %v1286_v50  ;;  %v1278_v50 = vld [vmem:[%s9626_s10 + $0xe0] sm:$0xff] }
 0x89f   :  { %v1169_v52 = vmul.f32 %v6662_v51, %v6662_v51 }
 0x8a1   :  { %v1175_v53 = vsel %vm125_vm1, %v1169_v52, 0.0  ;;  %v1288_v52 = vld [vmem:[%s9626_s10 + $0x130] sm:$0xff] }
 0x8a2   :  { %1176 = vadd.xlane.f32.xlu2 %v1175_v53  ;;  %v1305_v53 = vld [vmem:[%s9626_s10 + $0x1b8] sm:$0xff]  ;;  %1549 = vmatpush.msrb.mxu3 %v1288_v52  ;;  %v1280_v52 = vld [vmem:[%s9626_s10 + $0xf0] sm:$0xff] }
 0x8a3   :  { %1577 = vmatpush.msra.mxu1 %v1305_v53  ;;  %v1281_v53 = vld [vmem:[%s9626_s10 + $0xf8] sm:$0xff] }
 0x8b4   :  { %v1149_v54 = vpop.xlane.xlu2 %1148 }
 0x8b5   :  { %v1162_v34 = vmul.f32 %v6653_v20, %v1149_v54  ;;  %v1287_v54 = vld [vmem:[%s9626_s10 + $0x128] sm:$0xff] }
 0x8b7   :  { %v6668_v55 = vsub.f32 %v1137_v31, %v1162_v34  ;;  %v1289_v34 = vld [vmem:[%s9626_s10 + $0x138] sm:$0xff] }
 0x8b8   :  { %1578 = vmatpush.msra.mxu1 %v1289_v34  ;;  %v1264_v34 = vld [vmem:[%s9626_s10 + $0x70] sm:$0xff] }
 0x8b9   :  { %v1170_v56 = vmul.f32 %v6668_v55, %v6668_v55 }
 0x8bb   :  { %v1178_v57 = vsel %vm125_vm1, %v1170_v56, 0.0  ;;  %v1270_v56 = vld [vmem:[%s9626_s10 + $0xa0] sm:$0xff] }
 0x8bc   :  { %1179 = vadd.xlane.f32.xlu2 %v1178_v57  ;;  %v1152_v58 = vpop.xlane.xlu1 %1151  ;;  %1492 = vmatpush.msra.mxu2 %v1270_v56  ;;  %v1263_v56 = vld [vmem:[%s9626_s10 + $0x68] sm:$0xff] }
 0x8bd   :  { %v1163_v59 = vmul.f32 %v6653_v20, %v1152_v58  ;;  %v1271_v58 = vld [vmem:[%s9626_s10 + $0xa8] sm:$0xff] }
 0x8be   :  { %1493 = vmatpush.msra.mxu2 %v1254_v0  ;;  %v1904_v0 = vld [vmem:[%s9628_s12 + $0x70] sm:$0xff] }
 0x8bf   :  { %v6674_v60 = vsub.f32 %v1138_v36, %v1163_v59  ;;  %v1272_v59 = vld [vmem:[%s9626_s10 + $0xb0] sm:$0xff] }
 0x8c0   :  { %1550 = vmatpush.msrb.mxu3 %v1272_v59  ;;  %v1921_v59 = vld [vmem:[%s9628_s12 + $0xf8] sm:$0xff] }
 0x8c1   :  { %v1171_v63 = vmul.f32 %v6674_v60, %v6674_v60 }
 0x8c2   :  { %1551 = vmatpush.msrb.mxu3 %v1256_v2  ;;  %v1920_v2 = vld [vmem:[%s9628_s12 + $0xf0] sm:$0xff] }
 0x8c3   :  { %v1181_v1 = vsel %vm125_vm1, %v1171_v63, 0.0 }
 0x8c4   :  { %1182 = vadd.xlane.f32.xlu0 %v1181_v1  ;;  %v1273_v1 = vld [vmem:[%s9626_s10 + $0xb8] sm:$0xff] }
 0x8c5   :  { %1579 = vmatpush.msra.mxu1 %v1273_v1  ;;  %v1953_v1 = vld [vmem:[%s9628_s12 + $0x1f8] sm:$0xff] }
 0x8c7   :  { %1580 = vmatpush.msra.mxu1 %v1257_v27  ;;  %v1919_v27 = vld [vmem:[%s9628_s12 + $0xe8] sm:$0xff] }
 0x90d   :  { %v1174_v15 = vpop.xlane.xlu2 %1173 }
 0x90e   :  { %v1184_v19 = vmul.f32 %v1174_v15, %v6653_v20 }
 0x910   :  { %v1188_v61 = vadd.f32 1e-05, %v1184_v19 }
 0x912   :  { %6091 = vrsqrt.f32 %v1188_v61  ;;  %vm1198_vm5 = vweird.f32 %v1188_v61 }
 0x915   :  { %v1177_v21 = vpop.xlane.xlu2 %1176 }
 0x916   :  { %v1185_v22 = vmul.f32 %v1177_v21, %v6653_v20 }
 0x918   :  { %v6092_v16 = vpop.eup %6091  ;;  %v1189_v24 = vadd.f32 1e-05, %v1185_v22 }
 0x919   :  { %v1193_v25 = vmul.f32 %v6092_v16, %v1188_v61  ;;  %vm1199_vm4 = vweird.f32 %v6092_v16 }
 0x91a   :  { %6093 = vrsqrt.f32 %v1189_v24  ;;  %vm1200_vm6 = vmor %vm1198_vm5, %vm1199_vm4  ;;  %vm1208_vm8 = vweird.f32 %v1189_v24 }
 0x91b   :  { %v1194_v18 = vmul.f32 %v6092_v16, %v1193_v25  ;;  %v1290_v25 = vld [vmem:[%s9626_s10 + $0x140] sm:$0xff] }
 0x91d   :  { %v1195_v62 = vmul.f32 0.5, %v1194_v18 }
 0x91f   :  { %v1196_v26 = vsub.f32 1.5, %v1195_v62 }
 0x920   :  { %v6094_v14 = vpop.eup %6093 }
 0x921   :  { %v1197_v30 = vmul.f32 %v6092_v16, %v1196_v26  ;;  %v1203_v31 = vmul.f32 %v6094_v14, %v1189_v24  ;;  %vm1209_vm7 = vweird.f32 %v6094_v14 }
 0x922   :  { %vm1210_vm9 = vmor %vm1208_vm8, %vm1209_vm7 }
 0x923   :  { %v1201_v33 = vsel %vm1200_vm6, %v6092_v16, %v1197_v30  ;;  %v1204_v35 = vmul.f32 %v6094_v14, %v1203_v31  ;;  %v1309_v30 = vld [vmem:[%s9626_s10 + $0x1d8] sm:$0xff]  ;;  %v1291_v31 = vld [vmem:[%s9626_s10 + $0x148] sm:$0xff] }
 0x924   :  { %v1232_v32 = vmul.f32 %v1201_v33, %v6656_v47  ;;  %v1274_v33 = vld [vmem:[%s9626_s10 + $0xc0] sm:$0xff] }
 0x925   :  { %v1205_v36 = vmul.f32 0.5, %v1204_v35  ;;  %v1275_v35 = vld [vmem:[%s9626_s10 + $0xc8] sm:$0xff] }
 0x926   :  { %v1239_v39 = vmul.f32 %v6732_v29, %v1232_v32  ;;  %v1277_v32 = vld [vmem:[%s9626_s10 + $0xd8] sm:$0xff] }
 0x927   :  { %v1206_v37 = vsub.f32 1.5, %v1205_v36  ;;  %v1258_v36 = vld [vmem:[%s9626_s10 + $0x40] sm:$0xff] }
 0x928   :  { %v6742_v38 = vadd.f32 %v6737_v17, %v1239_v39  ;;  %v1260_v39 = vld [vmem:[%s9626_s10 + $0x50] sm:$0xff] }
 0x929   :  { %v1207_v40 = vmul.f32 %v6094_v14, %v1206_v37  ;;  %v1259_v37 = vld [vmem:[%s9626_s10 + $0x48] sm:$0xff] }
 0x92a   :  { %5380 = vmatmul.msk.f32.vlgmr.msrb.gmra.mxu2 %vm125_vm1, %v6742_v38  ;;  %5384 = vmatmul.msk.f32.vlgmr.msra.gmra.mxu0 %vm125_vm1, %v6742_v38 }
 0x92b   :  { %v1211_v41 = vsel %vm1210_vm9, %v6094_v14, %v1207_v40  ;;  %5388 = vmatmul.msk.f32.vlgmr.msra.gmra.mxu3 %vm125_vm1, %v6742_v38  ;;  %5392 = vmatmul.msk.f32.vlgmr.msrb.gmra.mxu1 %vm125_vm1, %v6742_v38  ;;  %v1292_v14 = vld [vmem:[%s9626_s10 + $0x150] sm:$0xff]  ;;  %v1261_v40 = vld [vmem:[%s9626_s10 + $0x58] sm:$0xff] }
 0x92c   :  { %v1233_v44 = vmul.f32 %v1211_v41, %v6662_v51  ;;  %v1303_v51 = vld [vmem:[%s9626_s10 + $0x1a8] sm:$0xff]  ;;  %1606 = vmatpush.msrb.mxu2 %v1306_v13  ;;  %1693 = vmatpush.msrb.mxu1 %v1309_v30  ;;  %v1310_v41 = vld [vmem:[%s9626_s10 + $0x1e0] sm:$0xff]  ;;  %v1949_v13 = vld [vmem:[%s9628_s12 + $0x1d8] sm:$0xff] }
 0x92d   :  { %1519 = vmatpush.msrb.mxu0 %v1303_v51  ;;  %v1279_v51 = vld [vmem:[%s9626_s10 + $0xe8] sm:$0xff]  ;;  %v1897_v30 = vld [vmem:[%s9628_s12 + $0x38] sm:$0xff] }
 0x92e   :  { %v1240_v42 = vmul.f32 %v6732_v29, %v1233_v44  ;;  %1607 = vmatpush.msrb.mxu2 %v1290_v25  ;;  %v1312_v44 = vld [vmem:[%s9626_s10 + $0x1f0] sm:$0xff]  ;;  %v1947_v25 = vld [vmem:[%s9628_s12 + $0x1c8] sm:$0xff] }
 0x92f   :  { %v1180_v45 = vpop.xlane.xlu2 %1179  ;;  %1520 = vmatpush.msrb.mxu0 %v1287_v54  ;;  %v1262_v54 = vld [vmem:[%s9626_s10 + $0x60] sm:$0xff] }
 0x930   :  { %v6755_v46 = vadd.f32 %v6737_v17, %v1240_v42  ;;  %v1186_v47 = vmul.f32 %v1180_v45, %v6653_v20  ;;  %1608 = vmatpush.msrb.mxu2 %v1274_v33  ;;  %v1294_v42 = vld [vmem:[%s9626_s10 + $0x160] sm:$0xff]  ;;  %v1311_v45 = vld [vmem:[%s9626_s10 + $0x1e8] sm:$0xff]  ;;  %v1945_v33 = vld [vmem:[%s9628_s12 + $0x1b8] sm:$0xff] }
 0x931   :  { %1521 = vmatpush.msrb.mxu0 %v1271_v58  ;;  %v1905_v58 = vld [vmem:[%s9628_s12 + $0x78] sm:$0xff] }
 0x932   :  { %v1190_v23 = vadd.f32 1e-05, %v1186_v47  ;;  %5381 = vmatmul.msk.f32.gmra.mxu2 %vm125_vm1, %v6755_v46  ;;  %5385 = vmatmul.msk.f32.gmra.mxu0 %vm125_vm1, %v6755_v46  ;;  %v1296_v47 = vld [vmem:[%s9626_s10 + $0x170] sm:$0xff] }
 0x933   :  { %5389 = vmatmul.msk.f32.gmra.mxu3 %vm125_vm1, %v6755_v46  ;;  %5393 = vmatmul.msk.f32.gmra.mxu1 %vm125_vm1, %v6755_v46 }
 0x934   :  { %6095 = vrsqrt.f32 %v1190_v23  ;;  %1522 = vmatpush.msrb.mxu0 %v1255_v3  ;;  %vm1218_vm11 = vweird.f32 %v1190_v23  ;;  %1609 = vmatpush.msrb.mxu2 %v1258_v36  ;;  %v1936_v3 = vld [vmem:[%s9628_s12 + $0x170] sm:$0xff] }
 0x935   :  { %v1944_v36 = vld [vmem:[%s9628_s12 + $0x1b0] sm:$0xff] }
 0x937   :  { %v1183_v57 = vpop.xlane.xlu0 %1182 }
 0x938   :  { %v1187_v63 = vmul.f32 %v1183_v57, %v6653_v20  ;;  %v1265_v57 = vld [vmem:[%s9626_s10 + $0x78] sm:$0xff] }
 0x93a   :  { %v6096_v4 = vpop.eup %6095  ;;  %v1191_v5 = vadd.f32 1e-05, %v1187_v63  ;;  %v1937_v63 = vld [vmem:[%s9628_s12 + $0x178] sm:$0xff] }
 0x93b   :  { %v1213_v6 = vmul.f32 %v6096_v4, %v1190_v23  ;;  %vm1219_vm10 = vweird.f32 %v6096_v4  ;;  %v1313_v23 = vld [vmem:[%s9626_s10 + $0x1f8] sm:$0xff] }
 0x93c   :  { %6097 = vrsqrt.f32 %v1191_v5  ;;  %vm1220_vm12 = vmor %vm1218_vm11, %vm1219_vm10  ;;  %vm1228_vm14 = vweird.f32 %v1191_v5 }
 0x93d   :  { %v1214_v7 = vmul.f32 %v6096_v4, %v1213_v6  ;;  %v1935_v6 = vld [vmem:[%s9628_s12 + $0x168] sm:$0xff] }
 0x93f   :  { %v1215_v8 = vmul.f32 0.5, %v1214_v7  ;;  %v1951_v7 = vld [vmem:[%s9628_s12 + $0x1e8] sm:$0xff] }
 0x941   :  { %v1216_v9 = vsub.f32 1.5, %v1215_v8  ;;  %v1902_v8 = vld [vmem:[%s9628_s12 + $0x60] sm:$0xff] }
 0x942   :  { %v6098_v28 = vpop.eup %6097 }
 0x943   :  { %v1217_v43 = vmul.f32 %v6096_v4, %v1216_v9  ;;  %v1223_v10 = vmul.f32 %v6098_v28, %v1191_v5  ;;  %vm1229_vm13 = vweird.f32 %v6098_v28  ;;  %v1903_v5 = vld [vmem:[%s9628_s12 + $0x68] sm:$0xff]  ;;  %v1918_v9 = vld [vmem:[%s9628_s12 + $0xe0] sm:$0xff] }
 0x944   :  { %vm1230_vm15 = vmor %vm1228_vm14, %vm1229_vm13 }
 0x945   :  { %v1221_v11 = vsel %vm1220_vm12, %v6096_v4, %v1217_v43  ;;  %v1224_v12 = vmul.f32 %v6098_v28, %v1223_v10  ;;  %v1952_v4 = vld [vmem:[%s9628_s12 + $0x1f0] sm:$0xff]  ;;  %v1950_v43 = vld [vmem:[%s9628_s12 + $0x1e0] sm:$0xff]  ;;  %v1901_v10 = vld [vmem:[%s9628_s12 + $0x58] sm:$0xff] }
 0x946   :  { %v1234_v15 = vmul.f32 %v1221_v11, %v6668_v55  ;;  %v1308_v55 = vld [vmem:[%s9626_s10 + $0x1d0] sm:$0xff]  ;;  %v1917_v11 = vld [vmem:[%s9628_s12 + $0xd8] sm:$0xff] }
 0x947   :  { %v1225_v19 = vmul.f32 0.5, %v1224_v12  ;;  %1664 = vmatpush.msra.mxu3 %v1308_v55  ;;  %v1933_v12 = vld [vmem:[%s9628_s12 + $0x158] sm:$0xff]  ;;  %v1931_v55 = vld [vmem:[%s9628_s12 + $0x148] sm:$0xff] }
 0x948   :  { %v1241_v61 = vmul.f32 %v6732_v29, %v1234_v15  ;;  %v1900_v15 = vld [vmem:[%s9628_s12 + $0x50] sm:$0xff] }
 0x949   :  { %v1226_v21 = vsub.f32 1.5, %v1225_v19  ;;  %1665 = vmatpush.msra.mxu3 %v1292_v14  ;;  %v1916_v19 = vld [vmem:[%s9628_s12 + $0xd0] sm:$0xff]  ;;  %v1946_v14 = vld [vmem:[%s9628_s12 + $0x1c0] sm:$0xff] }
 0x94a   :  { %v6821_v22 = vadd.f32 %v6737_v17, %v1241_v61  ;;  %v1932_v61 = vld [vmem:[%s9628_s12 + $0x150] sm:$0xff] }
 0x94b   :  { %v1227_v16 = vmul.f32 %v6098_v28, %v1226_v21  ;;  %v1948_v21 = vld [vmem:[%s9628_s12 + $0x1d0] sm:$0xff] }
 0x94c   :  { %5382 = vmatmul.msk.f32.gmra.mxu2 %vm125_vm1, %v6821_v22  ;;  %5386 = vmatmul.msk.f32.gmra.mxu0 %vm125_vm1, %v6821_v22 }
 0x94d   :  { %v1231_v24 = vsel %vm1230_vm15, %v6098_v28, %v1227_v16  ;;  %5390 = vmatmul.msk.f32.gmra.mxu3 %vm125_vm1, %v6821_v22  ;;  %5394 = vmatmul.msk.f32.gmra.mxu1 %vm125_vm1, %v6821_v22  ;;  %v1934_v28 = vld [vmem:[%s9628_s12 + $0x160] sm:$0xff]  ;;  %v1899_v16 = vld [vmem:[%s9628_s12 + $0x48] sm:$0xff] }
 0x94e   :  { %v1235_v18 = vmul.f32 %v1231_v24, %v6674_v60  ;;  %v1307_v60 = vld [vmem:[%s9626_s10 + $0x1c8] sm:$0xff] }
 0x94f   :  { %1635 = vmatpush.msra.mxu0 %v1307_v60  ;;  %v1915_v24 = vld [vmem:[%s9628_s12 + $0xc8] sm:$0xff]  ;;  %v1930_v60 = vld [vmem:[%s9628_s12 + $0x140] sm:$0xff] }
 0x950   :  { %v1242_v62 = vmul.f32 %v6732_v29, %v1235_v18  ;;  %v1293_v29 = vld [vmem:[%s9626_s10 + $0x158] sm:$0xff]  ;;  %v1898_v18 = vld [vmem:[%s9628_s12 + $0x40] sm:$0xff] }
 0x951   :  { %1636 = vmatpush.msra.mxu0 %v1291_v31  ;;  %1694 = vmatpush.msrb.mxu1 %v1293_v29  ;;  %v1913_v31 = vld [vmem:[%s9628_s12 + $0xb8] sm:$0xff] }
 0x952   :  { %v6840_v26 = vadd.f32 %v6737_v17, %v1242_v62  ;;  %v1276_v17 = vld [vmem:[%s9626_s10 + $0xd0] sm:$0xff]  ;;  %v1914_v62 = vld [vmem:[%s9628_s12 + $0xc0] sm:$0xff]  ;;  %v1929_v29 = vld [vmem:[%s9628_s12 + $0x138] sm:$0xff] }
 0x953   :  { %1666 = vmatpush.msra.mxu3 %v1276_v17  ;;  %1637 = vmatpush.msra.mxu0 %v1275_v35  ;;  %v1896_v35 = vld [vmem:[%s9628_s12 + $0x30] sm:$0xff] }
 0x954   :  { %5383 = vmatmul.msk.f32.gmra.mxu2 %vm125_vm1, %v6840_v26  ;;  %5387 = vmatmul.msk.f32.gmra.mxu0 %vm125_vm1, %v6840_v26  ;;  %v1912_v17 = vld [vmem:[%s9628_s12 + $0xb0] sm:$0xff] }
 0x955   :  { %5391 = vmatmul.msk.f32.gmra.mxu3 %vm125_vm1, %v6840_v26  ;;  %5395 = vmatmul.msk.f32.gmra.mxu1 %vm125_vm1, %v6840_v26 }
 0x956   :  { %1667 = vmatpush.msra.mxu3 %v1260_v39  ;;  %1695 = vmatpush.msrb.mxu1 %v1277_v32  ;;  %v1928_v32 = vld [vmem:[%s9628_s12 + $0x130] sm:$0xff]  ;;  %v1895_v39 = vld [vmem:[%s9628_s12 + $0x28] sm:$0xff] }
 0x957   :  { %1638 = vmatpush.msra.mxu0 %v1259_v37  ;;  %v1911_v37 = vld [vmem:[%s9628_s12 + $0xa8] sm:$0xff] }
 0x958   :  { %1696 = vmatpush.msrb.mxu1 %v1261_v40  ;;  %v1927_v40 = vld [vmem:[%s9628_s12 + $0x128] sm:$0xff] }
 0x95c   :  { %5396 = vmatmul.msk.f32.vlgmr.msra.gmra.mxu2 %vm125_vm1, %v6742_v38  ;;  %5400 = vmatmul.msk.f32.vlgmr.msrb.gmra.mxu0 %vm125_vm1, %v6742_v38 }
 0x95d   :  { %5404 = vmatmul.msk.f32.vlgmr.msrb.gmra.mxu3 %vm125_vm1, %v6742_v38  ;;  %5408 = vmatmul.msk.f32.vlgmr.msra.gmra.mxu1 %vm125_vm1, %v6742_v38 }
 0x95e   :  { %1722 = vmatpush.msra.mxu2 %v1310_v41  ;;  %1780 = vmatpush.msrb.mxu3 %v1312_v44  ;;  %v1943_v41 = vld [vmem:[%s9628_s12 + $0x1a8] sm:$0xff]  ;;  %v1894_v44 = vld [vmem:[%s9628_s12 + $0x20] sm:$0xff] }
 0x95f   :  { %1751 = vmatpush.msrb.mxu0 %v1311_v45  ;;  %1809 = vmatpush.msra.mxu1 %v1313_v23  ;;  %v1926_v45 = vld [vmem:[%s9628_s12 + $0x120] sm:$0xff]  ;;  %v1893_v23 = vld [vmem:[%s9628_s12 + $0x18] sm:$0xff] }
 0x960   :  { %1723 = vmatpush.msra.mxu2 %v1294_v42  ;;  %1781 = vmatpush.msrb.mxu3 %v1296_v47  ;;  %v1910_v42 = vld [vmem:[%s9628_s12 + $0xa0] sm:$0xff] }
 0x961   :  { %1752 = vmatpush.msrb.mxu0 %v1295_v48  ;;  %1810 = vmatpush.msra.mxu1 %v1297_v49  ;;  %v1942_v47 = vld [vmem:[%s9628_s12 + $0x1a0] sm:$0xff]  ;;  %v1909_v48 = vld [vmem:[%s9628_s12 + $0x98] sm:$0xff] }
 0x962   :  { %1724 = vmatpush.msra.mxu2 %v1278_v50  ;;  %1782 = vmatpush.msrb.mxu3 %v1280_v52  ;;  %v1925_v49 = vld [vmem:[%s9628_s12 + $0x118] sm:$0xff]  ;;  %v1908_v52 = vld [vmem:[%s9628_s12 + $0x90] sm:$0xff] }
 0x963   :  { %1753 = vmatpush.msrb.mxu0 %v1279_v51  ;;  %1811 = vmatpush.msra.mxu1 %v1281_v53  ;;  %v1941_v50 = vld [vmem:[%s9628_s12 + $0x198] sm:$0xff]  ;;  %v1892_v51 = vld [vmem:[%s9628_s12 + $0x10] sm:$0xff] }
 0x964   :  { %5397 = vmatmul.msk.f32.gmra.mxu2 %vm125_vm1, %v6755_v46  ;;  %5401 = vmatmul.msk.f32.gmra.mxu0 %vm125_vm1, %v6755_v46  ;;  %v1924_v53 = vld [vmem:[%s9628_s12 + $0x110] sm:$0xff] }
 0x965   :  { %5405 = vmatmul.msk.f32.gmra.mxu3 %vm125_vm1, %v6755_v46  ;;  %5409 = vmatmul.msk.f32.gmra.mxu1 %vm125_vm1, %v6755_v46 }
 0x966   :  { %1725 = vmatpush.msra.mxu2 %v1262_v54  ;;  %1783 = vmatpush.msrb.mxu3 %v1264_v34  ;;  %v1940_v54 = vld [vmem:[%s9628_s12 + $0x190] sm:$0xff]  ;;  %v1891_v34 = vld [vmem:[%s9628_s12 + $0x8] sm:$0xff] }
 0x967   :  { %1754 = vmatpush.msrb.mxu0 %v1263_v56  ;;  %1812 = vmatpush.msra.mxu1 %v1265_v57  ;;  %v1907_v56 = vld [vmem:[%s9628_s12 + $0x88] sm:$0xff] }
 0x968   :  { %v1923_v57 = vld [vmem:[%s9628_s12 + $0x108] sm:$0xff] }
 0x96c   :  { %5398 = vmatmul.msk.f32.gmra.mxu2 %vm125_vm1, %v6821_v22  ;;  %5402 = vmatmul.msk.f32.gmra.mxu0 %vm125_vm1, %v6821_v22 }
 0x96d   :  { %5406 = vmatmul.msk.f32.gmra.mxu3 %vm125_vm1, %v6821_v22  ;;  %5410 = vmatmul.msk.f32.gmra.mxu1 %vm125_vm1, %v6821_v22 }
 0x974   :  { %5399 = vmatmul.msk.f32.gmra.mxu2 %vm125_vm1, %v6840_v26  ;;  %5403 = vmatmul.msk.f32.gmra.mxu0 %vm125_vm1, %v6840_v26 }
 0x975   :  { %5407 = vmatmul.msk.f32.gmra.mxu3 %vm125_vm1, %v6840_v26  ;;  %5411 = vmatmul.msk.f32.gmra.mxu1 %vm125_vm1, %v6840_v26 }
 0x97c   :  { %5412 = vmatmul.msk.f32.vlgmr.msrb.gmra.mxu2 %vm125_vm1, %v6742_v38  ;;  %5416 = vmatmul.msk.f32.vlgmr.msra.gmra.mxu0 %vm125_vm1, %v6742_v38 }
 0x97d   :  { %5420 = vmatmul.msk.f32.vlgmr.msra.gmra.mxu3 %vm125_vm1, %v6742_v38  ;;  %5424 = vmatmul.msk.f32.vlgmr.msrb.gmra.mxu1 %vm125_vm1, %v6742_v38 }
 0x97e   :  { %2150 = vmatpush.msrb.mxu2 %v1905_v58  ;;  %2179 = vmatpush.msra.mxu0 %v1921_v59  ;;  %v1939_v58 = vld [vmem:[%s9628_s12 + $0x188] sm:$0xff]  ;;  %v1890_v59 = vld [vmem:[%s9628_s12] sm:$0xff] }
 0x97f   :  { %2208 = vmatpush.msra.mxu3 %v1937_v63  ;;  %2237 = vmatpush.msrb.mxu1 %v1953_v1  ;;  %v1906_v63 = vld [vmem:[%s9628_s12 + $0x80] sm:$0xff] }
 0x980   :  { %2151 = vmatpush.msrb.mxu2 %v1904_v0  ;;  %2180 = vmatpush.msra.mxu0 %v1920_v2  ;;  %v1922_v1 = vld [vmem:[%s9628_s12 + $0x100] sm:$0xff]  ;;  %v1985_v2 = vld [vmem:[%s9628_s12 + $0x2f8] sm:$0xff] }
 0x981   :  { %2209 = vmatpush.msra.mxu3 %v1936_v3  ;;  %2238 = vmatpush.msrb.mxu1 %v1952_v4  ;;  %v1938_v0 = vld [vmem:[%s9628_s12 + $0x180] sm:$0xff]  ;;  %v2017_v3 = vld [vmem:[%s9628_s12 + $0x3f8] sm:$0xff] }
 0x982   :  { %2152 = vmatpush.msrb.mxu2 %v1903_v5  ;;  %2181 = vmatpush.msra.mxu0 %v1919_v27  ;;  %v1969_v4 = vld [vmem:[%s9628_s12 + $0x278] sm:$0xff]  ;;  %v1984_v27 = vld [vmem:[%s9628_s12 + $0x2f0] sm:$0xff] }
 0x983   :  { %2210 = vmatpush.msra.mxu3 %v1935_v6  ;;  %2239 = vmatpush.msrb.mxu1 %v1951_v7  ;;  %v2001_v5 = vld [vmem:[%s9628_s12 + $0x378] sm:$0xff]  ;;  %v2016_v6 = vld [vmem:[%s9628_s12 + $0x3f0] sm:$0xff]  ;;  %v1983_v7 = vld [vmem:[%s9628_s12 + $0x2e8] sm:$0xff] }
 0x984   :  { %5413 = vmatmul.msk.f32.gmra.mxu2 %vm125_vm1, %v6755_v46  ;;  %5417 = vmatmul.msk.f32.gmra.mxu0 %vm125_vm1, %v6755_v46 }
 0x985   :  { %5421 = vmatmul.msk.f32.gmra.mxu3 %vm125_vm1, %v6755_v46  ;;  %5425 = vmatmul.msk.f32.gmra.mxu1 %vm125_vm1, %v6755_v46 }
 0x986   :  { %2153 = vmatpush.msrb.mxu2 %v1902_v8  ;;  %2182 = vmatpush.msra.mxu0 %v1918_v9  ;;  %v2015_v8 = vld [vmem:[%s9628_s12 + $0x3e8] sm:$0xff]  ;;  %v1968_v9 = vld [vmem:[%s9628_s12 + $0x270] sm:$0xff] }
 0x987   :  { %2211 = vmatpush.msra.mxu3 %v1934_v28  ;;  %2240 = vmatpush.msrb.mxu1 %v1950_v43  ;;  %v2000_v28 = vld [vmem:[%s9628_s12 + $0x370] sm:$0xff]  ;;  %v1982_v43 = vld [vmem:[%s9628_s12 + $0x2e0] sm:$0xff] }
 0x988   :  { %2154 = vmatpush.msrb.mxu2 %v1901_v10  ;;  %2183 = vmatpush.msra.mxu0 %v1917_v11  ;;  %v2014_v10 = vld [vmem:[%s9628_s12 + $0x3e0] sm:$0xff]  ;;  %v1967_v11 = vld [vmem:[%s9628_s12 + $0x268] sm:$0xff] }
 0x989   :  { %2212 = vmatpush.msra.mxu3 %v1933_v12  ;;  %2241 = vmatpush.msrb.mxu1 %v1949_v13  ;;  %v1999_v12 = vld [vmem:[%s9628_s12 + $0x368] sm:$0xff]  ;;  %v7262_v13 = vld [vmem:[%s9627_s11] sm:$0xff] }
 0x98a   :  { %2155 = vmatpush.msrb.mxu2 %v1900_v15  ;;  %2184 = vmatpush.msra.mxu0 %v1916_v19  ;;  %v1981_v15 = vld [vmem:[%s9628_s12 + $0x2d8] sm:$0xff] }
 0x98b   :  { %2213 = vmatpush.msra.mxu3 %v1932_v61  ;;  %2242 = vmatpush.msrb.mxu1 %v1948_v21  ;;  %v2013_v19 = vld [vmem:[%s9628_s12 + $0x3d8] sm:$0xff]  ;;  %v1966_v61 = vld [vmem:[%s9628_s12 + $0x260] sm:$0xff] }
 0x98c   :  { %5414 = vmatmul.msk.f32.gmra.mxu2 %vm125_vm1, %v6821_v22  ;;  %5418 = vmatmul.msk.f32.gmra.mxu0 %vm125_vm1, %v6821_v22  ;;  %v1998_v21 = vld [vmem:[%s9628_s12 + $0x360] sm:$0xff] }
 0x98d   :  { %5422 = vmatmul.msk.f32.gmra.mxu3 %vm125_vm1, %v6821_v22  ;;  %5426 = vmatmul.msk.f32.gmra.mxu1 %vm125_vm1, %v6821_v22 }
 0x98e   :  { %2156 = vmatpush.msrb.mxu2 %v1899_v16  ;;  %2185 = vmatpush.msra.mxu0 %v1915_v24 }
 0x98f   :  { %2214 = vmatpush.msra.mxu3 %v1931_v55  ;;  %2243 = vmatpush.msrb.mxu1 %v1947_v25  ;;  %v7277_v55 = vperm.slane %v7262_v13, 1 }
 0x990   :  { %2157 = vmatpush.msrb.mxu2 %v1898_v18  ;;  %2186 = vmatpush.msra.mxu0 %v1914_v62  ;;  %v7280_v18 = vperm.slane %v7262_v13, 0 }
 0x991   :  { %2215 = vmatpush.msra.mxu3 %v1930_v60  ;;  %2244 = vmatpush.msrb.mxu1 %v1946_v14  ;;  %v7283_v60 = vperm.slane %v7262_v13, 3  ;;  %v7286_v14 = vperm.slane %v7262_v13, 2 }
 0x992   :  { %2158 = vmatpush.msrb.mxu2 %v1897_v30  ;;  %2187 = vmatpush.msra.mxu0 %v1913_v31  ;;  %v1980_v30 = vld [vmem:[%s9628_s12 + $0x2d0] sm:$0xff] }
 0x993   :  { %2216 = vmatpush.msra.mxu3 %v1929_v29  ;;  %2245 = vmatpush.msrb.mxu1 %v1945_v33  ;;  %v2012_v31 = vld [vmem:[%s9628_s12 + $0x3d0] sm:$0xff]  ;;  %v1965_v29 = vld [vmem:[%s9628_s12 + $0x258] sm:$0xff] }
 0x994   :  { %5415 = vmatmul.msk.f32.gmra.mxu2 %vm125_vm1, %v6840_v26  ;;  %5419 = vmatmul.msk.f32.gmra.mxu0 %vm125_vm1, %v6840_v26  ;;  %v1997_v33 = vld [vmem:[%s9628_s12 + $0x358] sm:$0xff] }
 0x995   :  { %5423 = vmatmul.msk.f32.gmra.mxu3 %vm125_vm1, %v6840_v26  ;;  %5427 = vmatmul.msk.f32.gmra.mxu1 %vm125_vm1, %v6840_v26 }
 0x996   :  { %2159 = vmatpush.msrb.mxu2 %v1896_v35  ;;  %2188 = vmatpush.msra.mxu0 %v1912_v17  ;;  %v1979_v35 = vld [vmem:[%s9628_s12 + $0x2c8] sm:$0xff] }
 0x997   :  { %2217 = vmatpush.msra.mxu3 %v1928_v32  ;;  %2246 = vmatpush.msrb.mxu1 %v1944_v36  ;;  %v2011_v17 = vld [vmem:[%s9628_s12 + $0x3c8] sm:$0xff] }
 0x998   :  { %2160 = vmatpush.msrb.mxu2 %v1895_v39  ;;  %2189 = vmatpush.msra.mxu0 %v1911_v37  ;;  %v1964_v39 = vld [vmem:[%s9628_s12 + $0x250] sm:$0xff] }
 0x999   :  { %2218 = vmatpush.msra.mxu3 %v1927_v40  ;;  %2247 = vmatpush.msrb.mxu1 %v1943_v41  ;;  %v1996_v37 = vld [vmem:[%s9628_s12 + $0x350] sm:$0xff] }
 0x99a   :  { %2161 = vmatpush.msrb.mxu2 %v1894_v44  ;;  %2190 = vmatpush.msra.mxu0 %v1910_v42  ;;  %v1978_v44 = vld [vmem:[%s9628_s12 + $0x2c0] sm:$0xff] }
 0x99b   :  { %2219 = vmatpush.msra.mxu3 %v1926_v45  ;;  %2248 = vmatpush.msrb.mxu1 %v1942_v47  ;;  %v2010_v42 = vld [vmem:[%s9628_s12 + $0x3c0] sm:$0xff]  ;;  %v1963_v45 = vld [vmem:[%s9628_s12 + $0x248] sm:$0xff] }
 0x99c   :  { %5428 = vmatmul.msk.f32.vlgmr.msra.gmra.mxu2 %vm125_vm1, %v6742_v38  ;;  %5432 = vmatmul.msk.f32.vlgmr.msrb.gmra.mxu0 %vm125_vm1, %v6742_v38  ;;  %v1995_v47 = vld [vmem:[%s9628_s12 + $0x348] sm:$0xff] }
 0x99d   :  { %5436 = vmatmul.msk.f32.vlgmr.msrb.gmra.mxu3 %vm125_vm1, %v6742_v38  ;;  %5440 = vmatmul.msk.f32.vlgmr.msra.gmra.mxu1 %vm125_vm1, %v6742_v38 }
 0x99e   :  { %2162 = vmatpush.msrb.mxu2 %v1893_v23  ;;  %2191 = vmatpush.msra.mxu0 %v1909_v48 }
 0x99f   :  { %2220 = vmatpush.msra.mxu3 %v1925_v49  ;;  %2249 = vmatpush.msrb.mxu1 %v1941_v50 }
 0x9a0   :  { %2163 = vmatpush.msrb.mxu2 %v1892_v51  ;;  %2192 = vmatpush.msra.mxu0 %v1908_v52 }
 0x9a1   :  { %2221 = vmatpush.msra.mxu3 %v1924_v53  ;;  %2250 = vmatpush.msrb.mxu1 %v1940_v54  ;;  %v1977_v53 = vld [vmem:[%s9628_s12 + $0x2b8] sm:$0xff] }
 0x9a2   :  { %2164 = vmatpush.msrb.mxu2 %v1891_v34  ;;  %2193 = vmatpush.msra.mxu0 %v1907_v56  ;;  %v2009_v54 = vld [vmem:[%s9628_s12 + $0x3b8] sm:$0xff] }
 0x9a3   :  { %2222 = vmatpush.msra.mxu3 %v1923_v57  ;;  %2251 = vmatpush.msrb.mxu1 %v1939_v58  ;;  %v1962_v57 = vld [vmem:[%s9628_s12 + $0x240] sm:$0xff] }
 0x9a4   :  { %5429 = vmatmul.msk.f32.gmra.mxu2 %vm125_vm1, %v6755_v46  ;;  %5433 = vmatmul.msk.f32.gmra.mxu0 %vm125_vm1, %v6755_v46  ;;  %v1994_v58 = vld [vmem:[%s9628_s12 + $0x340] sm:$0xff] }
 0x9a5   :  { %5437 = vmatmul.msk.f32.gmra.mxu3 %vm125_vm1, %v6755_v46  ;;  %5441 = vmatmul.msk.f32.gmra.mxu1 %vm125_vm1, %v6755_v46 }
 0x9a6   :  { %2165 = vmatpush.msrb.mxu2 %v1890_v59  ;;  %2194 = vmatpush.msra.mxu0 %v1906_v63  ;;  %v1976_v59 = vld [vmem:[%s9628_s12 + $0x2b0] sm:$0xff] }
 0x9a7   :  { %2223 = vmatpush.msra.mxu3 %v1922_v1  ;;  %2252 = vmatpush.msrb.mxu1 %v1938_v0  ;;  %v1408_v16 = vpop.f32.mrf.mxu0  ;;  %v2008_v63 = vld [vmem:[%s9628_s12 + $0x3b0] sm:$0xff] }
 0x9a8   :  { %2295 = vmatpush.msrb.mxu0 %v1985_v2  ;;  %2266 = vmatpush.msra.mxu2 %v1969_v4  ;;  %v1466_v25 = vpop.f32.mrf.mxu1  ;;  %v1409_v32 = vadd.f32 %v1408_v16, %v7277_v55  ;;  %v1961_v2 = vld [vmem:[%s9628_s12 + $0x238] sm:$0xff]  ;;  %v1958_v16 = vld [vmem:[%s9628_s12 + $0x220] sm:$0xff] }
 0x9a9   :  { %2353 = vmatpush.msra.mxu1 %v2017_v3  ;;  %2324 = vmatpush.msrb.mxu3 %v2001_v5  ;;  %v1467_v40 = vadd.f32 %v1466_v25, %v7283_v60  ;;  %v1993_v3 = vld [vmem:[%s9628_s12 + $0x338] sm:$0xff]  ;;  %v1972_v25 = vld [vmem:[%s9628_s12 + $0x290] sm:$0xff] }
 0x9aa   :  { %2296 = vmatpush.msrb.mxu0 %v1984_v27  ;;  %2267 = vmatpush.msra.mxu2 %v1968_v9  ;;  %v1827_v23 = vmax.f32 %v1409_v32, 0.0  ;;  %v1975_v27 = vld [vmem:[%s9628_s12 + $0x2a8] sm:$0xff] }
 0x9ab   :  { %2354 = vmatpush.msra.mxu1 %v2016_v6  ;;  %2325 = vmatpush.msrb.mxu3 %v2000_v28  ;;  %v1829_v49 = vmax.f32 %v1467_v40, 0.0  ;;  %v2007_v6 = vld [vmem:[%s9628_s12 + $0x3a8] sm:$0xff]  ;;  %v2002_v40 = vld [vmem:[%s9628_s12 + $0x380] sm:$0xff] }
 0x9ac   :  { %5430 = vmatmul.msk.f32.gmra.mxu2 %vm125_vm1, %v6821_v22  ;;  %5434 = vmatmul.msk.f32.gmra.mxu0 %vm125_vm1, %v6821_v22 }
 0x9ad   :  { %5438 = vmatmul.msk.f32.gmra.mxu3 %vm125_vm1, %v6821_v22  ;;  %5442 = vmatmul.msk.f32.gmra.mxu1 %vm125_vm1, %v6821_v22  ;;  %v1379_v24 = vpop.f32.mrf.mxu2 }
 0x9ae   :  { %2297 = vmatpush.msrb.mxu0 %v1983_v7  ;;  %2355 = vmatpush.msra.mxu1 %v2015_v8  ;;  %v1437_v62 = vpop.f32.mrf.mxu3  ;;  %v1380_v36 = vadd.f32 %v1379_v24, %v7280_v18  ;;  %v1960_v7 = vld [vmem:[%s9628_s12 + $0x230] sm:$0xff]  ;;  %v1990_v24 = vld [vmem:[%s9628_s12 + $0x320] sm:$0xff] }
 0x9af   :  { %2268 = vmatpush.msra.mxu2 %v1967_v11  ;;  %2326 = vmatpush.msrb.mxu3 %v1999_v12  ;;  %v1438_v41 = vadd.f32 %v1437_v62, %v7286_v14  ;;  %v1411_v51 = vpop.f32.mrf.mxu0  ;;  %v1992_v8 = vld [vmem:[%s9628_s12 + $0x330] sm:$0xff]  ;;  %v1974_v11 = vld [vmem:[%s9628_s12 + $0x2a0] sm:$0xff] }
 0x9b0   :  { %2298 = vmatpush.msrb.mxu0 %v1982_v43  ;;  %2356 = vmatpush.msra.mxu1 %v2014_v10  ;;  %v1826_v48 = vmax.f32 %v1380_v36, 0.0  ;;  %v1469_v34 = vpop.f32.mrf.mxu1  ;;  %v1412_v1 = vadd.f32 %v1411_v51, %v7277_v55  ;;  %v2006_v12 = vld [vmem:[%s9628_s12 + $0x3a0] sm:$0xff]  ;;  %v2004_v62 = vld [vmem:[%s9628_s12 + $0x390] sm:$0xff] }
 0x9b1   :  { %2269 = vmatpush.msra.mxu2 %v1966_v61  ;;  %2327 = vmatpush.msrb.mxu3 %v1998_v21  ;;  %v1828_v50 = vmax.f32 %v1438_v41, 0.0  ;;  %v1470_v4 = vadd.f32 %v1469_v34, %v7283_v60  ;;  %v1973_v61 = vld [vmem:[%s9628_s12 + $0x298] sm:$0xff]  ;;  %v1956_v36 = vld [vmem:[%s9628_s12 + $0x210] sm:$0xff]  ;;  %v1986_v34 = vld [vmem:[%s9628_s12 + $0x300] sm:$0xff] }
 0x9b2   :  { %2299 = vmatpush.msrb.mxu0 %v1981_v15  ;;  %2357 = vmatpush.msra.mxu1 %v2013_v19  ;;  %v1843_v9 = vmax.f32 %v1412_v1, 0.0  ;;  %v1959_v15 = vld [vmem:[%s9628_s12 + $0x228] sm:$0xff]  ;;  %v2005_v21 = vld [vmem:[%s9628_s12 + $0x398] sm:$0xff]  ;;  %v2080_v51 = vld [vmem:[%s9628_s12 + $0x5f0] sm:$0xff] }
 0x9b3   :  { %2270 = vmatpush.msra.mxu2 %v1965_v29  ;;  %2328 = vmatpush.msrb.mxu3 %v1997_v33  ;;  %v1845_v43 = vmax.f32 %v1470_v4, 0.0  ;;  %v1991_v19 = vld [vmem:[%s9628_s12 + $0x328] sm:$0xff]  ;;  %v2033_v4 = vld [vmem:[%s9628_s12 + $0x478] sm:$0xff] }
 0x9b4   :  { %5431 = vmatmul.msk.f32.gmra.mxu2 %vm125_vm1, %v6840_v26  ;;  %5435 = vmatmul.msk.f32.gmra.mxu0 %vm125_vm1, %v6840_v26  ;;  %v1971_v33 = vld [vmem:[%s9628_s12 + $0x288] sm:$0xff] }
 0x9b5   :  { %5439 = vmatmul.msk.f32.gmra.mxu3 %vm125_vm1, %v6840_v26  ;;  %5443 = vmatmul.msk.f32.gmra.mxu1 %vm125_vm1, %v6840_v26  ;;  %v1382_v52 = vpop.f32.mrf.mxu2 }
 0x9b6   :  { %2300 = vmatpush.msrb.mxu0 %v1980_v30  ;;  %2358 = vmatpush.msra.mxu1 %v2012_v31  ;;  %v1440_v56 = vpop.f32.mrf.mxu3  ;;  %v1383_v0 = vadd.f32 %v1382_v52, %v7280_v18  ;;  %v1957_v30 = vld [vmem:[%s9628_s12 + $0x218] sm:$0xff] }
 0x9b7   :  { %2271 = vmatpush.msra.mxu2 %v1964_v39  ;;  %2329 = vmatpush.msrb.mxu3 %v1996_v37  ;;  %v1441_v5 = vadd.f32 %v1440_v56, %v7286_v14  ;;  %v1989_v31 = vld [vmem:[%s9628_s12 + $0x318] sm:$0xff]  ;;  %v1988_v39 = vld [vmem:[%s9628_s12 + $0x310] sm:$0xff] }
 0x9b8   :  { %2301 = vmatpush.msrb.mxu0 %v1979_v35  ;;  %2359 = vmatpush.msra.mxu1 %v2011_v17  ;;  %v1842_v28 = vmax.f32 %v1383_v0, 0.0  ;;  %v2003_v35 = vld [vmem:[%s9628_s12 + $0x388] sm:$0xff] }
 0x9b9   :  { %2272 = vmatpush.msra.mxu2 %v1963_v45  ;;  %2330 = vmatpush.msrb.mxu3 %v1995_v47  ;;  %v1844_v10 = vmax.f32 %v1441_v5, 0.0  ;;  %v2049_v45 = vld [vmem:[%s9628_s12 + $0x4f8] sm:$0xff]  ;;  %v2079_v0 = vld [vmem:[%s9628_s12 + $0x5e8] sm:$0xff] }
 0x9ba   :  { %2302 = vmatpush.msrb.mxu0 %v1978_v44  ;;  %2360 = vmatpush.msra.mxu1 %v2010_v42  ;;  %v1970_v44 = vld [vmem:[%s9628_s12 + $0x280] sm:$0xff]  ;;  %v2081_v47 = vld [vmem:[%s9628_s12 + $0x5f8] sm:$0xff] }
 0x9bb   :  { %2273 = vmatpush.msra.mxu2 %v1962_v57  ;;  %2331 = vmatpush.msrb.mxu3 %v1994_v58  ;;  %v2047_v58 = vld [vmem:[%s9628_s12 + $0x4e8] sm:$0xff] }
 0x9bc   :  { %2166 = vmatmul.f32.vlgmr.msrb.gmra.mxu2 %v1826_v48  ;;  %2195 = vmatmul.f32.vlgmr.msra.gmra.mxu0 %v1827_v23  ;;  %v1955_v23 = vld [vmem:[%s9628_s12 + $0x208] sm:$0xff] }
 0x9bd   :  { %2224 = vmatmul.f32.vlgmr.msra.gmra.mxu3 %v1828_v50  ;;  %2253 = vmatmul.f32.vlgmr.msrb.gmra.mxu1 %v1829_v49  ;;  %v1987_v48 = vld [vmem:[%s9628_s12 + $0x308] sm:$0xff]  ;;  %v2048_v50 = vld [vmem:[%s9628_s12 + $0x4f0] sm:$0xff] }
 0x9be   :  { %2303 = vmatpush.msrb.mxu0 %v1977_v53  ;;  %2361 = vmatpush.msra.mxu1 %v2009_v54  ;;  %v1954_v54 = vld [vmem:[%s9628_s12 + $0x200] sm:$0xff] }
 0x9bf   :  { %2274 = vmatpush.msra.mxu2 %v1961_v2  ;;  %2332 = vmatpush.msrb.mxu3 %v1993_v3 }
 0x9c0   :  { %2304 = vmatpush.msrb.mxu0 %v1976_v59  ;;  %2362 = vmatpush.msra.mxu1 %v2008_v63 }
 0x9c1   :  { %2275 = vmatpush.msra.mxu2 %v1960_v7  ;;  %2333 = vmatpush.msrb.mxu3 %v1992_v8  ;;  %v7479_v7 = vperm.slane %v7262_v13, 5  ;;  %v2032_v8 = vld [vmem:[%s9628_s12 + $0x470] sm:$0xff] }
 0x9c2   :  { %2305 = vmatpush.msrb.mxu0 %v1975_v27  ;;  %2363 = vmatpush.msra.mxu1 %v2007_v6  ;;  %v2078_v6 = vld [vmem:[%s9628_s12 + $0x5e0] sm:$0xff] }
 0x9c3   :  { %2276 = vmatpush.msra.mxu2 %v1959_v15  ;;  %2334 = vmatpush.msrb.mxu3 %v1991_v19  ;;  %v2031_v19 = vld [vmem:[%s9628_s12 + $0x468] sm:$0xff] }
 0x9c4   :  { %2169 = vmatmul.f32.gmra.mxu2 %v1842_v28  ;;  %2198 = vmatmul.f32.gmra.mxu0 %v1843_v9  ;;  %v2045_v9 = vld [vmem:[%s9628_s12 + $0x4d8] sm:$0xff] }
 0x9c5   :  { %2227 = vmatmul.f32.gmra.mxu3 %v1844_v10  ;;  %2256 = vmatmul.f32.gmra.mxu1 %v1845_v43  ;;  %v7488_v43 = vperm.slane %v7262_v13, 7  ;;  %v2064_v10 = vld [vmem:[%s9628_s12 + $0x570] sm:$0xff] }
 0x9c6   :  { %2306 = vmatpush.msrb.mxu0 %v1974_v11  ;;  %2364 = vmatpush.msra.mxu1 %v2006_v12  ;;  %v2077_v11 = vld [vmem:[%s9628_s12 + $0x5d8] sm:$0xff] }
 0x9c7   :  { %2277 = vmatpush.msra.mxu2 %v1958_v16  ;;  %2335 = vmatpush.msrb.mxu3 %v1990_v24 }
 0x9c8   :  { %2307 = vmatpush.msrb.mxu0 %v1973_v61  ;;  %2365 = vmatpush.msra.mxu1 %v2005_v21  ;;  %v2044_v61 = vld [vmem:[%s9628_s12 + $0x4d0] sm:$0xff] }
 0x9c9   :  { %v1414_v29 = vpop.f32.mrf.mxu0  ;;  %2278 = vmatpush.msra.mxu2 %v1957_v30  ;;  %2336 = vmatpush.msrb.mxu3 %v1989_v31  ;;  %v2076_v30 = vld [vmem:[%s9628_s12 + $0x5d0] sm:$0xff] }
 0x9ca   :  { %v1415_v17 = vadd.f32 %v1414_v29, %v7277_v55  ;;  %v1472_v32 = vpop.f32.mrf.mxu1  ;;  %2308 = vmatpush.msrb.mxu0 %v1972_v25  ;;  %2366 = vmatpush.msra.mxu1 %v2004_v62  ;;  %v2030_v29 = vld [vmem:[%s9628_s12 + $0x460] sm:$0xff] }
 0x9cb   :  { %v1473_v37 = vadd.f32 %v1472_v32, %v7283_v60  ;;  %2279 = vmatpush.msra.mxu2 %v1956_v36  ;;  %2337 = vmatpush.msrb.mxu3 %v1988_v39  ;;  %v7522_v36 = vperm.slane %v7262_v13, 6  ;;  %v2062_v39 = vld [vmem:[%s9628_s12 + $0x560] sm:$0xff] }
 0x9cc   :  { %v1859_v41 = vmax.f32 %v1415_v17, 0.0  ;;  %2309 = vmatpush.msrb.mxu0 %v1971_v33  ;;  %2367 = vmatpush.msra.mxu1 %v2003_v35  ;;  %v7516_v35 = vperm.slane %v7262_v13, 4  ;;  %v2043_v17 = vld [vmem:[%s9628_s12 + $0x4c8] sm:$0xff]  ;;  %v2042_v13 = vld [vmem:[%s9628_s12 + $0x4c0] sm:$0xff] }
 0x9cd   :  { %v1861_v42 = vmax.f32 %v1473_v37, 0.0  ;;  %2280 = vmatpush.msra.mxu2 %v1955_v23  ;;  %2338 = vmatpush.msrb.mxu3 %v1987_v48  ;;  %v2075_v37 = vld [vmem:[%s9628_s12 + $0x5c8] sm:$0xff]  ;;  %v2028_v23 = vld [vmem:[%s9628_s12 + $0x450] sm:$0xff]  ;;  %v2041_v48 = vld [vmem:[%s9628_s12 + $0x4b8] sm:$0xff] }
 0x9ce   :  { %2201 = vmatmul.f32.gmra.mxu0 %v1859_v41  ;;  %2368 = vmatpush.msra.mxu1 %v2002_v40  ;;  %v2029_v40 = vld [vmem:[%s9628_s12 + $0x458] sm:$0xff] }
 0x9cf   :  { %2259 = vmatmul.f32.gmra.mxu1 %v1861_v42  ;;  %v1385_v49 = vpop.f32.mrf.mxu2  ;;  %2310 = vmatpush.msrb.mxu0 %v1970_v44  ;;  %v2061_v44 = vld [vmem:[%s9628_s12 + $0x558] sm:$0xff]  ;;  %v2074_v42 = vld [vmem:[%s9628_s12 + $0x5c0] sm:$0xff] }
 0x9d0   :  { %v1386_v52 = vadd.f32 %v1385_v49, %v7280_v18  ;;  %v1443_v53 = vpop.f32.mrf.mxu3  ;;  %2469 = vmatpush.msrb.mxu1 %v2081_v47  ;;  %2281 = vmatpush.msra.mxu2 %v1954_v54 }
 0x9d1   :  { %2411 = vmatpush.msra.mxu0 %v2049_v45  ;;  %v1444_v56 = vadd.f32 %v1443_v53, %v7286_v14  ;;  %v1417_v57 = vpop.f32.mrf.mxu0  ;;  %2339 = vmatpush.msrb.mxu3 %v1986_v34  ;;  %v2073_v34 = vld [vmem:[%s9628_s12 + $0x5b8] sm:$0xff] }
 0x9d2   :  { %v1858_v59 = vmax.f32 %v1386_v52, 0.0  ;;  %v1418_v63 = vadd.f32 %v1417_v57, %v7277_v55  ;;  %v1475_v1 = vpop.f32.mrf.mxu1  ;;  %2470 = vmatpush.msrb.mxu1 %v2080_v51  ;;  %v2046_v55 = vld [vmem:[%s9628_s12 + $0x4e0] sm:$0xff]  ;;  %2382 = vmatpush.msrb.mxu2 %v2033_v4  ;;  %v2060_v51 = vld [vmem:[%s9628_s12 + $0x550] sm:$0xff]  ;;  %v2039_v4 = vld [vmem:[%s9628_s12 + $0x4a8] sm:$0xff] }
 0x9d3   :  { %2412 = vmatpush.msra.mxu0 %v2048_v50  ;;  %v1860_v2 = vmax.f32 %v1444_v56, 0.0  ;;  %v1476_v3 = vadd.f32 %v1475_v1, %v7283_v60  ;;  %v2065_v60 = vld [vmem:[%s9628_s12 + $0x578] sm:$0xff] }
 0x9d4   :  { %v1875_v5 = vmax.f32 %v1418_v63, 0.0  ;;  %2172 = vmatmul.f32.gmra.mxu2 %v1858_v59  ;;  %2471 = vmatpush.msrb.mxu1 %v2079_v0  ;;  %v2040_v63 = vld [vmem:[%s9628_s12 + $0x4b0] sm:$0xff]  ;;  %v2059_v0 = vld [vmem:[%s9628_s12 + $0x548] sm:$0xff] }
 0x9d5   :  { %2413 = vmatpush.msra.mxu0 %v2047_v58  ;;  %v1877_v27 = vmax.f32 %v1476_v3, 0.0  ;;  %2230 = vmatmul.f32.gmra.mxu3 %v1860_v2  ;;  %v2027_v58 = vld [vmem:[%s9628_s12 + $0x448] sm:$0xff]  ;;  %v2072_v2 = vld [vmem:[%s9628_s12 + $0x5b0] sm:$0xff]  ;;  %v2026_v3 = vld [vmem:[%s9628_s12 + $0x440] sm:$0xff] }
 0x9d6   :  { %2204 = vmatmul.f32.gmra.mxu0 %v1875_v5  ;;  %2440 = vmatpush.msra.mxu3 %v2065_v60 }
 0x9d7   :  { %2262 = vmatmul.f32.gmra.mxu1 %v1877_v27  ;;  %v1388_v28 = vpop.f32.mrf.mxu2  ;;  %2414 = vmatpush.msra.mxu0 %v2046_v55  ;;  %v2058_v55 = vld [vmem:[%s9628_s12 + $0x540] sm:$0xff]  ;;  %v2071_v27 = vld [vmem:[%s9628_s12 + $0x5a8] sm:$0xff] }
 0x9d8   :  { %v1389_v12 = vadd.f32 %v1388_v28, %v7280_v18  ;;  %v1446_v15 = vpop.f32.mrf.mxu3  ;;  %2472 = vmatpush.msrb.mxu1 %v2078_v6  ;;  %2383 = vmatpush.msrb.mxu2 %v2032_v8  ;;  %v2063_v18 = vld [vmem:[%s9628_s12 + $0x568] sm:$0xff]  ;;  %v2025_v8 = vld [vmem:[%s9628_s12 + $0x438] sm:$0xff] }
 0x9d9   :  { %v1447_v21 = vadd.f32 %v1446_v15, %v7286_v14  ;;  %v1524_v16 = vpop.f32.mrf.mxu0  ;;  %2415 = vmatpush.msra.mxu0 %v2045_v9  ;;  %2441 = vmatpush.msra.mxu3 %v2064_v10  ;;  %v2038_v9 = vld [vmem:[%s9628_s12 + $0x4a0] sm:$0xff] }
 0x9da   :  { %v1874_v24 = vmax.f32 %v1389_v12, 0.0  ;;  %v1525_v25 = vadd.f32 %v1524_v16, %v7479_v7  ;;  %v1582_v62 = vpop.f32.mrf.mxu1  ;;  %2473 = vmatpush.msrb.mxu1 %v2077_v11  ;;  %2384 = vmatpush.msrb.mxu2 %v2031_v19  ;;  %v2057_v11 = vld [vmem:[%s9628_s12 + $0x538] sm:$0xff] }
 0x9db   :  { %v1876_v31 = vmax.f32 %v1447_v21, 0.0  ;;  %v1583_v14 = vadd.f32 %v1582_v62, %v7488_v43  ;;  %2416 = vmatpush.msra.mxu0 %v2044_v61  ;;  %2442 = vmatpush.msra.mxu3 %v2063_v18  ;;  %v2070_v61 = vld [vmem:[%s9628_s12 + $0x5a0] sm:$0xff]  ;;  %v2024_v18 = vld [vmem:[%s9628_s12 + $0x430] sm:$0xff] }
 0x9dc   :  { %v1831_v33 = vmax.f32 %v1525_v25, 0.0  ;;  %2175 = vmatmul.f32.gmra.mxu2 %v1874_v24  ;;  %2474 = vmatpush.msrb.mxu1 %v2076_v30  ;;  %v2037_v25 = vld [vmem:[%s9628_s12 + $0x498] sm:$0xff]  ;;  %v2056_v30 = vld [vmem:[%s9628_s12 + $0x530] sm:$0xff] }
 0x9dd   :  { %v1833_v32 = vmax.f32 %v1583_v14, 0.0  ;;  %2233 = vmatmul.f32.gmra.mxu3 %v1876_v31  ;;  %2385 = vmatpush.msrb.mxu2 %v2030_v29  ;;  %v2069_v31 = vld [vmem:[%s9628_s12 + $0x598] sm:$0xff]  ;;  %v2023_v14 = vld [vmem:[%s9628_s12 + $0x428] sm:$0xff]  ;;  %v2036_v29 = vld [vmem:[%s9628_s12 + $0x490] sm:$0xff] }
 0x9de   :  { %2311 = vmatmul.f32.vlgmr.msrb.gmra.mxu0 %v1831_v33  ;;  %2443 = vmatpush.msra.mxu3 %v2062_v39 }
 0x9df   :  { %2369 = vmatmul.f32.vlgmr.msra.gmra.mxu1 %v1833_v32  ;;  %v1495_v41 = vpop.f32.mrf.mxu2  ;;  %2417 = vmatpush.msra.mxu0 %v2043_v17  ;;  %v2055_v17 = vld [vmem:[%s9628_s12 + $0x528] sm:$0xff]  ;;  %v2068_v32 = vld [vmem:[%s9628_s12 + $0x590] sm:$0xff] }
 0x9e0   :  { %v1496_v45 = vadd.f32 %v1495_v41, %v7516_v35  ;;  %v1553_v47 = vpop.f32.mrf.mxu3  ;;  %2475 = vmatpush.msrb.mxu1 %v2075_v37  ;;  %2386 = vmatpush.msrb.mxu2 %v2029_v40  ;;  %v2022_v40 = vld [vmem:[%s9628_s12 + $0x420] sm:$0xff] }
 0x9e1   :  { %v1554_v49 = vadd.f32 %v1553_v47, %v7522_v36  ;;  %v1527_v50 = vpop.f32.mrf.mxu0  ;;  %2418 = vmatpush.msra.mxu0 %v2042_v13  ;;  %2444 = vmatpush.msra.mxu3 %v2061_v44  ;;  %v2035_v13 = vld [vmem:[%s9628_s12 + $0x488] sm:$0xff] }
 0x9e2   :  { %v1830_v52 = vmax.f32 %v1496_v45, 0.0  ;;  %v1528_v53 = vadd.f32 %v1527_v50, %v7479_v7  ;;  %v1585_v54 = vpop.f32.mrf.mxu1  ;;  %2476 = vmatpush.msrb.mxu1 %v2074_v42  ;;  %2387 = vmatpush.msrb.mxu2 %v2028_v23  ;;  %v2054_v42 = vld [vmem:[%s9628_s12 + $0x520] sm:$0xff] }
 0x9e3   :  { %v1832_v56 = vmax.f32 %v1554_v49, 0.0  ;;  %v1586_v57 = vadd.f32 %v1585_v54, %v7488_v43  ;;  %2419 = vmatpush.msra.mxu0 %v2041_v48  ;;  %2445 = vmatpush.msra.mxu3 %v2060_v51  ;;  %v2067_v48 = vld [vmem:[%s9628_s12 + $0x588] sm:$0xff] }
 0x9e4   :  { %v1847_v59 = vmax.f32 %v1528_v53, 0.0  ;;  %2282 = vmatmul.f32.vlgmr.msra.gmra.mxu2 %v1830_v52  ;;  %2477 = vmatpush.msrb.mxu1 %v2073_v34  ;;  %v7641_v51 = vld [vmem:[%s9627_s11 + $0x8] sm:$0xff]  ;;  %v2034_v53 = vld [vmem:[%s9628_s12 + $0x480] sm:$0xff] }
 0x9e5   :  { %v1849_v1 = vmax.f32 %v1586_v57, 0.0  ;;  %2340 = vmatmul.f32.vlgmr.msrb.gmra.mxu3 %v1832_v56  ;;  %2388 = vmatpush.msrb.mxu2 %v2027_v58  ;;  %v2066_v34 = vld [vmem:[%s9628_s12 + $0x580] sm:$0xff]  ;;  %v7656_v56 = vperm.slane %v7641_v51, 1  ;;  %v2020_v57 = vld [vmem:[%s9628_s12 + $0x410] sm:$0xff]  ;;  %v2113_v58 = vld [vmem:[%s9628_s12 + $0x6f8] sm:$0xff] }
 0x9e6   :  { %2314 = vmatmul.f32.gmra.mxu0 %v1847_v59  ;;  %2446 = vmatpush.msra.mxu3 %v2059_v0  ;;  %v2145_v0 = vld [vmem:[%s9628_s12 + $0x7f8] sm:$0xff] }
 0x9e7   :  { %2372 = vmatmul.f32.gmra.mxu1 %v1849_v1  ;;  %v1498_v5 = vpop.f32.mrf.mxu2  ;;  %2420 = vmatpush.msra.mxu0 %v2040_v63  ;;  %v7665_v63 = vperm.slane %v7641_v51, 3  ;;  %v2052_v1 = vld [vmem:[%s9628_s12 + $0x510] sm:$0xff] }
 0x9e8   :  { %v1499_v60 = vadd.f32 %v1498_v5, %v7516_v35  ;;  %v1556_v6 = vpop.f32.mrf.mxu3  ;;  %2478 = vmatpush.msrb.mxu1 %v2072_v2  ;;  %2389 = vmatpush.msrb.mxu2 %v2026_v3  ;;  %v2112_v5 = vld [vmem:[%s9628_s12 + $0x6f0] sm:$0xff] }
 0x9e9   :  { %v1557_v28 = vadd.f32 %v1556_v6, %v7522_v36  ;;  %v1530_v10 = vpop.f32.mrf.mxu0  ;;  %2421 = vmatpush.msra.mxu0 %v2039_v4  ;;  %2447 = vmatpush.msra.mxu3 %v2058_v55  ;;  %v2019_v4 = vld [vmem:[%s9628_s12 + $0x408] sm:$0xff] }
 0x9ea   :  { %v1846_v12 = vmax.f32 %v1499_v60, 0.0  ;;  %v1531_v15 = vadd.f32 %v1530_v10, %v7479_v7  ;;  %v1588_v19 = vpop.f32.mrf.mxu1  ;;  %2479 = vmatpush.msrb.mxu1 %v2071_v27  ;;  %2390 = vmatpush.msrb.mxu2 %v2025_v8  ;;  %v2018_v10 = vld [vmem:[%s9628_s12 + $0x400] sm:$0xff] }
 0x9eb   :  { %v1848_v21 = vmax.f32 %v1557_v28, 0.0  ;;  %v1589_v16 = vadd.f32 %v1588_v19, %v7488_v43  ;;  %2422 = vmatpush.msra.mxu0 %v2038_v9  ;;  %2448 = vmatpush.msra.mxu3 %v2057_v11  ;;  %v2144_v9 = vld [vmem:[%s9628_s12 + $0x7f0] sm:$0xff] }
 0x9ec   :  { %v1863_v24 = vmax.f32 %v1531_v15, 0.0  ;;  %2285 = vmatmul.f32.gmra.mxu2 %v1846_v12  ;;  %2480 = vmatpush.msrb.mxu1 %v2070_v61  ;;  %v7693_v12 = vperm.slane %v7641_v51, 0  ;;  %v2050_v15 = vld [vmem:[%s9628_s12 + $0x500] sm:$0xff]  ;;  %v7699_v61 = vperm.slane %v7641_v51, 2 }
 0x9ed   :  { %v1865_v62 = vmax.f32 %v1589_v16, 0.0  ;;  %2343 = vmatmul.f32.gmra.mxu3 %v1848_v21  ;;  %2391 = vmatpush.msrb.mxu2 %v2024_v18  ;;  %v2111_v21 = vld [vmem:[%s9628_s12 + $0x6e8] sm:$0xff]  ;;  %v2097_v18 = vld [vmem:[%s9628_s12 + $0x678] sm:$0xff] }
 0x9ee   :  { %2317 = vmatmul.f32.gmra.mxu0 %v1863_v24  ;;  %2449 = vmatpush.msra.mxu3 %v2056_v30  ;;  %v2143_v16 = vld [vmem:[%s9628_s12 + $0x7e8] sm:$0xff]  ;;  %v2129_v24 = vld [vmem:[%s9628_s12 + $0x778] sm:$0xff]  ;;  %v2142_v30 = vld [vmem:[%s9628_s12 + $0x7e0] sm:$0xff] }
 0x9ef   :  { %2375 = vmatmul.f32.gmra.mxu1 %v1865_v62  ;;  %v1501_v33 = vpop.f32.mrf.mxu2  ;;  %2423 = vmatpush.msra.mxu0 %v2037_v25  ;;  %v2110_v62 = vld [vmem:[%s9628_s12 + $0x6e0] sm:$0xff] }
 0x9f0   :  { %v1502_v39 = vadd.f32 %v1501_v33, %v7516_v35  ;;  %v1559_v37 = vpop.f32.mrf.mxu3  ;;  %2481 = vmatpush.msrb.mxu1 %v2069_v31  ;;  %2392 = vmatpush.msrb.mxu2 %v2023_v14  ;;  %v2128_v33 = vld [vmem:[%s9628_s12 + $0x770] sm:$0xff] }
 0x9f1   :  { %v1560_v41 = vadd.f32 %v1559_v37, %v7522_v36  ;;  %v1533_v44 = vpop.f32.mrf.mxu0  ;;  %2424 = vmatpush.msra.mxu0 %v2036_v29  ;;  %2450 = vmatpush.msra.mxu3 %v2055_v17  ;;  %v2096_v29 = vld [vmem:[%s9628_s12 + $0x670] sm:$0xff] }
 0x9f2   :  { %v1862_v45 = vmax.f32 %v1502_v39, 0.0  ;;  %v1534_v47 = vadd.f32 %v1533_v44, %v7479_v7  ;;  %v1591_v23 = vpop.f32.mrf.mxu1  ;;  %2482 = vmatpush.msrb.mxu1 %v2068_v32  ;;  %2393 = vmatpush.msrb.mxu2 %v2022_v40  ;;  %v2021_v7 = vld [vmem:[%s9628_s12 + $0x418] sm:$0xff] }
 0x9f3   :  { %v1864_v49 = vmax.f32 %v1560_v41, 0.0  ;;  %v1592_v50 = vadd.f32 %v1591_v23, %v7488_v43  ;;  %2425 = vmatpush.msra.mxu0 %v2035_v13  ;;  %2451 = vmatpush.msra.mxu3 %v2054_v42  ;;  %v2053_v43 = vld [vmem:[%s9628_s12 + $0x518] sm:$0xff]  ;;  %v2108_v23 = vld [vmem:[%s9628_s12 + $0x6d0] sm:$0xff] }
 0x9f4   :  { %v1879_v52 = vmax.f32 %v1534_v47, 0.0  ;;  %2288 = vmatmul.f32.gmra.mxu2 %v1862_v45  ;;  %2483 = vmatpush.msrb.mxu1 %v2067_v48  ;;  %v2109_v39 = vld [vmem:[%s9628_s12 + $0x6d8] sm:$0xff]  ;;  %v2095_v45 = vld [vmem:[%s9628_s12 + $0x668] sm:$0xff] }
 0x9f5   :  { %v1881_v54 = vmax.f32 %v1592_v50, 0.0  ;;  %2346 = vmatmul.f32.gmra.mxu3 %v1864_v49  ;;  %2394 = vmatpush.msrb.mxu2 %v2021_v7  ;;  %v2141_v41 = vld [vmem:[%s9628_s12 + $0x7d8] sm:$0xff]  ;;  %v2127_v49 = vld [vmem:[%s9628_s12 + $0x768] sm:$0xff]  ;;  %v2140_v50 = vld [vmem:[%s9628_s12 + $0x7d0] sm:$0xff] }
 0x9f6   :  { %2320 = vmatmul.f32.gmra.mxu0 %v1879_v52  ;;  %2452 = vmatpush.msra.mxu3 %v2053_v43  ;;  %v2094_v7 = vld [vmem:[%s9628_s12 + $0x660] sm:$0xff]  ;;  %v2107_v52 = vld [vmem:[%s9628_s12 + $0x6c8] sm:$0xff] }
 0x9f7   :  { %2378 = vmatmul.f32.gmra.mxu1 %v1881_v54  ;;  %v1504_v59 = vpop.f32.mrf.mxu2  ;;  %2426 = vmatpush.msra.mxu0 %v2034_v53  ;;  %v2126_v54 = vld [vmem:[%s9628_s12 + $0x760] sm:$0xff]  ;;  %v2139_v43 = vld [vmem:[%s9628_s12 + $0x7c8] sm:$0xff] }
 0x9f8   :  { %v1505_v2 = vadd.f32 %v1504_v59, %v7516_v35  ;;  %v1562_v3 = vpop.f32.mrf.mxu3  ;;  %2484 = vmatpush.msrb.mxu1 %v2066_v34  ;;  %2395 = vmatpush.msrb.mxu2 %v2020_v57  ;;  %v2051_v35 = vld [vmem:[%s9628_s12 + $0x508] sm:$0xff]  ;;  %v2106_v59 = vld [vmem:[%s9628_s12 + $0x6c0] sm:$0xff] }
 0x9f9   :  { %v1563_v55 = vadd.f32 %v1562_v3, %v7522_v36  ;;  %v1640_v27 = vpop.f32.mrf.mxu0  ;;  %2527 = vmatpush.msrb.mxu0 %v2113_v58  ;;  %2453 = vmatpush.msra.mxu3 %v2052_v1  ;;  %v2093_v58 = vld [vmem:[%s9628_s12 + $0x658] sm:$0xff] }
 0x9fa   :  { %v1878_v60 = vmax.f32 %v1505_v2, 0.0  ;;  %v1641_v6 = vadd.f32 %v1640_v27, %v7656_v56  ;;  %v1698_v8 = vpop.f32.mrf.mxu1  ;;  %2585 = vmatpush.msra.mxu1 %v2145_v0  ;;  %2396 = vmatpush.msrb.mxu2 %v2019_v4  ;;  %v2125_v2 = vld [vmem:[%s9628_s12 + $0x758] sm:$0xff] }
 0x9fb   :  { %v1880_v28 = vmax.f32 %v1563_v55, 0.0  ;;  %v1699_v36 = vadd.f32 %v1698_v8, %v7665_v63  ;;  %2528 = vmatpush.msrb.mxu0 %v2112_v5  ;;  %2454 = vmatpush.msra.mxu3 %v2051_v35  ;;  %v2138_v55 = vld [vmem:[%s9628_s12 + $0x7c0] sm:$0xff]  ;;  %v2105_v8 = vld [vmem:[%s9628_s12 + $0x6b8] sm:$0xff] }
 0x9fc   :  { %v1835_v11 = vmax.f32 %v1641_v6, 0.0  ;;  %2291 = vmatmul.f32.gmra.mxu2 %v1878_v60  ;;  %2586 = vmatpush.msra.mxu1 %v2144_v9  ;;  %v2092_v60 = vld [vmem:[%s9628_s12 + $0x650] sm:$0xff] }
 0x9fd   :  { %v1837_v19 = vmax.f32 %v1699_v36, 0.0  ;;  %2349 = vmatmul.f32.gmra.mxu3 %v1880_v28  ;;  %2397 = vmatpush.msrb.mxu2 %v2018_v10  ;;  %v2124_v28 = vld [vmem:[%s9628_s12 + $0x750] sm:$0xff]  ;;  %v2137_v36 = vld [vmem:[%s9628_s12 + $0x7b8] sm:$0xff]  ;;  %v2091_v10 = vld [vmem:[%s9628_s12 + $0x648] sm:$0xff] }
 0x9fe   :  { %2427 = vmatmul.f32.vlgmr.msra.gmra.mxu0 %v1835_v11  ;;  %2455 = vmatpush.msra.mxu3 %v2050_v15  ;;  %v2104_v11 = vld [vmem:[%s9628_s12 + $0x6b0] sm:$0xff] }
 0x9ff   :  { %2485 = vmatmul.f32.vlgmr.msrb.gmra.mxu1 %v1837_v19  ;;  %v1611_v25 = vpop.f32.mrf.mxu2  ;;  %2529 = vmatpush.msrb.mxu0 %v2111_v21  ;;  %v2123_v19 = vld [vmem:[%s9628_s12 + $0x748] sm:$0xff]  ;;  %v2136_v21 = vld [vmem:[%s9628_s12 + $0x7b0] sm:$0xff] }
 0xa00   :  { %v1612_v31 = vadd.f32 %v1611_v25, %v7693_v12  ;;  %v1669_v14 = vpop.f32.mrf.mxu3  ;;  %2587 = vmatpush.msra.mxu1 %v2143_v16  ;;  %2498 = vmatpush.msra.mxu2 %v2097_v18  ;;  %v2103_v25 = vld [vmem:[%s9628_s12 + $0x6a8] sm:$0xff] }
 0xa01   :  { %v1670_v17 = vadd.f32 %v1669_v14, %v7699_v61  ;;  %v1643_v32 = vpop.f32.mrf.mxu0  ;;  %2556 = vmatpush.msrb.mxu3 %v2129_v24  ;;  %2530 = vmatpush.msrb.mxu0 %v2110_v62  ;;  %v2090_v24 = vld [vmem:[%s9628_s12 + $0x640] sm:$0xff]  ;;  %v2135_v14 = vld [vmem:[%s9628_s12 + $0x7a8] sm:$0xff] }
 0xa02   :  { %v1834_v37 = vmax.f32 %v1612_v31, 0.0  ;;  %v1644_v40 = vadd.f32 %v1643_v32, %v7656_v56  ;;  %v1701_v13 = vpop.f32.mrf.mxu1  ;;  %2588 = vmatpush.msra.mxu1 %v2142_v30  ;;  %2499 = vmatpush.msra.mxu2 %v2096_v29  ;;  %v2122_v31 = vld [vmem:[%s9628_s12 + $0x740] sm:$0xff] }
 0xa03   :  { %v1836_v44 = vmax.f32 %v1670_v17, 0.0  ;;  %v1702_v42 = vadd.f32 %v1701_v13, %v7665_v63  ;;  %2557 = vmatpush.msrb.mxu3 %v2128_v33  ;;  %2531 = vmatpush.msrb.mxu0 %v2109_v39 }
 0xa04   :  { %v1851_v47 = vmax.f32 %v1644_v40, 0.0  ;;  %2398 = vmatmul.f32.vlgmr.msrb.gmra.mxu2 %v1834_v37  ;;  %2589 = vmatpush.msra.mxu1 %v2141_v41  ;;  %v2089_v37 = vld [vmem:[%s9628_s12 + $0x638] sm:$0xff]  ;;  %v2102_v40 = vld [vmem:[%s9628_s12 + $0x6a0] sm:$0xff] }
 0xa05   :  { %v1853_v48 = vmax.f32 %v1702_v42, 0.0  ;;  %2456 = vmatmul.f32.vlgmr.msra.gmra.mxu3 %v1836_v44  ;;  %2500 = vmatpush.msra.mxu2 %v2095_v45  ;;  %v2088_v44 = vld [vmem:[%s9628_s12 + $0x630] sm:$0xff]  ;;  %v2101_v42 = vld [vmem:[%s9628_s12 + $0x698] sm:$0xff]  ;;  %v7834_v45 = vperm.slane %v7641_v51, 5 }
 0xa06   :  { %2430 = vmatmul.f32.gmra.mxu0 %v1851_v47  ;;  %2558 = vmatpush.msrb.mxu3 %v2127_v49  ;;  %v7843_v49 = vperm.slane %v7641_v51, 7 }
 0xa07   :  { %2488 = vmatmul.f32.gmra.mxu1 %v1853_v48  ;;  %v1614_v53 = vpop.f32.mrf.mxu2  ;;  %2532 = vmatpush.msrb.mxu0 %v2108_v23  ;;  %v2120_v23 = vld [vmem:[%s9628_s12 + $0x730] sm:$0xff]  ;;  %v2133_v48 = vld [vmem:[%s9628_s12 + $0x798] sm:$0xff] }
 0xa08   :  { %v1615_v34 = vadd.f32 %v1614_v53, %v7693_v12  ;;  %v1672_v57 = vpop.f32.mrf.mxu3  ;;  %2590 = vmatpush.msra.mxu1 %v2140_v50  ;;  %2501 = vmatpush.msra.mxu2 %v2094_v7  ;;  %v2100_v53 = vld [vmem:[%s9628_s12 + $0x690] sm:$0xff] }
 0xa09   :  { %v1673_v1 = vadd.f32 %v1672_v57, %v7699_v61  ;;  %v1646_v0 = vpop.f32.mrf.mxu0  ;;  %2533 = vmatpush.msrb.mxu0 %v2107_v52  ;;  %2559 = vmatpush.msrb.mxu3 %v2126_v54  ;;  %v2087_v52 = vld [vmem:[%s9628_s12 + $0x628] sm:$0xff] }
 0xa0a   :  { %v1850_v3 = vmax.f32 %v1615_v34, 0.0  ;;  %v1647_v4 = vadd.f32 %v1646_v0, %v7656_v56  ;;  %v1704_v5 = vpop.f32.mrf.mxu1  ;;  %2591 = vmatpush.msra.mxu1 %v2139_v43  ;;  %2502 = vmatpush.msra.mxu2 %v2093_v58  ;;  %v2119_v34 = vld [vmem:[%s9628_s12 + $0x728] sm:$0xff] }
 0xa0b   :  { %v1852_v27 = vmax.f32 %v1673_v1, 0.0  ;;  %v1705_v35 = vadd.f32 %v1704_v5, %v7665_v63  ;;  %2534 = vmatpush.msrb.mxu0 %v2106_v59  ;;  %2560 = vmatpush.msrb.mxu3 %v2125_v2  ;;  %v2099_v59 = vld [vmem:[%s9628_s12 + $0x688] sm:$0xff]  ;;  %v7874_v5 = vperm.slane %v7641_v51, 4 }
 0xa0c   :  { %v1867_v6 = vmax.f32 %v1647_v4, 0.0  ;;  %2401 = vmatmul.f32.gmra.mxu2 %v1850_v3  ;;  %2592 = vmatpush.msra.mxu1 %v2138_v55  ;;  %v2118_v3 = vld [vmem:[%s9628_s12 + $0x720] sm:$0xff]  ;;  %v2131_v4 = vld [vmem:[%s9628_s12 + $0x788] sm:$0xff]  ;;  %v2085_v55 = vld [vmem:[%s9628_s12 + $0x618] sm:$0xff] }
 0xa0d   :  { %v1869_v9 = vmax.f32 %v1705_v35, 0.0  ;;  %2459 = vmatmul.f32.gmra.mxu3 %v1852_v27  ;;  %2503 = vmatpush.msra.mxu2 %v2092_v60  ;;  %v2098_v27 = vld [vmem:[%s9628_s12 + $0x680] sm:$0xff]  ;;  %v7883_v35 = vperm.slane %v7641_v51, 6 }
 0xa0e   :  { %2433 = vmatmul.f32.gmra.mxu0 %v1867_v6  ;;  %2561 = vmatpush.msrb.mxu3 %v2124_v28 }
 0xa0f   :  { %2491 = vmatmul.f32.gmra.mxu1 %v1869_v9  ;;  %v1617_v15 = vpop.f32.mrf.mxu2  ;;  %2535 = vmatpush.msrb.mxu0 %v2105_v8  ;;  %v2117_v8 = vld [vmem:[%s9628_s12 + $0x718] sm:$0xff]  ;;  %v2130_v9 = vld [vmem:[%s9628_s12 + $0x780] sm:$0xff] }
 0xa10   :  { %v1618_v16 = vadd.f32 %v1617_v15, %v7693_v12  ;;  %v1675_v18 = vpop.f32.mrf.mxu3  ;;  %2593 = vmatpush.msra.mxu1 %v2137_v36  ;;  %2504 = vmatpush.msra.mxu2 %v2091_v10  ;;  %v2084_v10 = vld [vmem:[%s9628_s12 + $0x610] sm:$0xff] }
 0xa11   :  { %v1676_v62 = vadd.f32 %v1675_v18, %v7699_v61  ;;  %v1649_v30 = vpop.f32.mrf.mxu0  ;;  %2536 = vmatpush.msrb.mxu0 %v2104_v11  ;;  %2562 = vmatpush.msrb.mxu3 %v2123_v19  ;;  %v2116_v11 = vld [vmem:[%s9628_s12 + $0x710] sm:$0xff]  ;;  %v2083_v18 = vld [vmem:[%s9628_s12 + $0x608] sm:$0xff] }
 0xa12   :  { %v1866_v29 = vmax.f32 %v1618_v16, 0.0  ;;  %v1650_v33 = vadd.f32 %v1649_v30, %v7656_v56  ;;  %v1707_v17 = vpop.f32.mrf.mxu1  ;;  %2594 = vmatpush.msra.mxu1 %v2136_v21  ;;  %2505 = vmatpush.msra.mxu2 %v2090_v24  ;;  %v2121_v56 = vld [vmem:[%s9628_s12 + $0x738] sm:$0xff]  ;;  %v2115_v24 = vld [vmem:[%s9628_s12 + $0x708] sm:$0xff] }
 0xa13   :  { %v1868_v32 = vmax.f32 %v1676_v62, 0.0  ;;  %v1708_v39 = vadd.f32 %v1707_v17, %v7665_v63  ;;  %2537 = vmatpush.msrb.mxu0 %v2103_v25  ;;  %2563 = vmatpush.msrb.mxu3 %v2122_v31  ;;  %v2134_v63 = vld [vmem:[%s9628_s12 + $0x7a0] sm:$0xff] }
 0xa14   :  { %v1883_v13 = vmax.f32 %v1650_v33, 0.0  ;;  %2595 = vmatpush.msra.mxu1 %v2135_v14  ;;  %2404 = vmatmul.f32.gmra.mxu2 %v1866_v29  ;;  %v2082_v31 = vld [vmem:[%s9628_s12 + $0x600] sm:$0xff] }
 0xa15   :  { %v1885_v41 = vmax.f32 %v1708_v39, 0.0  ;;  %2462 = vmatmul.f32.gmra.mxu3 %v1868_v32  ;;  %2506 = vmatpush.msra.mxu2 %v2089_v37  ;;  %v2114_v14 = vld [vmem:[%s9628_s12 + $0x700] sm:$0xff] }
 0xa16   :  { %2538 = vmatpush.msrb.mxu0 %v2102_v40  ;;  %2564 = vmatpush.msrb.mxu3 %v2121_v56 }
 0xa17   :  { %2596 = vmatpush.msra.mxu1 %v2134_v63  ;;  %v1620_v47 = vpop.f32.mrf.mxu2  ;;  %2436 = vmatmul.f32.gmra.mxu0 %v1883_v13 }
 0xa18   :  { %2494 = vmatmul.f32.gmra.mxu1 %v1885_v41  ;;  %v1621_v50 = vadd.f32 %v1620_v47, %v7693_v12  ;;  %v1678_v7 = vpop.f32.mrf.mxu3  ;;  %2507 = vmatpush.msra.mxu2 %v2088_v44  ;;  %v2132_v12 = vld [vmem:[%s9628_s12 + $0x790] sm:$0xff] }
 0xa19   :  { %v1679_v54 = vadd.f32 %v1678_v7, %v7699_v61  ;;  %2539 = vmatpush.msrb.mxu0 %v2101_v42  ;;  %v1756_v43 = vpop.f32.mrf.mxu0  ;;  %2565 = vmatpush.msrb.mxu3 %v2120_v23  ;;  %v2086_v61 = vld [vmem:[%s9628_s12 + $0x620] sm:$0xff] }
 0xa1a   :  { %2597 = vmatpush.msra.mxu1 %v2133_v48  ;;  %v1757_v57 = vadd.f32 %v1756_v43, %v7834_v45  ;;  %v1814_v58 = vpop.f32.mrf.mxu1  ;;  %v1882_v1 = vmax.f32 %v1621_v50, 0.0  ;;  %2508 = vmatpush.msra.mxu2 %v2087_v52 }
 0xa1b   :  { %v1884_v0 = vmax.f32 %v1679_v54, 0.0  ;;  %v1815_v2 = vadd.f32 %v1814_v58, %v7843_v49  ;;  %2540 = vmatpush.msrb.mxu0 %v2100_v53  ;;  %2566 = vmatpush.msrb.mxu3 %v2119_v34 }
 0xa1c   :  { %2598 = vmatpush.msra.mxu1 %v2132_v12  ;;  %2509 = vmatpush.msra.mxu2 %v2086_v61  ;;  %v1839_v60 = vmax.f32 %v1757_v57, 0.0 }
 0xa1d   :  { %2541 = vmatpush.msrb.mxu0 %v2099_v59  ;;  %v1841_v6 = vmax.f32 %v1815_v2, 0.0  ;;  %2567 = vmatpush.msrb.mxu3 %v2118_v3 }
 0xa1e   :  { %2599 = vmatpush.msra.mxu1 %v2131_v4  ;;  %2407 = vmatmul.f32.gmra.mxu2 %v1882_v1 }
 0xa1f   :  { %2465 = vmatmul.f32.gmra.mxu3 %v1884_v0  ;;  %v1727_v28 = vpop.f32.mrf.mxu2  ;;  %2510 = vmatpush.msra.mxu2 %v2085_v55 }
 0xa20   :  { %2542 = vmatpush.msrb.mxu0 %v2098_v27  ;;  %v1728_v51 = vadd.f32 %v1727_v28, %v7874_v5  ;;  %v1785_v36 = vpop.f32.mrf.mxu3  ;;  %2568 = vmatpush.msrb.mxu3 %v2117_v8 }
 0xa21   :  { %2600 = vmatpush.msra.mxu1 %v2130_v9  ;;  %v1786_v15 = vadd.f32 %v1785_v36, %v7883_v35  ;;  %v1759_v19 = vpop.f32.mrf.mxu0  ;;  %2543 = vmatmul.f32.vlgmr.msrb.gmra.mxu0 %v1839_v60 }
 0xa22   :  { %2601 = vmatmul.f32.vlgmr.msra.gmra.mxu1 %v1841_v6  ;;  %v1760_v21 = vadd.f32 %v1759_v19, %v7834_v45  ;;  %v1817_v16 = vpop.f32.mrf.mxu1  ;;  %2511 = vmatpush.msra.mxu2 %v2084_v10  ;;  %v1838_v62 = vmax.f32 %v1728_v51, 0.0 }
 0xa23   :  { %2569 = vmatpush.msrb.mxu3 %v2116_v11  ;;  %v1818_v25 = vadd.f32 %v1817_v16, %v7843_v49  ;;  %v1840_v30 = vmax.f32 %v1786_v15, 0.0 }
 0xa24   :  { %2512 = vmatpush.msra.mxu2 %v2083_v18  ;;  %v1855_v29 = vmax.f32 %v1760_v21, 0.0 }
 0xa25   :  { %2570 = vmatpush.msrb.mxu3 %v2115_v24  ;;  %v1857_v33 = vmax.f32 %v1818_v25, 0.0 }
 0xa26   :  { %2513 = vmatpush.msra.mxu2 %v2082_v31 }
 0xa27   :  { %2571 = vmatpush.msrb.mxu3 %v2114_v14  ;;  %v1730_v17 = vpop.f32.mrf.mxu2  ;;  %2514 = vmatmul.f32.vlgmr.msra.gmra.mxu2 %v1838_v62 }
 0xa28   :  { %2572 = vmatmul.f32.vlgmr.msrb.gmra.mxu3 %v1840_v30  ;;  %v1731_v32 = vadd.f32 %v1730_v17, %v7874_v5  ;;  %v1788_v39 = vpop.f32.mrf.mxu3 }
 0xa29   :  { %v1789_v37 = vadd.f32 %v1788_v39, %v7883_v35  ;;  %v1762_v40 = vpop.f32.mrf.mxu0  ;;  %2546 = vmatmul.f32.gmra.mxu0 %v1855_v29 }
 0xa2a   :  { %2604 = vmatmul.f32.gmra.mxu1 %v1857_v33  ;;  %v1763_v13 = vadd.f32 %v1762_v40, %v7834_v45  ;;  %v1820_v56 = vpop.f32.mrf.mxu1  ;;  %v1854_v41 = vmax.f32 %v1731_v32, 0.0  ;;  %v6014_v32 = vld [vmem:[%s9652_s22] ss:$0 sm:$0xff] }
 0xa2b   :  { %v1821_v63 = vadd.f32 %v1820_v56, %v7843_v49  ;;  %v1856_v44 = vmax.f32 %v1789_v37, 0.0 }
 0xa2c   :  { %v1871_v42 = vmax.f32 %v1763_v13, 0.0 }
 0xa2d   :  { %v1873_v47 = vmax.f32 %v1821_v63, 0.0 }
 0xa2f   :  { %v1733_v23 = vpop.f32.mrf.mxu2  ;;  %2517 = vmatmul.f32.gmra.mxu2 %v1854_v41 }
 0xa30   :  { %2575 = vmatmul.f32.gmra.mxu3 %v1856_v44  ;;  %v1734_v48 = vadd.f32 %v1733_v23, %v7874_v5  ;;  %v1791_v50 = vpop.f32.mrf.mxu3 }
 0xa31   :  { %v1792_v7 = vadd.f32 %v1791_v50, %v7883_v35  ;;  %v1765_v52 = vpop.f32.mrf.mxu0  ;;  %2549 = vmatmul.f32.gmra.mxu0 %v1871_v42 }
 0xa32   :  { %2607 = vmatmul.f32.gmra.mxu1 %v1873_v47  ;;  %v1766_v53 = vadd.f32 %v1765_v52, %v7834_v45  ;;  %v1823_v54 = vpop.f32.mrf.mxu1  ;;  %v1870_v34 = vmax.f32 %v1734_v48, 0.0 }
 0xa33   :  { %v1824_v43 = vadd.f32 %v1823_v54, %v7843_v49  ;;  %v1872_v12 = vmax.f32 %v1792_v7, 0.0 }
 0xa34   :  { %v1887_v57 = vmax.f32 %v1766_v53, 0.0 }
 0xa35   :  { %v1889_v58 = vmax.f32 %v1824_v43, 0.0 }
 0xa37   :  { %v1736_v61 = vpop.f32.mrf.mxu2  ;;  %2520 = vmatmul.f32.gmra.mxu2 %v1870_v34 }
 0xa38   :  { %2578 = vmatmul.f32.gmra.mxu3 %v1872_v12  ;;  %v1737_v59 = vadd.f32 %v1736_v61, %v7874_v5  ;;  %v1794_v1 = vpop.f32.mrf.mxu3 }
 0xa39   :  { %v1795_v0 = vadd.f32 %v1794_v1, %v7883_v35  ;;  %v2196_v2 = vpop.f32.mrf.mxu0  ;;  %2552 = vmatmul.f32.gmra.mxu0 %v1887_v57 }
 0xa3a   :  { %2610 = vmatmul.f32.gmra.mxu1 %v1889_v58  ;;  %v2254_v3 = vpop.f32.mrf.mxu1  ;;  %v1886_v45 = vmax.f32 %v1737_v59, 0.0 }
 0xa3b   :  { %v1888_v4 = vmax.f32 %v1795_v0, 0.0 }
 0xa3f   :  { %2523 = vmatmul.f32.gmra.mxu2 %v1886_v45  ;;  %v2167_v27 = vpop.f32.mrf.mxu2 }
 0xa40   :  { %2581 = vmatmul.f32.gmra.mxu3 %v1888_v4  ;;  %v2225_v60 = vpop.f32.mrf.mxu3  ;;  %v2168_v13 = vadd.f32 %v6014_v32, %v2167_v27 }
 0xa41   :  { %v2199_v49 = vpop.f32.mrf.mxu0 }
 0xa42   :  { %v2257_v55 = vpop.f32.mrf.mxu1  ;;  %v2197_v63 = vadd.f32 %v2196_v2, %v2168_v13 }
 0xa44   :  { %v2226_v47 = vadd.f32 %v2225_v60, %v2197_v63 }
 0xa46   :  { %v2255_v7 = vadd.f32 %v2254_v3, %v2226_v47 }
 0xa47   :  { %v2170_v9 = vpop.f32.mrf.mxu2 }
 0xa48   :  { %v2228_v28 = vpop.f32.mrf.mxu3  ;;  %v2171_v23 = vadd.f32 %v6014_v32, %v2170_v9 }
 0xa4a   :  { %v2200_v50 = vadd.f32 %v2199_v49, %v2171_v23 }
 0xa4b   :  { %v2202_v6 = vpop.f32.mrf.mxu0 }
 0xa4c   :  { %v2260_v8 = vpop.f32.mrf.mxu1  ;;  %v2229_v43 = vadd.f32 %v2228_v28, %v2200_v50 }
 0xa4e   :  { %v2258_v61 = vadd.f32 %v2257_v55, %v2229_v43 }
 0xa53   :  { %v2205_v5 = vpop.f32.mrf.mxu0 }
 0xa54   :  { %v7923_v51 = vpop.f32.mrf.mxu1 }
 0xa57   :  { %v2173_v35 = vpop.f32.mrf.mxu2 }
 0xa58   :  { %v2231_v36 = vpop.f32.mrf.mxu3  ;;  %v2174_v34 = vadd.f32 %v6014_v32, %v2173_v35 }
 0xa5a   :  { %v2203_v58 = vadd.f32 %v2202_v6, %v2174_v34 }
 0xa5b   :  { %v2312_v10 = vpop.f32.mrf.mxu0 }
 0xa5c   :  { %v2370_v11 = vpop.f32.mrf.mxu1  ;;  %v2232_v4 = vadd.f32 %v2231_v36, %v2203_v58 }
 0xa5e   :  { %v2261_v13 = vadd.f32 %v2260_v8, %v2232_v4 }
 0xa5f   :  { %v2176_v15 = vpop.f32.mrf.mxu2 }
 0xa60   :  { %v2234_v19 = vpop.f32.mrf.mxu3  ;;  %v2177_v27 = vadd.f32 %v6014_v32, %v2176_v15 }
 0xa62   :  { %v2206_v3 = vadd.f32 %v2205_v5, %v2177_v27 }
 0xa63   :  { %v2315_v21 = vpop.f32.mrf.mxu0 }
 0xa64   :  { %v2373_v16 = vpop.f32.mrf.mxu1  ;;  %v2235_v47 = vadd.f32 %v2234_v19, %v2206_v3 }
 0xa67   :  { %v2283_v18 = vpop.f32.mrf.mxu2 }
 0xa68   :  { %v2341_v24 = vpop.f32.mrf.mxu3  ;;  %v2284_v53 = vadd.f32 %v2283_v18, %v2255_v7 }
 0xa6a   :  { %v2313_v57 = vadd.f32 %v2312_v10, %v2284_v53 }
 0xa6b   :  { %v2318_v25 = vpop.f32.mrf.mxu0 }
 0xa6c   :  { %v7925_v62 = vpop.f32.mrf.mxu1  ;;  %v2342_v1 = vadd.f32 %v2341_v24, %v2313_v57 }
 0xa6e   :  { %v2371_v9 = vadd.f32 %v2370_v11, %v2342_v1 }
 0xa6f   :  { %v2286_v30 = vpop.f32.mrf.mxu2 }
 0xa70   :  { %v2344_v31 = vpop.f32.mrf.mxu3  ;;  %v2287_v0 = vadd.f32 %v2286_v30, %v2258_v61  ;;  %v2264_v30 = vadd.f32 %v7923_v51, %v2235_v47 }
 0xa72   :  { %v2316_v60 = vadd.f32 %v2315_v21, %v2287_v0 }
 0xa73   :  { %v2321_v14 = vpop.f32.mrf.mxu0 }
 0xa74   :  { %v7927_v33 = vpop.f32.mrf.mxu1  ;;  %v2345_v63 = vadd.f32 %v2344_v31, %v2316_v60 }
 0xa76   :  { %v2374_v24 = vadd.f32 %v2373_v16, %v2345_v63 }
 0xa77   :  { %v2289_v29 = vpop.f32.mrf.mxu2 }
 0xa78   :  { %v2347_v17 = vpop.f32.mrf.mxu3  ;;  %v2290_v28 = vadd.f32 %v2289_v29, %v2261_v13 }
 0xa7a   :  { %v2319_v23 = vadd.f32 %v2318_v25, %v2290_v28 }
 0xa7b   :  { %v2428_v39 = vpop.f32.mrf.mxu0 }
 0xa7c   :  { %v2486_v56 = vpop.f32.mrf.mxu1  ;;  %v2348_v21 = vadd.f32 %v2347_v17, %v2319_v23 }
 0xa7e   :  { %v2377_v19 = vadd.f32 %v7925_v62, %v2348_v21 }
 0xa7f   :  { %v2292_v37 = vpop.f32.mrf.mxu2 }
 0xa80   :  { %v2350_v40 = vpop.f32.mrf.mxu3  ;;  %v2293_v11 = vadd.f32 %v2292_v37, %v2264_v30 }
 0xa82   :  { %v2322_v29 = vadd.f32 %v2321_v14, %v2293_v11 }
 0xa83   :  { %v2431_v42 = vpop.f32.mrf.mxu0 }
 0xa84   :  { %v2489_v48 = vpop.f32.mrf.mxu1  ;;  %v2351_v16 = vadd.f32 %v2350_v40, %v2322_v29 }
 0xa87   :  { %v2399_v41 = vpop.f32.mrf.mxu2 }
 0xa88   :  { %v2457_v44 = vpop.f32.mrf.mxu3  ;;  %v2400_v18 = vadd.f32 %v2399_v41, %v2371_v9 }
 0xa8a   :  { %v2429_v10 = vadd.f32 %v2428_v39, %v2400_v18 }
 0xa8b   :  { %v2434_v12 = vpop.f32.mrf.mxu0 }
 0xa8c   :  { %v2492_v59 = vpop.f32.mrf.mxu1  ;;  %v2458_v50 = vadd.f32 %v2457_v44, %v2429_v10 }
 0xa8e   :  { %v2487_v8 = vadd.f32 %v2486_v56, %v2458_v50 }
 0xa8f   :  { %v2402_v52 = vpop.f32.mrf.mxu2 }
 0xa90   :  { %v2460_v54 = vpop.f32.mrf.mxu3  ;;  %v2403_v36 = vadd.f32 %v2402_v52, %v2374_v24 }
 0xa92   :  { %v2432_v32 = vadd.f32 %v2431_v42, %v2403_v36  ;;  %v2380_v42 = vadd.f32 %v7927_v33, %v2351_v16 }
 0xa94   :  { %v2437_v49 = vpop.f32.mrf.mxu0  ;;  %v2461_v7 = vadd.f32 %v2460_v54, %v2432_v32 }
 0xa95   :  { %v2495_v35 = vpop.f32.mrf.mxu1 }
 0xa96   :  { %v2490_v34 = vadd.f32 %v2489_v48, %v2461_v7 }
 0xa97   :  { %v2405_v2 = vpop.f32.mrf.mxu2 }
 0xa98   :  { %v2463_v45 = vpop.f32.mrf.mxu3  ;;  %v2406_v53 = vadd.f32 %v2405_v2, %v2377_v19 }
 0xa9a   :  { %v2435_v44 = vadd.f32 %v2434_v12, %v2406_v53 }
 0xa9c   :  { %v2464_v58 = vadd.f32 %v2463_v45, %v2435_v44  ;;  %v5445_v44 = vld [vmem:[%s9620_s4 + $0x28] sm:$0xff] }
 0xa9e   :  { %v2544_v15 = vpop.f32.mrf.mxu0  ;;  %v2493_v12 = vadd.f32 %v2492_v59, %v2464_v58 }
 0xa9f   :  { %v2602_v5 = vpop.f32.mrf.mxu1 }
 0xaa1   :  { %v2408_v6 = vpop.f32.mrf.mxu2 }
 0xaa2   :  { %v2466_v55 = vpop.f32.mrf.mxu3  ;;  %v2409_v62 = vadd.f32 %v2408_v6, %v2380_v42 }
 0xaa4   :  { %v2438_v1 = vadd.f32 %v2437_v49, %v2409_v62 }
 0xaa6   :  { %v2547_v51 = vpop.f32.mrf.mxu0  ;;  %v2467_v60 = vadd.f32 %v2466_v55, %v2438_v1 }
 0xaa7   :  { %v2605_v14 = vpop.f32.mrf.mxu1 }
 0xaa8   :  { %v2496_v18 = vadd.f32 %v2495_v35, %v2467_v60  ;;  %v6016_v60 = vld [vmem:[%s9631_s15] ss:$0 sm:$0xff] }
 0xaaa   :  { %v2515_v41 = vpop.f32.mrf.mxu2 }
 0xaab   :  { %v2573_v31 = vpop.f32.mrf.mxu3  ;;  %v2516_v39 = vadd.f32 %v2515_v41, %v2487_v8 }
 0xaad   :  { %v2545_v25 = vadd.f32 %v2544_v15, %v2516_v39 }
 0xaae   :  { %v2550_v2 = vpop.f32.mrf.mxu0 }
 0xaaf   :  { %v2574_v43 = vadd.f32 %v2573_v31, %v2545_v25  ;;  %v2608_v45 = vpop.f32.mrf.mxu1 }
 0xab1   :  { %v2603_v52 = vadd.f32 %v2602_v5, %v2574_v43  ;;  %v5447_v43 = vld [vmem:[%s9620_s4 + $0x38] sm:$0xff] }
 0xab2   :  { %v2518_v17 = vpop.f32.mrf.mxu2  ;;  %2756 = vmatpush.msrb.mxu2 %v5447_v43 }
 0xab3   :  { %v2576_v37 = vpop.f32.mrf.mxu3  ;;  %v2519_v56 = vadd.f32 %v2518_v17, %v2490_v34  ;;  %v2614_v57 = vadd.f32 %v2603_v52, %v6742_v38  ;;  %v5444_v52 = vld [vmem:[%s9620_s4 + $0x20] sm:$0xff] }
 0xab5   :  { %v2548_v61 = vadd.f32 %v2547_v51, %v2519_v56  ;;  %v2620_v54 = vsel %vm125_vm1, %v2614_v57, 0.0  ;;  %v5446_v51 = vld [vmem:[%s9620_s4 + $0x30] sm:$0xff] }
 0xab6   :  { %2621 = vadd.xlane.f32.xlu2 %v2620_v54  ;;  %v2553_v59 = vpop.f32.mrf.mxu0  ;;  %2757 = vmatpush.msrb.mxu2 %v5446_v51 }
 0xab7   :  { %v2577_v40 = vadd.f32 %v2576_v37, %v2548_v61  ;;  %v2611_v55 = vpop.f32.mrf.mxu1 }
 0xab8   :  { %2758 = vmatpush.msrb.mxu2 %v5445_v44 }
 0xab9   :  { %v2606_v0 = vadd.f32 %v2605_v14, %v2577_v40 }
 0xaba   :  { %v2521_v48 = vpop.f32.mrf.mxu2  ;;  %2759 = vmatpush.msrb.mxu2 %v5444_v52 }
 0xabb   :  { %v2522_v4 = vadd.f32 %v2521_v48, %v2493_v12  ;;  %v2615_v27 = vadd.f32 %v2606_v0, %v6755_v46  ;;  %v2579_v33 = vpop.f32.mrf.mxu3 }
 0xabd   :  { %v2551_v9 = vadd.f32 %v2550_v2, %v2522_v4  ;;  %v2623_v38 = vsel %vm125_vm1, %v2615_v27, 0.0  ;;  %v6015_v4 = vld [vmem:[%s9630_s14] ss:$0 sm:$0xff] }
 0xabe   :  { %2624 = vadd.xlane.f32.xlu0 %v2623_v38 }
 0xabf   :  { %v2580_v3 = vadd.f32 %v2579_v33, %v2551_v9 }
 0xac1   :  { %v2609_v13 = vadd.f32 %v2608_v45, %v2580_v3 }
 0xac2   :  { %v2524_v63 = vpop.f32.mrf.mxu2 }
 0xac3   :  { %v2525_v28 = vadd.f32 %v2524_v63, %v2496_v18  ;;  %v2616_v49 = vadd.f32 %v2609_v13, %v6821_v22  ;;  %v2582_v6 = vpop.f32.mrf.mxu3 }
 0xac5   :  { %v2554_v47 = vadd.f32 %v2553_v59, %v2525_v28  ;;  %v2626_v10 = vsel %vm125_vm1, %v2616_v49, 0.0 }
 0xac6   :  { %2627 = vadd.xlane.f32.xlu2 %v2626_v10 }
 0xac7   :  { %v2583_v46 = vadd.f32 %v2582_v6, %v2554_v47 }
 0xac9   :  { %v2612_v23 = vadd.f32 %v2611_v55, %v2583_v46 }
 0xacb   :  { %v2617_v24 = vadd.f32 %v2612_v23, %v6840_v26 }
 0xacd   :  { %v2629_v30 = vsel %vm125_vm1, %v2617_v24, 0.0 }
 0xace   :  { %2630 = vadd.xlane.f32.xlu1 %v2629_v30 }
 0xb29   :  { %v2622_v50 = vpop.xlane.xlu2 %2621 }
 0xb2a   :  { %v2632_v35 = vmul.f32 %v2622_v50, %v6653_v20 }
 0xb2c   :  { %v2636_v36 = vsub.f32 %v2614_v57, %v2632_v35 }
 0xb2e   :  { %v2640_v15 = vmul.f32 %v2636_v36, %v2636_v36 }
 0xb30   :  { %v2644_v22 = vsel %vm125_vm1, %v2640_v15, 0.0 }
 0xb31   :  { %v2625_v21 = vpop.xlane.xlu0 %2624  ;;  %2645 = vadd.xlane.f32.xlu0 %v2644_v22 }
 0xb32   :  { %v2633_v11 = vmul.f32 %v2625_v21, %v6653_v20 }
 0xb34   :  { %v7946_v32 = vsub.f32 %v2615_v27, %v2633_v11 }
 0xb36   :  { %v2641_v5 = vmul.f32 %v7946_v32, %v7946_v32 }
 0xb38   :  { %v2647_v26 = vsel %vm125_vm1, %v2641_v5, 0.0 }
 0xb39   :  { %2648 = vadd.xlane.f32.xlu2 %v2647_v26  ;;  %v2628_v8 = vpop.xlane.xlu2 %2627 }
 0xb3a   :  { %v2634_v41 = vmul.f32 %v2628_v8, %v6653_v20 }
 0xb3c   :  { %v7952_v31 = vsub.f32 %v2616_v49, %v2634_v41 }
 0xb3e   :  { %v2642_v29 = vmul.f32 %v7952_v31, %v7952_v31 }
 0xb40   :  { %v2650_v19 = vsel %vm125_vm1, %v2642_v29, 0.0 }
 0xb41   :  { %2651 = vadd.xlane.f32.xlu1 %v2650_v19  ;;  %v2631_v39 = vpop.xlane.xlu1 %2630 }
 0xb42   :  { %v2635_v7 = vmul.f32 %v2631_v39, %v6653_v20 }
 0xb44   :  { %v7958_v53 = vsub.f32 %v2617_v24, %v2635_v7 }
 0xb46   :  { %v2643_v25 = vmul.f32 %v7958_v53, %v7958_v53 }
 0xb48   :  { %v2653_v16 = vsel %vm125_vm1, %v2643_v25, 0.0 }
 0xb49   :  { %2654 = vadd.xlane.f32.xlu0 %v2653_v16 }
 0xba4   :  { %v2646_v34 = vpop.xlane.xlu0 %2645 }
 0xba5   :  { %v2656_v17 = vmul.f32 %v2646_v34, %v6653_v20 }
 0xba7   :  { %v2660_v37 = vadd.f32 1e-05, %v2656_v17 }
 0xba9   :  { %6099 = vrsqrt.f32 %v2660_v37  ;;  %vm2670_vm4 = vweird.f32 %v2660_v37 }
 0xbac   :  { %v2649_v42 = vpop.xlane.xlu2 %2648 }
 0xbad   :  { %v2657_v56 = vmul.f32 %v2649_v42, %v6653_v20 }
 0xbaf   :  { %v6100_v57 = vpop.eup %6099  ;;  %v2661_v14 = vadd.f32 1e-05, %v2657_v56 }
 0xbb0   :  { %v2665_v58 = vmul.f32 %v6100_v57, %v2660_v37  ;;  %vm2671_vm3 = vweird.f32 %v6100_v57 }
 0xbb1   :  { %6101 = vrsqrt.f32 %v2661_v14  ;;  %vm2672_vm5 = vmor %vm2670_vm4, %vm2671_vm3  ;;  %vm2680_vm7 = vweird.f32 %v2661_v14 }
 0xbb2   :  { %v2666_v62 = vmul.f32 %v6100_v57, %v2665_v58 }
 0xbb4   :  { %v2667_v61 = vmul.f32 0.5, %v2666_v62  ;;  %v2652_v54 = vpop.xlane.xlu1 %2651 }
 0xbb5   :  { %v2658_v40 = vmul.f32 %v2652_v54, %v6653_v20 }
 0xbb6   :  { %v2668_v1 = vsub.f32 1.5, %v2667_v61 }
 0xbb7   :  { %v6102_v0 = vpop.eup %6101  ;;  %v2662_v12 = vadd.f32 1e-05, %v2658_v40 }
 0xbb8   :  { %v2669_v2 = vmul.f32 %v6100_v57, %v2668_v1  ;;  %v2675_v48 = vmul.f32 %v6102_v0, %v2661_v14  ;;  %vm2681_vm6 = vweird.f32 %v6102_v0 }
 0xbb9   :  { %6103 = vrsqrt.f32 %v2662_v12  ;;  %vm2682_vm8 = vmor %vm2680_vm7, %vm2681_vm6  ;;  %vm2690_vm10 = vweird.f32 %v2662_v12 }
 0xbba   :  { %v2673_v27 = vsel %vm2672_vm5, %v6100_v57, %v2669_v2  ;;  %v2676_v33 = vmul.f32 %v6102_v0, %v2675_v48 }
 0xbbb   :  { %v2704_v9 = vmul.f32 %v2673_v27, %v2636_v36 }
 0xbbc   :  { %v2677_v38 = vmul.f32 0.5, %v2676_v33  ;;  %v2655_v45 = vpop.xlane.xlu0 %2654 }
 0xbbd   :  { %v2711_v3 = vmul.f32 %v6015_v4, %v2704_v9  ;;  %v2659_v13 = vmul.f32 %v2655_v45, %v6653_v20 }
 0xbbe   :  { %v2678_v18 = vsub.f32 1.5, %v2677_v38 }
 0xbbf   :  { %v6104_v63 = vpop.eup %6103  ;;  %v7985_v28 = vadd.f32 %v6016_v60, %v2711_v3  ;;  %v2663_v49 = vadd.f32 1e-05, %v2659_v13 }
 0xbc0   :  { %v2679_v59 = vmul.f32 %v6102_v0, %v2678_v18  ;;  %v2685_v47 = vmul.f32 %v6104_v63, %v2662_v12  ;;  %vm2691_vm9 = vweird.f32 %v6104_v63 }
 0xbc1   :  { %6105 = vrsqrt.f32 %v2663_v49  ;;  %5449 = vmatmul.msk.f32.vlgmr.msrb.gmra.mxu2 %vm125_vm1, %v7985_v28  ;;  %vm2692_vm11 = vmor %vm2690_vm10, %vm2691_vm9  ;;  %vm2700_vm13 = vweird.f32 %v2663_v49 }
 0xbc2   :  { %v2683_v10 = vsel %vm2682_vm8, %v6102_v0, %v2679_v59  ;;  %v2686_v6 = vmul.f32 %v6104_v63, %v2685_v47 }
 0xbc3   :  { %v2705_v46 = vmul.f32 %v2683_v10, %v7946_v32 }
 0xbc4   :  { %v2687_v55 = vmul.f32 0.5, %v2686_v6 }
 0xbc5   :  { %v2712_v23 = vmul.f32 %v6015_v4, %v2705_v46 }
 0xbc6   :  { %v2688_v24 = vsub.f32 1.5, %v2687_v55 }
 0xbc7   :  { %v6106_v30 = vpop.eup %6105  ;;  %v7990_v50 = vadd.f32 %v6016_v60, %v2712_v23 }
 0xbc8   :  { %v2689_v35 = vmul.f32 %v6104_v63, %v2688_v24  ;;  %v2695_v36 = vmul.f32 %v6106_v30, %v2663_v49  ;;  %vm2701_vm12 = vweird.f32 %v6106_v30 }
 0xbc9   :  { %5450 = vmatmul.msk.f32.gmra.mxu2 %vm125_vm1, %v7990_v50  ;;  %vm2702_vm14 = vmor %vm2700_vm13, %vm2701_vm12 }
 0xbca   :  { %v2693_v15 = vsel %vm2692_vm11, %v6104_v63, %v2689_v35  ;;  %v2696_v22 = vmul.f32 %v6106_v30, %v2695_v36 }
 0xbcb   :  { %v2706_v21 = vmul.f32 %v2693_v15, %v7952_v31  ;;  %v6017_v31 = vld [vmem:[%s9621_s5 + $0x1] ss:$0 sm:$0xff]  ;;  %s9653_s5 = smov 48  }
 0xbcc   :  { %v2697_v11 = vmul.f32 0.5, %v2696_v22 }
 0xbcd   :  { %v2713_v32 = vmul.f32 %v6015_v4, %v2706_v21 }
 0xbce   :  { %v2698_v5 = vsub.f32 1.5, %v2697_v11 }
 0xbcf   :  { %v7995_v26 = vadd.f32 %v6016_v60, %v2713_v32 }
 0xbd0   :  { %v2699_v8 = vmul.f32 %v6106_v30, %v2698_v5 }
 0xbd1   :  { %5451 = vmatmul.msk.f32.gmra.mxu2 %vm125_vm1, %v7995_v26 }
 0xbd2   :  { %v2703_v41 = vsel %vm2702_vm14, %v6106_v30, %v2699_v8 }
 0xbd3   :  { %v2707_v29 = vmul.f32 %v2703_v41, %v7958_v53 }
 0xbd5   :  { %v2714_v19 = vmul.f32 %v6015_v4, %v2707_v29 }
 0xbd7   :  { %v8000_v39 = vadd.f32 %v6016_v60, %v2714_v19 }
 0xbd9   :  { %5452 = vmatmul.msk.f32.gmra.mxu2 %vm125_vm1, %v8000_v39 }
 0xc44   :  { %v2761_v7 = vpop.f32.mrf.mxu2 }
 0xc45   :  { %v8007_v25 = vadd.f32 %v6017_v31, %v2761_v7 }
 0xc47   :  { %2775 = vrot.lane.b32.xlu1 %v8007_v25, %s6209_s23 }
 0xc4c   :  { %v2764_v16 = vpop.f32.mrf.mxu2 }
 0xc4d   :  { %v8011_v43 = vadd.f32 %v6017_v31, %v2764_v16 }
 0xc4f   :  { %2777 = vrot.lane.b32.xlu2 %v8011_v43, %s6209_s23  ;;  %2971 = vrot.lane.b32.xlu1 %v8007_v25, %s6211_s25  ;;  %v8089_v6 = vpack.i.bf16 %v8007_v25, %v8011_v43 }
 0xc54   :  { %v2767_v53 = vpop.f32.mrf.mxu2 }
 0xc55   :  { %v8017_v51 = vadd.f32 %v6017_v31, %v2767_v53 }
 0xc57   :  { %3069 = vrot.lane.b32.xlu1 %v8017_v51, %s6211_s25  ;;  %2871 = vrot.lane.b32.xlu2 %v8017_v51, %s6209_s23 }
 0xc5c   :  { %v2770_v44 = vpop.f32.mrf.mxu2 }
 0xc5d   :  { %v8023_v52 = vadd.f32 %v6017_v31, %v2770_v44 }
 0xc5f   :  { %2873 = vrot.lane.b32.xlu0 %v8023_v52, %s6209_s23  ;;  %3067 = vrot.lane.b32.xlu1 %v8023_v52, %s6212_s26  ;;  %s9654_s23 = smov 72  }
 0xc60   :  { %2967 = vrot.lane.b32.xlu2 %v8007_v25, %s6212_s26 }
 0xc67   :  { %2973 = vrot.lane.b32.xlu0 %v8011_v43, %s6211_s25  ;;  %3247 = vrot.lane.b32.xlu1 %v8007_v25, %s6214_s28 }
 0xc68   :  { %2969 = vrot.lane.b32.xlu2 %v8011_v43, %s6212_s26 }
 0xc6f   :  { %3065 = vrot.lane.b32.xlu0 %v8017_v51, %s6212_s26  ;;  %3349 = vrot.lane.b32.xlu1 %v8017_v51, %s6213_s27 }
 0xc70   :  { %3253 = vrot.lane.b32.xlu2 %v8011_v43, %s6213_s27 }
 0xc77   :  { %3251 = vrot.lane.b32.xlu0 %v8007_v25, %s6213_s27 }
 0xc78   :  { %3249 = vrot.lane.b32.xlu2 %v8011_v43, %s6214_s28 }
 0xc7f   :  { %3071 = vrot.lane.b32.xlu0 %v8023_v52, %s6211_s25 }
 0xc80   :  { %3345 = vrot.lane.b32.xlu2 %v8017_v51, %s6214_s28 }
 0xc87   :  { %3351 = vrot.lane.b32.xlu0 %v8023_v52, %s6213_s27 }
 0xc8f   :  { %3347 = vrot.lane.b32.xlu0 %v8023_v52, %s6214_s28 }
 0xca9   :  { %v2778_v34 = vpop.permute.xlu2 %2777 }
 0xcaa   :  { %5453 = vmatpush.xpose.msk.msra.mxu0 %vm71_vm0, %v2778_v34 }
 0xcb1   :  { %v2872_v42 = vpop.permute.xlu2 %2871 }
 0xcb9   :  { %v2776_v17 = vpop.permute.xlu1 %2775 }
 0xcba   :  { %5454 = vmatpush.xpose.msk.msra.mxu0 %vm71_vm0, %v2776_v17  ;;  %v2968_v14 = vpop.permute.xlu2 %2967 }
 0xcbd   :  { %5455 = vmatmul.msk.f32.vlgmr.msra.gmra.mxu0 %vm71_vm0, %v8007_v25 }
 0xcc1   :  { %v2972_v56 = vpop.permute.xlu1 %2971 }
 0xcc2   :  { %v2970_v61 = vpop.permute.xlu2 %2969 }
 0xcc5   :  { %5456 = vmatmul.msk.f32.gmra.mxu0 %vm71_vm0, %v8011_v43 }
 0xcc9   :  { %v3070_v58 = vpop.permute.xlu1 %3069 }
 0xcca   :  { %v3254_v12 = vpop.permute.xlu2 %3253 }
 0xcd1   :  { %v2874_v37 = vpop.permute.xlu0 %2873  ;;  %v3068_v40 = vpop.permute.xlu1 %3067 }
 0xcd2   :  { %5459 = vmatpush.xpose.msk.msrb.mxu0 %vm71_vm0, %v2874_v37  ;;  %v3250_v4 = vpop.permute.xlu2 %3249 }
 0xcd6   :  { %5460 = vmatpush.xpose.msk.msrb.mxu0 %vm71_vm0, %v2872_v42 }
 0xcd9   :  { %v2974_v57 = vpop.permute.xlu0 %2973  ;;  %5461 = vmatmul.msk.f32.vlgmr.msrb.gmra.mxu0 %vm71_vm0, %v8017_v51  ;;  %v3248_v0 = vpop.permute.xlu1 %3247 }
 0xcda   :  { %5466 = vmatpush.xpose.msk.msrb.mxu1 %vm71_vm0, %v2974_v57  ;;  %v3346_v27 = vpop.permute.xlu2 %3345 }
 0xcde   :  { %5467 = vmatpush.xpose.msk.msrb.mxu1 %vm71_vm0, %v2972_v56 }
 0xce1   :  { %v3066_v62 = vpop.permute.xlu0 %3065  ;;  %5462 = vmatmul.msk.f32.gmra.mxu0 %vm71_vm0, %v8023_v52  ;;  %5468 = vmatmul.msk.f32.vlgmr.msrb.gmra.mxu1 %vm71_vm0, %v2968_v14  ;;  %v3350_v48 = vpop.permute.xlu1 %3349 }
 0xce9   :  { %v3252_v54 = vpop.permute.xlu0 %3251  ;;  %5469 = vmatmul.msk.f32.gmra.mxu1 %vm71_vm0, %v2970_v61 }
 0xcf1   :  { %v3072_v1 = vpop.permute.xlu0 %3071 }
 0xcf2   :  { %5472 = vmatpush.xpose.msk.msra.mxu0 %vm71_vm0, %v3072_v1 }
 0xcf6   :  { %5473 = vmatpush.xpose.msk.msra.mxu0 %vm71_vm0, %v3070_v58  ;;  %v8119_v58 = vpack.i.bf16 %v8017_v51, %v8023_v52 }
 0xcf9   :  { %5474 = vmatmul.msk.f32.vlgmr.msra.gmra.mxu0 %vm71_vm0, %v3066_v62  ;;  %v3352_v2 = vpop.permute.xlu0 %3351 }
 0xcfa   :  { %5487 = vmatpush.xpose.msk.msrb.mxu0 %vm71_vm0, %v3254_v12 }
 0xcfe   :  { %5488 = vmatpush.xpose.msk.msrb.mxu0 %vm71_vm0, %v3252_v54 }
 0xd01   :  { %5475 = vmatmul.msk.f32.gmra.mxu0 %vm71_vm0, %v3068_v40  ;;  %v3348_v33 = vpop.permute.xlu0 %3347 }
 0xd02   :  { %5493 = vmatpush.xpose.msk.msra.mxu0 %vm71_vm0, %v3352_v2 }
 0xd06   :  { %5494 = vmatpush.xpose.msk.msra.mxu0 %vm71_vm0, %v3350_v48 }
 0xd09   :  { %5489 = vmatmul.msk.f32.vlgmr.msrb.gmra.mxu0 %vm71_vm0, %v3248_v0 }
 0xd11   :  { %5490 = vmatmul.msk.f32.gmra.mxu0 %vm71_vm0, %v3250_v4 }
 0xd19   :  { %5495 = vmatmul.msk.f32.vlgmr.msra.gmra.mxu0 %vm71_vm0, %v3346_v27 }
 0xd21   :  { %5496 = vmatmul.msk.f32.gmra.mxu0 %vm71_vm0, %v3348_v33 }
 0xd3a   :  { %v2804_v60 = vpop.f32.mrf.mxu0 }
 0xd3b   :  { %v2810_v9 = vmul.f32 0.35355338, %v2804_v60 }
 0xd3d   :  { %v2812_v38 = vsel %vm206_vm2, %v2810_v9, -inf }
 0xd3e   :  { %2813 = vmax.xlane.f32.xlu1 %v2812_v38 }
 0xd42   :  { %v2807_v45 = vpop.f32.mrf.mxu0 }
 0xd43   :  { %v2811_v3 = vmul.f32 0.35355338, %v2807_v45 }
 0xd45   :  { %v2815_v13 = vsel %vm206_vm2, %v2811_v3, -inf }
 0xd46   :  { %2816 = vmax.xlane.f32.xlu2 %v2815_v13 }
 0xd56   :  { %v2900_v18 = vpop.f32.mrf.mxu0 }
 0xd57   :  { %v2906_v63 = vmul.f32 0.35355338, %v2900_v18 }
 0xd59   :  { %v2908_v49 = vsel %vm206_vm2, %v2906_v63, -inf }
 0xd5a   :  { %2909 = vmax.xlane.f32.xlu0 %v2908_v49 }
 0xd5e   :  { %v2903_v59 = vpop.f32.mrf.mxu0  ;;  %v3000_v46 = vpop.f32.mrf.mxu1 }
 0xd5f   :  { %v2907_v47 = vmul.f32 0.35355338, %v2903_v59  ;;  %v8093_v55 = vmul.f32 0.35355338, %v3000_v46 }
 0xd61   :  { %v2911_v10 = vsel %vm206_vm2, %v2907_v47, -inf  ;;  %v3008_v23 = vsel %vm206_vm2, %v8093_v55, -inf }
 0xd62   :  { %2912 = vmax.xlane.f32.xlu1 %v2911_v10 }
 0xd66   :  { %v3003_v32 = vpop.f32.mrf.mxu1 }
 0xd67   :  { %v8101_v5 = vmul.f32 0.35355338, %v3003_v32 }
 0xd69   :  { %v3011_v29 = vsel %vm206_vm2, %v8101_v5, -inf }
 0xd6e   :  { %5970 = vrot.lane.b32.xlu0 %v8089_v6, %s6210_s24 }
 0xd76   :  { %v3098_v19 = vpop.f32.mrf.mxu0 }
 0xd77   :  { %v8109_v31 = vmul.f32 0.35355338, %v3098_v19 }
 0xd79   :  { %v3106_v16 = vsel %vm206_vm2, %v8109_v31, -inf }
 0xd7e   :  { %v3101_v34 = vpop.f32.mrf.mxu0 }
 0xd86   :  { %v3280_v14 = vpop.f32.mrf.mxu0 }
 0xd87   :  { %v8127_v0 = vmul.f32 0.35355338, %v3280_v14 }
 0xd89   :  { %v3288_v2 = vsel %vm206_vm2, %v8127_v0, -inf }
 0xd8e   :  { %v3283_v12 = vpop.f32.mrf.mxu0 }
 0xd8f   :  { %v8131_v48 = vmul.f32 0.35355338, %v3283_v12 }
 0xd91   :  { %v3291_v27 = vsel %vm206_vm2, %v8131_v48, -inf }
 0xd96   :  { %v3378_v4 = vpop.f32.mrf.mxu0 }
 0xd97   :  { %v8135_v33 = vmul.f32 0.35355338, %v3378_v4 }
 0xd98   :  { %3009 = vmax.xlane.f32.xlu0 %v3008_v23 }
 0xd99   :  { %v3386_v60 = vsel %vm206_vm2, %v8135_v33, -inf }
 0xdb1   :  { %v2814_v24 = vpop.xlane.xlu1 %2813 }
 0xdb2   :  { %v2818_v30 = vsub.f32 %v2810_v9, %v2814_v24  ;;  %v3381_v9 = vpop.f32.mrf.mxu0 }
 0xdb3   :  { %v8139_v38 = vmul.f32 0.35355338, %v3381_v9 }
 0xdb4   :  { %v2820_v35 = vmul.f32 1.442695, %v2818_v30 }
 0xdb5   :  { %v3389_v45 = vsel %vm206_vm2, %v8139_v38, -inf }
 0xdb6   :  { %6107 = vpow2.f32 %v2820_v35 }
 0xdb9   :  { %v2817_v36 = vpop.xlane.xlu2 %2816 }
 0xdba   :  { %v2819_v15 = vsub.f32 %v2811_v3, %v2817_v36  ;;  %v8143_v3 = vmul.f32 0.35355338, %v3101_v34 }
 0xdbc   :  { %v8097_v22 = vpop.eup %6107  ;;  %v2822_v21 = vmul.f32 1.442695, %v2819_v15  ;;  %v3109_v13 = vsel %vm206_vm2, %v8143_v3, -inf }
 0xdbd   :  { %v2824_v11 = vsel %vm206_vm2, %v8097_v22, 0.0 }
 0xdbe   :  { %6109 = vpow2.f32 %v2822_v21  ;;  %2825 = vadd.xlane.f32.xlu2 %v2824_v11 }
 0xdc4   :  { %v8103_v8 = vpop.eup %6109 }
 0xdc5   :  { %v2827_v41 = vsel %vm206_vm2, %v8103_v8, 0.0 }
 0xdc6   :  { %2828 = vadd.xlane.f32.xlu1 %v2827_v41  ;;  %3012 = vmax.xlane.f32.xlu2 %v3011_v29 }
 0xdcd   :  { %v2910_v7 = vpop.xlane.xlu0 %2909 }
 0xdce   :  { %v2914_v53 = vsub.f32 %v2906_v63, %v2910_v7  ;;  %3107 = vmax.xlane.f32.xlu2 %v3106_v16 }
 0xdd0   :  { %v2916_v44 = vmul.f32 1.442695, %v2914_v53 }
 0xdd2   :  { %6111 = vpow2.f32 %v2916_v44 }
 0xdd5   :  { %v2913_v17 = vpop.xlane.xlu1 %2912 }
 0xdd6   :  { %v2915_v37 = vsub.f32 %v2907_v47, %v2913_v17 }
 0xdd8   :  { %v8113_v42 = vpop.eup %6111  ;;  %v2918_v56 = vmul.f32 1.442695, %v2915_v37 }
 0xdd9   :  { %v2920_v57 = vsel %vm206_vm2, %v8113_v42, 0.0 }
 0xdda   :  { %6113 = vpow2.f32 %v2918_v56  ;;  %2921 = vadd.xlane.f32.xlu2 %v2920_v57 }
 0xddf   :  { %5975 = vrot.lane.b32.xlu1 %v8119_v58, %s6210_s24  ;;  %s9655_s24 = smov 104  }
 0xde0   :  { %v8123_v62 = vpop.eup %6113  ;;  %v5971_v61 = vpop.permute.xlu0 %5970 }
 0xde1   :  { %v5972_v54 = vunpack.i.l.bf16 %v5971_v61  ;;  %v2923_v40 = vsel %vm206_vm2, %v8123_v62, 0.0  ;;  %v5973_v1 = vunpack.i.h.bf16 %v5971_v61 }
 0xde2   :  { %2924 = vadd.xlane.f32.xlu2 %v2923_v40 }
 0xde3   :  { %2860 = vmatpush.msra.mxu3 %v5972_v54 }
 0xde5   :  { %2861 = vmatpush.msra.mxu3 %v5973_v1 }
 0xdea   :  { %3289 = vmax.xlane.f32.xlu2 %v3288_v2 }
 0xdf2   :  { %3292 = vmax.xlane.f32.xlu2 %v3291_v27 }
 0xdfa   :  { %3387 = vmax.xlane.f32.xlu2 %v3386_v60 }
 0xe02   :  { %3390 = vmax.xlane.f32.xlu2 %v3389_v45 }
 0xe09   :  { %3110 = vmax.xlane.f32.xlu1 %v3109_v13 }
 0xe0b   :  { %v3010_v18 = vpop.xlane.xlu0 %3009 }
 0xe0c   :  { %v3014_v63 = vsub.f32 %v8093_v55, %v3010_v18 }
 0xe0e   :  { %v3016_v49 = vmul.f32 1.442695, %v3014_v63 }
 0xe10   :  { %6115 = vpow2.f32 %v3016_v49 }
 0xe16   :  { %v8148_v59 = vpop.eup %6115 }
 0xe17   :  { %v3020_v47 = vsel %vm206_vm2, %v8148_v59, 0.0 }
 0xe18   :  { %3021 = vadd.xlane.f32.xlu0 %v3020_v47 }
 0xe1a   :  { %5980 = vrot.lane.b32.xlu2 %v8089_v6, %s6215_s29 }
 0xe22   :  { %5990 = vrot.lane.b32.xlu1 %v8089_v6, %s9653_s5  ;;  %5995 = vrot.lane.b32.xlu2 %v8119_v58, %s9653_s5 }
 0xe2a   :  { %3494 = vrot.lane.b32.xlu2 %v8007_v25, %s9654_s23 }
 0xe31   :  { %v2826_v10 = vpop.xlane.xlu2 %2825 }
 0xe32   :  { %6117 = vrcp.f32 %v2826_v10 }
 0xe38   :  { %v6118_v46 = vpop.eup %6117 }
 0xe39   :  { %v2832_v55 = vmul.f32 %v6118_v46, %v8097_v22  ;;  %v3013_v23 = vpop.xlane.xlu2 %3012  ;;  %v2829_v24 = vpop.xlane.xlu1 %2828 }
 0xe3a   :  { %v3015_v30 = vsub.f32 %v8101_v5, %v3013_v23  ;;  %6119 = vrcp.f32 %v2829_v24 }
 0xe3b   :  { %5457 = vmatmul.msk.f32.vlgmr.msra.gmra.mxu3 %vm206_vm2, %v2832_v55 }
 0xe3c   :  { %v3018_v35 = vmul.f32 1.442695, %v3015_v30 }
 0xe3e   :  { %6121 = vpow2.f32 %v3018_v35 }
 0xe40   :  { %v6120_v36 = vpop.eup %6119 }
 0xe41   :  { %v3108_v15 = vpop.xlane.xlu2 %3107  ;;  %v2833_v21 = vmul.f32 %v6120_v36, %v8103_v8 }
 0xe42   :  { %v3112_v11 = vsub.f32 %v8109_v31, %v3108_v15 }
 0xe43   :  { %5458 = vmatmul.msk.f32.gmra.mxu3 %vm206_vm2, %v2833_v21 }
 0xe44   :  { %v8166_v32 = vpop.eup %6121  ;;  %v3114_v22 = vmul.f32 1.442695, %v3112_v11 }
 0xe45   :  { %v3023_v41 = vsel %vm206_vm2, %v8166_v32, 0.0 }
 0xe46   :  { %6123 = vpow2.f32 %v3114_v22  ;;  %3024 = vadd.xlane.f32.xlu0 %v3023_v41 }
 0xe4c   :  { %v8170_v5 = vpop.eup %6123 }
 0xe4d   :  { %v2922_v29 = vpop.xlane.xlu2 %2921  ;;  %v3118_v19 = vsel %vm206_vm2, %v8170_v5, 0.0 }
 0xe4e   :  { %6125 = vrcp.f32 %v2922_v29  ;;  %3119 = vadd.xlane.f32.xlu1 %v3118_v19 }
 0xe51   :  { %v5976_v8 = vpop.permute.xlu1 %5975 }
 0xe52   :  { %v5977_v31 = vunpack.i.l.bf16 %v5976_v8  ;;  %v5978_v16 = vunpack.i.h.bf16 %v5976_v8 }
 0xe54   :  { %v6126_v7 = vpop.eup %6125  ;;  %2956 = vmatpush.msrb.mxu3 %v5977_v31 }
 0xe55   :  { %v2928_v53 = vmul.f32 %v6126_v7, %v8113_v42  ;;  %v2925_v44 = vpop.xlane.xlu2 %2924 }
 0xe56   :  { %6127 = vrcp.f32 %v2925_v44  ;;  %2957 = vmatpush.msrb.mxu3 %v5978_v16  ;;  %v5478_v44 = vld [vmem:[%s9622_s6 + $0x28] sm:$0xff] }
 0xe57   :  { %5463 = vmatmul.msk.f32.vlgmr.msrb.gmra.mxu3 %vm206_vm2, %v2928_v53  ;;  %3192 = vmatpush.msra.mxu1 %v5478_v44 }
 0xe5a   :  { %5985 = vrot.lane.b32.xlu0 %v8119_v58, %s6215_s29 }
 0xe5c   :  { %v6128_v34 = vpop.eup %6127 }
 0xe5d   :  { %v3290_v17 = vpop.xlane.xlu2 %3289  ;;  %v2929_v37 = vmul.f32 %v6128_v34, %v8123_v62 }
 0xe5e   :  { %v3294_v56 = vsub.f32 %v8127_v0, %v3290_v17 }
 0xe5f   :  { %5464 = vmatmul.msk.f32.gmra.mxu3 %vm206_vm2, %v2929_v37 }
 0xe60   :  { %v3296_v57 = vmul.f32 1.442695, %v3294_v56 }
 0xe62   :  { %6129 = vpow2.f32 %v3296_v57  ;;  %3496 = vrot.lane.b32.xlu0 %v8011_v43, %s9654_s23 }
 0xe65   :  { %v3293_v42 = vpop.xlane.xlu2 %3292 }
 0xe66   :  { %v3295_v62 = vsub.f32 %v8131_v48, %v3293_v42 }
 0xe68   :  { %v8183_v14 = vpop.eup %6129  ;;  %v3298_v2 = vmul.f32 1.442695, %v3295_v62 }
 0xe69   :  { %v3300_v61 = vsel %vm206_vm2, %v8183_v14, 0.0 }
 0xe6a   :  { %3301 = vadd.xlane.f32.xlu2 %v3300_v61 }
 0xe6d   :  { %v3388_v54 = vpop.xlane.xlu2 %3387 }
 0xe6e   :  { %v3392_v27 = vsub.f32 %v8135_v33, %v3388_v54 }
 0xe70   :  { %v3394_v45 = vmul.f32 1.442695, %v3392_v27 }
 0xe75   :  { %v3391_v40 = vpop.xlane.xlu2 %3390 }
 0xe76   :  { %v3393_v46 = vsub.f32 %v8139_v38, %v3391_v40 }
 0xe7c   :  { %v3111_v1 = vpop.xlane.xlu1 %3110 }
 0xe7d   :  { %v3113_v0 = vsub.f32 %v8143_v3, %v3111_v1  ;;  %v5981_v12 = vpop.permute.xlu2 %5980 }
 0xe7e   :  { %v5982_v4 = vunpack.i.l.bf16 %v5981_v12  ;;  %v5983_v9 = vunpack.i.h.bf16 %v5981_v12 }
 0xe7f   :  { %v3116_v60 = vmul.f32 1.442695, %v3113_v0 }
 0xe80   :  { %3056 = vmatpush.msra.mxu2 %v5982_v4 }
 0xe81   :  { %6131 = vpow2.f32 %v3116_v60 }
 0xe82   :  { %6133 = vpow2.f32 %v3298_v2  ;;  %3594 = vrot.lane.b32.xlu2 %v8023_v52, %s9654_s23  ;;  %3057 = vmatpush.msra.mxu2 %v5983_v9 }
 0xe83   :  { %6135 = vpow2.f32 %v3394_v45 }
 0xe85   :  { %v5996_v11 = vpop.permute.xlu2 %5995 }
 0xe86   :  { %v5997_v8 = vunpack.i.l.bf16 %v5996_v11  ;;  %v5998_v7 = vunpack.i.h.bf16 %v5996_v11 }
 0xe87   :  { %v8192_v13 = vpop.eup %6131 }
 0xe88   :  { %v8194_v48 = vpop.eup %6133  ;;  %v3121_v3 = vsel %vm206_vm2, %v8192_v13, 0.0 }
 0xe89   :  { %3122 = vadd.xlane.f32.xlu1 %v3121_v3  ;;  %v3303_v18 = vsel %vm206_vm2, %v8194_v48, 0.0  ;;  %v8202_v63 = vpop.eup %6135 }
 0xe8a   :  { %3492 = vrot.lane.b32.xlu2 %v8011_v43, %s9655_s24  ;;  %v3398_v49 = vsel %vm206_vm2, %v8202_v63, 0.0  ;;  %v5465_v43 = vld [vmem:[%s9622_s6 + $0x20] sm:$0xff] }
 0xe8b   :  { %v3022_v33 = vpop.xlane.xlu0 %3021  ;;  %3233 = vmatpush.msrb.mxu2 %v5465_v43 }
 0xe8c   :  { %6137 = vrcp.f32 %v3022_v33  ;;  %3304 = vadd.xlane.f32.xlu0 %v3303_v18  ;;  %v5499_v33 = vld [vmem:[%s9622_s6 + $0x30] sm:$0xff] }
 0xe8d   :  { %v3495_v16 = vpop.permute.xlu2 %3494  ;;  %3472 = vmatpush.msrb.mxu1 %v5499_v33 }
 0xe91   :  { %3399 = vadd.xlane.f32.xlu1 %v3398_v49 }
 0xe92   :  { %v6138_v47 = vpop.eup %6137  ;;  %3590 = vrot.lane.b32.xlu2 %v8023_v52, %s9655_s24  ;;  %v3396_v52 = vmul.f32 1.442695, %v3393_v46 }
 0xe93   :  { %v3028_v10 = vmul.f32 %v6138_v47, %v8148_v59 }
 0xe94   :  { %v5991_v23 = vpop.permute.xlu1 %5990 }
 0xe95   :  { %5470 = vmatmul.msk.f32.vlgmr.msra.gmra.mxu2 %vm206_vm2, %v3028_v10  ;;  %v5992_v41 = vunpack.i.l.bf16 %v5991_v23  ;;  %v5993_v19 = vunpack.i.h.bf16 %v5991_v23 }
 0xea0   :  { %3592 = vrot.lane.b32.xlu0 %v8017_v51, %s9654_s23 }
 0xeaa   :  { %3490 = vrot.lane.b32.xlu1 %v8007_v25, %s9655_s24 }
 0xeb9   :  { %v3025_v55 = vpop.xlane.xlu0 %3024 }
 0xeba   :  { %6139 = vrcp.f32 %v3025_v55 }
 0xebb   :  { %6141 = vpow2.f32 %v3396_v52 }
 0xebe   :  { %v2863_v25 = vpop.f32.mrf.mxu3 }
 0xec0   :  { %v6140_v59 = vpop.eup %6139 }
 0xec1   :  { %v3029_v24 = vmul.f32 %v6140_v59, %v8166_v32  ;;  %v3120_v30 = vpop.xlane.xlu1 %3119  ;;  %v8220_v35 = vpop.eup %6141 }
 0xec2   :  { %6143 = vrcp.f32 %v3120_v30  ;;  %v3401_v36 = vsel %vm206_vm2, %v8220_v35, 0.0 }
 0xec3   :  { %5471 = vmatmul.msk.f32.gmra.mxu2 %vm206_vm2, %v3029_v24 }
 0xec6   :  { %v2866_v29 = vpop.f32.mrf.mxu3 }
 0xec8   :  { %v6144_v15 = vpop.eup %6143 }
 0xec9   :  { %v3126_v32 = vmul.f32 %v6144_v15, %v8170_v5 }
 0xeca   :  { %3402 = vadd.xlane.f32.xlu0 %v3401_v36 }
 0xecb   :  { %5483 = vmatmul.msk.f32.vlgmr.msrb.gmra.mxu2 %vm71_vm0, %v2863_v25 }
 0xecc   :  { %v5986_v38 = vpop.permute.xlu0 %5985 }
 0xecd   :  { %v5987_v21 = vunpack.i.l.bf16 %v5986_v38  ;;  %v5988_v22 = vunpack.i.h.bf16 %v5986_v38 }
 0xecf   :  { %3154 = vmatpush.msra.mxu3 %v5987_v21 }
 0xed1   :  { %3155 = vmatpush.msra.mxu3 %v5988_v22 }
 0xed2   :  { %5476 = vmatmul.msk.f32.vlgmr.msra.gmra.mxu3 %vm206_vm2, %v3126_v32 }
 0xed3   :  { %3336 = vmatpush.msrb.mxu3 %v5992_v41  ;;  %5484 = vmatmul.msk.f32.gmra.mxu2 %vm71_vm0, %v2866_v29 }
 0xed4   :  { %v3497_v31 = vpop.permute.xlu0 %3496 }
 0xed5   :  { %3337 = vmatpush.msrb.mxu3 %v5993_v19  ;;  %5504 = vmatpush.xpose.msk.msra.mxu2 %vm71_vm0, %v3497_v31 }
 0xed7   :  { %3434 = vmatpush.msra.mxu3 %v5997_v8 }
 0xed9   :  { %3435 = vmatpush.msra.mxu3 %v5998_v7  ;;  %5505 = vmatpush.xpose.msk.msra.mxu2 %vm71_vm0, %v3495_v16 }
 0xeda   :  { %v2959_v5 = vpop.f32.mrf.mxu3 }
 0xedb   :  { %5485 = vmatmul.msk.f32.gmra.mxu2 %vm71_vm0, %v2959_v5 }
 0xedd   :  { %v3302_v17 = vpop.xlane.xlu2 %3301 }
 0xede   :  { %3588 = vrot.lane.b32.xlu0 %v8017_v51, %s9655_s24 }
 0xee2   :  { %v2962_v53 = vpop.f32.mrf.mxu3 }
 0xee3   :  { %5486 = vmatmul.msk.f32.gmra.mxu2 %vm71_vm0, %v2962_v53 }
 0xee5   :  { %v3595_v61 = vpop.permute.xlu2 %3594 }
 0xeed   :  { %v3493_v4 = vpop.permute.xlu2 %3492 }
 0xef5   :  { %v3591_v3 = vpop.permute.xlu2 %3590 }
 0xefc   :  { %v3123_v34 = vpop.xlane.xlu1 %3122 }
 0xefd   :  { %6145 = vrcp.f32 %v3123_v34 }
 0xefe   :  { %6147 = vrcp.f32 %v3302_v17 }
 0xeff   :  { %v3305_v57 = vpop.xlane.xlu0 %3304 }
 0xf00   :  { %6149 = vrcp.f32 %v3305_v57 }
 0xf03   :  { %v6146_v37 = vpop.eup %6145 }
 0xf04   :  { %v3127_v56 = vmul.f32 %v6146_v37, %v8192_v13  ;;  %v6148_v42 = vpop.eup %6147  ;;  %v3400_v54 = vpop.xlane.xlu1 %3399 }
 0xf05   :  { %v3308_v51 = vmul.f32 %v6148_v42, %v8183_v14  ;;  %6151 = vrcp.f32 %v3400_v54 }
 0xf06   :  { %5477 = vmatmul.msk.f32.gmra.mxu3 %vm206_vm2, %v3127_v56  ;;  %v6150_v40 = vpop.eup %6149 }
 0xf07   :  { %v3309_v1 = vmul.f32 %v6150_v40, %v8194_v48 }
 0xf0b   :  { %v6152_v12 = vpop.eup %6151 }
 0xf0c   :  { %v3406_v14 = vmul.f32 %v6152_v12, %v8202_v63 }
 0xf0e   :  { %5491 = vmatmul.msk.f32.vlgmr.msrb.gmra.mxu3 %vm206_vm2, %v3308_v51 }
 0xf0f   :  { %5510 = vmatpush.xpose.msk.msrb.mxu3 %vm71_vm0, %v3595_v61 }
 0xf12   :  { %v3593_v62 = vpop.permute.xlu0 %3592 }
 0xf13   :  { %5511 = vmatpush.xpose.msk.msrb.mxu3 %vm71_vm0, %v3593_v62 }
 0xf16   :  { %5492 = vmatmul.msk.f32.gmra.mxu3 %vm206_vm2, %v3309_v1 }
 0xf18   :  { %v3059_v0 = vpop.f32.mrf.mxu2 }
 0xf19   :  { %5479 = vmatmul.msk.f32.vlgmr.msra.gmra.mxu1 %vm71_vm0, %v3059_v0 }
 0xf1c   :  { %v3491_v2 = vpop.permute.xlu1 %3490 }
 0xf1d   :  { %5506 = vmatmul.msk.f32.vlgmr.msra.gmra.mxu2 %vm71_vm0, %v3491_v2 }
 0xf1e   :  { %5497 = vmatmul.msk.f32.vlgmr.msra.gmra.mxu3 %vm206_vm2, %v3406_v14 }
 0xf25   :  { %5507 = vmatmul.msk.f32.gmra.mxu2 %vm71_vm0, %v3493_v4 }
 0xf3d   :  { %v3403_v27 = vpop.xlane.xlu0 %3402 }
 0xf3e   :  { %6153 = vrcp.f32 %v3403_v27 }
 0xf44   :  { %v6154_v60 = vpop.eup %6153 }
 0xf45   :  { %v3407_v9 = vmul.f32 %v6154_v60, %v8220_v35 }
 0xf46   :  { %v3062_v45 = vpop.f32.mrf.mxu2 }
 0xf47   :  { %5480 = vmatmul.msk.f32.gmra.mxu1 %vm71_vm0, %v3062_v45  ;;  %5498 = vmatmul.msk.f32.gmra.mxu3 %vm206_vm2, %v3407_v9 }
 0xf4e   :  { %v8259_v18 = vpop.f32.mrf.mxu2 }
 0xf50   :  { %v3589_v13 = vpop.permute.xlu0 %3588 }
 0xf51   :  { %5512 = vmatmul.msk.f32.vlgmr.msrb.gmra.mxu3 %vm71_vm0, %v3589_v13 }
 0xf55   :  { %v3157_v48 = vpop.f32.mrf.mxu3 }
 0xf56   :  { %5481 = vmatmul.msk.f32.gmra.mxu1 %vm71_vm0, %v3157_v48  ;;  %v8261_v63 = vpop.f32.mrf.mxu2 }
 0xf59   :  { %5513 = vmatmul.msk.f32.gmra.mxu3 %vm71_vm0, %v3591_v3 }
 0xf5e   :  { %v8264_v47 = vpop.f32.mrf.mxu2 }
 0xf66   :  { %v8267_v43 = vpop.f32.mrf.mxu2 }
 0xf89   :  { %v3160_v49 = vpop.f32.mrf.mxu3 }
 0xf8a   :  { %5482 = vmatmul.msk.f32.gmra.mxu1 %vm71_vm0, %v3160_v49  ;;  %v5516_v49 = vld [vmem:[%s9622_s6 + $0x38] sm:$0xff] }
 0xf91   :  { %v3339_v10 = vpop.f32.mrf.mxu3 }
 0xf92   :  { %5500 = vmatmul.msk.f32.vlgmr.msrb.gmra.mxu1 %vm71_vm0, %v3339_v10 }
 0xf99   :  { %v3342_v46 = vpop.f32.mrf.mxu3 }
 0xf9a   :  { %5501 = vmatmul.msk.f32.gmra.mxu1 %vm71_vm0, %v3342_v46 }
 0xfa0   :  { %v3523_v55 = vpop.f32.mrf.mxu2 }
 0xfa1   :  { %v3529_v52 = vmul.f32 0.35355338, %v3523_v55  ;;  %v3437_v23 = vpop.f32.mrf.mxu3 }
 0xfa2   :  { %5502 = vmatmul.msk.f32.gmra.mxu1 %vm71_vm0, %v3437_v23  ;;  %v3194_v23 = vpop.f32.mrf.mxu1 }
 0xfa3   :  { %v3531_v59 = vsel %vm206_vm2, %v3529_v52, -inf }
 0xfa4   :  { %3532 = vmax.xlane.f32.xlu0 %v3531_v59 }
 0xfa8   :  { %v3526_v24 = vpop.f32.mrf.mxu2 }
 0xfa9   :  { %v3530_v30 = vmul.f32 0.35355338, %v3526_v24 }
 0xfab   :  { %v3534_v35 = vsel %vm206_vm2, %v3530_v30, -inf }
 0xfac   :  { %3535 = vmax.xlane.f32.xlu1 %v3534_v35 }
 0xfc4   :  { %v3197_v59 = vpop.f32.mrf.mxu1 }
 0xfca   :  { %v3440_v25 = vpop.f32.mrf.mxu3 }
 0xfcb   :  { %5503 = vmatmul.msk.f32.gmra.mxu1 %vm71_vm0, %v3440_v25  ;;  %v3236_v25 = vadd.f32 %v8259_v18, %v3194_v23  ;;  %v5558_v23 = vld [vmem:[%s9626_s10 + $0x310] sm:$0xff] }
 0xfd3   :  { %v3200_v24 = vpop.f32.mrf.mxu1 }
 0xfd4   :  { %v3621_v36 = vpop.f32.mrf.mxu3 }
 0xfd5   :  { %v3627_v38 = vmul.f32 0.35355338, %v3621_v36 }
 0xfd7   :  { %v3629_v15 = vsel %vm206_vm2, %v3627_v38, -inf }
 0xfd8   :  { %3630 = vmax.xlane.f32.xlu2 %v3629_v15 }
 0xfdc   :  { %v3624_v21 = vpop.f32.mrf.mxu3 }
 0xfdd   :  { %v3628_v11 = vmul.f32 0.35355338, %v3624_v21 }
 0xfdf   :  { %v3632_v22 = vsel %vm206_vm2, %v3628_v11, -inf }
 0xfe0   :  { %3633 = vmax.xlane.f32.xlu0 %v3632_v22 }
 0xff0   :  { %6000 = vrot.lane.b32.xlu2 %v8089_v6, %s9656_s13 }
0x1017   :  { %v3533_v32 = vpop.xlane.xlu0 %3532 }
0x1018   :  { %v3537_v41 = vsub.f32 %v3529_v52, %v3533_v32  ;;  %v3239_v32 = vadd.f32 %v8261_v63, %v3197_v59  ;;  %v5559_v59 = vld [vmem:[%s9626_s10 + $0x318] sm:$0xff] }
0x101a   :  { %v3539_v29 = vmul.f32 1.442695, %v3537_v41 }
0x101c   :  { %6155 = vpow2.f32 %v3539_v29 }
0x101f   :  { %v3536_v19 = vpop.xlane.xlu1 %3535 }
0x1020   :  { %v3538_v8 = vsub.f32 %v3530_v30, %v3536_v19  ;;  %v3203_v30 = vpop.f32.mrf.mxu1 }
0x1022   :  { %v6156_v31 = vpop.eup %6155  ;;  %v3541_v7 = vmul.f32 1.442695, %v3538_v8 }
0x1023   :  { %v3543_v16 = vsel %vm206_vm2, %v6156_v31, 0.0 }
0x1024   :  { %6157 = vpow2.f32 %v3541_v7  ;;  %3544 = vadd.xlane.f32.xlu1 %v3543_v16 }
0x1028   :  { %v3474_v35 = vpop.f32.mrf.mxu1 }
0x1029   :  { %v3486_v36 = vadd.f32 %v3474_v35, %v3236_v25  ;;  %v5542_v35 = vld [vmem:[%s9626_s10 + $0x290] sm:$0xff]  ;;  %v5543_v25 = vld [vmem:[%s9626_s10 + $0x298] sm:$0xff] }
0x102a   :  { %v6158_v5 = vpop.eup %6157 }
0x102b   :  { %v3546_v53 = vsel %vm206_vm2, %v6158_v5, 0.0 }
0x102c   :  { %3547 = vadd.xlane.f32.xlu0 %v3546_v53  ;;  %v3242_v53 = vadd.f32 %v8264_v47, %v3200_v24  ;;  %v5540_v24 = vld [vmem:[%s9626_s10 + $0x280] sm:$0xff] }
0x1030   :  { %v3477_v22 = vpop.f32.mrf.mxu1 }
0x1031   :  { %v3487_v29 = vadd.f32 %v3477_v22, %v3239_v32 }
0x1040   :  { %6005 = vrot.lane.b32.xlu0 %v8119_v58, %s9656_s13 }
0x104b   :  { %v3631_v6 = vpop.xlane.xlu2 %3630 }
0x104c   :  { %v3635_v44 = vsub.f32 %v3627_v38, %v3631_v6  ;;  %v6018_v38 = vld [vmem:[%s9623_s7 + $0x1] ss:$0 sm:$0xff] }
0x104e   :  { %v3637_v34 = vmul.f32 1.442695, %v3635_v44 }
0x1050   :  { %6159 = vpow2.f32 %v3637_v34 }
0x1053   :  { %v6001_v17 = vpop.permute.xlu2 %6000  ;;  %v3634_v37 = vpop.xlane.xlu0 %3633 }
0x1054   :  { %v6002_v56 = vunpack.i.l.bf16 %v6001_v17  ;;  %v3636_v57 = vsub.f32 %v3628_v11, %v3634_v37  ;;  %v6003_v51 = vunpack.i.h.bf16 %v6001_v17  ;;  %v3245_v17 = vadd.f32 %v8267_v43, %v3203_v30  ;;  %v5541_v30 = vld [vmem:[%s9626_s10 + $0x288] sm:$0xff] }
0x1056   :  { %v6160_v42 = vpop.eup %6159  ;;  %v3639_v61 = vmul.f32 1.442695, %v3636_v57  ;;  %3579 = vmatpush.msrb.mxu0 %v6002_v56 }
0x1057   :  { %v3641_v54 = vsel %vm206_vm2, %v6160_v42, 0.0 }
0x1058   :  { %6161 = vpow2.f32 %v3639_v61  ;;  %3642 = vadd.xlane.f32.xlu1 %v3641_v54  ;;  %3580 = vmatpush.msrb.mxu0 %v6003_v51 }
0x105a   :  { %3715 = vmatpush.msra.mxu0 %v5516_v49  ;;  %v5573_v49 = vld [vmem:[%s9626_s10 + $0x388] sm:$0xff] }
0x105b   :  { %4007 = vmatpush.msra.mxu1 %v5573_v49  ;;  %v5530_v49 = vld [vmem:[%s9626_s10 + $0x230] sm:$0xff] }
0x105e   :  { %v6162_v40 = vpop.eup %6161 }
0x105f   :  { %v3644_v58 = vsel %vm206_vm2, %v6162_v40, 0.0 }
0x1060   :  { %3645 = vadd.xlane.f32.xlu1 %v3644_v58 }
0x1097   :  { %v3545_v62 = vpop.xlane.xlu1 %3544 }
0x1098   :  { %6163 = vrcp.f32 %v3545_v62 }
0x109e   :  { %v6164_v1 = vpop.eup %6163 }
0x109f   :  { %v3551_v0 = vmul.f32 %v6164_v1, %v6156_v31  ;;  %v3548_v12 = vpop.xlane.xlu0 %3547 }
0x10a0   :  { %6165 = vrcp.f32 %v3548_v12 }
0x10a1   :  { %5508 = vmatmul.msk.f32.vlgmr.msrb.gmra.mxu0 %vm206_vm2, %v3551_v0 }
0x10a6   :  { %v6166_v14 = vpop.eup %6165 }
0x10a7   :  { %v3552_v2 = vmul.f32 %v6166_v14, %v6158_v5  ;;  %v3480_v5 = vpop.f32.mrf.mxu1 }
0x10a8   :  { %v3488_v6 = vadd.f32 %v3480_v5, %v3242_v53 }
0x10a9   :  { %5509 = vmatmul.msk.f32.gmra.mxu0 %vm206_vm2, %v3552_v2 }
0x10b2   :  { %v6006_v4 = vpop.permute.xlu0 %6005 }
0x10b3   :  { %v6007_v27 = vunpack.i.l.bf16 %v6006_v4  ;;  %v6008_v60 = vunpack.i.h.bf16 %v6006_v4 }
0x10b5   :  { %3677 = vmatpush.msrb.mxu2 %v6007_v27 }
0x10b7   :  { %3678 = vmatpush.msrb.mxu2 %v6008_v60 }
0x10cb   :  { %v3643_v9 = vpop.xlane.xlu1 %3642 }
0x10cc   :  { %6167 = vrcp.f32 %v3643_v9 }
0x10d2   :  { %v6168_v45 = vpop.eup %6167 }
0x10d3   :  { %v3649_v13 = vmul.f32 %v6168_v45, %v6160_v42  ;;  %v3646_v48 = vpop.xlane.xlu1 %3645 }
0x10d4   :  { %6169 = vrcp.f32 %v3646_v48 }
0x10d5   :  { %5514 = vmatmul.msk.f32.vlgmr.msrb.gmra.mxu2 %vm206_vm2, %v3649_v13 }
0x10da   :  { %v6170_v3 = vpop.eup %6169 }
0x10db   :  { %v3650_v33 = vmul.f32 %v6170_v3, %v6162_v40 }
0x10dd   :  { %5515 = vmatmul.msk.f32.gmra.mxu2 %vm206_vm2, %v3650_v33  ;;  %v5572_v33 = vld [vmem:[%s9626_s10 + $0x380] sm:$0xff] }
0x10de   :  { %3978 = vmatpush.msra.mxu3 %v5572_v33  ;;  %v5528_v33 = vld [vmem:[%s9626_s10 + $0x220] sm:$0xff] }
0x111e   :  { %v3582_v10 = vpop.f32.mrf.mxu0 }
0x111f   :  { %5517 = vmatmul.msk.f32.vlgmr.msra.gmra.mxu0 %vm71_vm0, %v3582_v10  ;;  %v5574_v10 = vld [vmem:[%s9626_s10 + $0x390] sm:$0xff] }
0x1120   :  { %4036 = vmatpush.msra.mxu2 %v5574_v10  ;;  %v5529_v10 = vld [vmem:[%s9626_s10 + $0x228] sm:$0xff] }
0x1122   :  { %4037 = vmatpush.msra.mxu2 %v5558_v23 }
0x1124   :  { %4038 = vmatpush.msra.mxu2 %v5542_v35 }
0x1126   :  { %v3585_v46 = vpop.f32.mrf.mxu0 }
0x1127   :  { %5518 = vmatmul.msk.f32.gmra.mxu0 %vm71_vm0, %v3585_v46  ;;  %v5575_v46 = vld [vmem:[%s9626_s10 + $0x398] sm:$0xff] }
0x1128   :  { %4065 = vmatpush.msrb.mxu0 %v5575_v46 }
0x112a   :  { %4066 = vmatpush.msrb.mxu0 %v5559_v59 }
0x112c   :  { %4067 = vmatpush.msrb.mxu0 %v5543_v25 }
0x1158   :  { %v3680_v55 = vpop.f32.mrf.mxu2 }
0x1159   :  { %5519 = vmatmul.msk.f32.gmra.mxu0 %vm71_vm0, %v3680_v55  ;;  %v5556_v55 = vld [vmem:[%s9626_s10 + $0x300] sm:$0xff] }
0x115a   :  { %3979 = vmatpush.msra.mxu3 %v5556_v55 }
0x115c   :  { %3980 = vmatpush.msra.mxu3 %v5540_v24 }
0x1160   :  { %v3683_v52 = vpop.f32.mrf.mxu2 }
0x1161   :  { %5520 = vmatmul.msk.f32.gmra.mxu0 %vm71_vm0, %v3683_v52  ;;  %v5557_v52 = vld [vmem:[%s9626_s10 + $0x308] sm:$0xff] }
0x1162   :  { %4008 = vmatpush.msra.mxu1 %v5557_v52  ;;  %v5531_v52 = vld [vmem:[%s9626_s10 + $0x238] sm:$0xff] }
0x1164   :  { %4009 = vmatpush.msra.mxu1 %v5541_v30 }
0x119c   :  { %v3717_v15 = vpop.f32.mrf.mxu0 }
0x119d   :  { %v3729_v21 = vadd.f32 %v3717_v15, %v3486_v36  ;;  %v5524_v36 = vld [vmem:[%s9626_s10 + $0x200] sm:$0xff]  ;;  %v5526_v15 = vld [vmem:[%s9626_s10 + $0x210] sm:$0xff] }
0x119e   :  { %3981 = vmatpush.msra.mxu3 %v5524_v36  ;;  %4039 = vmatpush.msra.mxu2 %v5526_v15 }
0x119f   :  { %v3738_v11 = vadd.f32 %v6018_v38, %v3729_v21  ;;  %v5527_v21 = vld [vmem:[%s9626_s10 + $0x218] sm:$0xff] }
0x11a0   :  { %4068 = vmatpush.msrb.mxu0 %v5527_v21  ;;  %v5580_v21 = vld [vmem:[%s9626_s10 + $0x3c0] sm:$0xff] }
0x11a1   :  { %v3742_v41 = vadd.f32 %v3738_v11, %v7985_v28  ;;  %v3483_v28 = vpop.f32.mrf.mxu1 }
0x11a2   :  { %v3489_v56 = vadd.f32 %v3483_v28, %v3245_v17  ;;  %v8392_v28 = vld [vmem:[%s9625_s9 + $0x1] ss:$0 sm:$0xff] }
0x11a3   :  { %v3750_v19 = vsel %vm125_vm1, %v3742_v41, 0.0 }
0x11a4   :  { %v3720_v8 = vpop.f32.mrf.mxu0  ;;  %3751 = vadd.xlane.f32.xlu1 %v3750_v19 }
0x11a5   :  { %v3730_v31 = vadd.f32 %v3720_v8, %v3487_v29 }
0x11a7   :  { %v3739_v18 = vadd.f32 %v6018_v38, %v3730_v31 }
0x11a9   :  { %v3743_v7 = vadd.f32 %v3739_v18, %v7990_v50 }
0x11ab   :  { %v3753_v16 = vsel %vm125_vm1, %v3743_v7, 0.0 }
0x11ac   :  { %3754 = vadd.xlane.f32.xlu2 %v3753_v16 }
0x11d6   :  { %v3723_v44 = vpop.f32.mrf.mxu0 }
0x11d7   :  { %v3731_v63 = vadd.f32 %v3723_v44, %v3488_v6  ;;  %v8387_v44 = vld [vmem:[%s9624_s8 + $0x1] ss:$0 sm:$0xff]  ;;  %s6221_s8 = smov [#allocation2]  }
0x11d8   :  { %s5294_s9 = sshll.u32 %s6221_s8, 4  ;;  %s5295_s9 = int_to_ptr.vmem [resolvable:$true] %s5294_s9 }
0x11d9   :  { %v3740_v34 = vadd.f32 %v6018_v38, %v3731_v63 }
0x11db   :  { %v3744_v37 = vadd.f32 %v3740_v34, %v7995_v26 }
0x11dd   :  { %v3756_v57 = vsel %vm125_vm1, %v3744_v37, 0.0 }
0x11de   :  { %v3726_v42 = vpop.f32.mrf.mxu0  ;;  %3757 = vadd.xlane.f32.xlu1 %v3756_v57 }
0x11df   :  { %v3732_v50 = vadd.f32 %v3726_v42, %v3489_v56 }
0x11e1   :  { %v3741_v51 = vadd.f32 %v6018_v38, %v3732_v50  ;;  %v5525_v38 = vld [vmem:[%s9626_s10 + $0x208] sm:$0xff] }
0x11e2   :  { %4010 = vmatpush.msra.mxu1 %v5525_v38 }
0x11e3   :  { %v3745_v61 = vadd.f32 %v3741_v51, %v8000_v39 }
0x11e5   :  { %v3759_v47 = vsel %vm125_vm1, %v3745_v61, 0.0 }
0x11e6   :  { %3760 = vadd.xlane.f32.xlu0 %v3759_v47 }
0x1217   :  { %v3752_v54 = vpop.xlane.xlu1 %3751 }
0x1218   :  { %v3762_v40 = vmul.f32 %v3752_v54, %v6653_v20 }
0x121a   :  { %v8311_v58 = vsub.f32 %v3742_v41, %v3762_v40 }
0x121c   :  { %v3770_v26 = vmul.f32 %v8311_v58, %v8311_v58 }
0x121e   :  { %v3774_v43 = vsel %vm125_vm1, %v3770_v26, 0.0 }
0x121f   :  { %v3755_v62 = vpop.xlane.xlu2 %3754  ;;  %3775 = vadd.xlane.f32.xlu1 %v3774_v43  ;;  %v5576_v43 = vld [vmem:[%s9626_s10 + $0x3a0] sm:$0xff] }
0x1220   :  { %v3763_v1 = vmul.f32 %v3755_v62, %v6653_v20  ;;  %v5578_v62 = vld [vmem:[%s9626_s10 + $0x3b0] sm:$0xff]  ;;  %4094 = vmatpush.msrb.mxu3 %v5576_v43  ;;  %v5569_v43 = vld [vmem:[%s9626_s10 + $0x368] sm:$0xff] }
0x1221   :  { %4152 = vmatpush.msrb.mxu2 %v5578_v62  ;;  %v5571_v62 = vld [vmem:[%s9626_s10 + $0x378] sm:$0xff] }
0x1222   :  { %v8317_v0 = vsub.f32 %v3743_v7, %v3763_v1  ;;  %v5560_v1 = vld [vmem:[%s9626_s10 + $0x320] sm:$0xff] }
0x1223   :  { %4095 = vmatpush.msrb.mxu3 %v5560_v1  ;;  %v5552_v1 = vld [vmem:[%s9626_s10 + $0x2e0] sm:$0xff] }
0x1224   :  { %v3771_v39 = vmul.f32 %v8317_v0, %v8317_v0 }
0x1226   :  { %v3777_v12 = vsel %vm125_vm1, %v3771_v39, 0.0  ;;  %v5562_v39 = vld [vmem:[%s9626_s10 + $0x330] sm:$0xff] }
0x1227   :  { %3778 = vadd.xlane.f32.xlu1 %v3777_v12  ;;  %v5579_v12 = vld [vmem:[%s9626_s10 + $0x3b8] sm:$0xff]  ;;  %4153 = vmatpush.msrb.mxu2 %v5562_v39  ;;  %v5554_v39 = vld [vmem:[%s9626_s10 + $0x2f0] sm:$0xff] }
0x1228   :  { %4181 = vmatpush.msra.mxu0 %v5579_v12  ;;  %v5555_v12 = vld [vmem:[%s9626_s10 + $0x2f8] sm:$0xff] }
0x1251   :  { %v3758_v14 = vpop.xlane.xlu1 %3757 }
0x1252   :  { %v3764_v2 = vmul.f32 %v3758_v14, %v6653_v20  ;;  %v5561_v14 = vld [vmem:[%s9626_s10 + $0x328] sm:$0xff] }
0x1254   :  { %v8323_v4 = vsub.f32 %v3744_v37, %v3764_v2  ;;  %v5563_v2 = vld [vmem:[%s9626_s10 + $0x338] sm:$0xff] }
0x1255   :  { %4182 = vmatpush.msra.mxu0 %v5563_v2  ;;  %v5537_v2 = vld [vmem:[%s9626_s10 + $0x268] sm:$0xff] }
0x1256   :  { %v3772_v27 = vmul.f32 %v8323_v4, %v8323_v4 }
0x1258   :  { %v3780_v60 = vsel %vm125_vm1, %v3772_v27, 0.0  ;;  %v5544_v27 = vld [vmem:[%s9626_s10 + $0x2a0] sm:$0xff] }
0x1259   :  { %3781 = vadd.xlane.f32.xlu1 %v3780_v60  ;;  %v3761_v9 = vpop.xlane.xlu0 %3760  ;;  %4096 = vmatpush.msrb.mxu3 %v5544_v27  ;;  %v5538_v27 = vld [vmem:[%s9626_s10 + $0x270] sm:$0xff] }
0x125a   :  { %v3765_v45 = vmul.f32 %v3761_v9, %v6653_v20  ;;  %v5545_v9 = vld [vmem:[%s9626_s10 + $0x2a8] sm:$0xff] }
0x125b   :  { %4097 = vmatpush.msrb.mxu3 %v5528_v33  ;;  %v5668_v33 = vld [vmem:[%s9628_s12 + $0x870] sm:$0xff] }
0x125c   :  { %v8329_v13 = vsub.f32 %v3745_v61, %v3765_v45  ;;  %v5546_v45 = vld [vmem:[%s9626_s10 + $0x2b0] sm:$0xff] }
0x125d   :  { %4154 = vmatpush.msrb.mxu2 %v5546_v45  ;;  %v5685_v45 = vld [vmem:[%s9628_s12 + $0x8f8] sm:$0xff] }
0x125e   :  { %v3773_v48 = vmul.f32 %v8329_v13, %v8329_v13 }
0x125f   :  { %4155 = vmatpush.msrb.mxu2 %v5530_v49  ;;  %v5684_v49 = vld [vmem:[%s9628_s12 + $0x8f0] sm:$0xff] }
0x1260   :  { %v3783_v3 = vsel %vm125_vm1, %v3773_v48, 0.0 }
0x1261   :  { %3784 = vadd.xlane.f32.xlu1 %v3783_v3  ;;  %v5547_v3 = vld [vmem:[%s9626_s10 + $0x2b8] sm:$0xff] }
0x1262   :  { %4183 = vmatpush.msra.mxu0 %v5547_v3  ;;  %v5717_v3 = vld [vmem:[%s9628_s12 + $0x9f8] sm:$0xff] }
0x1264   :  { %4184 = vmatpush.msra.mxu0 %v5531_v52  ;;  %v5683_v52 = vld [vmem:[%s9628_s12 + $0x8e8] sm:$0xff] }
0x1292   :  { %v3776_v11 = vpop.xlane.xlu1 %3775 }
0x1293   :  { %v3786_v22 = vmul.f32 %v3776_v11, %v6653_v20 }
0x1295   :  { %v3790_v32 = vadd.f32 1e-05, %v3786_v22 }
0x1297   :  { %6171 = vrsqrt.f32 %v3790_v32  ;;  %vm3800_vm2 = vweird.f32 %v3790_v32 }
0x129a   :  { %v3779_v41 = vpop.xlane.xlu1 %3778 }
0x129b   :  { %v3787_v29 = vmul.f32 %v3779_v41, %v6653_v20 }
0x129d   :  { %v6172_v19 = vpop.eup %6171  ;;  %v3791_v8 = vadd.f32 1e-05, %v3787_v29 }
0x129e   :  { %v3795_v31 = vmul.f32 %v6172_v19, %v3790_v32  ;;  %vm3801_vm0 = vweird.f32 %v6172_v19 }
0x129f   :  { %6173 = vrsqrt.f32 %v3791_v8  ;;  %vm3802_vm15 = vmor %vm3800_vm2, %vm3801_vm0  ;;  %vm3810_vm4 = vweird.f32 %v3791_v8 }
0x12a0   :  { %v3796_v18 = vmul.f32 %v6172_v19, %v3795_v31  ;;  %v5564_v31 = vld [vmem:[%s9626_s10 + $0x340] sm:$0xff] }
0x12a2   :  { %v3797_v7 = vmul.f32 0.5, %v3796_v18 }
0x12a4   :  { %v3798_v16 = vsub.f32 1.5, %v3797_v7 }
0x12a5   :  { %v6174_v5 = vpop.eup %6173 }
0x12a6   :  { %v3799_v53 = vmul.f32 %v6172_v19, %v3798_v16  ;;  %v3805_v6 = vmul.f32 %v6174_v5, %v3791_v8  ;;  %vm3811_vm3 = vweird.f32 %v6174_v5 }
0x12a7   :  { %vm3812_vm5 = vmor %vm3810_vm4, %vm3811_vm3  ;;  %vm5254_vm3 = vcmask 1040384   ;;  %vm5287_vm4 = vcmask 17408  }
0x12a8   :  { %v3803_v63 = vsel %vm3802_vm15, %v6172_v19, %v3799_v53  ;;  %v3806_v34 = vmul.f32 %v6174_v5, %v3805_v6  ;;  %v5583_v53 = vld [vmem:[%s9626_s10 + $0x3d8] sm:$0xff]  ;;  %v5565_v6 = vld [vmem:[%s9626_s10 + $0x348] sm:$0xff] }
0x12a9   :  { %v3834_v17 = vmul.f32 %v3803_v63, %v8311_v58  ;;  %v5548_v63 = vld [vmem:[%s9626_s10 + $0x2c0] sm:$0xff] }
0x12aa   :  { %v3807_v37 = vmul.f32 0.5, %v3806_v34  ;;  %v5549_v34 = vld [vmem:[%s9626_s10 + $0x2c8] sm:$0xff] }
0x12ab   :  { %v3841_v56 = vmul.f32 %v8387_v44, %v3834_v17  ;;  %v5551_v17 = vld [vmem:[%s9626_s10 + $0x2d8] sm:$0xff] }
0x12ac   :  { %v3808_v57 = vsub.f32 1.5, %v3807_v37  ;;  %v5532_v37 = vld [vmem:[%s9626_s10 + $0x240] sm:$0xff] }
0x12ad   :  { %v8397_v42 = vadd.f32 %v8392_v28, %v3841_v56  ;;  %v5534_v56 = vld [vmem:[%s9626_s10 + $0x250] sm:$0xff] }
0x12ae   :  { %v3809_v50 = vmul.f32 %v6174_v5, %v3808_v57  ;;  %v5533_v57 = vld [vmem:[%s9626_s10 + $0x248] sm:$0xff] }
0x12af   :  { %5590 = vmatmul.msk.f32.vlgmr.msra.gmra.mxu3 %vm125_vm1, %v8397_v42  ;;  %5594 = vmatmul.msk.f32.vlgmr.msra.gmra.mxu1 %vm125_vm1, %v8397_v42 }
0x12b0   :  { %v3813_v51 = vsel %vm3812_vm5, %v6174_v5, %v3809_v50  ;;  %5598 = vmatmul.msk.f32.vlgmr.msra.gmra.mxu2 %vm125_vm1, %v8397_v42  ;;  %5602 = vmatmul.msk.f32.vlgmr.msrb.gmra.mxu0 %vm125_vm1, %v8397_v42  ;;  %v5566_v5 = vld [vmem:[%s9626_s10 + $0x350] sm:$0xff]  ;;  %v5535_v50 = vld [vmem:[%s9626_s10 + $0x258] sm:$0xff] }
0x12b1   :  { %v3835_v61 = vmul.f32 %v3813_v51, %v8317_v0  ;;  %v5577_v0 = vld [vmem:[%s9626_s10 + $0x3a8] sm:$0xff]  ;;  %4210 = vmatpush.msra.mxu3 %v5580_v21  ;;  %4297 = vmatpush.msrb.mxu0 %v5583_v53  ;;  %v5584_v51 = vld [vmem:[%s9626_s10 + $0x3e0] sm:$0xff]  ;;  %v5713_v21 = vld [vmem:[%s9628_s12 + $0x9d8] sm:$0xff] }
0x12b2   :  { %4123 = vmatpush.msrb.mxu1 %v5577_v0  ;;  %v5553_v0 = vld [vmem:[%s9626_s10 + $0x2e8] sm:$0xff]  ;;  %v5661_v53 = vld [vmem:[%s9628_s12 + $0x838] sm:$0xff] }
0x12b3   :  { %v3842_v47 = vmul.f32 %v8387_v44, %v3835_v61  ;;  %4211 = vmatpush.msra.mxu3 %v5564_v31  ;;  %v5586_v61 = vld [vmem:[%s9626_s10 + $0x3f0] sm:$0xff]  ;;  %v5711_v31 = vld [vmem:[%s9628_s12 + $0x9c8] sm:$0xff] }
0x12b4   :  { %4124 = vmatpush.msrb.mxu1 %v5561_v14  ;;  %v5536_v14 = vld [vmem:[%s9626_s10 + $0x260] sm:$0xff] }
0x12b5   :  { %v8410_v54 = vadd.f32 %v8392_v28, %v3842_v47  ;;  %4212 = vmatpush.msra.mxu3 %v5548_v63  ;;  %v5568_v47 = vld [vmem:[%s9626_s10 + $0x360] sm:$0xff]  ;;  %v5709_v63 = vld [vmem:[%s9628_s12 + $0x9b8] sm:$0xff] }
0x12b6   :  { %4125 = vmatpush.msrb.mxu1 %v5545_v9  ;;  %v5669_v9 = vld [vmem:[%s9628_s12 + $0x878] sm:$0xff] }
0x12b7   :  { %5591 = vmatmul.msk.f32.gmra.mxu3 %vm125_vm1, %v8410_v54  ;;  %5595 = vmatmul.msk.f32.gmra.mxu1 %vm125_vm1, %v8410_v54 }
0x12b8   :  { %5599 = vmatmul.msk.f32.gmra.mxu2 %vm125_vm1, %v8410_v54  ;;  %5603 = vmatmul.msk.f32.gmra.mxu0 %vm125_vm1, %v8410_v54 }
0x12b9   :  { %4126 = vmatpush.msrb.mxu1 %v5529_v10  ;;  %4213 = vmatpush.msra.mxu3 %v5532_v37  ;;  %v5700_v10 = vld [vmem:[%s9628_s12 + $0x970] sm:$0xff] }
0x12ba   :  { %v5708_v37 = vld [vmem:[%s9628_s12 + $0x9b0] sm:$0xff] }
0x12cc   :  { %v3782_v40 = vpop.xlane.xlu1 %3781 }
0x12cd   :  { %v3788_v58 = vmul.f32 %v3782_v40, %v6653_v20  ;;  %v5585_v40 = vld [vmem:[%s9626_s10 + $0x3e8] sm:$0xff] }
0x12cf   :  { %v3792_v26 = vadd.f32 1e-05, %v3788_v58  ;;  %v5587_v58 = vld [vmem:[%s9626_s10 + $0x3f8] sm:$0xff] }
0x12d1   :  { %6175 = vrsqrt.f32 %v3792_v26  ;;  %vm3820_vm7 = vweird.f32 %v3792_v26 }
0x12d4   :  { %v3785_v60 = vpop.xlane.xlu1 %3784 }
0x12d5   :  { %v3789_v48 = vmul.f32 %v3785_v60, %v6653_v20  ;;  %v5539_v60 = vld [vmem:[%s9626_s10 + $0x278] sm:$0xff] }
0x12d7   :  { %v6176_v46 = vpop.eup %6175  ;;  %v3793_v55 = vadd.f32 1e-05, %v3789_v48  ;;  %v5701_v48 = vld [vmem:[%s9628_s12 + $0x978] sm:$0xff] }
0x12d8   :  { %v3815_v23 = vmul.f32 %v6176_v46, %v3792_v26  ;;  %vm3821_vm6 = vweird.f32 %v6176_v46  ;;  %v5570_v26 = vld [vmem:[%s9626_s10 + $0x370] sm:$0xff] }
0x12d9   :  { %6177 = vrsqrt.f32 %v3793_v55  ;;  %vm3822_vm8 = vmor %vm3820_vm7, %vm3821_vm6  ;;  %vm3830_vm10 = vweird.f32 %v3793_v55 }
0x12da   :  { %v3816_v59 = vmul.f32 %v6176_v46, %v3815_v23  ;;  %v5699_v23 = vld [vmem:[%s9628_s12 + $0x968] sm:$0xff] }
0x12dc   :  { %v3817_v24 = vmul.f32 0.5, %v3816_v59  ;;  %v5715_v59 = vld [vmem:[%s9628_s12 + $0x9e8] sm:$0xff] }
0x12de   :  { %v3818_v30 = vsub.f32 1.5, %v3817_v24  ;;  %v5666_v24 = vld [vmem:[%s9628_s12 + $0x860] sm:$0xff] }
0x12df   :  { %v6178_v35 = vpop.eup %6177 }
0x12e0   :  { %v3819_v25 = vmul.f32 %v6176_v46, %v3818_v30  ;;  %v3825_v36 = vmul.f32 %v6178_v35, %v3793_v55  ;;  %vm3831_vm9 = vweird.f32 %v6178_v35  ;;  %v5667_v55 = vld [vmem:[%s9628_s12 + $0x868] sm:$0xff]  ;;  %v5682_v30 = vld [vmem:[%s9628_s12 + $0x8e0] sm:$0xff] }
0x12e1   :  { %vm3832_vm11 = vmor %vm3830_vm10, %vm3831_vm9 }
0x12e2   :  { %v3823_v38 = vsel %vm3822_vm8, %v6176_v46, %v3819_v25  ;;  %v3826_v15 = vmul.f32 %v6178_v35, %v3825_v36  ;;  %v5716_v46 = vld [vmem:[%s9628_s12 + $0x9f0] sm:$0xff]  ;;  %v5714_v25 = vld [vmem:[%s9628_s12 + $0x9e0] sm:$0xff]  ;;  %v5665_v36 = vld [vmem:[%s9628_s12 + $0x858] sm:$0xff] }
0x12e3   :  { %v3836_v11 = vmul.f32 %v3823_v38, %v8323_v4  ;;  %v5582_v4 = vld [vmem:[%s9626_s10 + $0x3d0] sm:$0xff]  ;;  %v5681_v38 = vld [vmem:[%s9628_s12 + $0x8d8] sm:$0xff] }
0x12e4   :  { %v3827_v22 = vmul.f32 0.5, %v3826_v15  ;;  %4268 = vmatpush.msra.mxu2 %v5582_v4  ;;  %v5697_v15 = vld [vmem:[%s9628_s12 + $0x958] sm:$0xff]  ;;  %v5695_v4 = vld [vmem:[%s9628_s12 + $0x948] sm:$0xff] }
0x12e5   :  { %v3843_v32 = vmul.f32 %v8387_v44, %v3836_v11  ;;  %v5664_v11 = vld [vmem:[%s9628_s12 + $0x850] sm:$0xff] }
0x12e6   :  { %v3828_v41 = vsub.f32 1.5, %v3827_v22  ;;  %4269 = vmatpush.msra.mxu2 %v5566_v5  ;;  %v5680_v22 = vld [vmem:[%s9628_s12 + $0x8d0] sm:$0xff]  ;;  %v5710_v5 = vld [vmem:[%s9628_s12 + $0x9c0] sm:$0xff] }
0x12e7   :  { %v8476_v29 = vadd.f32 %v8392_v28, %v3843_v32  ;;  %v5696_v32 = vld [vmem:[%s9628_s12 + $0x950] sm:$0xff] }
0x12e8   :  { %v3829_v19 = vmul.f32 %v6178_v35, %v3828_v41  ;;  %v5712_v41 = vld [vmem:[%s9628_s12 + $0x9d0] sm:$0xff] }
0x12e9   :  { %5592 = vmatmul.msk.f32.gmra.mxu3 %vm125_vm1, %v8476_v29  ;;  %5596 = vmatmul.msk.f32.gmra.mxu1 %vm125_vm1, %v8476_v29 }
0x12ea   :  { %v3833_v8 = vsel %vm3832_vm11, %v6178_v35, %v3829_v19  ;;  %5600 = vmatmul.msk.f32.gmra.mxu2 %vm125_vm1, %v8476_v29  ;;  %5604 = vmatmul.msk.f32.gmra.mxu0 %vm125_vm1, %v8476_v29  ;;  %v5698_v35 = vld [vmem:[%s9628_s12 + $0x960] sm:$0xff]  ;;  %v5663_v19 = vld [vmem:[%s9628_s12 + $0x848] sm:$0xff] }
0x12eb   :  { %v3837_v18 = vmul.f32 %v3833_v8, %v8329_v13  ;;  %v5581_v13 = vld [vmem:[%s9626_s10 + $0x3c8] sm:$0xff] }
0x12ec   :  { %4239 = vmatpush.msra.mxu1 %v5581_v13  ;;  %v5679_v8 = vld [vmem:[%s9628_s12 + $0x8c8] sm:$0xff]  ;;  %v5694_v13 = vld [vmem:[%s9628_s12 + $0x940] sm:$0xff] }
0x12ed   :  { %v3844_v7 = vmul.f32 %v8387_v44, %v3837_v18  ;;  %v5567_v44 = vld [vmem:[%s9626_s10 + $0x358] sm:$0xff]  ;;  %v5662_v18 = vld [vmem:[%s9628_s12 + $0x840] sm:$0xff] }
0x12ee   :  { %4240 = vmatpush.msra.mxu1 %v5565_v6  ;;  %4298 = vmatpush.msrb.mxu0 %v5567_v44  ;;  %v5677_v6 = vld [vmem:[%s9628_s12 + $0x8b8] sm:$0xff] }
0x12ef   :  { %v8495_v16 = vadd.f32 %v8392_v28, %v3844_v7  ;;  %v5550_v28 = vld [vmem:[%s9626_s10 + $0x2d0] sm:$0xff]  ;;  %v5678_v7 = vld [vmem:[%s9628_s12 + $0x8c0] sm:$0xff]  ;;  %v5693_v44 = vld [vmem:[%s9628_s12 + $0x938] sm:$0xff] }
0x12f0   :  { %4270 = vmatpush.msra.mxu2 %v5550_v28  ;;  %4241 = vmatpush.msra.mxu1 %v5549_v34  ;;  %v5660_v34 = vld [vmem:[%s9628_s12 + $0x830] sm:$0xff] }
0x12f1   :  { %5593 = vmatmul.msk.f32.gmra.mxu3 %vm125_vm1, %v8495_v16  ;;  %5597 = vmatmul.msk.f32.gmra.mxu1 %vm125_vm1, %v8495_v16  ;;  %v5676_v28 = vld [vmem:[%s9628_s12 + $0x8b0] sm:$0xff] }
0x12f2   :  { %5601 = vmatmul.msk.f32.gmra.mxu2 %vm125_vm1, %v8495_v16  ;;  %5605 = vmatmul.msk.f32.gmra.mxu0 %vm125_vm1, %v8495_v16 }
0x12f3   :  { %4271 = vmatpush.msra.mxu2 %v5534_v56  ;;  %4299 = vmatpush.msrb.mxu0 %v5551_v17  ;;  %v5692_v17 = vld [vmem:[%s9628_s12 + $0x930] sm:$0xff]  ;;  %v5659_v56 = vld [vmem:[%s9628_s12 + $0x828] sm:$0xff] }
0x12f4   :  { %4242 = vmatpush.msra.mxu1 %v5533_v57  ;;  %v5675_v57 = vld [vmem:[%s9628_s12 + $0x8a8] sm:$0xff] }
0x12f5   :  { %4300 = vmatpush.msrb.mxu0 %v5535_v50  ;;  %v5691_v50 = vld [vmem:[%s9628_s12 + $0x928] sm:$0xff] }
0x12f9   :  { %5606 = vmatmul.msk.f32.vlgmr.msrb.gmra.mxu3 %vm125_vm1, %v8397_v42  ;;  %5610 = vmatmul.msk.f32.vlgmr.msrb.gmra.mxu1 %vm125_vm1, %v8397_v42 }
0x12fa   :  { %5614 = vmatmul.msk.f32.vlgmr.msrb.gmra.mxu2 %vm125_vm1, %v8397_v42  ;;  %5618 = vmatmul.msk.f32.vlgmr.msra.gmra.mxu0 %vm125_vm1, %v8397_v42 }
0x12fb   :  { %4326 = vmatpush.msrb.mxu3 %v5584_v51  ;;  %4384 = vmatpush.msrb.mxu2 %v5586_v61  ;;  %v5707_v51 = vld [vmem:[%s9628_s12 + $0x9a8] sm:$0xff]  ;;  %v5658_v61 = vld [vmem:[%s9628_s12 + $0x820] sm:$0xff] }
0x12fc   :  { %4355 = vmatpush.msrb.mxu1 %v5585_v40  ;;  %4413 = vmatpush.msra.mxu0 %v5587_v58  ;;  %v5690_v40 = vld [vmem:[%s9628_s12 + $0x920] sm:$0xff] }
0x12fd   :  { %4327 = vmatpush.msrb.mxu3 %v5568_v47  ;;  %4385 = vmatpush.msrb.mxu2 %v5570_v26  ;;  %v5674_v47 = vld [vmem:[%s9628_s12 + $0x8a0] sm:$0xff]  ;;  %v5657_v26 = vld [vmem:[%s9628_s12 + $0x818] sm:$0xff] }
0x12fe   :  { %4356 = vmatpush.msrb.mxu1 %v5569_v43  ;;  %4414 = vmatpush.msra.mxu0 %v5571_v62  ;;  %v5706_v58 = vld [vmem:[%s9628_s12 + $0x9a0] sm:$0xff]  ;;  %v5673_v43 = vld [vmem:[%s9628_s12 + $0x898] sm:$0xff] }
0x12ff   :  { %4328 = vmatpush.msrb.mxu3 %v5552_v1  ;;  %4386 = vmatpush.msrb.mxu2 %v5554_v39  ;;  %v5689_v62 = vld [vmem:[%s9628_s12 + $0x918] sm:$0xff]  ;;  %v5688_v39 = vld [vmem:[%s9628_s12 + $0x910] sm:$0xff] }
0x1300   :  { %4357 = vmatpush.msrb.mxu1 %v5553_v0  ;;  %4415 = vmatpush.msra.mxu0 %v5555_v12  ;;  %v5705_v1 = vld [vmem:[%s9628_s12 + $0x998] sm:$0xff]  ;;  %v5672_v0 = vld [vmem:[%s9628_s12 + $0x890] sm:$0xff] }
0x1301   :  { %5607 = vmatmul.msk.f32.gmra.mxu3 %vm125_vm1, %v8410_v54  ;;  %5611 = vmatmul.msk.f32.gmra.mxu1 %vm125_vm1, %v8410_v54  ;;  %v5704_v12 = vld [vmem:[%s9628_s12 + $0x990] sm:$0xff] }
0x1302   :  { %5615 = vmatmul.msk.f32.gmra.mxu2 %vm125_vm1, %v8410_v54  ;;  %5619 = vmatmul.msk.f32.gmra.mxu0 %vm125_vm1, %v8410_v54 }
0x1303   :  { %4329 = vmatpush.msrb.mxu3 %v5536_v14  ;;  %4358 = vmatpush.msrb.mxu1 %v5537_v2  ;;  %v5655_v14 = vld [vmem:[%s9628_s12 + $0x808] sm:$0xff] }
0x1304   :  { %4387 = vmatpush.msrb.mxu2 %v5538_v27  ;;  %4416 = vmatpush.msra.mxu0 %v5539_v60  ;;  %v5671_v2 = vld [vmem:[%s9628_s12 + $0x888] sm:$0xff] }
0x1305   :  { %v5687_v27 = vld [vmem:[%s9628_s12 + $0x908] sm:$0xff] }
0x1306   :  { %v5703_v60 = vld [vmem:[%s9628_s12 + $0x988] sm:$0xff] }
0x1309   :  { %5608 = vmatmul.msk.f32.gmra.mxu3 %vm125_vm1, %v8476_v29  ;;  %5612 = vmatmul.msk.f32.gmra.mxu1 %vm125_vm1, %v8476_v29 }
0x130a   :  { %5616 = vmatmul.msk.f32.gmra.mxu2 %vm125_vm1, %v8476_v29  ;;  %5620 = vmatmul.msk.f32.gmra.mxu0 %vm125_vm1, %v8476_v29 }
0x1311   :  { %5609 = vmatmul.msk.f32.gmra.mxu3 %vm125_vm1, %v8495_v16  ;;  %5613 = vmatmul.msk.f32.gmra.mxu1 %vm125_vm1, %v8495_v16 }
0x1312   :  { %5617 = vmatmul.msk.f32.gmra.mxu2 %vm125_vm1, %v8495_v16  ;;  %5621 = vmatmul.msk.f32.gmra.mxu0 %vm125_vm1, %v8495_v16 }
0x1319   :  { %5622 = vmatmul.msk.f32.vlgmr.msra.gmra.mxu3 %vm125_vm1, %v8397_v42  ;;  %5626 = vmatmul.msk.f32.vlgmr.msra.gmra.mxu1 %vm125_vm1, %v8397_v42 }
0x131a   :  { %5630 = vmatmul.msk.f32.vlgmr.msra.gmra.mxu2 %vm125_vm1, %v8397_v42  ;;  %5634 = vmatmul.msk.f32.vlgmr.msrb.gmra.mxu0 %vm125_vm1, %v8397_v42 }
0x131b   :  { %4756 = vmatpush.msra.mxu3 %v5669_v9  ;;  %4783 = vmatpush.msra.mxu1 %v5685_v45  ;;  %v5654_v9 = vld [vmem:[%s9628_s12 + $0x800] sm:$0xff] }
0x131c   :  { %4810 = vmatpush.msra.mxu2 %v5701_v48  ;;  %4837 = vmatpush.msrb.mxu0 %v5717_v3  ;;  %v5670_v45 = vld [vmem:[%s9628_s12 + $0x880] sm:$0xff] }
0x131d   :  { %4757 = vmatpush.msra.mxu3 %v5668_v33  ;;  %4784 = vmatpush.msra.mxu1 %v5684_v49  ;;  %v5686_v48 = vld [vmem:[%s9628_s12 + $0x900] sm:$0xff]  ;;  %v5749_v33 = vld [vmem:[%s9628_s12 + $0xaf8] sm:$0xff] }
0x131e   :  { %4811 = vmatpush.msra.mxu2 %v5700_v10  ;;  %4838 = vmatpush.msrb.mxu0 %v5716_v46  ;;  %v5702_v3 = vld [vmem:[%s9628_s12 + $0x980] sm:$0xff]  ;;  %v5781_v49 = vld [vmem:[%s9628_s12 + $0xbf8] sm:$0xff] }
0x131f   :  { %4758 = vmatpush.msra.mxu3 %v5667_v55  ;;  %4785 = vmatpush.msra.mxu1 %v5683_v52  ;;  %v5733_v10 = vld [vmem:[%s9628_s12 + $0xa78] sm:$0xff]  ;;  %v5748_v55 = vld [vmem:[%s9628_s12 + $0xaf0] sm:$0xff] }
0x1320   :  { %4812 = vmatpush.msra.mxu2 %v5699_v23  ;;  %4839 = vmatpush.msrb.mxu0 %v5715_v59  ;;  %v5765_v46 = vld [vmem:[%s9628_s12 + $0xb78] sm:$0xff]  ;;  %v5780_v52 = vld [vmem:[%s9628_s12 + $0xbf0] sm:$0xff] }
0x1321   :  { %5623 = vmatmul.msk.f32.gmra.mxu3 %vm125_vm1, %v8410_v54  ;;  %5627 = vmatmul.msk.f32.gmra.mxu1 %vm125_vm1, %v8410_v54  ;;  %v5732_v23 = vld [vmem:[%s9628_s12 + $0xa70] sm:$0xff] }
0x1322   :  { %5631 = vmatmul.msk.f32.gmra.mxu2 %vm125_vm1, %v8410_v54  ;;  %5635 = vmatmul.msk.f32.gmra.mxu0 %vm125_vm1, %v8410_v54  ;;  %v5764_v59 = vld [vmem:[%s9628_s12 + $0xb70] sm:$0xff] }
0x1323   :  { %4759 = vmatpush.msra.mxu3 %v5666_v24  ;;  %4786 = vmatpush.msra.mxu1 %v5682_v30  ;;  %v5747_v24 = vld [vmem:[%s9628_s12 + $0xae8] sm:$0xff] }
0x1324   :  { %4813 = vmatpush.msra.mxu2 %v5698_v35  ;;  %4840 = vmatpush.msrb.mxu0 %v5714_v25  ;;  %v5779_v30 = vld [vmem:[%s9628_s12 + $0xbe8] sm:$0xff] }
0x1325   :  { %4760 = vmatpush.msra.mxu3 %v5665_v36  ;;  %4787 = vmatpush.msra.mxu1 %v5681_v38  ;;  %v5731_v35 = vld [vmem:[%s9628_s12 + $0xa68] sm:$0xff]  ;;  %v5746_v36 = vld [vmem:[%s9628_s12 + $0xae0] sm:$0xff] }
0x1326   :  { %4814 = vmatpush.msra.mxu2 %v5697_v15  ;;  %4841 = vmatpush.msrb.mxu0 %v5713_v21  ;;  %v5763_v25 = vld [vmem:[%s9628_s12 + $0xb68] sm:$0xff]  ;;  %v5778_v38 = vld [vmem:[%s9628_s12 + $0xbe0] sm:$0xff] }
0x1327   :  { %4761 = vmatpush.msra.mxu3 %v5664_v11  ;;  %4788 = vmatpush.msra.mxu1 %v5680_v22  ;;  %v5730_v15 = vld [vmem:[%s9628_s12 + $0xa60] sm:$0xff] }
0x1328   :  { %4815 = vmatpush.msra.mxu2 %v5696_v32  ;;  %4842 = vmatpush.msrb.mxu0 %v5712_v41  ;;  %v5762_v21 = vld [vmem:[%s9628_s12 + $0xb60] sm:$0xff] }
0x1329   :  { %5624 = vmatmul.msk.f32.gmra.mxu3 %vm125_vm1, %v8476_v29  ;;  %5628 = vmatmul.msk.f32.gmra.mxu1 %vm125_vm1, %v8476_v29 }
0x132a   :  { %5632 = vmatmul.msk.f32.gmra.mxu2 %vm125_vm1, %v8476_v29  ;;  %5636 = vmatmul.msk.f32.gmra.mxu0 %vm125_vm1, %v8476_v29 }
0x132b   :  { %4762 = vmatpush.msra.mxu3 %v5663_v19  ;;  %4789 = vmatpush.msra.mxu1 %v5679_v8 }
0x132c   :  { %4816 = vmatpush.msra.mxu2 %v5695_v4  ;;  %4843 = vmatpush.msrb.mxu0 %v5711_v31  ;;  %v4012_v11 = vpop.f32.mrf.mxu1 }
0x132d   :  { %4763 = vmatpush.msra.mxu3 %v5662_v18  ;;  %4790 = vmatpush.msra.mxu1 %v5678_v7  ;;  %v4070_v41 = vpop.f32.mrf.mxu0  ;;  %v5745_v18 = vld [vmem:[%s9628_s12 + $0xad8] sm:$0xff] }
0x132e   :  { %4817 = vmatpush.msra.mxu2 %v5694_v13  ;;  %4844 = vmatpush.msrb.mxu0 %v5710_v5  ;;  %v5777_v7 = vld [vmem:[%s9628_s12 + $0xbd8] sm:$0xff] }
0x132f   :  { %4764 = vmatpush.msra.mxu3 %v5661_v53  ;;  %4791 = vmatpush.msra.mxu1 %v5677_v6  ;;  %v5729_v13 = vld [vmem:[%s9628_s12 + $0xa58] sm:$0xff]  ;;  %v5744_v53 = vld [vmem:[%s9628_s12 + $0xad0] sm:$0xff] }
0x1330   :  { %4818 = vmatpush.msra.mxu2 %v5693_v44  ;;  %4845 = vmatpush.msrb.mxu0 %v5709_v63  ;;  %v5761_v5 = vld [vmem:[%s9628_s12 + $0xb58] sm:$0xff]  ;;  %v5776_v6 = vld [vmem:[%s9628_s12 + $0xbd0] sm:$0xff] }
0x1331   :  { %5625 = vmatmul.msk.f32.gmra.mxu3 %vm125_vm1, %v8495_v16  ;;  %5629 = vmatmul.msk.f32.gmra.mxu1 %vm125_vm1, %v8495_v16 }
0x1332   :  { %5633 = vmatmul.msk.f32.gmra.mxu2 %vm125_vm1, %v8495_v16  ;;  %5637 = vmatmul.msk.f32.gmra.mxu0 %vm125_vm1, %v8495_v16  ;;  %v3983_v22 = vpop.f32.mrf.mxu3 }
0x1333   :  { %4765 = vmatpush.msra.mxu3 %v5660_v34  ;;  %4792 = vmatpush.msra.mxu1 %v5676_v28  ;;  %v4041_v8 = vpop.f32.mrf.mxu2  ;;  %v5728_v34 = vld [vmem:[%s9628_s12 + $0xa50] sm:$0xff] }
0x1334   :  { %4819 = vmatpush.msra.mxu2 %v5692_v17  ;;  %4846 = vmatpush.msrb.mxu0 %v5708_v37  ;;  %v5760_v28 = vld [vmem:[%s9628_s12 + $0xb50] sm:$0xff] }
0x1335   :  { %4766 = vmatpush.msra.mxu3 %v5659_v56  ;;  %4793 = vmatpush.msra.mxu1 %v5675_v57  ;;  %v5743_v56 = vld [vmem:[%s9628_s12 + $0xac8] sm:$0xff] }
0x1336   :  { %4820 = vmatpush.msra.mxu2 %v5691_v50  ;;  %4847 = vmatpush.msrb.mxu0 %v5707_v51  ;;  %v5775_v57 = vld [vmem:[%s9628_s12 + $0xbc8] sm:$0xff] }
0x1337   :  { %4767 = vmatpush.msra.mxu3 %v5658_v61  ;;  %4794 = vmatpush.msra.mxu1 %v5674_v47  ;;  %v5727_v50 = vld [vmem:[%s9628_s12 + $0xa48] sm:$0xff] }
0x1338   :  { %4821 = vmatpush.msra.mxu2 %v5690_v40  ;;  %4848 = vmatpush.msrb.mxu0 %v5706_v58  ;;  %v5759_v51 = vld [vmem:[%s9628_s12 + $0xb48] sm:$0xff] }
0x1339   :  { %5638 = vmatmul.msk.f32.vlgmr.msrb.gmra.mxu3 %vm125_vm1, %v8397_v42  ;;  %5642 = vmatmul.msk.f32.vlgmr.msrb.gmra.mxu1 %vm125_vm1, %v8397_v42 }
0x133a   :  { %5646 = vmatmul.msk.f32.vlgmr.msrb.gmra.mxu2 %vm125_vm1, %v8397_v42  ;;  %5650 = vmatmul.msk.f32.vlgmr.msra.gmra.mxu0 %vm125_vm1, %v8397_v42  ;;  %v5656_v42 = vld [vmem:[%s9628_s12 + $0x810] sm:$0xff] }
0x133b   :  { %4768 = vmatpush.msra.mxu3 %v5657_v26  ;;  %4795 = vmatpush.msra.mxu1 %v5673_v43  ;;  %v4015_v26 = vpop.f32.mrf.mxu1  ;;  %v3986_v43 = vpop.f32.mrf.mxu3 }
0x133c   :  { %4822 = vmatpush.msra.mxu2 %v5689_v62  ;;  %4849 = vmatpush.msrb.mxu0 %v5705_v1  ;;  %v5742_v62 = vld [vmem:[%s9628_s12 + $0xac0] sm:$0xff] }
0x133d   :  { %4769 = vmatpush.msra.mxu3 %v5656_v42  ;;  %4796 = vmatpush.msra.mxu1 %v5672_v0  ;;  %v5774_v1 = vld [vmem:[%s9628_s12 + $0xbc0] sm:$0xff]  ;;  %v4073_v42 = vpop.f32.mrf.mxu0  ;;  %v4044_v0 = vpop.f32.mrf.mxu2 }
0x133e   :  { %4823 = vmatpush.msra.mxu2 %v5688_v39  ;;  %4850 = vmatpush.msrb.mxu0 %v5704_v12  ;;  %v5726_v39 = vld [vmem:[%s9628_s12 + $0xa40] sm:$0xff] }
0x133f   :  { %4770 = vmatpush.msra.mxu3 %v5655_v14  ;;  %4797 = vmatpush.msra.mxu1 %v5671_v2  ;;  %v5758_v12 = vld [vmem:[%s9628_s12 + $0xb40] sm:$0xff]  ;;  %v5741_v14 = vld [vmem:[%s9628_s12 + $0xab8] sm:$0xff] }
0x1340   :  { %4824 = vmatpush.msra.mxu2 %v5687_v27  ;;  %4851 = vmatpush.msrb.mxu0 %v5703_v60  ;;  %v5773_v2 = vld [vmem:[%s9628_s12 + $0xbb8] sm:$0xff] }
0x1341   :  { %5639 = vmatmul.msk.f32.gmra.mxu3 %vm125_vm1, %v8410_v54  ;;  %5643 = vmatmul.msk.f32.gmra.mxu1 %vm125_vm1, %v8410_v54 }
0x1342   :  { %5647 = vmatmul.msk.f32.gmra.mxu2 %vm125_vm1, %v8410_v54  ;;  %5651 = vmatmul.msk.f32.gmra.mxu0 %vm125_vm1, %v8410_v54 }
0x1343   :  { %4771 = vmatpush.msra.mxu3 %v5654_v9  ;;  %4798 = vmatpush.msra.mxu1 %v5670_v45  ;;  %v5725_v9 = vld [vmem:[%s9628_s12 + $0xa38] sm:$0xff] }
0x1344   :  { %4825 = vmatpush.msra.mxu2 %v5686_v48  ;;  %4852 = vmatpush.msrb.mxu0 %v5702_v3  ;;  %v5757_v45 = vld [vmem:[%s9628_s12 + $0xb38] sm:$0xff] }
0x1345   :  { %4891 = vmatpush.msrb.mxu1 %v5749_v33  ;;  %4864 = vmatpush.msrb.mxu3 %v5733_v10  ;;  %v5740_v33 = vld [vmem:[%s9628_s12 + $0xab0] sm:$0xff] }
0x1346   :  { %4945 = vmatpush.msra.mxu0 %v5781_v49  ;;  %4918 = vmatpush.msrb.mxu2 %v5765_v46  ;;  %v5772_v49 = vld [vmem:[%s9628_s12 + $0xbb0] sm:$0xff] }
0x1347   :  { %4892 = vmatpush.msrb.mxu1 %v5748_v55  ;;  %4865 = vmatpush.msrb.mxu3 %v5732_v23  ;;  %v5724_v10 = vld [vmem:[%s9628_s12 + $0xa30] sm:$0xff] }
0x1348   :  { %4946 = vmatpush.msra.mxu0 %v5780_v52  ;;  %4919 = vmatpush.msrb.mxu2 %v5764_v59  ;;  %v5756_v46 = vld [vmem:[%s9628_s12 + $0xb30] sm:$0xff] }
0x1349   :  { %5640 = vmatmul.msk.f32.gmra.mxu3 %vm125_vm1, %v8476_v29  ;;  %5644 = vmatmul.msk.f32.gmra.mxu1 %vm125_vm1, %v8476_v29 }
0x134a   :  { %5648 = vmatmul.msk.f32.gmra.mxu2 %vm125_vm1, %v8476_v29  ;;  %5652 = vmatmul.msk.f32.gmra.mxu0 %vm125_vm1, %v8476_v29  ;;  %v8911_v29 = vld [vmem:[%s9627_s11 + $0x10] sm:$0xff] }
0x134b   :  { %4893 = vmatpush.msrb.mxu1 %v5747_v24  ;;  %4947 = vmatpush.msra.mxu0 %v5779_v30  ;;  %v8926_v32 = vperm.slane %v8911_v29, 1  ;;  %v8929_v19 = vperm.slane %v8911_v29, 0  ;;  %v8932_v4 = vperm.slane %v8911_v29, 3  ;;  %v8935_v31 = vperm.slane %v8911_v29, 2  ;;  %v5739_v24 = vld [vmem:[%s9628_s12 + $0xaa8] sm:$0xff] }
0x134c   :  { %4866 = vmatpush.msrb.mxu3 %v5731_v35  ;;  %4920 = vmatpush.msrb.mxu2 %v5763_v25  ;;  %v5771_v30 = vld [vmem:[%s9628_s12 + $0xba8] sm:$0xff] }
0x134d   :  { %4894 = vmatpush.msrb.mxu1 %v5746_v36  ;;  %4948 = vmatpush.msra.mxu0 %v5778_v38  ;;  %v4013_v44 = vadd.f32 %v4012_v11, %v8926_v32  ;;  %v3984_v63 = vadd.f32 %v3983_v22, %v8929_v19  ;;  %v4071_v17 = vadd.f32 %v4070_v41, %v8932_v4  ;;  %v5723_v35 = vld [vmem:[%s9628_s12 + $0xa28] sm:$0xff]  ;;  %v5738_v36 = vld [vmem:[%s9628_s12 + $0xaa0] sm:$0xff]  ;;  %v5737_v11 = vld [vmem:[%s9628_s12 + $0xa98] sm:$0xff] }
0x134e   :  { %4867 = vmatpush.msrb.mxu3 %v5730_v15  ;;  %4921 = vmatpush.msrb.mxu2 %v5762_v21  ;;  %v4042_v37 = vadd.f32 %v4041_v8, %v8935_v31  ;;  %v4016_v27 = vadd.f32 %v4015_v26, %v8926_v32  ;;  %v3987_v60 = vadd.f32 %v3986_v43, %v8929_v19  ;;  %v5755_v25 = vld [vmem:[%s9628_s12 + $0xb28] sm:$0xff]  ;;  %v5770_v38 = vld [vmem:[%s9628_s12 + $0xba0] sm:$0xff]  ;;  %v5769_v22 = vld [vmem:[%s9628_s12 + $0xb98] sm:$0xff] }
0x134f   :  { %4895 = vmatpush.msrb.mxu1 %v5745_v18  ;;  %4949 = vmatpush.msra.mxu0 %v5777_v7  ;;  %v4431_v61 = vmax.f32 %v4013_v44, 0.0  ;;  %v4430_v47 = vmax.f32 %v3984_v63, 0.0  ;;  %v4433_v40 = vmax.f32 %v4071_v17, 0.0  ;;  %v4074_v48 = vadd.f32 %v4073_v42, %v8932_v4  ;;  %v5722_v15 = vld [vmem:[%s9628_s12 + $0xa20] sm:$0xff]  ;;  %v5721_v41 = vld [vmem:[%s9628_s12 + $0xa18] sm:$0xff]  ;;  %v5736_v7 = vld [vmem:[%s9628_s12 + $0xa90] sm:$0xff] }
0x1350   :  { %4868 = vmatpush.msrb.mxu3 %v5729_v13  ;;  %4922 = vmatpush.msrb.mxu2 %v5761_v5  ;;  %v4432_v58 = vmax.f32 %v4042_v37, 0.0  ;;  %v4045_v3 = vadd.f32 %v4044_v0, %v8935_v31  ;;  %v4447_v55 = vmax.f32 %v4016_v27, 0.0  ;;  %v4446_v52 = vmax.f32 %v3987_v60, 0.0  ;;  %v5754_v21 = vld [vmem:[%s9628_s12 + $0xb20] sm:$0xff]  ;;  %v5753_v8 = vld [vmem:[%s9628_s12 + $0xb18] sm:$0xff]  ;;  %v5768_v13 = vld [vmem:[%s9628_s12 + $0xb90] sm:$0xff] }
0x1351   :  { %5641 = vmatmul.msk.f32.gmra.mxu3 %vm125_vm1, %v8495_v16  ;;  %5645 = vmatmul.msk.f32.gmra.mxu1 %vm125_vm1, %v8495_v16  ;;  %v4449_v23 = vmax.f32 %v4074_v48, 0.0  ;;  %v5752_v44 = vld [vmem:[%s9628_s12 + $0xb10] sm:$0xff]  ;;  %v5735_v17 = vld [vmem:[%s9628_s12 + $0xa88] sm:$0xff] }
0x1352   :  { %5649 = vmatmul.msk.f32.gmra.mxu2 %vm125_vm1, %v8495_v16  ;;  %5653 = vmatmul.msk.f32.gmra.mxu0 %vm125_vm1, %v8495_v16  ;;  %v4448_v59 = vmax.f32 %v4045_v3, 0.0  ;;  %v5844_v43 = vld [vmem:[%s9628_s12 + $0xdf0] sm:$0xff]  ;;  %v5829_v3 = vld [vmem:[%s9628_s12 + $0xd78] sm:$0xff] }
0x1353   :  { %4896 = vmatpush.msrb.mxu1 %v5744_v53  ;;  %4950 = vmatpush.msra.mxu0 %v5776_v6  ;;  %v5720_v6 = vld [vmem:[%s9628_s12 + $0xa10] sm:$0xff] }
0x1354   :  { %4869 = vmatpush.msrb.mxu3 %v5728_v34  ;;  %4923 = vmatpush.msrb.mxu2 %v5760_v28  ;;  %v5767_v34 = vld [vmem:[%s9628_s12 + $0xb88] sm:$0xff]  ;;  %v5812_v0 = vld [vmem:[%s9628_s12 + $0xcf0] sm:$0xff] }
0x1355   :  { %4897 = vmatpush.msrb.mxu1 %v5743_v56  ;;  %4951 = vmatpush.msra.mxu0 %v5775_v57  ;;  %v5766_v56 = vld [vmem:[%s9628_s12 + $0xb80] sm:$0xff]  ;;  %v5719_v57 = vld [vmem:[%s9628_s12 + $0xa08] sm:$0xff] }
0x1356   :  { %4870 = vmatpush.msrb.mxu3 %v5727_v50  ;;  %4924 = vmatpush.msrb.mxu2 %v5759_v51  ;;  %v5734_v50 = vld [vmem:[%s9628_s12 + $0xa80] sm:$0xff]  ;;  %v5845_v51 = vld [vmem:[%s9628_s12 + $0xdf8] sm:$0xff] }
0x1357   :  { %4898 = vmatpush.msrb.mxu1 %v5742_v62  ;;  %4952 = vmatpush.msra.mxu0 %v5774_v1  ;;  %v5718_v62 = vld [vmem:[%s9628_s12 + $0xa00] sm:$0xff] }
0x1358   :  { %4871 = vmatpush.msrb.mxu3 %v5726_v39  ;;  %4925 = vmatpush.msrb.mxu2 %v5758_v12 }
0x1359   :  { %4772 = vmatmul.f32.vlgmr.msra.gmra.mxu3 %v4430_v47  ;;  %4799 = vmatmul.f32.vlgmr.msra.gmra.mxu1 %v4431_v61  ;;  %v5813_v47 = vld [vmem:[%s9628_s12 + $0xcf8] sm:$0xff] }
0x135a   :  { %4826 = vmatmul.f32.vlgmr.msra.gmra.mxu2 %v4432_v58  ;;  %4853 = vmatmul.f32.vlgmr.msrb.gmra.mxu0 %v4433_v40  ;;  %v5751_v40 = vld [vmem:[%s9628_s12 + $0xb08] sm:$0xff] }
0x135b   :  { %4899 = vmatpush.msrb.mxu1 %v5741_v14  ;;  %4953 = vmatpush.msra.mxu0 %v5773_v2  ;;  %v5843_v2 = vld [vmem:[%s9628_s12 + $0xde8] sm:$0xff] }
0x135c   :  { %4872 = vmatpush.msrb.mxu3 %v5725_v9  ;;  %4926 = vmatpush.msrb.mxu2 %v5757_v45  ;;  %v5750_v9 = vld [vmem:[%s9628_s12 + $0xb00] sm:$0xff] }
0x135d   :  { %4900 = vmatpush.msrb.mxu1 %v5740_v33  ;;  %4954 = vmatpush.msra.mxu0 %v5772_v49  ;;  %v9128_v33 = vperm.slane %v8911_v29, 5  ;;  %v5810_v49 = vld [vmem:[%s9628_s12 + $0xce0] sm:$0xff] }
0x135e   :  { %4873 = vmatpush.msrb.mxu3 %v5724_v10  ;;  %4927 = vmatpush.msrb.mxu2 %v5756_v46  ;;  %v5842_v10 = vld [vmem:[%s9628_s12 + $0xde0] sm:$0xff] }
0x135f   :  { %4901 = vmatpush.msrb.mxu1 %v5739_v24  ;;  %4955 = vmatpush.msra.mxu0 %v5771_v30  ;;  %v5809_v30 = vld [vmem:[%s9628_s12 + $0xcd8] sm:$0xff] }
0x1360   :  { %4874 = vmatpush.msrb.mxu3 %v5723_v35  ;;  %4928 = vmatpush.msrb.mxu2 %v5755_v25  ;;  %v5841_v35 = vld [vmem:[%s9628_s12 + $0xdd8] sm:$0xff] }
0x1361   :  { %4774 = vmatmul.f32.gmra.mxu3 %v4446_v52  ;;  %4801 = vmatmul.f32.gmra.mxu1 %v4447_v55  ;;  %v9137_v55 = vperm.slane %v8911_v29, 7  ;;  %v5796_v52 = vld [vmem:[%s9628_s12 + $0xc70] sm:$0xff] }
0x1362   :  { %4828 = vmatmul.f32.gmra.mxu2 %v4448_v59  ;;  %4855 = vmatmul.f32.gmra.mxu0 %v4449_v23  ;;  %v5828_v23 = vld [vmem:[%s9628_s12 + $0xd70] sm:$0xff] }
0x1363   :  { %4902 = vmatpush.msrb.mxu1 %v5738_v36  ;;  %4956 = vmatpush.msra.mxu0 %v5770_v38 }
0x1364   :  { %4875 = vmatpush.msrb.mxu3 %v5722_v15  ;;  %4929 = vmatpush.msrb.mxu2 %v5754_v21 }
0x1365   :  { %4903 = vmatpush.msrb.mxu1 %v5737_v11  ;;  %4957 = vmatpush.msra.mxu0 %v5769_v22  ;;  %v5795_v11 = vld [vmem:[%s9628_s12 + $0xc68] sm:$0xff] }
0x1366   :  { %v4018_v18 = vpop.f32.mrf.mxu1  ;;  %4876 = vmatpush.msrb.mxu3 %v5721_v41  ;;  %4930 = vmatpush.msrb.mxu2 %v5753_v8  ;;  %v5840_v41 = vld [vmem:[%s9628_s12 + $0xdd0] sm:$0xff] }
0x1367   :  { %v4019_v5 = vadd.f32 %v4018_v18, %v8926_v32  ;;  %v4076_v53 = vpop.f32.mrf.mxu0  ;;  %4904 = vmatpush.msrb.mxu1 %v5736_v7  ;;  %4958 = vmatpush.msra.mxu0 %v5768_v13  ;;  %v9165_v18 = vperm.slane %v8911_v29, 4  ;;  %v5808_v7 = vld [vmem:[%s9628_s12 + $0xcd0] sm:$0xff] }
0x1368   :  { %v4077_v63 = vadd.f32 %v4076_v53, %v8932_v4  ;;  %4877 = vmatpush.msrb.mxu3 %v5720_v6  ;;  %4931 = vmatpush.msrb.mxu2 %v5752_v44  ;;  %v5794_v53 = vld [vmem:[%s9628_s12 + $0xc60] sm:$0xff]  ;;  %v5807_v44 = vld [vmem:[%s9628_s12 + $0xcc8] sm:$0xff] }
0x1369   :  { %v4463_v28 = vmax.f32 %v4019_v5, 0.0  ;;  %4959 = vmatpush.msra.mxu0 %v5767_v34  ;;  %4905 = vmatpush.msrb.mxu1 %v5735_v17  ;;  %v9171_v5 = vperm.slane %v8911_v29, 6  ;;  %v5826_v6 = vld [vmem:[%s9628_s12 + $0xd60] sm:$0xff]  ;;  %v5839_v29 = vld [vmem:[%s9628_s12 + $0xdc8] sm:$0xff]  ;;  %v5793_v34 = vld [vmem:[%s9628_s12 + $0xc58] sm:$0xff] }
0x136a   :  { %v4465_v37 = vmax.f32 %v4077_v63, 0.0  ;;  %4878 = vmatpush.msrb.mxu3 %v5719_v57  ;;  %4932 = vmatpush.msrb.mxu2 %v5751_v40  ;;  %v5838_v57 = vld [vmem:[%s9628_s12 + $0xdc0] sm:$0xff] }
0x136b   :  { %4804 = vmatmul.f32.gmra.mxu1 %v4463_v28  ;;  %4960 = vmatpush.msra.mxu0 %v5766_v56  ;;  %v5825_v28 = vld [vmem:[%s9628_s12 + $0xd58] sm:$0xff]  ;;  %v5806_v56 = vld [vmem:[%s9628_s12 + $0xcc0] sm:$0xff] }
0x136c   :  { %4858 = vmatmul.f32.gmra.mxu0 %v4465_v37  ;;  %v3989_v61 = vpop.f32.mrf.mxu3  ;;  %4906 = vmatpush.msrb.mxu1 %v5734_v50 }
0x136d   :  { %v3990_v58 = vadd.f32 %v3989_v61, %v8929_v19  ;;  %v4047_v26 = vpop.f32.mrf.mxu2  ;;  %5053 = vmatpush.msrb.mxu0 %v5845_v51  ;;  %4879 = vmatpush.msrb.mxu3 %v5718_v62  ;;  %v5824_v61 = vld [vmem:[%s9628_s12 + $0xd50] sm:$0xff] }
0x136e   :  { %v4048_v1 = vadd.f32 %v4047_v26, %v8935_v31  ;;  %v4021_v42 = vpop.f32.mrf.mxu1  ;;  %4999 = vmatpush.msra.mxu1 %v5813_v47  ;;  %4933 = vmatpush.msrb.mxu2 %v5750_v9  ;;  %v5792_v26 = vld [vmem:[%s9628_s12 + $0xc50] sm:$0xff]  ;;  %v5790_v9 = vld [vmem:[%s9628_s12 + $0xc40] sm:$0xff] }
0x136f   :  { %v4462_v39 = vmax.f32 %v3990_v58, 0.0  ;;  %v4022_v12 = vadd.f32 %v4021_v42, %v8926_v32  ;;  %v4079_v14 = vpop.f32.mrf.mxu0  ;;  %5054 = vmatpush.msrb.mxu0 %v5844_v43  ;;  %v5811_v32 = vld [vmem:[%s9628_s12 + $0xce8] sm:$0xff] }
0x1370   :  { %v4464_v27 = vmax.f32 %v4048_v1, 0.0  ;;  %v4080_v60 = vadd.f32 %v4079_v14, %v8932_v4  ;;  %5000 = vmatpush.msra.mxu1 %v5812_v0  ;;  %v5797_v4 = vld [vmem:[%s9628_s12 + $0xc78] sm:$0xff]  ;;  %5026 = vmatpush.msra.mxu2 %v5829_v3  ;;  %v5823_v14 = vld [vmem:[%s9628_s12 + $0xd48] sm:$0xff] }
0x1371   :  { %v4479_v45 = vmax.f32 %v4022_v12, 0.0  ;;  %4777 = vmatmul.f32.gmra.mxu3 %v4462_v39  ;;  %5055 = vmatpush.msrb.mxu0 %v5843_v2  ;;  %v5837_v1 = vld [vmem:[%s9628_s12 + $0xdb8] sm:$0xff]  ;;  %v5791_v12 = vld [vmem:[%s9628_s12 + $0xc48] sm:$0xff]  ;;  %v5804_v2 = vld [vmem:[%s9628_s12 + $0xcb0] sm:$0xff] }
0x1372   :  { %v4481_v48 = vmax.f32 %v4080_v60, 0.0  ;;  %4831 = vmatmul.f32.gmra.mxu2 %v4464_v27  ;;  %5001 = vmatpush.msra.mxu1 %v5811_v32  ;;  %v5805_v0 = vld [vmem:[%s9628_s12 + $0xcb8] sm:$0xff]  ;;  %v5836_v27 = vld [vmem:[%s9628_s12 + $0xdb0] sm:$0xff]  ;;  %v5835_v3 = vld [vmem:[%s9628_s12 + $0xda8] sm:$0xff] }
0x1373   :  { %4806 = vmatmul.f32.gmra.mxu1 %v4479_v45  ;;  %4972 = vmatpush.msra.mxu3 %v5797_v4  ;;  %v5822_v45 = vld [vmem:[%s9628_s12 + $0xd40] sm:$0xff]  ;;  %v5803_v4 = vld [vmem:[%s9628_s12 + $0xca8] sm:$0xff] }
0x1374   :  { %4860 = vmatmul.f32.gmra.mxu0 %v4481_v48  ;;  %v3992_v46 = vpop.f32.mrf.mxu3  ;;  %5002 = vmatpush.msra.mxu1 %v5810_v49 }
0x1375   :  { %v3993_v59 = vadd.f32 %v3992_v46, %v8929_v19  ;;  %v4050_v24 = vpop.f32.mrf.mxu2  ;;  %5056 = vmatpush.msrb.mxu0 %v5842_v10  ;;  %v5827_v19 = vld [vmem:[%s9628_s12 + $0xd68] sm:$0xff]  ;;  %4973 = vmatpush.msra.mxu3 %v5796_v52  ;;  %v5821_v46 = vld [vmem:[%s9628_s12 + $0xd38] sm:$0xff] }
0x1376   :  { %v4051_v25 = vadd.f32 %v4050_v24, %v8935_v31  ;;  %v4128_v36 = vpop.f32.mrf.mxu1  ;;  %5027 = vmatpush.msra.mxu2 %v5828_v23  ;;  %5003 = vmatpush.msra.mxu1 %v5809_v30  ;;  %v5789_v24 = vld [vmem:[%s9628_s12 + $0xc38] sm:$0xff] }
0x1377   :  { %v4478_v38 = vmax.f32 %v3993_v59, 0.0  ;;  %v4129_v15 = vadd.f32 %v4128_v36, %v9128_v33  ;;  %v4186_v21 = vpop.f32.mrf.mxu0  ;;  %5057 = vmatpush.msrb.mxu0 %v5841_v35  ;;  %4974 = vmatpush.msra.mxu3 %v5795_v11  ;;  %v5801_v11 = vld [vmem:[%s9628_s12 + $0xc98] sm:$0xff] }
0x1378   :  { %v4480_v22 = vmax.f32 %v4051_v25, 0.0  ;;  %v4187_v31 = vadd.f32 %v4186_v21, %v9137_v55  ;;  %5028 = vmatpush.msra.mxu2 %v5827_v19  ;;  %5004 = vmatpush.msra.mxu1 %v5808_v7  ;;  %v5834_v25 = vld [vmem:[%s9628_s12 + $0xda0] sm:$0xff]  ;;  %v5820_v21 = vld [vmem:[%s9628_s12 + $0xd30] sm:$0xff] }
0x1379   :  { %v4435_v8 = vmax.f32 %v4129_v15, 0.0  ;;  %4779 = vmatmul.f32.gmra.mxu3 %v4478_v38  ;;  %5058 = vmatpush.msrb.mxu0 %v5840_v41  ;;  %v5802_v19 = vld [vmem:[%s9628_s12 + $0xca0] sm:$0xff]  ;;  %v5788_v15 = vld [vmem:[%s9628_s12 + $0xc30] sm:$0xff]  ;;  %v5787_v41 = vld [vmem:[%s9628_s12 + $0xc28] sm:$0xff] }
0x137a   :  { %v4437_v13 = vmax.f32 %v4187_v31, 0.0  ;;  %4833 = vmatmul.f32.gmra.mxu2 %v4480_v22  ;;  %4975 = vmatpush.msra.mxu3 %v5794_v53  ;;  %v5833_v22 = vld [vmem:[%s9628_s12 + $0xd98] sm:$0xff]  ;;  %v5800_v53 = vld [vmem:[%s9628_s12 + $0xc90] sm:$0xff] }
0x137b   :  { %4907 = vmatmul.f32.vlgmr.msrb.gmra.mxu1 %v4435_v8  ;;  %5029 = vmatpush.msra.mxu2 %v5826_v6  ;;  %v5819_v8 = vld [vmem:[%s9628_s12 + $0xd28] sm:$0xff]  ;;  %v5832_v6 = vld [vmem:[%s9628_s12 + $0xd90] sm:$0xff] }
0x137c   :  { %4961 = vmatmul.f32.vlgmr.msra.gmra.mxu0 %v4437_v13  ;;  %v4099_v63 = vpop.f32.mrf.mxu3  ;;  %5005 = vmatpush.msra.mxu1 %v5807_v44 }
0x137d   :  { %v4100_v17 = vadd.f32 %v4099_v63, %v9165_v18  ;;  %v4157_v37 = vpop.f32.mrf.mxu2  ;;  %5059 = vmatpush.msrb.mxu0 %v5839_v29  ;;  %4976 = vmatpush.msra.mxu3 %v5793_v34  ;;  %v5818_v63 = vld [vmem:[%s9628_s12 + $0xd20] sm:$0xff] }
0x137e   :  { %v4158_v50 = vadd.f32 %v4157_v37, %v9171_v5  ;;  %v4131_v51 = vpop.f32.mrf.mxu1  ;;  %5030 = vmatpush.msra.mxu2 %v5825_v28  ;;  %5006 = vmatpush.msra.mxu1 %v5806_v56  ;;  %v5786_v37 = vld [vmem:[%s9628_s12 + $0xc20] sm:$0xff] }
0x137f   :  { %v4434_v47 = vmax.f32 %v4100_v17, 0.0  ;;  %v4132_v40 = vadd.f32 %v4131_v51, %v9128_v33  ;;  %v4189_v58 = vpop.f32.mrf.mxu0  ;;  %5060 = vmatpush.msrb.mxu0 %v5838_v57  ;;  %4977 = vmatpush.msra.mxu3 %v5792_v26  ;;  %v5798_v26 = vld [vmem:[%s9628_s12 + $0xc80] sm:$0xff] }
0x1380   :  { %v4436_v43 = vmax.f32 %v4158_v50, 0.0  ;;  %v4190_v62 = vadd.f32 %v4189_v58, %v9137_v55  ;;  %5031 = vmatpush.msra.mxu2 %v5824_v61  ;;  %5007 = vmatpush.msra.mxu1 %v5805_v0  ;;  %v9290_v50 = vld [vmem:[%s9627_s11 + $0x18] sm:$0xff]  ;;  %v5799_v61 = vld [vmem:[%s9628_s12 + $0xc88] sm:$0xff]  ;;  %v5816_v0 = vld [vmem:[%s9628_s12 + $0xd10] sm:$0xff] }
0x1381   :  { %v4451_v42 = vmax.f32 %v4132_v40, 0.0  ;;  %4880 = vmatmul.f32.vlgmr.msrb.gmra.mxu3 %v4434_v47  ;;  %5061 = vmatpush.msrb.mxu0 %v5837_v1  ;;  %v5817_v40 = vld [vmem:[%s9628_s12 + $0xd18] sm:$0xff]  ;;  %v9305_v58 = vperm.slane %v9290_v50, 1  ;;  %v9314_v1 = vperm.slane %v9290_v50, 3 }
0x1382   :  { %v4453_v39 = vmax.f32 %v4190_v62, 0.0  ;;  %4934 = vmatmul.f32.vlgmr.msrb.gmra.mxu2 %v4436_v43  ;;  %4978 = vmatpush.msra.mxu3 %v5791_v12  ;;  %v5830_v43 = vld [vmem:[%s9628_s12 + $0xd80] sm:$0xff] }
0x1383   :  { %4909 = vmatmul.f32.gmra.mxu1 %v4451_v42  ;;  %5032 = vmatpush.msra.mxu2 %v5823_v14  ;;  %v5784_v42 = vld [vmem:[%s9628_s12 + $0xc10] sm:$0xff]  ;;  %v5877_v14 = vld [vmem:[%s9628_s12 + $0xef8] sm:$0xff] }
0x1384   :  { %4963 = vmatmul.f32.gmra.mxu0 %v4453_v39  ;;  %v4102_v60 = vpop.f32.mrf.mxu3  ;;  %5008 = vmatpush.msra.mxu1 %v5804_v2  ;;  %v5909_v2 = vld [vmem:[%s9628_s12 + $0xff8] sm:$0xff] }
0x1385   :  { %v4103_v32 = vadd.f32 %v4102_v60, %v9165_v18  ;;  %v4160_v48 = vpop.f32.mrf.mxu2  ;;  %5062 = vmatpush.msrb.mxu0 %v5836_v27  ;;  %4979 = vmatpush.msra.mxu3 %v5790_v9 }
0x1386   :  { %v4161_v49 = vadd.f32 %v4160_v48, %v9171_v5  ;;  %v4134_v10 = vpop.f32.mrf.mxu1  ;;  %5033 = vmatpush.msra.mxu2 %v5822_v45  ;;  %5009 = vmatpush.msra.mxu1 %v5803_v4  ;;  %v5783_v48 = vld [vmem:[%s9628_s12 + $0xc08] sm:$0xff] }
0x1387   :  { %v4450_v52 = vmax.f32 %v4103_v32, 0.0  ;;  %v4135_v23 = vadd.f32 %v4134_v10, %v9128_v33  ;;  %v4192_v59 = vpop.f32.mrf.mxu0  ;;  %5063 = vmatpush.msrb.mxu0 %v5835_v3  ;;  %4980 = vmatpush.msra.mxu3 %v5789_v24  ;;  %v5908_v3 = vld [vmem:[%s9628_s12 + $0xff0] sm:$0xff]  ;;  %v9342_v10 = vperm.slane %v9290_v50, 0  ;;  %v5814_v24 = vld [vmem:[%s9628_s12 + $0xd00] sm:$0xff] }
0x1388   :  { %v4452_v30 = vmax.f32 %v4161_v49, 0.0  ;;  %v4193_v35 = vadd.f32 %v4192_v59, %v9137_v55  ;;  %5034 = vmatpush.msra.mxu2 %v5821_v46  ;;  %5010 = vmatpush.msra.mxu1 %v5802_v19  ;;  %v5876_v46 = vld [vmem:[%s9628_s12 + $0xef0] sm:$0xff]  ;;  %v5782_v59 = vld [vmem:[%s9628_s12 + $0xc00] sm:$0xff]  ;;  %v5893_v19 = vld [vmem:[%s9628_s12 + $0xf78] sm:$0xff] }
0x1389   :  { %v4467_v36 = vmax.f32 %v4135_v23, 0.0  ;;  %4882 = vmatmul.f32.gmra.mxu3 %v4450_v52  ;;  %5064 = vmatpush.msrb.mxu0 %v5834_v25  ;;  %v9348_v23 = vperm.slane %v9290_v50, 2 }
0x138a   :  { %v4469_v38 = vmax.f32 %v4193_v35, 0.0  ;;  %4936 = vmatmul.f32.gmra.mxu2 %v4452_v30  ;;  %4981 = vmatpush.msra.mxu3 %v5788_v15  ;;  %v5875_v30 = vld [vmem:[%s9628_s12 + $0xee8] sm:$0xff] }
0x138b   :  { %4912 = vmatmul.f32.gmra.mxu1 %v4467_v36  ;;  %5035 = vmatpush.msra.mxu2 %v5820_v21  ;;  %v5907_v35 = vld [vmem:[%s9628_s12 + $0xfe8] sm:$0xff]  ;;  %v5861_v36 = vld [vmem:[%s9628_s12 + $0xe78] sm:$0xff]  ;;  %v5874_v21 = vld [vmem:[%s9628_s12 + $0xee0] sm:$0xff] }
0x138c   :  { %4966 = vmatmul.f32.gmra.mxu0 %v4469_v38  ;;  %v4105_v31 = vpop.f32.mrf.mxu3  ;;  %5011 = vmatpush.msra.mxu1 %v5801_v11  ;;  %v5906_v11 = vld [vmem:[%s9628_s12 + $0xfe0] sm:$0xff] }
0x138d   :  { %v4106_v7 = vadd.f32 %v4105_v31, %v9165_v18  ;;  %v4163_v13 = vpop.f32.mrf.mxu2  ;;  %5065 = vmatpush.msrb.mxu0 %v5833_v22  ;;  %4982 = vmatpush.msra.mxu3 %v5787_v41  ;;  %v5892_v41 = vld [vmem:[%s9628_s12 + $0xf70] sm:$0xff] }
0x138e   :  { %v4164_v44 = vadd.f32 %v4163_v13, %v9171_v5  ;;  %v4137_v29 = vpop.f32.mrf.mxu1  ;;  %5036 = vmatpush.msra.mxu2 %v5819_v8  ;;  %5012 = vmatpush.msra.mxu1 %v5800_v53  ;;  %v5860_v53 = vld [vmem:[%s9628_s12 + $0xe70] sm:$0xff] }
0x138f   :  { %v4466_v34 = vmax.f32 %v4106_v7, 0.0  ;;  %v4138_v28 = vadd.f32 %v4137_v29, %v9128_v33  ;;  %v4195_v17 = vpop.f32.mrf.mxu0  ;;  %5066 = vmatpush.msrb.mxu0 %v5832_v6  ;;  %v5831_v33 = vld [vmem:[%s9628_s12 + $0xd88] sm:$0xff]  ;;  %4983 = vmatpush.msra.mxu3 %v5786_v37  ;;  %v5905_v29 = vld [vmem:[%s9628_s12 + $0xfd8] sm:$0xff] }
0x1390   :  { %v4468_v56 = vmax.f32 %v4164_v44, 0.0  ;;  %v4196_v57 = vadd.f32 %v4195_v17, %v9137_v55  ;;  %5037 = vmatpush.msra.mxu2 %v5818_v63  ;;  %v5785_v55 = vld [vmem:[%s9628_s12 + $0xc18] sm:$0xff]  ;;  %5013 = vmatpush.msra.mxu1 %v5799_v61  ;;  %v5859_v17 = vld [vmem:[%s9628_s12 + $0xe68] sm:$0xff]  ;;  %v5890_v61 = vld [vmem:[%s9628_s12 + $0xf60] sm:$0xff] }
0x1391   :  { %v4483_v51 = vmax.f32 %v4138_v28, 0.0  ;;  %4885 = vmatmul.f32.gmra.mxu3 %v4466_v34  ;;  %5067 = vmatpush.msrb.mxu0 %v5831_v33  ;;  %v5873_v34 = vld [vmem:[%s9628_s12 + $0xed8] sm:$0xff]  ;;  %v5891_v37 = vld [vmem:[%s9628_s12 + $0xf68] sm:$0xff] }
0x1392   :  { %v4485_v47 = vmax.f32 %v4196_v57, 0.0  ;;  %4939 = vmatmul.f32.gmra.mxu2 %v4468_v56  ;;  %4984 = vmatpush.msra.mxu3 %v5785_v55  ;;  %v5872_v56 = vld [vmem:[%s9628_s12 + $0xed0] sm:$0xff] }
0x1393   :  { %4914 = vmatmul.f32.gmra.mxu1 %v4483_v51  ;;  %5038 = vmatpush.msra.mxu2 %v5817_v40  ;;  %v5904_v57 = vld [vmem:[%s9628_s12 + $0xfd0] sm:$0xff]  ;;  %v5858_v51 = vld [vmem:[%s9628_s12 + $0xe60] sm:$0xff]  ;;  %v5871_v40 = vld [vmem:[%s9628_s12 + $0xec8] sm:$0xff] }
0x1394   :  { %4968 = vmatmul.f32.gmra.mxu0 %v4485_v47  ;;  %v4108_v62 = vpop.f32.mrf.mxu3  ;;  %5014 = vmatpush.msra.mxu1 %v5798_v26  ;;  %v5903_v26 = vld [vmem:[%s9628_s12 + $0xfc8] sm:$0xff] }
0x1395   :  { %v4109_v39 = vadd.f32 %v4108_v62, %v9165_v18  ;;  %v4166_v12 = vpop.f32.mrf.mxu2  ;;  %5068 = vmatpush.msrb.mxu0 %v5830_v43  ;;  %v5815_v18 = vld [vmem:[%s9628_s12 + $0xd08] sm:$0xff]  ;;  %4985 = vmatpush.msra.mxu3 %v5784_v42  ;;  %v5889_v42 = vld [vmem:[%s9628_s12 + $0xf58] sm:$0xff] }
0x1396   :  { %v4167_v27 = vadd.f32 %v4166_v12, %v9171_v5  ;;  %v4244_v60 = vpop.f32.mrf.mxu1  ;;  %5039 = vmatpush.msra.mxu2 %v5816_v0  ;;  %5107 = vmatpush.msrb.mxu1 %v5877_v14  ;;  %v5857_v14 = vld [vmem:[%s9628_s12 + $0xe58] sm:$0xff] }
0x1397   :  { %v4482_v9 = vmax.f32 %v4109_v39, 0.0  ;;  %v4245_v45 = vadd.f32 %v4244_v60, %v9305_v58  ;;  %v4302_v32 = vpop.f32.mrf.mxu0  ;;  %5161 = vmatpush.msra.mxu0 %v5909_v2  ;;  %4986 = vmatpush.msra.mxu3 %v5783_v48  ;;  %v5870_v60 = vld [vmem:[%s9628_s12 + $0xec0] sm:$0xff]  ;;  %v5869_v48 = vld [vmem:[%s9628_s12 + $0xeb8] sm:$0xff] }
0x1398   :  { %v4484_v4 = vmax.f32 %v4167_v27, 0.0  ;;  %v4303_v5 = vadd.f32 %v4302_v32, %v9314_v1  ;;  %5040 = vmatpush.msra.mxu2 %v5815_v18  ;;  %5108 = vmatpush.msrb.mxu1 %v5876_v46  ;;  %v5902_v18 = vld [vmem:[%s9628_s12 + $0xfc0] sm:$0xff]  ;;  %v5856_v32 = vld [vmem:[%s9628_s12 + $0xe50] sm:$0xff] }
0x1399   :  { %v4439_v49 = vmax.f32 %v4245_v45, 0.0  ;;  %4887 = vmatmul.f32.gmra.mxu3 %v4482_v9  ;;  %5162 = vmatpush.msra.mxu0 %v5908_v3  ;;  %v5868_v46 = vld [vmem:[%s9628_s12 + $0xeb0] sm:$0xff] }
0x139a   :  { %v4441_v52 = vmax.f32 %v4303_v5, 0.0  ;;  %4941 = vmatmul.f32.gmra.mxu2 %v4484_v4  ;;  %4987 = vmatpush.msra.mxu3 %v5782_v59  ;;  %v5888_v4 = vld [vmem:[%s9628_s12 + $0xf50] sm:$0xff]  ;;  %v5901_v5 = vld [vmem:[%s9628_s12 + $0xfb8] sm:$0xff] }
0x139b   :  { %5015 = vmatmul.f32.vlgmr.msra.gmra.mxu1 %v4439_v49  ;;  %5041 = vmatpush.msra.mxu2 %v5814_v24  ;;  %v5855_v49 = vld [vmem:[%s9628_s12 + $0xe48] sm:$0xff] }
0x139c   :  { %5069 = vmatmul.f32.vlgmr.msrb.gmra.mxu0 %v4441_v52  ;;  %v4215_v25 = vpop.f32.mrf.mxu3  ;;  %5109 = vmatpush.msrb.mxu1 %v5875_v30  ;;  %v5887_v24 = vld [vmem:[%s9628_s12 + $0xf48] sm:$0xff]  ;;  %v5900_v30 = vld [vmem:[%s9628_s12 + $0xfb0] sm:$0xff] }
0x139d   :  { %v4216_v38 = vadd.f32 %v4215_v25, %v9342_v10  ;;  %v4273_v15 = vpop.f32.mrf.mxu2  ;;  %5163 = vmatpush.msra.mxu0 %v5907_v35  ;;  %5080 = vmatpush.msrb.mxu3 %v5861_v36  ;;  %v5854_v36 = vld [vmem:[%s9628_s12 + $0xe40] sm:$0xff] }
0x139e   :  { %v4274_v22 = vadd.f32 %v4273_v15, %v9348_v23  ;;  %v4247_v31 = vpop.f32.mrf.mxu1  ;;  %5134 = vmatpush.msrb.mxu2 %v5893_v19  ;;  %5110 = vmatpush.msrb.mxu1 %v5874_v21  ;;  %v5867_v19 = vld [vmem:[%s9628_s12 + $0xea8] sm:$0xff] }
0x139f   :  { %v4438_v8 = vmax.f32 %v4216_v38, 0.0  ;;  %v4248_v7 = vadd.f32 %v4247_v31, %v9305_v58  ;;  %v4305_v13 = vpop.f32.mrf.mxu0  ;;  %5164 = vmatpush.msra.mxu0 %v5906_v11  ;;  %5081 = vmatpush.msrb.mxu3 %v5860_v53  ;;  %v5886_v11 = vld [vmem:[%s9628_s12 + $0xf40] sm:$0xff] }
0x13a0   :  { %v4440_v6 = vmax.f32 %v4274_v22, 0.0  ;;  %v4306_v44 = vadd.f32 %v4305_v13, %v9314_v1  ;;  %5135 = vmatpush.msrb.mxu2 %v5892_v41  ;;  %5111 = vmatpush.msrb.mxu1 %v5873_v34  ;;  %v5899_v22 = vld [vmem:[%s9628_s12 + $0xfa8] sm:$0xff]  ;;  %v5898_v53 = vld [vmem:[%s9628_s12 + $0xfa0] sm:$0xff]  ;;  %v9492_v34 = vperm.slane %v9290_v50, 7 }
0x13a1   :  { %v4455_v63 = vmax.f32 %v4248_v7, 0.0  ;;  %4988 = vmatmul.f32.vlgmr.msra.gmra.mxu3 %v4438_v8  ;;  %5165 = vmatpush.msra.mxu0 %v5905_v29  ;;  %v5866_v8 = vld [vmem:[%s9628_s12 + $0xea0] sm:$0xff]  ;;  %v5865_v29 = vld [vmem:[%s9628_s12 + $0xe98] sm:$0xff] }
0x13a2   :  { %v4457_v28 = vmax.f32 %v4306_v44, 0.0  ;;  %5042 = vmatmul.f32.vlgmr.msra.gmra.mxu2 %v4440_v6  ;;  %5082 = vmatpush.msrb.mxu3 %v5859_v17  ;;  %v5852_v44 = vld [vmem:[%s9628_s12 + $0xe30] sm:$0xff] }
0x13a3   :  { %5017 = vmatmul.f32.gmra.mxu1 %v4455_v63  ;;  %5136 = vmatpush.msrb.mxu2 %v5891_v37  ;;  %v9489_v63 = vperm.slane %v9290_v50, 5  ;;  %v5884_v37 = vld [vmem:[%s9628_s12 + $0xf30] sm:$0xff] }
0x13a4   :  { %5071 = vmatmul.f32.gmra.mxu0 %v4457_v28  ;;  %v4218_v33 = vpop.f32.mrf.mxu3  ;;  %5112 = vmatpush.msrb.mxu1 %v5872_v56  ;;  %v5897_v56 = vld [vmem:[%s9628_s12 + $0xf98] sm:$0xff] }
0x13a5   :  { %v4219_v47 = vadd.f32 %v4218_v33, %v9342_v10  ;;  %v4276_v55 = vpop.f32.mrf.mxu2  ;;  %5166 = vmatpush.msra.mxu0 %v5904_v57  ;;  %5083 = vmatpush.msrb.mxu3 %v5858_v51  ;;  %v5851_v51 = vld [vmem:[%s9628_s12 + $0xe28] sm:$0xff] }
0x13a6   :  { %v4277_v43 = vadd.f32 %v4276_v55, %v9348_v23  ;;  %v4250_v62 = vpop.f32.mrf.mxu1  ;;  %5137 = vmatpush.msrb.mxu2 %v5890_v61  ;;  %5113 = vmatpush.msrb.mxu1 %v5871_v40 }
0x13a7   :  { %v4454_v0 = vmax.f32 %v4219_v47, 0.0  ;;  %v4251_v39 = vadd.f32 %v4250_v62, %v9305_v58  ;;  %v4308_v12 = vpop.f32.mrf.mxu0  ;;  %5167 = vmatpush.msra.mxu0 %v5903_v26  ;;  %5084 = vmatpush.msrb.mxu3 %v5857_v14  ;;  %v5883_v47 = vld [vmem:[%s9628_s12 + $0xf28] sm:$0xff]  ;;  %v5850_v26 = vld [vmem:[%s9628_s12 + $0xe20] sm:$0xff]  ;;  %v9532_v14 = vperm.slane %v9290_v50, 6 }
0x13a8   :  { %v4456_v2 = vmax.f32 %v4277_v43, 0.0  ;;  %v4309_v27 = vadd.f32 %v4308_v12, %v9314_v1  ;;  %5138 = vmatpush.msrb.mxu2 %v5889_v42  ;;  %5114 = vmatpush.msrb.mxu1 %v5870_v60  ;;  %v5863_v43 = vld [vmem:[%s9628_s12 + $0xe88] sm:$0xff]  ;;  %v9529_v12 = vperm.slane %v9290_v50, 4  ;;  %v5894_v50 = vld [vmem:[%s9628_s12 + $0xf80] sm:$0xff] }
0x13a9   :  { %v4471_v9 = vmax.f32 %v4251_v39, 0.0  ;;  %4990 = vmatmul.f32.gmra.mxu3 %v4454_v0  ;;  %5168 = vmatpush.msra.mxu0 %v5902_v18  ;;  %v5882_v0 = vld [vmem:[%s9628_s12 + $0xf20] sm:$0xff]  ;;  %v5895_v39 = vld [vmem:[%s9628_s12 + $0xf88] sm:$0xff] }
0x13aa   :  { %v4473_v45 = vmax.f32 %v4309_v27, 0.0  ;;  %5044 = vmatmul.f32.gmra.mxu2 %v4456_v2  ;;  %5085 = vmatpush.msrb.mxu3 %v5856_v32  ;;  %v5849_v2 = vld [vmem:[%s9628_s12 + $0xe18] sm:$0xff]  ;;  %v5862_v27 = vld [vmem:[%s9628_s12 + $0xe80] sm:$0xff] }
0x13ab   :  { %5020 = vmatmul.f32.gmra.mxu1 %v4471_v9  ;;  %5139 = vmatpush.msrb.mxu2 %v5888_v4  ;;  %v5881_v9 = vld [vmem:[%s9628_s12 + $0xf18] sm:$0xff] }
0x13ac   :  { %5074 = vmatmul.f32.gmra.mxu0 %v4473_v45  ;;  %v4221_v3 = vpop.f32.mrf.mxu3  ;;  %5115 = vmatpush.msrb.mxu1 %v5869_v48 }
0x13ad   :  { %v4222_v52 = vadd.f32 %v4221_v3, %v9342_v10  ;;  %v4279_v59 = vpop.f32.mrf.mxu2  ;;  %5169 = vmatpush.msra.mxu0 %v5901_v5  ;;  %5086 = vmatpush.msrb.mxu3 %v5855_v49  ;;  %v5848_v5 = vld [vmem:[%s9628_s12 + $0xe10] sm:$0xff] }
0x13ae   :  { %v4280_v35 = vadd.f32 %v4279_v59, %v9348_v23  ;;  %v4253_v25 = vpop.f32.mrf.mxu1  ;;  %5116 = vmatpush.msrb.mxu1 %v5868_v46  ;;  %5140 = vmatpush.msrb.mxu2 %v5887_v24  ;;  %v5880_v3 = vld [vmem:[%s9628_s12 + $0xf10] sm:$0xff]  ;;  %v5847_v24 = vld [vmem:[%s9628_s12 + $0xe08] sm:$0xff] }
0x13af   :  { %v4470_v38 = vmax.f32 %v4222_v52, 0.0  ;;  %v4254_v15 = vadd.f32 %v4253_v25, %v9305_v58  ;;  %v4311_v21 = vpop.f32.mrf.mxu0  ;;  %5170 = vmatpush.msra.mxu0 %v5900_v30  ;;  %5087 = vmatpush.msrb.mxu3 %v5854_v36  ;;  %v5853_v58 = vld [vmem:[%s9628_s12 + $0xe38] sm:$0xff]  ;;  %v5879_v30 = vld [vmem:[%s9628_s12 + $0xf08] sm:$0xff]  ;;  %v5846_v36 = vld [vmem:[%s9628_s12 + $0xe00] sm:$0xff] }
0x13b0   :  { %v4472_v31 = vmax.f32 %v4280_v35, 0.0  ;;  %v4312_v41 = vadd.f32 %v4311_v21, %v9314_v1  ;;  %5117 = vmatpush.msrb.mxu1 %v5867_v19  ;;  %5141 = vmatpush.msrb.mxu2 %v5886_v11  ;;  %v5885_v1 = vld [vmem:[%s9628_s12 + $0xf38] sm:$0xff]  ;;  %v5878_v19 = vld [vmem:[%s9628_s12 + $0xf00] sm:$0xff] }
0x13b1   :  { %v4487_v7 = vmax.f32 %v4254_v15, 0.0  ;;  %5171 = vmatpush.msra.mxu0 %v5899_v22  ;;  %4993 = vmatmul.f32.gmra.mxu3 %v4470_v38 }
0x13b2   :  { %v4489_v13 = vmax.f32 %v4312_v41, 0.0  ;;  %5047 = vmatmul.f32.gmra.mxu2 %v4472_v31  ;;  %5088 = vmatpush.msrb.mxu3 %v5853_v58 }
0x13b3   :  { %5118 = vmatpush.msrb.mxu1 %v5866_v8  ;;  %5142 = vmatpush.msrb.mxu2 %v5885_v1 }
0x13b4   :  { %v4224_v6 = vpop.f32.mrf.mxu3  ;;  %5172 = vmatpush.msra.mxu0 %v5898_v53  ;;  %5022 = vmatmul.f32.gmra.mxu1 %v4487_v7 }
0x13b5   :  { %v4225_v28 = vadd.f32 %v4224_v6, %v9342_v10  ;;  %v4282_v17 = vpop.f32.mrf.mxu2  ;;  %5076 = vmatmul.f32.gmra.mxu0 %v4489_v13  ;;  %v5864_v10 = vld [vmem:[%s9628_s12 + $0xe90] sm:$0xff]  ;;  %5089 = vmatpush.msrb.mxu3 %v5852_v44 }
0x13b6   :  { %v4283_v57 = vadd.f32 %v4282_v17, %v9348_v23  ;;  %v4360_v33 = vpop.f32.mrf.mxu1  ;;  %5119 = vmatpush.msrb.mxu1 %v5865_v29  ;;  %v5896_v23 = vld [vmem:[%s9628_s12 + $0xf90] sm:$0xff]  ;;  %5143 = vmatpush.msrb.mxu2 %v5884_v37 }
0x13b7   :  { %v4418_v61 = vpop.f32.mrf.mxu0  ;;  %5173 = vmatpush.msra.mxu0 %v5897_v56  ;;  %v4361_v55 = vadd.f32 %v4360_v33, %v9489_v63  ;;  %v4486_v62 = vmax.f32 %v4225_v28, 0.0  ;;  %5090 = vmatpush.msrb.mxu3 %v5851_v51 }
0x13b8   :  { %v4419_v40 = vadd.f32 %v4418_v61, %v9492_v34  ;;  %v4488_v42 = vmax.f32 %v4283_v57, 0.0  ;;  %5120 = vmatpush.msrb.mxu1 %v5864_v10  ;;  %5144 = vmatpush.msrb.mxu2 %v5883_v47 }
0x13b9   :  { %5174 = vmatpush.msra.mxu0 %v5896_v23  ;;  %5091 = vmatpush.msrb.mxu3 %v5850_v26  ;;  %v4443_v60 = vmax.f32 %v4361_v55, 0.0 }
0x13ba   :  { %5121 = vmatpush.msrb.mxu1 %v5863_v43  ;;  %v4445_v18 = vmax.f32 %v4419_v40, 0.0  ;;  %5145 = vmatpush.msrb.mxu2 %v5882_v0 }
0x13bb   :  { %5175 = vmatpush.msra.mxu0 %v5895_v39  ;;  %4995 = vmatmul.f32.gmra.mxu3 %v4486_v62 }
0x13bc   :  { %v4331_v45 = vpop.f32.mrf.mxu3  ;;  %5049 = vmatmul.f32.gmra.mxu2 %v4488_v42  ;;  %5092 = vmatpush.msrb.mxu3 %v5849_v2 }
0x13bd   :  { %v4389_v32 = vpop.f32.mrf.mxu2  ;;  %5122 = vmatpush.msrb.mxu1 %v5862_v27  ;;  %v4332_v48 = vadd.f32 %v4331_v45, %v9529_v12  ;;  %5146 = vmatpush.msrb.mxu2 %v5881_v9  ;;  %v6021_v27 = vld [vmem:[%s9652_s22 + $0x1] ss:$0 sm:$0xff] }
0x13be   :  { %v4390_v4 = vadd.f32 %v4389_v32, %v9532_v14  ;;  %v4363_v49 = vpop.f32.mrf.mxu1  ;;  %5176 = vmatpush.msra.mxu0 %v5894_v50  ;;  %5123 = vmatmul.f32.vlgmr.msrb.gmra.mxu1 %v4443_v60 }
0x13bf   :  { %v4421_v46 = vpop.f32.mrf.mxu0  ;;  %5177 = vmatmul.f32.vlgmr.msra.gmra.mxu0 %v4445_v18  ;;  %v4364_v52 = vadd.f32 %v4363_v49, %v9489_v63  ;;  %5093 = vmatpush.msrb.mxu3 %v5848_v5  ;;  %v4442_v35 = vmax.f32 %v4332_v48, 0.0 }
0x13c0   :  { %v4422_v59 = vadd.f32 %v4421_v46, %v9492_v34  ;;  %5147 = vmatpush.msrb.mxu2 %v5880_v3  ;;  %v4444_v25 = vmax.f32 %v4390_v4, 0.0 }
0x13c1   :  { %5094 = vmatpush.msrb.mxu3 %v5847_v24  ;;  %v4459_v38 = vmax.f32 %v4364_v52, 0.0 }
0x13c2   :  { %5148 = vmatpush.msrb.mxu2 %v5879_v30  ;;  %v4461_v15 = vmax.f32 %v4422_v59, 0.0 }
0x13c3   :  { %5095 = vmatpush.msrb.mxu3 %v5846_v36 }
0x13c4   :  { %v4334_v21 = vpop.f32.mrf.mxu3  ;;  %5149 = vmatpush.msrb.mxu2 %v5878_v19  ;;  %5096 = vmatmul.f32.vlgmr.msrb.gmra.mxu3 %v4442_v35 }
0x13c5   :  { %v4392_v11 = vpop.f32.mrf.mxu2  ;;  %5150 = vmatmul.f32.vlgmr.msrb.gmra.mxu2 %v4444_v25  ;;  %v4335_v22 = vadd.f32 %v4334_v21, %v9529_v12 }
0x13c6   :  { %v4393_v31 = vadd.f32 %v4392_v11, %v9532_v14  ;;  %v4366_v41 = vpop.f32.mrf.mxu1  ;;  %5125 = vmatmul.f32.gmra.mxu1 %v4459_v38 }
0x13c7   :  { %v4424_v58 = vpop.f32.mrf.mxu0  ;;  %5179 = vmatmul.f32.gmra.mxu0 %v4461_v15  ;;  %v4367_v8 = vadd.f32 %v4366_v41, %v9489_v63  ;;  %v4458_v13 = vmax.f32 %v4335_v22, 0.0 }
0x13c8   :  { %v4425_v7 = vadd.f32 %v4424_v58, %v9492_v34  ;;  %v4460_v1 = vmax.f32 %v4393_v31, 0.0 }
0x13c9   :  { %v4475_v53 = vmax.f32 %v4367_v8, 0.0 }
0x13ca   :  { %v4477_v6 = vmax.f32 %v4425_v7, 0.0 }
0x13cc   :  { %v4337_v44 = vpop.f32.mrf.mxu3  ;;  %5098 = vmatmul.f32.gmra.mxu3 %v4458_v13 }
0x13cd   :  { %v4395_v29 = vpop.f32.mrf.mxu2  ;;  %5152 = vmatmul.f32.gmra.mxu2 %v4460_v1  ;;  %v4338_v28 = vadd.f32 %v4337_v44, %v9529_v12 }
0x13ce   :  { %v4396_v17 = vadd.f32 %v4395_v29, %v9532_v14  ;;  %v4369_v37 = vpop.f32.mrf.mxu1  ;;  %5128 = vmatmul.f32.gmra.mxu1 %v4475_v53 }
0x13cf   :  { %v4427_v56 = vpop.f32.mrf.mxu0  ;;  %5182 = vmatmul.f32.gmra.mxu0 %v4477_v6  ;;  %v4370_v57 = vadd.f32 %v4369_v37, %v9489_v63  ;;  %v4474_v51 = vmax.f32 %v4338_v28, 0.0 }
0x13d0   :  { %v4428_v33 = vadd.f32 %v4427_v56, %v9492_v34  ;;  %v4476_v10 = vmax.f32 %v4396_v17, 0.0 }
0x13d1   :  { %v4491_v61 = vmax.f32 %v4370_v57, 0.0 }
0x13d2   :  { %v4493_v47 = vmax.f32 %v4428_v33, 0.0 }
0x13d4   :  { %v4340_v23 = vpop.f32.mrf.mxu3  ;;  %5101 = vmatmul.f32.gmra.mxu3 %v4474_v51 }
0x13d5   :  { %v4398_v55 = vpop.f32.mrf.mxu2  ;;  %5155 = vmatmul.f32.gmra.mxu2 %v4476_v10  ;;  %v4341_v40 = vadd.f32 %v4340_v23, %v9529_v12 }
0x13d6   :  { %v4399_v26 = vadd.f32 %v4398_v55, %v9532_v14  ;;  %v4800_v43 = vpop.f32.mrf.mxu1  ;;  %5130 = vmatmul.f32.gmra.mxu1 %v4491_v61 }
0x13d7   :  { %v4854_v62 = vpop.f32.mrf.mxu0  ;;  %5184 = vmatmul.f32.gmra.mxu0 %v4493_v47  ;;  %v4490_v42 = vmax.f32 %v4341_v40, 0.0 }
0x13d8   :  { %v4492_v63 = vmax.f32 %v4399_v26, 0.0 }
0x13dc   :  { %v4773_v0 = vpop.f32.mrf.mxu3  ;;  %5103 = vmatmul.f32.gmra.mxu3 %v4490_v42 }
0x13dd   :  { %v4827_v34 = vpop.f32.mrf.mxu2  ;;  %5157 = vmatmul.f32.gmra.mxu2 %v4492_v63 }
0x13de   :  { %v4802_v39 = vpop.f32.mrf.mxu1 }
0x13df   :  { %v4856_v2 = vpop.f32.mrf.mxu0 }
0x13e4   :  { %v4775_v60 = vpop.f32.mrf.mxu3 }
0x13e5   :  { %v4776_v12 = vadd.f32 %v6021_v27, %v4775_v60  ;;  %v4829_v14 = vpop.f32.mrf.mxu2 }
0x13e7   :  { %v4803_v18 = vadd.f32 %v4802_v39, %v4776_v12 }
0x13e8   :  { %v4805_v9 = vpop.f32.mrf.mxu1 }
0x13e9   :  { %v4830_v50 = vadd.f32 %v4829_v14, %v4803_v18  ;;  %v4859_v45 = vpop.f32.mrf.mxu0 }
0x13eb   :  { %v4857_v32 = vadd.f32 %v4856_v2, %v4830_v50 }
0x13f0   :  { %v4807_v48 = vpop.f32.mrf.mxu1 }
0x13f1   :  { %v4861_v4 = vpop.f32.mrf.mxu0 }
0x13f4   :  { %v4778_v5 = vpop.f32.mrf.mxu3 }
0x13f5   :  { %v4832_v3 = vpop.f32.mrf.mxu2 }
0x13f8   :  { %v4908_v49 = vpop.f32.mrf.mxu1 }
0x13f9   :  { %v4962_v46 = vpop.f32.mrf.mxu0 }
0x13fc   :  { %v4780_v52 = vpop.f32.mrf.mxu3 }
0x13fd   :  { %v4781_v59 = vadd.f32 %v6021_v27, %v4780_v52  ;;  %v4834_v24 = vpop.f32.mrf.mxu2 }
0x13ff   :  { %v4808_v30 = vadd.f32 %v4807_v48, %v4781_v59 }
0x1400   :  { %v4910_v35 = vpop.f32.mrf.mxu1 }
0x1401   :  { %v4835_v25 = vadd.f32 %v4834_v24, %v4808_v30  ;;  %v4964_v36 = vpop.f32.mrf.mxu0 }
0x1403   :  { %v4862_v19 = vadd.f32 %v4861_v4, %v4835_v25 }
0x1404   :  { %v4881_v38 = vpop.f32.mrf.mxu3 }
0x1405   :  { %v4935_v15 = vpop.f32.mrf.mxu2 }
0x1408   :  { %v4913_v21 = vpop.f32.mrf.mxu1 }
0x1409   :  { %v4967_v11 = vpop.f32.mrf.mxu0 }
0x140c   :  { %v4883_v22 = vpop.f32.mrf.mxu3 }
0x140d   :  { %v4884_v31 = vadd.f32 %v4883_v22, %v4857_v32  ;;  %v4937_v41 = vpop.f32.mrf.mxu2 }
0x140f   :  { %v4911_v58 = vadd.f32 %v4910_v35, %v4884_v31 }
0x1410   :  { %v4915_v8 = vpop.f32.mrf.mxu1 }
0x1411   :  { %v4938_v7 = vadd.f32 %v4937_v41, %v4911_v58  ;;  %v4969_v13 = vpop.f32.mrf.mxu0 }
0x1413   :  { %v4965_v1 = vadd.f32 %v4964_v36, %v4938_v7 }
0x1414   :  { %v4886_v53 = vpop.f32.mrf.mxu3 }
0x1415   :  { %v4940_v6 = vpop.f32.mrf.mxu2 }
0x1418   :  { %v5016_v44 = vpop.f32.mrf.mxu1 }
0x1419   :  { %v5070_v29 = vpop.f32.mrf.mxu0 }
0x141c   :  { %v4888_v28 = vpop.f32.mrf.mxu3 }
0x141d   :  { %v4889_v17 = vadd.f32 %v4888_v28, %v4862_v19  ;;  %v4942_v37 = vpop.f32.mrf.mxu2 }
0x141f   :  { %v4916_v56 = vadd.f32 %v4915_v8, %v4889_v17 }
0x1420   :  { %v5018_v57 = vpop.f32.mrf.mxu1 }
0x1421   :  { %v4943_v33 = vadd.f32 %v4942_v37, %v4916_v56  ;;  %v5072_v51 = vpop.f32.mrf.mxu0 }
0x1423   :  { %v4970_v10 = vadd.f32 %v4969_v13, %v4943_v33 }
0x1424   :  { %v4989_v61 = vpop.f32.mrf.mxu3 }
0x1425   :  { %v5043_v47 = vpop.f32.mrf.mxu2  ;;  %v5257_v61 = vld [vmem:[%s9632_s16 + $0x8] sm:$0xff] }
0x1428   :  { %v5021_v23 = vpop.f32.mrf.mxu1 }
0x1429   :  { %v5075_v55 = vpop.f32.mrf.mxu0 }
0x142a   :  { %v5256_v55 = vld [vmem:[%s9632_s16] sm:$0xff] }
0x142c   :  { %v4991_v40 = vpop.f32.mrf.mxu3 }
0x142d   :  { %v5045_v26 = vpop.f32.mrf.mxu2  ;;  %v4992_v27 = vadd.f32 %v4991_v40, %v4965_v1 }
0x142f   :  { %v5019_v18 = vadd.f32 %v5018_v57, %v4992_v27 }
0x1431   :  { %v5023_v43 = vpop.f32.mrf.mxu1  ;;  %v5046_v50 = vadd.f32 %v5045_v26, %v5019_v18 }
0x1432   :  { %v5077_v62 = vpop.f32.mrf.mxu0 }
0x1433   :  { %v5073_v48 = vadd.f32 %v5072_v51, %v5046_v50  ;;  %v5259_v51 = vld [vmem:[%s9632_s16 + $0x18] sm:$0xff]  ;;  %v6023_v50 = vld [vmem:[%s9631_s15 + $0x1] ss:$0 sm:$0xff]  ;;  %s5296_s15 = sshll.u32 %s9634_s18, 4  ;;  %s5297_s15 = int_to_ptr.hbm [resolvable:$true] %s5296_s15 }
0x1434   :  { %v4994_v42 = vpop.f32.mrf.mxu3  ;;  %5279 = vmatpush.msra.mxu3 %v5259_v51 }
0x1435   :  { %v5048_v63 = vpop.f32.mrf.mxu2 }
0x143b   :  { %v5124_v0 = vpop.f32.mrf.mxu1 }
0x143c   :  { %v5178_v34 = vpop.f32.mrf.mxu0 }
0x143e   :  { %v4996_v39 = vpop.f32.mrf.mxu3 }
0x143f   :  { %v5050_v2 = vpop.f32.mrf.mxu2  ;;  %v4997_v49 = vadd.f32 %v4996_v39, %v4970_v10  ;;  %v5258_v10 = vld [vmem:[%s9632_s16 + $0x10] sm:$0xff] }
0x1440   :  { %5280 = vmatpush.msra.mxu3 %v5258_v10 }
0x1441   :  { %v5024_v59 = vadd.f32 %v5023_v43, %v4997_v49 }
0x1442   :  { %5281 = vmatpush.msra.mxu3 %v5257_v61 }
0x1443   :  { %v5126_v60 = vpop.f32.mrf.mxu1  ;;  %v5051_v36 = vadd.f32 %v5050_v2, %v5024_v59 }
0x1444   :  { %v5180_v12 = vpop.f32.mrf.mxu0  ;;  %5282 = vmatpush.msra.mxu3 %v5256_v55 }
0x1445   :  { %v5078_v38 = vadd.f32 %v5077_v62, %v5051_v36 }
0x1447   :  { %v5097_v14 = vpop.f32.mrf.mxu3 }
0x1448   :  { %v5151_v9 = vpop.f32.mrf.mxu2 }
0x144b   :  { %v5129_v45 = vpop.f32.mrf.mxu1 }
0x144c   :  { %v5183_v32 = vpop.f32.mrf.mxu0 }
0x144f   :  { %v5099_v4 = vpop.f32.mrf.mxu3 }
0x1450   :  { %v5153_v5 = vpop.f32.mrf.mxu2  ;;  %v5100_v3 = vadd.f32 %v5099_v4, %v5073_v48 }
0x1452   :  { %v5127_v46 = vadd.f32 %v5126_v60, %v5100_v3 }
0x1453   :  { %v5131_v11 = vpop.f32.mrf.mxu1 }
0x1454   :  { %v5154_v52 = vadd.f32 %v5153_v5, %v5127_v46  ;;  %v5185_v58 = vpop.f32.mrf.mxu0 }
0x1456   :  { %v5181_v24 = vadd.f32 %v5180_v12, %v5154_v52  ;;  %v6022_v12 = vld [vmem:[%s9630_s14 + $0x1] ss:$0 sm:$0xff]  ;;  %v6024_v52 = vld [vmem:[%s9633_s17] ss:$0 sm:$0xff] }
0x1457   :  { %v5102_v30 = vpop.f32.mrf.mxu3 }
0x1458   :  { %v5156_v35 = vpop.f32.mrf.mxu2  ;;  %v5188_v25 = vadd.f32 %v5181_v24, %v8410_v54 }
0x145a   :  { %v5194_v19 = vsel %vm125_vm1, %v5188_v25, 0.0 }
0x145b   :  { %5195 = vadd.xlane.f32.xlu2 %v5194_v19 }
0x145f   :  { %v5104_v15 = vpop.f32.mrf.mxu3 }
0x1460   :  { %v5105_v21 = vadd.f32 %v5104_v15, %v5078_v38  ;;  %v5158_v31 = vpop.f32.mrf.mxu2 }
0x1462   :  { %v5132_v22 = vadd.f32 %v5131_v11, %v5105_v21 }
0x1464   :  { %v5159_v41 = vadd.f32 %v5158_v31, %v5132_v22 }
0x1466   :  { %v5186_v8 = vadd.f32 %v5185_v58, %v5159_v41 }
0x1468   :  { %v5189_v7 = vadd.f32 %v5186_v8, %v8495_v16 }
0x146a   :  { %v5197_v13 = vsel %vm125_vm1, %v5189_v7, 0.0 }
0x146b   :  { %5198 = vadd.xlane.f32.xlu1 %v5197_v13 }
0x14ce   :  { %v5196_v1 = vpop.xlane.xlu2 %5195 }
0x14cf   :  { %v5200_v54 = vmul.f32 %v5196_v1, %v6653_v20 }
0x14d1   :  { %v5202_v53 = vsub.f32 %v5188_v25, %v5200_v54 }
0x14d3   :  { %v5204_v6 = vmul.f32 %v5202_v53, %v5202_v53 }
0x14d5   :  { %v5206_v44 = vsel %vm125_vm1, %v5204_v6, 0.0 }
0x14d6   :  { %5207 = vadd.xlane.f32.xlu2 %v5206_v44 }
0x14de   :  { %v5199_v29 = vpop.xlane.xlu1 %5198 }
0x14df   :  { %v5201_v28 = vmul.f32 %v5199_v29, %v6653_v20 }
0x14e1   :  { %v5203_v17 = vsub.f32 %v5189_v7, %v5201_v28 }
0x14e3   :  { %v5205_v37 = vmul.f32 %v5203_v17, %v5203_v17 }
0x14e5   :  { %v5209_v56 = vsel %vm125_vm1, %v5205_v37, 0.0 }
0x14e6   :  { %5210 = vadd.xlane.f32.xlu0 %v5209_v56 }
0x1549   :  { %v5208_v16 = vpop.xlane.xlu2 %5207 }
0x154a   :  { %v5212_v57 = vmul.f32 %v5208_v16, %v6653_v20 }
0x154c   :  { %v5214_v33 = vadd.f32 1e-05, %v5212_v57 }
0x154e   :  { %6179 = vrsqrt.f32 %v5214_v33  ;;  %vm5222_vm13 = vweird.f32 %v5214_v33 }
0x1554   :  { %v6180_v47 = vpop.eup %6179 }
0x1555   :  { %v5217_v23 = vmul.f32 %v6180_v47, %v5214_v33  ;;  %vm5223_vm12 = vweird.f32 %v6180_v47 }
0x1556   :  { %vm5224_vm14 = vmor %vm5222_vm13, %vm5223_vm12 }
0x1557   :  { %v5218_v40 = vmul.f32 %v6180_v47, %v5217_v23 }
0x1559   :  { %v5211_v26 = vpop.xlane.xlu0 %5210  ;;  %v5219_v62 = vmul.f32 0.5, %v5218_v40 }
0x155a   :  { %v5213_v43 = vmul.f32 %v5211_v26, %v6653_v20 }
0x155b   :  { %v5220_v63 = vsub.f32 1.5, %v5219_v62 }
0x155c   :  { %v5215_v42 = vadd.f32 1e-05, %v5213_v43 }
0x155d   :  { %v5221_v0 = vmul.f32 %v6180_v47, %v5220_v63 }
0x155e   :  { %6181 = vrsqrt.f32 %v5215_v42  ;;  %vm5232_vm2 = vweird.f32 %v5215_v42 }
0x155f   :  { %v5225_v2 = vsel %vm5224_vm14, %v6180_v47, %v5221_v0 }
0x1560   :  { %v5236_v18 = vmul.f32 %v5225_v2, %v5202_v53 }
0x1562   :  { %v5241_v9 = vmul.f32 %v6022_v12, %v5236_v18 }
0x1564   :  { %v6182_v34 = vpop.eup %6181  ;;  %v5246_v4 = vadd.f32 %v6023_v50, %v5241_v9 }
0x1565   :  { %v5227_v39 = vmul.f32 %v6182_v34, %v5215_v42  ;;  %vm5233_vm0 = vweird.f32 %v6182_v34 }
0x1566   :  { %vm5234_vm15 = vmor %vm5232_vm2, %vm5233_vm0  ;;  %v5249_v3 = vrot.slane %v5246_v4, 7 }
0x1567   :  { %v5228_v27 = vmul.f32 %v6182_v34, %v5227_v39 }
0x1569   :  { %v5229_v60 = vmul.f32 0.5, %v5228_v27 }
0x156b   :  { %v5230_v14 = vsub.f32 1.5, %v5229_v60 }
0x156d   :  { %v5231_v20 = vmul.f32 %v6182_v34, %v5230_v14 }
0x156f   :  { %v5235_v45 = vsel %vm5234_vm15, %v6182_v34, %v5231_v20 }
0x1570   :  { %v5237_v32 = vmul.f32 %v5235_v45, %v5203_v17 }
0x1572   :  { %v5242_v48 = vmul.f32 %v6022_v12, %v5237_v32 }
0x1574   :  { %v5247_v5 = vadd.f32 %v6023_v50, %v5242_v48 }
0x1576   :  { %v5252_v49 = vrot.slane %v5247_v5, 6 }
0x1578   :  { %v5255_v46 = vsel %vm5254_vm3, %v5249_v3, %v5252_v49 }
0x1579   :  { %5913 = vmatmul.msk.f32.vlgmr.msra.gmra.mxu3 %vm125_vm1, %v5255_v46 }
0x15fc   :  { %v5284_v59 = vpop.f32.mrf.mxu3 }
0x15fd   :  { %v5285_v24 = vadd.f32 %v6024_v52, %v5284_v59 }
0x15ff   :  { %5288 = vst.msk [vmem:[#allocation2] sm:$0x3] %vm5287_vm4, %v5285_v24 }
0x1600   :  { %5299 = dma.vmem_to_hbm [thread:$0]  %s5295_s9, 32, %s5297_s15, [#allocation3]  }
0x1601   :  { %6207 = dma.done.wait [#allocation3], 32  }
0x1602   :  { %6208 = vsyncadd [#allocation3], 4294967264 }
0x1603   :  { %5304 = vsyncpa [#allocation3], 1 }

</bundles_post_ra>
